<compile_context>
chip_gen: v6e
topology: v6e:2x2x1
jax: 0.10.0
libtpu: 0.0.40
codegen_flags: <defaults>
</compile_context>

<pallas_src>
import functools
import math

import numpy as np
import jax
import jax.numpy as jnp
from jax.experimental import pallas as pl
from jax.experimental.pallas import tpu as pltpu

# ----------------------------- small synthetic config -----------------------
MODEL_DIM = 32          # model_dim (torch default 256, shrunk for the demo)
NHEAD = 8
HEAD_DIM = MODEL_DIM // NHEAD
N_LEVELS = 2            # in_features = ['p3', 'p4']
DEC_N_POINTS = 4
FFN_DIM = 64            # feedforward_dimension (torch: 1024)
BASE_NUM_PTS = 8        # base_number_control_points
NUM_CTRL_PTS = 16       # number_control_points
MASK_STRIDE = 8
NUM_DEC_LAYERS = int(math.log2(NUM_CTRL_PTS // BASE_NUM_PTS)) + 1   # upsampling

N_OFF = NHEAD * N_LEVELS * DEC_N_POINTS * 2   # 128 — lane-dense offset chunk
N_ATT = NHEAD * N_LEVELS * DEC_N_POINTS       # 64
MXU_DTYPE = jnp.bfloat16                      # bf16 operands, f32 accumulation
LN_EPS = 1e-5

A_SLAB = 256            # kernel A output slab: [tgt1(32) | off(128) | attn(64) | pad(32)]
C_SLAB = 128            # kernel C output slab: [tgt2(32) | ref(2) | pad(94)]


def _layernorm(z, g, b, eps):
    mu = jnp.mean(z, axis=-1, keepdims=True)
    var = jnp.mean(jnp.square(z - mu), axis=-1, keepdims=True)
    return (z - mu) * jax.lax.rsqrt(var + eps) * g + b


def _row_block(M, P):
    """Row-block (multiple of P and of 8) ~<=128 rows; >=2 blocks when possible."""
    unit = (P * 8) // math.gcd(P, 8)       # lcm(P, 8): whole instances, sublane aligned
    if M % unit:
        return M
    n_units = M // unit
    if n_units <= 1:
        return M
    per_blk = min(n_units, max(1, 128 // unit))
    while n_units % per_blk:
        per_blk -= 1
    if per_blk == n_units and n_units % 2 == 0:
        per_blk = n_units // 2             # guarantee >=2 parallel grid steps (megacore)
    return per_blk * unit


def _build_block_mask(row_blk, pts):
    """Block-diagonal instance mask (constant, built with numpy at trace time)."""
    row = np.arange(row_blk)[:, None] // pts
    col = np.arange(row_blk)[None, :] // pts
    return jnp.asarray(np.where(row == col, 0.0, -1e9), jnp.float32)


def _group_sum_matrix():
    """Block-diagonal ones (64,64): grouped-softmax sums via one bf16 MXU matmul."""
    grp = N_ATT // NHEAD
    return jnp.asarray(np.kron(np.eye(NHEAD), np.ones((grp, grp))), MXU_DTYPE)


# ------------------------------- Pallas kernels ------------------------------
def _sa_ca_proj_kernel(tgt_ref, qpos_ref, wqk_ref, bqk_ref, wvo_ref, sab_ref,
                       g1_ref, b1_ref, woa_ref, boa_ref, neg_ref, gmat_ref,
                       out_ref, *, nhead, eps):
    """Fused p2p self-attn block + deformable-attn query projections (one row block)."""
    tgt = tgt_ref[...]                                    # (Mb, D) f32
    qpos = qpos_ref[...]
    Mb, D = tgt.shape
    dh = D // nhead
    scale = 1.0 / math.sqrt(dh)

    x = (tgt + qpos).astype(MXU_DTYPE)                    # q = k = tgt + query_pos
    qk = jnp.dot(x, wqk_ref[...], preferred_element_type=jnp.float32) + bqk_ref[...]
    neg = neg_ref[...]                                    # precomputed instance mask
    tgt_bf = tgt.astype(MXU_DTYPE)

    acc = jnp.zeros((Mb, D), jnp.float32)
    for h in range(nhead):                                # static head loop
        qh = qk[:, h * dh:(h + 1) * dh].astype(MXU_DTYPE)
        kh = qk[:, D + h * dh:D + (h + 1) * dh].astype(MXU_DTYPE)
        # fused per-head V/out projection: K = D matmul (no ctx scratch, no 4-lane stores)
        vo = jnp.dot(tgt_bf, wvo_ref[h], preferred_element_type=jnp.float32)
        s = jax.lax.dot_general(qh, kh, (((1,), (1,)), ((), ())),
                                preferred_element_type=jnp.float32) * scale + neg
        s = s - jnp.max(s, axis=-1, keepdims=True)
        p = jnp.exp(s)
        p = p * pl.reciprocal(jnp.sum(p, axis=-1, keepdims=True), approx=True)
        acc = acc + jnp.dot(p.astype(MXU_DTYPE), vo.astype(MXU_DTYPE),
                            preferred_element_type=jnp.float32)      # K = Mb
    att = acc + sab_ref[...]                              # folded  bv @ Wo + bo
    tgt1 = _layernorm(tgt + att, g1_ref[...], b1_ref[...], eps)

    # ---- deformable cross-attn query projections (offsets + attention weights)
    oa = jnp.dot((tgt1 + qpos).astype(MXU_DTYPE), woa_ref[...],
                 preferred_element_type=jnp.float32) + boa_ref[...]   # (Mb, 192)
    off = oa[:, :N_OFF]
    logits = oa[:, N_OFF:N_OFF + N_ATT]
    m = jnp.max(logits, axis=-1, keepdims=True)           # per-row const (softmax-invariant)
    e = jnp.exp(logits - m)
    gsum = jnp.dot(e.astype(MXU_DTYPE), gmat_ref[...],    # per-group sums, bf16 MXU
                   preferred_element_type=jnp.float32)
    attnw = e * pl.reciprocal(jnp.maximum(gsum, 1e-20), approx=True)

    # lane-dense 256-wide output slab: [tgt1 | offsets | attn | pad]
    out_ref[:, :D] = tgt1
    out_ref[:, D:D + N_OFF] = off
    out_ref[:, D + N_OFF:D + N_OFF + N_ATT] = attnw
    out_ref[:, D + N_OFF + N_ATT:] = jnp.zeros(
        (Mb, out_ref.shape[-1] - (D + N_OFF + N_ATT)), jnp.float32)


def _value_proj_kernel(mem_ref, w_ref, b_ref, o_ref):
    """Batched (over decoder layers) value projection: value_l = mem @ Wv_l + bv_l."""
    o_ref[0] = jnp.dot(mem_ref[...], w_ref[0],
                       preferred_element_type=jnp.float32) + b_ref[0]


def _ca_out_ffn_xy_kernel(tgt_ref, ca_ref, ref_ref,
                          wout_ref, bout_ref, g2_ref, b2_ref,
                          w1_ref, bf1_ref, w2_ref, bf2_ref, g3_ref, b3_ref,
                          xw1_ref, xb1_ref, xw2_ref, xb2_ref, xw3_ref, xb3_ref,
                          out_ref, *, eps):
    """Fused: CA out-proj + LN2 + FFN + LN3 + xy-MLP + reference refinement."""
    tgt = tgt_ref[...]
    Mb, D = tgt.shape
    ca = jnp.dot(ca_ref[...].astype(MXU_DTYPE), wout_ref[...],
                 preferred_element_type=jnp.float32) + bout_ref[...]
    t = _layernorm(tgt + ca, g2_ref[...], b2_ref[...], eps)

    h = jnp.maximum(jnp.dot(t.astype(MXU_DTYPE), w1_ref[...],
                            preferred_element_type=jnp.float32) + bf1_ref[...], 0.0)
    t2 = _layernorm(t + jnp.dot(h.astype(MXU_DTYPE), w2_ref[...],
                                preferred_element_type=jnp.float32) + bf2_ref[...],
                    g3_ref[...], b3_ref[...], eps)

    # xy_embed 3-layer MLP + iterative refinement of the reference polygon
    h1 = jnp.maximum(jnp.dot(t2.astype(MXU_DTYPE), xw1_ref[...],
                             preferred_element_type=jnp.float32) + xb1_ref[...], 0.0)
    h2 = jnp.maximum(jnp.dot(h1.astype(MXU_DTYPE), xw2_ref[...],
                             preferred_element_type=jnp.float32) + xb2_ref[...], 0.0)
    xy = jnp.dot(h2.astype(MXU_DTYPE), xw3_ref[...],
                 preferred_element_type=jnp.float32) + xb3_ref[...]   # (Mb, 2)

    r = jnp.minimum(jnp.maximum(ref_ref[...], 0.0), 1.0)
    inv = jnp.log(jnp.maximum(r, 1e-5)) - jnp.log(jnp.maximum(1.0 - r, 1e-5))
    new_ref = 1.0 / (1.0 + jnp.exp(-(inv + xy)))          # sigmoid

    # lane-dense 128-wide output slab: [tgt2 | ref | pad]
    out_ref[:, :D] = t2
    out_ref[:, D:D + 2] = new_ref
    out_ref[:, D + 2:] = jnp.zeros((Mb, out_ref.shape[-1] - (D + 2)), jnp.float32)


# ------------------------------- kernel wrappers -----------------------------
def _row_spec(shape):
    return pl.BlockSpec(shape, lambda i: (i, 0))


def _cst_spec(shape):
    return pl.BlockSpec(shape, lambda i: (0,) * len(shape))


def sa_ca_proj(tgt, qpos, neg_mask, gmat, lp, row_blk):
    M, D = tgt.shape
    n_blk = M // row_blk
    kernel = functools.partial(_sa_ca_proj_kernel, nhead=NHEAD, eps=LN_EPS)
    out = pl.pallas_call(
        kernel,
        out_shape=jax.ShapeDtypeStruct((M, A_SLAB), jnp.float32),
        grid=(n_blk,),
        in_specs=[_row_spec((row_blk, D)), _row_spec((row_blk, D)),
                  _cst_spec((D, 2 * D)), _cst_spec((1, 2 * D)),
                  _cst_spec((NHEAD, D, D)), _cst_spec((1, D)),
                  _cst_spec((1, D)), _cst_spec((1, D)),
                  _cst_spec((D, N_OFF + N_ATT)), _cst_spec((1, N_OFF + N_ATT)),
                  _cst_spec((row_blk, row_blk)), _cst_spec((N_ATT, N_ATT))],
        out_specs=_row_spec((row_blk, A_SLAB)),
        compiler_params=pltpu.CompilerParams(dimension_semantics=("parallel",)),
    )(tgt, qpos, lp["sa_wqk"], lp["sa_bqk"], lp["sa_wvo"], lp["sa_bias"],
      lp["ln1_g"], lp["ln1_b"], lp["ca_woa"], lp["ca_boa"], neg_mask, gmat)
    return out[:, :D], out[:, D:D + N_OFF], out[:, D + N_OFF:D + N_OFF + N_ATT]


def value_proj_all(mem_bf, wv_all, bv_all):
    BS, D = mem_bf.shape
    L = wv_all.shape[0]
    return pl.pallas_call(
        _value_proj_kernel,
        out_shape=jax.ShapeDtypeStruct((L, BS, D), jnp.float32),
        grid=(L,),
        in_specs=[pl.BlockSpec((BS, D), lambda l: (0, 0)),
                  pl.BlockSpec((1, D, D), lambda l: (l, 0, 0)),
                  pl.BlockSpec((1, 1, D), lambda l: (l, 0, 0))],
        out_specs=pl.BlockSpec((1, BS, D), lambda l: (l, 0, 0)),
        compiler_params=pltpu.CompilerParams(dimension_semantics=("parallel",)),
    )(mem_bf, wv_all, bv_all)


def ca_out_ffn_xy(tgt1, ca, ref2d, lp, xyp, row_blk):
    M, D = tgt1.shape
    F = FFN_DIM
    n_blk = M // row_blk
    kernel = functools.partial(_ca_out_ffn_xy_kernel, eps=LN_EPS)
    out = pl.pallas_call(
        kernel,
        out_shape=jax.ShapeDtypeStruct((M, C_SLAB), jnp.float32),
        grid=(n_blk,),
        in_specs=[_row_spec((row_blk, D)), _row_spec((row_blk, D)), _row_spec((row_blk, 2)),
                  _cst_spec((D, D)), _cst_spec((1, D)),
                  _cst_spec((1, D)), _cst_spec((1, D)),
                  _cst_spec((D, F)), _cst_spec((1, F)),
                  _cst_spec((F, D)), _cst_spec((1, D)),
                  _cst_spec((1, D)), _cst_spec((1, D)),
                  _cst_spec((D, D)), _cst_spec((1, D)),
                  _cst_spec((D, D)), _cst_spec((1, D)),
                  _cst_spec((D, 2)), _cst_spec((1, 2))],
        out_specs=_row_spec((row_blk, C_SLAB)),
        compiler_params=pltpu.CompilerParams(dimension_semantics=("parallel",)),
    )(tgt1, ca, ref2d,
      lp["ca_wout"], lp["ca_bout"], lp["ln2_g"], lp["ln2_b"],
      lp["ffn1_w"], lp["ffn1_b"], lp["ffn2_w"], lp["ffn2_b"],
      lp["ln3_g"], lp["ln3_b"],
      xyp["w1"], xyp["b1"], xyp["w2"], xyp["b2"], xyp["w3"], xyp["b3"])
    return out[:, :D], out[:, D:D + 2]


# ------------------------------- params --------------------------------------
def xavier(key, shape):
    a = math.sqrt(6.0 / (shape[0] + shape[1]))
    return jax.random.uniform(key, shape, jnp.float32, -a, a)


def init_params(key):
    keys = iter(jax.random.split(key, 128))

    def w(shape):
        return xavier(next(keys), shape)

    def b(n):
        return 0.01 * jax.random.normal(next(keys), (n,), jnp.float32)

    params = {
        "level_embed": jax.random.normal(next(keys), (N_LEVELS, MODEL_DIM), jnp.float32),
        "layers": [],
        "xy_embed": [],
    }
    for _ in range(NUM_DEC_LAYERS):
        layer = {
            "sa_wqk": w((MODEL_DIM, 2 * MODEL_DIM)), "sa_bqk": b(2 * MODEL_DIM),
            "sa_wv": w((MODEL_DIM, MODEL_DIM)), "sa_bv": b(MODEL_DIM),
            "sa_wo": w((MODEL_DIM, MODEL_DIM)), "sa_bo": b(MODEL_DIM),
            "ln1_g": jnp.ones((MODEL_DIM,), jnp.float32),
            "ln1_b": jnp.zeros((MODEL_DIM,), jnp.float32),
            "ca_woa": w((MODEL_DIM, N_OFF + N_ATT)), "ca_boa": b(N_OFF + N_ATT),
            "ca_wv": w((MODEL_DIM, MODEL_DIM)), "ca_bv": b(MODEL_DIM),
            "ca_wout": w((MODEL_DIM, MODEL_DIM)), "ca_bout": b(MODEL_DIM),
            "ln2_g": jnp.ones((MODEL_DIM,), jnp.float32),
            "ln2_b": jnp.zeros((MODEL_DIM,), jnp.float32),
            "ffn1_w": w((MODEL_DIM, FFN_DIM)), "ffn1_b": b(FFN_DIM),
            "ffn2_w": w((FFN_DIM, MODEL_DIM)), "ffn2_b": b(MODEL_DIM),
            "ln3_g": jnp.ones((MODEL_DIM,), jnp.float32),
            "ln3_b": jnp.zeros((MODEL_DIM,), jnp.float32),
        }
        params["layers"].append(layer)
        # NOTE: torch zero-inits the last xy_embed layer; small nonzero values
        # are used here so the synthetic kernel exercises the full compute.
        xy = {"w1": w((MODEL_DIM, MODEL_DIM)),
              "b1": jnp.zeros((MODEL_DIM,), jnp.float32),
              "w2": w((MODEL_DIM, MODEL_DIM)),
              "b2": jnp.zeros((MODEL_DIM,), jnp.float32),
              "w3": 0.01 * jax.random.normal(next(keys), (MODEL_DIM, 2), jnp.float32),
              "b3": jnp.zeros((2,), jnp.float32)}
        params["xy_embed"].append(xy)
    return params


def prepare_params(raw):
    """One-time kernel-ready params: bf16 weights, fused per-head Wv·Wo, stacked Wv."""
    D, dh = MODEL_DIM, HEAD_DIM
    out = {"level_embed": raw["level_embed"], "layers": [], "xy_embed": []}
    wv_all, bv_all = [], []
    for lp, xy in zip(raw["layers"], raw["xy_embed"]):
        wvo = jnp.stack(
            [lp["sa_wv"][:, h * dh:(h + 1) * dh] @ lp["sa_wo"][h * dh:(h + 1) * dh, :]
             for h in range(NHEAD)], axis=0)
        sa_bias = (lp["sa_bv"] @ lp["sa_wo"] + lp["sa_bo"]).reshape(1, D)
        out["layers"].append({
            "sa_wqk": lp["sa_wqk"].astype(MXU_DTYPE),
            "sa_bqk": lp["sa_bqk"].reshape(1, -1),
            "sa_wvo": wvo.astype(MXU_DTYPE),
            "sa_bias": sa_bias,
            "ln1_g": lp["ln1_g"].reshape(1, -1), "ln1_b": lp["ln1_b"].reshape(1, -1),
            "ca_woa": lp["ca_woa"].astype(MXU_DTYPE),
            "ca_boa": lp["ca_boa"].reshape(1, -1),
            "ca_wout": lp["ca_wout"].astype(MXU_DTYPE),
            "ca_bout": lp["ca_bout"].reshape(1, -1),
            "ln2_g": lp["ln2_g"].reshape(1, -1), "ln2_b": lp["ln2_b"].reshape(1, -1),
            "ffn1_w": lp["ffn1_w"].astype(MXU_DTYPE),
            "ffn1_b": lp["ffn1_b"].reshape(1, -1),
            "ffn2_w": lp["ffn2_w"].astype(MXU_DTYPE),
            "ffn2_b": lp["ffn2_b"].reshape(1, -1),
            "ln3_g": lp["ln3_g"].reshape(1, -1), "ln3_b": lp["ln3_b"].reshape(1, -1),
        })
        out["xy_embed"].append({
            "w1": xy["w1"].astype(MXU_DTYPE), "b1": xy["b1"].reshape(1, -1),
            "w2": xy["w2"].astype(MXU_DTYPE), "b2": xy["b2"].reshape(1, -1),
            "w3": xy["w3"].astype(MXU_DTYPE), "b3": xy["b3"].reshape(1, -1),
        })
        wv_all.append(lp["ca_wv"].astype(MXU_DTYPE))
        bv_all.append(lp["ca_bv"].reshape(1, -1))
    out["ca_wv_all"] = jnp.stack(wv_all, axis=0)     # (L, D, D) bf16
    out["ca_bv_all"] = jnp.stack(bv_all, axis=0)     # (L, 1, D) f32
    return out


# ------------------------------- JAX glue ------------------------------------
def position_embedding_sine(B, H, W, num_pos_feats, temperature=10000.0):
    y_embed = jnp.cumsum(jnp.ones((B, H, W), jnp.float32), axis=1)
    x_embed = jnp.cumsum(jnp.ones((B, H, W), jnp.float32), axis=2)
    eps = 1e-6
    scale = 2.0 * math.pi
    y_embed = y_embed / (y_embed[:, -1:, :] + eps) * scale
    x_embed = x_embed / (x_embed[:, :, -1:] + eps) * scale
    dim_t = jnp.arange(num_pos_feats, dtype=jnp.float32)
    dim_t = temperature ** (2.0 * jnp.floor(dim_t / 2.0) / num_pos_feats)
    pos_x = x_embed[..., None] / dim_t
    pos_y = y_embed[..., None] / dim_t
    pos_x = jnp.stack([jnp.sin(pos_x[..., 0::2]), jnp.cos(pos_x[..., 1::2])],
                      axis=4).reshape(B, H, W, -1)
    pos_y = jnp.stack([jnp.sin(pos_y[..., 0::2]), jnp.cos(pos_y[..., 1::2])],
                      axis=4).reshape(B, H, W, -1)
    return jnp.concatenate([pos_y, pos_x], axis=3)


def point_encoding(d_model, max_len):
    position = jnp.arange(max_len, dtype=jnp.float32)[:, None]
    div_term = jnp.exp(jnp.arange(0, d_model, 2, dtype=jnp.float32)
                       * (-math.log(10000.0) / d_model))
    pe = jnp.zeros((max_len, d_model), jnp.float32)
    pe = pe.at[:, 0::2].set(jnp.sin(position * div_term))
    pe = pe.at[:, 1::2].set(jnp.cos(position * div_term))
    return pe


def sample_ellipse(cx, cy, a, b, count):
    theta = jnp.arange(count, dtype=jnp.float32) * (2.0 * math.pi / count)
    x = cx[..., None] + a[..., None] * jnp.cos(theta)
    y = cy[..., None] + b[..., None] * jnp.sin(theta)
    return jnp.stack([x, y], axis=-1)  # (B, I, count, 2)


def _gather_heads(vflat, idx):
    # vflat: (B, S, H, Dh), idx: (B, Lq, H, K) -> (B, Lq, H, K, Dh)
    def per_head(v_sd, i_lk):
        return v_sd[i_lk]
    per_img = jax.vmap(per_head, in_axes=(1, 1), out_axes=1)
    return jax.vmap(per_img, in_axes=(0, 0), out_axes=0)(vflat, idx)


def _bilinear_gather(v_lvl, Hs, Ws, x, y):
    # TODO(synk): move this data-dependent gather into a Pallas kernel (manual
    # DMA gather / scalar-prefetched indices); here the 4 corner gathers are at
    # least fused into a single XLA gather per level.
    x0 = jnp.floor(x)
    y0 = jnp.floor(y)
    cx = jnp.stack([x0, x0 + 1.0, x0, x0 + 1.0], axis=-1)          # (B,Lq,H,K,4)
    cy = jnp.stack([y0, y0, y0 + 1.0, y0 + 1.0], axis=-1)
    wx = 1.0 - jnp.abs(x[..., None] - cx)
    wy = 1.0 - jnp.abs(y[..., None] - cy)
    valid = ((cx >= 0) & (cx <= Ws - 1) & (cy >= 0) & (cy <= Hs - 1)).astype(jnp.float32)
    xi = jnp.clip(cx, 0, Ws - 1).astype(jnp.int32)
    yi = jnp.clip(cy, 0, Hs - 1).astype(jnp.int32)
    idx = yi * Ws + xi                                             # (B,Lq,H,K,4)
    B, Lq, H, K, _ = idx.shape
    g = _gather_heads(v_lvl, idx.reshape(B, Lq, H, K * 4))         # one gather
    g = g.reshape(B, Lq, H, K, 4, -1)
    w = (wx * wy * valid)[..., None]
    return jnp.sum(g * w, axis=4)                                  # (B,Lq,H,K,Dh)


def deform_sample(value, offsets, attn, reference_points, spatial_shapes,
                  level_start_index):
    """MSDeformAttn sampling + weighted aggregation (projections run in Pallas)."""
    B, Lq = attn.shape[:2]
    normalizer = jnp.array([[w, h] for (h, w) in spatial_shapes], jnp.float32)
    loc = reference_points[:, :, None, :, None, :] + \
        offsets / normalizer[None, None, None, :, None, :]
    out = jnp.zeros((B, Lq, NHEAD, HEAD_DIM), jnp.float32)
    for lvl, (Hs, Ws) in enumerate(spatial_shapes):
        start = level_start_index[lvl]
        v_lvl = value[:, start:start + Hs * Ws]
        x = loc[:, :, :, lvl, :, 0] * Ws - 0.5          # grid_sample align_corners=False
        y = loc[:, :, :, lvl, :, 1] * Hs - 0.5
        sampled = _bilinear_gather(v_lvl, Hs, Ws, x, y)
        out = out + jnp.sum(sampled * attn[:, :, :, lvl, :, None], axis=3)
    return out.reshape(B, Lq, NHEAD * HEAD_DIM)


def upsample_points(x):
    """Cyclic midpoint upsampling along the control-point axis (P -> 2P)."""
    nxt = jnp.roll(x, -1, axis=-2)
    mid = 0.5 * (x + nxt)
    stacked = jnp.stack([x, mid], axis=-2)
    shp = x.shape
    return stacked.reshape(shp[:-2] + (shp[-2] * 2, shp[-1]))


def decoder_layer_forward(tgt, qpos, ref, value, spatial_shapes, level_start_index,
                          lp, xyp, neg_mask, gmat):
    B, I, P, D = tgt.shape
    M = B * I * P
    Lq = I * P
    row_blk = neg_mask.shape[0]

    # ---- Kernel A: self-attn block + deformable query projections
    tgt1, offsets, attn = sa_ca_proj(tgt.reshape(M, D), qpos.reshape(M, D),
                                     neg_mask, gmat, lp, row_blk)

    # ---- data-dependent bilinear sampling (JAX glue)
    off6 = offsets.reshape(B, Lq, NHEAD, N_LEVELS, DEC_N_POINTS, 2)
    attn5 = attn.reshape(B, Lq, NHEAD, N_LEVELS, DEC_N_POINTS)
    refL = jnp.broadcast_to(ref.reshape(B, Lq, 1, 2), (B, Lq, N_LEVELS, 2))  # valid_ratios == 1
    ca = deform_sample(value, off6, attn5, refL, spatial_shapes, level_start_index)

    # ---- Kernel C: CA out-proj + LN2 + FFN + LN3 + xy-MLP + refinement
    tgt2, new_ref = ca_out_ffn_xy(tgt1, ca.reshape(M, D), ref.reshape(M, 2),
                                  lp, xyp, row_blk)
    return tgt2.reshape(B, I, P, D), new_ref.reshape(B, I, P, 2)


def decoder_forward(tgt, ref, value_all, spatial_shapes, level_start_index,
                    point_emb, params):
    B, I, _, D = tgt.shape
    gmat = _group_sum_matrix()
    outputs_coords = []
    for it in range(NUM_DEC_LAYERS):
        n_pts = tgt.shape[2]
        idxs = jnp.arange(n_pts) * (NUM_CTRL_PTS // n_pts)
        qpos = jnp.broadcast_to(point_emb[idxs, :MODEL_DIM][None, None],
                                (B, I, n_pts, D))
        M = B * I * n_pts
        row_blk = _row_block(M, n_pts)
        neg_mask = _build_block_mask(row_blk, n_pts)
        tgt, new_ref = decoder_layer_forward(tgt, qpos, ref, value_all[it],
                                             spatial_shapes, level_start_index,
                                             params["layers"][it],
                                             params["xy_embed"][it],
                                             neg_mask, gmat)
        # output head xy_embed[it](hs[it]) is identical to the in-loop refinement,
        # so outputs_coords[it] == new_ref (same weights, same input).
        outputs_coords.append(new_ref)
        if it < NUM_DEC_LAYERS - 1:
            # TODO(synk): UpsamplingDecoderLayer internals approximated with
            # cyclic midpoint interpolation of queries and reference points.
            tgt = upsample_points(tgt)
            ref = upsample_points(new_ref)
        else:
            ref = new_ref
    return outputs_coords


@functools.partial(jax.jit, static_argnames=("number_instances",))
def _polygon_head_jit(p3, p4, boxes, params, *, number_instances):
    feats = {"p3": p3, "p4": p4}
    in_features = ["p3", "p4"]
    B = p3.shape[0]
    mask_wh = jnp.asarray(p3.shape[-2:][::-1], jnp.float32)    # (W, H)
    pad_img_wh = mask_wh * MASK_STRIDE

    # TODO(synk): MultiROIPooler prepool over the full-image box is skipped
    # (ROIAlign of the whole image back to the same resolution ~= identity here).

    src_flat, pos_flat, spatial_shapes, level_start_index = [], [], [], []
    start = 0
    for lvl, name in enumerate(in_features):
        x = feats[name]                                        # NCHW
        _, C, H, W = x.shape
        spatial_shapes.append((H, W))
        level_start_index.append(start)
        start += H * W
        src = jnp.transpose(x, (0, 2, 3, 1)).reshape(B, H * W, C)
        pos = position_embedding_sine(B, H, W, MODEL_DIM // 2).reshape(B, H * W, MODEL_DIM)
        pos = pos + params["level_embed"][lvl][None, None, :]
        src_flat.append(src)
        pos_flat.append(pos)
    src_flat = jnp.concatenate(src_flat, axis=1)               # (B, S, D)
    pos_flat = jnp.concatenate(pos_flat, axis=1)
    S = src_flat.shape[1]

    # memory = src + lvl_pos_embed, pre-cast to bf16 once; value projections for
    # ALL decoder layers done in ONE pallas_call before the loop (grid over L).
    mem_bf = (src_flat + pos_flat).astype(MXU_DTYPE).reshape(B * S, MODEL_DIM)
    value_all = value_proj_all(mem_bf, params["ca_wv_all"], params["ca_bv_all"])
    value_all = value_all.reshape(NUM_DEC_LAYERS, B, S, NHEAD, HEAD_DIM)

    point_emb = point_encoding(2 * MODEL_DIM, NUM_CTRL_PTS)
    start_idxs = jnp.arange(BASE_NUM_PTS) * (NUM_CTRL_PTS // BASE_NUM_PTS)
    tgt0 = point_emb[start_idxs, MODEL_DIM:]

    max_inst = max(number_instances)
    tgt = jnp.broadcast_to(tgt0[None, None], (B, max_inst, BASE_NUM_PTS, MODEL_DIM))

    # ellipse reference init (ref_init='ellipse'), then map into image space
    ones = jnp.ones((B, max_inst), jnp.float32)
    ref = sample_ellipse(0.5 * ones, 0.5 * ones, 0.49 * ones, 0.49 * ones, BASE_NUM_PTS)
    box_xy = boxes[..., :2][:, :, None, :]
    box_wh = (boxes[..., 2:] - boxes[..., :2])[:, :, None, :]
    ref = (ref * box_wh + box_xy) / pad_img_wh                 # predict_in_box_space=False

    outputs_coords = decoder_forward(tgt, ref, value_all, spatial_shapes,
                                     level_start_index, point_emb, params)

    # inference path (idx_output=-1): pred_polys in padded-image pixel coords
    coord = outputs_coords[-1]                                 # (B, I, NUM_CTRL_PTS, 2)
    coord = jnp.concatenate([coord[j, :number_instances[j]] for j in range(B)], axis=0)
    return coord * pad_img_wh


def polygon_head_forward(feats, instances, params):
    number_instances = tuple(int(inst["boxes"].shape[0]) for inst in instances)
    boxes = jnp.stack([inst["boxes"] for inst in instances], axis=0)   # (B, I, 4)
    return _polygon_head_jit(feats["p3"], feats["p4"], boxes, params,
                             number_instances=number_instances)


# ----------------------------------- main ------------------------------------
if __name__ == "__main__":
    key = jax.random.PRNGKey(0)
    k1, k2, k3 = jax.random.split(key, 3)
    B = 2
    feats = {
        "p3": jax.random.normal(k1, (B, MODEL_DIM, 16, 16), jnp.float32),
        "p4": jax.random.normal(k2, (B, MODEL_DIM, 8, 8), jnp.float32),
    }
    instances = [
        {"boxes": jnp.array([[8., 8., 72., 72.], [40., 16., 120., 96.]], jnp.float32),
         "image_size": (128, 128)},
        {"boxes": jnp.array([[16., 24., 96., 112.], [4., 4., 60., 60.]], jnp.float32),
         "image_size": (128, 128)},
    ]
    params = prepare_params(init_params(k3))

    pred_polys = polygon_head_forward(feats, instances, params)
    pred_polys = jax.block_until_ready(pred_polys)

    assert pred_polys.shape == (4, NUM_CTRL_PTS, 2), pred_polys.shape
    assert bool(jnp.all(jnp.isfinite(pred_polys)))
    print("KERNEL_OK")
</pallas_src>

<mosaic_0001>
module attributes {stable_mosaic.version = 11 : i64} {
  func.func @_sa_ca_proj_kernel(%arg0: i32, %arg1: memref<16x32xf32, #tpu.memory_space<vmem>>, %arg2: memref<16x32xf32, #tpu.memory_space<vmem>>, %arg3: memref<32x64xbf16, #tpu.memory_space<vmem>>, %arg4: memref<1x64xf32, #tpu.memory_space<vmem>>, %arg5: memref<8x32x32xbf16, #tpu.memory_space<vmem>>, %arg6: memref<1x32xf32, #tpu.memory_space<vmem>>, %arg7: memref<1x32xf32, #tpu.memory_space<vmem>>, %arg8: memref<1x32xf32, #tpu.memory_space<vmem>>, %arg9: memref<32x192xbf16, #tpu.memory_space<vmem>>, %arg10: memref<1x192xf32, #tpu.memory_space<vmem>>, %arg11: memref<16x16xf32, #tpu.memory_space<vmem>>, %arg12: memref<64x64xbf16, #tpu.memory_space<vmem>>, %arg13: memref<16x256xf32, #tpu.memory_space<vmem>>) attributes {dimension_semantics = [#tpu.dimension_semantics<parallel>], iteration_bounds = array<i64: 2>, scalar_prefetch = 0 : i64, scratch_operands = 0 : i64, tpu.core_type = #tpu.core_type<tc>, window_params = [{transform_indices = @transform_0, window_bounds = array<i64: 16, 32>}, {transform_indices = @transform_1, window_bounds = array<i64: 16, 32>}, {pipeline_mode = #tpu.pipeline_mode<synchronous>, transform_indices = @transform_2, window_bounds = array<i64: 32, 64>}, {pipeline_mode = #tpu.pipeline_mode<synchronous>, transform_indices = @transform_3, window_bounds = array<i64: 1, 64>}, {pipeline_mode = #tpu.pipeline_mode<synchronous>, transform_indices = @transform_4, window_bounds = array<i64: 8, 32, 32>}, {pipeline_mode = #tpu.pipeline_mode<synchronous>, transform_indices = @transform_5, window_bounds = array<i64: 1, 32>}, {pipeline_mode = #tpu.pipeline_mode<synchronous>, transform_indices = @transform_6, window_bounds = array<i64: 1, 32>}, {pipeline_mode = #tpu.pipeline_mode<synchronous>, transform_indices = @transform_7, window_bounds = array<i64: 1, 32>}, {pipeline_mode = #tpu.pipeline_mode<synchronous>, transform_indices = @transform_8, window_bounds = array<i64: 32, 192>}, {pipeline_mode = #tpu.pipeline_mode<synchronous>, transform_indices = @transform_9, window_bounds = array<i64: 1, 192>}, {pipeline_mode = #tpu.pipeline_mode<synchronous>, transform_indices = @transform_10, window_bounds = array<i64: 16, 16>}, {pipeline_mode = #tpu.pipeline_mode<synchronous>, transform_indices = @transform_11, window_bounds = array<i64: 64, 64>}, {transform_indices = @transform_12, window_bounds = array<i64: 16, 256>}]} {
    %c0 = arith.constant 0 : index
    %c0_0 = arith.constant 0 : index
    %0 = vector.load %arg1[%c0, %c0_0] : memref<16x32xf32, #tpu.memory_space<vmem>>, vector<16x32xf32>
    %c0_1 = arith.constant 0 : index
    %c0_2 = arith.constant 0 : index
    %1 = vector.load %arg2[%c0_1, %c0_2] : memref<16x32xf32, #tpu.memory_space<vmem>>, vector<16x32xf32>
    %2 = arith.addf %0, %1 : vector<16x32xf32>
    %3 = arith.truncf %2 : vector<16x32xf32> to vector<16x32xbf16>
    %c0_3 = arith.constant 0 : index
    %c0_4 = arith.constant 0 : index
    %4 = vector.load %arg3[%c0_3, %c0_4] : memref<32x64xbf16, #tpu.memory_space<vmem>>, vector<32x64xbf16>
    %cst = arith.constant dense<0.000000e+00> : vector<16x64xf32>
    %5 = tpu.matmul %3, %4, %cst {dimension_numbers = #tpu.dot_dimension_numbers<[1], [0], [0], [1], [0, 0, 1, 1], [], []>} : vector<16x32xbf16>, vector<32x64xbf16>, vector<16x64xf32> -> vector<16x64xf32>
    %c0_5 = arith.constant 0 : index
    %c0_6 = arith.constant 0 : index
    %6 = vector.load %arg4[%c0_5, %c0_6] : memref<1x64xf32, #tpu.memory_space<vmem>>, vector<1x64xf32>
    %7 = vector.broadcast %6 : vector<1x64xf32> to vector<16x64xf32>
    %8 = arith.addf %5, %7 : vector<16x64xf32>
    %c0_7 = arith.constant 0 : index
    %c0_8 = arith.constant 0 : index
    %9 = vector.load %arg11[%c0_7, %c0_8] : memref<16x16xf32, #tpu.memory_space<vmem>>, vector<16x16xf32>
    %10 = arith.truncf %0 : vector<16x32xf32> to vector<16x32xbf16>
    %cst_9 = arith.constant 0.000000e+00 : f32
    %11 = vector.broadcast %cst_9 : f32 to vector<16x32xf32>
    %12 = vector.extract_strided_slice %8 {offsets = [0, 0], sizes = [16, 4], strides = [1, 1]} : vector<16x64xf32> to vector<16x4xf32>
    %13 = arith.truncf %12 : vector<16x4xf32> to vector<16x4xbf16>
    %14 = vector.extract_strided_slice %8 {offsets = [0, 32], sizes = [16, 4], strides = [1, 1]} : vector<16x64xf32> to vector<16x4xf32>
    %15 = arith.truncf %14 : vector<16x4xf32> to vector<16x4xbf16>
    %c0_10 = arith.constant 0 : index
    %c0_11 = arith.constant 0 : index
    %c0_12 = arith.constant 0 : index
    %16 = vector.load %arg5[%c0_10, %c0_11, %c0_12] : memref<8x32x32xbf16, #tpu.memory_space<vmem>>, vector<1x32x32xbf16>
    %17 = vector.shape_cast %16 : vector<1x32x32xbf16> to vector<32x32xbf16>
    %cst_13 = arith.constant dense<0.000000e+00> : vector<16x32xf32>
    %18 = tpu.matmul %10, %17, %cst_13 {dimension_numbers = #tpu.dot_dimension_numbers<[1], [0], [0], [1], [0, 0, 1, 1], [], []>} : vector<16x32xbf16>, vector<32x32xbf16>, vector<16x32xf32> -> vector<16x32xf32>
    %cst_14 = arith.constant dense<0.000000e+00> : vector<16x16xf32>
    %19 = tpu.matmul %13, %15, %cst_14 {dimension_numbers = #tpu.dot_dimension_numbers<[1], [1], [0], [0], [0, 0, 1, 0], [], []>} : vector<16x4xbf16>, vector<16x4xbf16>, vector<16x16xf32> -> vector<16x16xf32>
    %cst_15 = arith.constant 5.000000e-01 : f32
    %20 = vector.broadcast %cst_15 : f32 to vector<16x16xf32>
    %21 = arith.mulf %19, %20 : vector<16x16xf32>
    %22 = arith.addf %21, %9 : vector<16x16xf32>
    %cst_16 = arith.constant dense<0xFF800000> : vector<16xf32>
    %23 = vector.multi_reduction <maximumf>, %22, %cst_16 [1] : vector<16x16xf32> to vector<16xf32>
    %24 = vector.shape_cast %23 : vector<16xf32> to vector<16x1xf32>
    %25 = vector.broadcast %24 : vector<16x1xf32> to vector<16x16xf32>
    %26 = arith.subf %22, %25 : vector<16x16xf32>
    %27 = math.exp %26 : vector<16x16xf32>
    %cst_17 = arith.constant dense<0.000000e+00> : vector<16xf32>
    %28 = vector.multi_reduction <add>, %27, %cst_17 [1] : vector<16x16xf32> to vector<16xf32>
    %29 = vector.shape_cast %28 : vector<16xf32> to vector<16x1xf32>
    %30 = tpu.reciprocal %29 {approx = true} : vector<16x1xf32> -> vector<16x1xf32>
    %31 = vector.broadcast %30 : vector<16x1xf32> to vector<16x16xf32>
    %32 = arith.mulf %27, %31 : vector<16x16xf32>
    %33 = arith.truncf %32 : vector<16x16xf32> to vector<16x16xbf16>
    %34 = arith.truncf %18 : vector<16x32xf32> to vector<16x32xbf16>
    %cst_18 = arith.constant dense<0.000000e+00> : vector<16x32xf32>
    %35 = tpu.matmul %33, %34, %cst_18 {dimension_numbers = #tpu.dot_dimension_numbers<[1], [0], [0], [1], [0, 0, 1, 1], [], []>} : vector<16x16xbf16>, vector<16x32xbf16>, vector<16x32xf32> -> vector<16x32xf32>
    %36 = arith.addf %11, %35 : vector<16x32xf32>
    %37 = vector.extract_strided_slice %8 {offsets = [0, 4], sizes = [16, 4], strides = [1, 1]} : vector<16x64xf32> to vector<16x4xf32>
    %38 = arith.truncf %37 : vector<16x4xf32> to vector<16x4xbf16>
    %39 = vector.extract_strided_slice %8 {offsets = [0, 36], sizes = [16, 4], strides = [1, 1]} : vector<16x64xf32> to vector<16x4xf32>
    %40 = arith.truncf %39 : vector<16x4xf32> to vector<16x4xbf16>
    %c1 = arith.constant 1 : index
    %c0_19 = arith.constant 0 : index
    %c0_20 = arith.constant 0 : index
    %41 = vector.load %arg5[%c1, %c0_19, %c0_20] : memref<8x32x32xbf16, #tpu.memory_space<vmem>>, vector<1x32x32xbf16>
    %42 = vector.shape_cast %41 : vector<1x32x32xbf16> to vector<32x32xbf16>
    %cst_21 = arith.constant dense<0.000000e+00> : vector<16x32xf32>
    %43 = tpu.matmul %10, %42, %cst_21 {dimension_numbers = #tpu.dot_dimension_numbers<[1], [0], [0], [1], [0, 0, 1, 1], [], []>} : vector<16x32xbf16>, vector<32x32xbf16>, vector<16x32xf32> -> vector<16x32xf32>
    %cst_22 = arith.constant dense<0.000000e+00> : vector<16x16xf32>
    %44 = tpu.matmul %38, %40, %cst_22 {dimension_numbers = #tpu.dot_dimension_numbers<[1], [1], [0], [0], [0, 0, 1, 0], [], []>} : vector<16x4xbf16>, vector<16x4xbf16>, vector<16x16xf32> -> vector<16x16xf32>
    %cst_23 = arith.constant 5.000000e-01 : f32
    %45 = vector.broadcast %cst_23 : f32 to vector<16x16xf32>
    %46 = arith.mulf %44, %45 : vector<16x16xf32>
    %47 = arith.addf %46, %9 : vector<16x16xf32>
    %cst_24 = arith.constant dense<0xFF800000> : vector<16xf32>
    %48 = vector.multi_reduction <maximumf>, %47, %cst_24 [1] : vector<16x16xf32> to vector<16xf32>
    %49 = vector.shape_cast %48 : vector<16xf32> to vector<16x1xf32>
    %50 = vector.broadcast %49 : vector<16x1xf32> to vector<16x16xf32>
    %51 = arith.subf %47, %50 : vector<16x16xf32>
    %52 = math.exp %51 : vector<16x16xf32>
    %cst_25 = arith.constant dense<0.000000e+00> : vector<16xf32>
    %53 = vector.multi_reduction <add>, %52, %cst_25 [1] : vector<16x16xf32> to vector<16xf32>
    %54 = vector.shape_cast %53 : vector<16xf32> to vector<16x1xf32>
    %55 = tpu.reciprocal %54 {approx = true} : vector<16x1xf32> -> vector<16x1xf32>
    %56 = vector.broadcast %55 : vector<16x1xf32> to vector<16x16xf32>
    %57 = arith.mulf %52, %56 : vector<16x16xf32>
    %58 = arith.truncf %57 : vector<16x16xf32> to vector<16x16xbf16>
    %59 = arith.truncf %43 : vector<16x32xf32> to vector<16x32xbf16>
    %cst_26 = arith.constant dense<0.000000e+00> : vector<16x32xf32>
    %60 = tpu.matmul %58, %59, %cst_26 {dimension_numbers = #tpu.dot_dimension_numbers<[1], [0], [0], [1], [0, 0, 1, 1], [], []>} : vector<16x16xbf16>, vector<16x32xbf16>, vector<16x32xf32> -> vector<16x32xf32>
    %61 = arith.addf %36, %60 : vector<16x32xf32>
    %62 = vector.extract_strided_slice %8 {offsets = [0, 8], sizes = [16, 4], strides = [1, 1]} : vector<16x64xf32> to vector<16x4xf32>
    %63 = arith.truncf %62 : vector<16x4xf32> to vector<16x4xbf16>
    %64 = vector.extract_strided_slice %8 {offsets = [0, 40], sizes = [16, 4], strides = [1, 1]} : vector<16x64xf32> to vector<16x4xf32>
    %65 = arith.truncf %64 : vector<16x4xf32> to vector<16x4xbf16>
    %c2 = arith.constant 2 : index
    %c0_27 = arith.constant 0 : index
    %c0_28 = arith.constant 0 : index
    %66 = vector.load %arg5[%c2, %c0_27, %c0_28] : memref<8x32x32xbf16, #tpu.memory_space<vmem>>, vector<1x32x32xbf16>
    %67 = vector.shape_cast %66 : vector<1x32x32xbf16> to vector<32x32xbf16>
    %cst_29 = arith.constant dense<0.000000e+00> : vector<16x32xf32>
    %68 = tpu.matmul %10, %67, %cst_29 {dimension_numbers = #tpu.dot_dimension_numbers<[1], [0], [0], [1], [0, 0, 1, 1], [], []>} : vector<16x32xbf16>, vector<32x32xbf16>, vector<16x32xf32> -> vector<16x32xf32>
    %cst_30 = arith.constant dense<0.000000e+00> : vector<16x16xf32>
    %69 = tpu.matmul %63, %65, %cst_30 {dimension_numbers = #tpu.dot_dimension_numbers<[1], [1], [0], [0], [0, 0, 1, 0], [], []>} : vector<16x4xbf16>, vector<16x4xbf16>, vector<16x16xf32> -> vector<16x16xf32>
    %cst_31 = arith.constant 5.000000e-01 : f32
    %70 = vector.broadcast %cst_31 : f32 to vector<16x16xf32>
    %71 = arith.mulf %69, %70 : vector<16x16xf32>
    %72 = arith.addf %71, %9 : vector<16x16xf32>
    %cst_32 = arith.constant dense<0xFF800000> : vector<16xf32>
    %73 = vector.multi_reduction <maximumf>, %72, %cst_32 [1] : vector<16x16xf32> to vector<16xf32>
    %74 = vector.shape_cast %73 : vector<16xf32> to vector<16x1xf32>
    %75 = vector.broadcast %74 : vector<16x1xf32> to vector<16x16xf32>
    %76 = arith.subf %72, %75 : vector<16x16xf32>
    %77 = math.exp %76 : vector<16x16xf32>
    %cst_33 = arith.constant dense<0.000000e+00> : vector<16xf32>
    %78 = vector.multi_reduction <add>, %77, %cst_33 [1] : vector<16x16xf32> to vector<16xf32>
    %79 = vector.shape_cast %78 : vector<16xf32> to vector<16x1xf32>
    %80 = tpu.reciprocal %79 {approx = true} : vector<16x1xf32> -> vector<16x1xf32>
    %81 = vector.broadcast %80 : vector<16x1xf32> to vector<16x16xf32>
    %82 = arith.mulf %77, %81 : vector<16x16xf32>
    %83 = arith.truncf %82 : vector<16x16xf32> to vector<16x16xbf16>
    %84 = arith.truncf %68 : vector<16x32xf32> to vector<16x32xbf16>
    %cst_34 = arith.constant dense<0.000000e+00> : vector<16x32xf32>
    %85 = tpu.matmul %83, %84, %cst_34 {dimension_numbers = #tpu.dot_dimension_numbers<[1], [0], [0], [1], [0, 0, 1, 1], [], []>} : vector<16x16xbf16>, vector<16x32xbf16>, vector<16x32xf32> -> vector<16x32xf32>
    %86 = arith.addf %61, %85 : vector<16x32xf32>
    %87 = vector.extract_strided_slice %8 {offsets = [0, 12], sizes = [16, 4], strides = [1, 1]} : vector<16x64xf32> to vector<16x4xf32>
    %88 = arith.truncf %87 : vector<16x4xf32> to vector<16x4xbf16>
    %89 = vector.extract_strided_slice %8 {offsets = [0, 44], sizes = [16, 4], strides = [1, 1]} : vector<16x64xf32> to vector<16x4xf32>
    %90 = arith.truncf %89 : vector<16x4xf32> to vector<16x4xbf16>
    %c3 = arith.constant 3 : index
    %c0_35 = arith.constant 0 : index
    %c0_36 = arith.constant 0 : index
    %91 = vector.load %arg5[%c3, %c0_35, %c0_36] : memref<8x32x32xbf16, #tpu.memory_space<vmem>>, vector<1x32x32xbf16>
    %92 = vector.shape_cast %91 : vector<1x32x32xbf16> to vector<32x32xbf16>
    %cst_37 = arith.constant dense<0.000000e+00> : vector<16x32xf32>
    %93 = tpu.matmul %10, %92, %cst_37 {dimension_numbers = #tpu.dot_dimension_numbers<[1], [0], [0], [1], [0, 0, 1, 1], [], []>} : vector<16x32xbf16>, vector<32x32xbf16>, vector<16x32xf32> -> vector<16x32xf32>
    %cst_38 = arith.constant dense<0.000000e+00> : vector<16x16xf32>
    %94 = tpu.matmul %88, %90, %cst_38 {dimension_numbers = #tpu.dot_dimension_numbers<[1], [1], [0], [0], [0, 0, 1, 0], [], []>} : vector<16x4xbf16>, vector<16x4xbf16>, vector<16x16xf32> -> vector<16x16xf32>
    %cst_39 = arith.constant 5.000000e-01 : f32
    %95 = vector.broadcast %cst_39 : f32 to vector<16x16xf32>
    %96 = arith.mulf %94, %95 : vector<16x16xf32>
    %97 = arith.addf %96, %9 : vector<16x16xf32>
    %cst_40 = arith.constant dense<0xFF800000> : vector<16xf32>
    %98 = vector.multi_reduction <maximumf>, %97, %cst_40 [1] : vector<16x16xf32> to vector<16xf32>
    %99 = vector.shape_cast %98 : vector<16xf32> to vector<16x1xf32>
    %100 = vector.broadcast %99 : vector<16x1xf32> to vector<16x16xf32>
    %101 = arith.subf %97, %100 : vector<16x16xf32>
    %102 = math.exp %101 : vector<16x16xf32>
    %cst_41 = arith.constant dense<0.000000e+00> : vector<16xf32>
    %103 = vector.multi_reduction <add>, %102, %cst_41 [1] : vector<16x16xf32> to vector<16xf32>
    %104 = vector.shape_cast %103 : vector<16xf32> to vector<16x1xf32>
    %105 = tpu.reciprocal %104 {approx = true} : vector<16x1xf32> -> vector<16x1xf32>
    %106 = vector.broadcast %105 : vector<16x1xf32> to vector<16x16xf32>
    %107 = arith.mulf %102, %106 : vector<16x16xf32>
    %108 = arith.truncf %107 : vector<16x16xf32> to vector<16x16xbf16>
    %109 = arith.truncf %93 : vector<16x32xf32> to vector<16x32xbf16>
    %cst_42 = arith.constant dense<0.000000e+00> : vector<16x32xf32>
    %110 = tpu.matmul %108, %109, %cst_42 {dimension_numbers = #tpu.dot_dimension_numbers<[1], [0], [0], [1], [0, 0, 1, 1], [], []>} : vector<16x16xbf16>, vector<16x32xbf16>, vector<16x32xf32> -> vector<16x32xf32>
    %111 = arith.addf %86, %110 : vector<16x32xf32>
    %112 = vector.extract_strided_slice %8 {offsets = [0, 16], sizes = [16, 4], strides = [1, 1]} : vector<16x64xf32> to vector<16x4xf32>
    %113 = arith.truncf %112 : vector<16x4xf32> to vector<16x4xbf16>
    %114 = vector.extract_strided_slice %8 {offsets = [0, 48], sizes = [16, 4], strides = [1, 1]} : vector<16x64xf32> to vector<16x4xf32>
    %115 = arith.truncf %114 : vector<16x4xf32> to vector<16x4xbf16>
    %c4 = arith.constant 4 : index
    %c0_43 = arith.constant 0 : index
    %c0_44 = arith.constant 0 : index
    %116 = vector.load %arg5[%c4, %c0_43, %c0_44] : memref<8x32x32xbf16, #tpu.memory_space<vmem>>, vector<1x32x32xbf16>
    %117 = vector.shape_cast %116 : vector<1x32x32xbf16> to vector<32x32xbf16>
    %cst_45 = arith.constant dense<0.000000e+00> : vector<16x32xf32>
    %118 = tpu.matmul %10, %117, %cst_45 {dimension_numbers = #tpu.dot_dimension_numbers<[1], [0], [0], [1], [0, 0, 1, 1], [], []>} : vector<16x32xbf16>, vector<32x32xbf16>, vector<16x32xf32> -> vector<16x32xf32>
    %cst_46 = arith.constant dense<0.000000e+00> : vector<16x16xf32>
    %119 = tpu.matmul %113, %115, %cst_46 {dimension_numbers = #tpu.dot_dimension_numbers<[1], [1], [0], [0], [0, 0, 1, 0], [], []>} : vector<16x4xbf16>, vector<16x4xbf16>, vector<16x16xf32> -> vector<16x16xf32>
    %cst_47 = arith.constant 5.000000e-01 : f32
    %120 = vector.broadcast %cst_47 : f32 to vector<16x16xf32>
    %121 = arith.mulf %119, %120 : vector<16x16xf32>
    %122 = arith.addf %121, %9 : vector<16x16xf32>
    %cst_48 = arith.constant dense<0xFF800000> : vector<16xf32>
    %123 = vector.multi_reduction <maximumf>, %122, %cst_48 [1] : vector<16x16xf32> to vector<16xf32>
    %124 = vector.shape_cast %123 : vector<16xf32> to vector<16x1xf32>
    %125 = vector.broadcast %124 : vector<16x1xf32> to vector<16x16xf32>
    %126 = arith.subf %122, %125 : vector<16x16xf32>
    %127 = math.exp %126 : vector<16x16xf32>
    %cst_49 = arith.constant dense<0.000000e+00> : vector<16xf32>
    %128 = vector.multi_reduction <add>, %127, %cst_49 [1] : vector<16x16xf32> to vector<16xf32>
    %129 = vector.shape_cast %128 : vector<16xf32> to vector<16x1xf32>
    %130 = tpu.reciprocal %129 {approx = true} : vector<16x1xf32> -> vector<16x1xf32>
    %131 = vector.broadcast %130 : vector<16x1xf32> to vector<16x16xf32>
    %132 = arith.mulf %127, %131 : vector<16x16xf32>
    %133 = arith.truncf %132 : vector<16x16xf32> to vector<16x16xbf16>
    %134 = arith.truncf %118 : vector<16x32xf32> to vector<16x32xbf16>
    %cst_50 = arith.constant dense<0.000000e+00> : vector<16x32xf32>
    %135 = tpu.matmul %133, %134, %cst_50 {dimension_numbers = #tpu.dot_dimension_numbers<[1], [0], [0], [1], [0, 0, 1, 1], [], []>} : vector<16x16xbf16>, vector<16x32xbf16>, vector<16x32xf32> -> vector<16x32xf32>
    %136 = arith.addf %111, %135 : vector<16x32xf32>
    %137 = vector.extract_strided_slice %8 {offsets = [0, 20], sizes = [16, 4], strides = [1, 1]} : vector<16x64xf32> to vector<16x4xf32>
    %138 = arith.truncf %137 : vector<16x4xf32> to vector<16x4xbf16>
    %139 = vector.extract_strided_slice %8 {offsets = [0, 52], sizes = [16, 4], strides = [1, 1]} : vector<16x64xf32> to vector<16x4xf32>
    %140 = arith.truncf %139 : vector<16x4xf32> to vector<16x4xbf16>
    %c5 = arith.constant 5 : index
    %c0_51 = arith.constant 0 : index
    %c0_52 = arith.constant 0 : index
    %141 = vector.load %arg5[%c5, %c0_51, %c0_52] : memref<8x32x32xbf16, #tpu.memory_space<vmem>>, vector<1x32x32xbf16>
    %142 = vector.shape_cast %141 : vector<1x32x32xbf16> to vector<32x32xbf16>
    %cst_53 = arith.constant dense<0.000000e+00> : vector<16x32xf32>
    %143 = tpu.matmul %10, %142, %cst_53 {dimension_numbers = #tpu.dot_dimension_numbers<[1], [0], [0], [1], [0, 0, 1, 1], [], []>} : vector<16x32xbf16>, vector<32x32xbf16>, vector<16x32xf32> -> vector<16x32xf32>
    %cst_54 = arith.constant dense<0.000000e+00> : vector<16x16xf32>
    %144 = tpu.matmul %138, %140, %cst_54 {dimension_numbers = #tpu.dot_dimension_numbers<[1], [1], [0], [0], [0, 0, 1, 0], [], []>} : vector<16x4xbf16>, vector<16x4xbf16>, vector<16x16xf32> -> vector<16x16xf32>
    %cst_55 = arith.constant 5.000000e-01 : f32
    %145 = vector.broadcast %cst_55 : f32 to vector<16x16xf32>
    %146 = arith.mulf %144, %145 : vector<16x16xf32>
    %147 = arith.addf %146, %9 : vector<16x16xf32>
    %cst_56 = arith.constant dense<0xFF800000> : vector<16xf32>
    %148 = vector.multi_reduction <maximumf>, %147, %cst_56 [1] : vector<16x16xf32> to vector<16xf32>
    %149 = vector.shape_cast %148 : vector<16xf32> to vector<16x1xf32>
    %150 = vector.broadcast %149 : vector<16x1xf32> to vector<16x16xf32>
    %151 = arith.subf %147, %150 : vector<16x16xf32>
    %152 = math.exp %151 : vector<16x16xf32>
    %cst_57 = arith.constant dense<0.000000e+00> : vector<16xf32>
    %153 = vector.multi_reduction <add>, %152, %cst_57 [1] : vector<16x16xf32> to vector<16xf32>
    %154 = vector.shape_cast %153 : vector<16xf32> to vector<16x1xf32>
    %155 = tpu.reciprocal %154 {approx = true} : vector<16x1xf32> -> vector<16x1xf32>
    %156 = vector.broadcast %155 : vector<16x1xf32> to vector<16x16xf32>
    %157 = arith.mulf %152, %156 : vector<16x16xf32>
    %158 = arith.truncf %157 : vector<16x16xf32> to vector<16x16xbf16>
    %159 = arith.truncf %143 : vector<16x32xf32> to vector<16x32xbf16>
    %cst_58 = arith.constant dense<0.000000e+00> : vector<16x32xf32>
    %160 = tpu.matmul %158, %159, %cst_58 {dimension_numbers = #tpu.dot_dimension_numbers<[1], [0], [0], [1], [0, 0, 1, 1], [], []>} : vector<16x16xbf16>, vector<16x32xbf16>, vector<16x32xf32> -> vector<16x32xf32>
    %161 = arith.addf %136, %160 : vector<16x32xf32>
    %162 = vector.extract_strided_slice %8 {offsets = [0, 24], sizes = [16, 4], strides = [1, 1]} : vector<16x64xf32> to vector<16x4xf32>
    %163 = arith.truncf %162 : vector<16x4xf32> to vector<16x4xbf16>
    %164 = vector.extract_strided_slice %8 {offsets = [0, 56], sizes = [16, 4], strides = [1, 1]} : vector<16x64xf32> to vector<16x4xf32>
    %165 = arith.truncf %164 : vector<16x4xf32> to vector<16x4xbf16>
    %c6 = arith.constant 6 : index
    %c0_59 = arith.constant 0 : index
    %c0_60 = arith.constant 0 : index
    %166 = vector.load %arg5[%c6, %c0_59, %c0_60] : memref<8x32x32xbf16, #tpu.memory_space<vmem>>, vector<1x32x32xbf16>
    %167 = vector.shape_cast %166 : vector<1x32x32xbf16> to vector<32x32xbf16>
    %cst_61 = arith.constant dense<0.000000e+00> : vector<16x32xf32>
    %168 = tpu.matmul %10, %167, %cst_61 {dimension_numbers = #tpu.dot_dimension_numbers<[1], [0], [0], [1], [0, 0, 1, 1], [], []>} : vector<16x32xbf16>, vector<32x32xbf16>, vector<16x32xf32> -> vector<16x32xf32>
    %cst_62 = arith.constant dense<0.000000e+00> : vector<16x16xf32>
    %169 = tpu.matmul %163, %165, %cst_62 {dimension_numbers = #tpu.dot_dimension_numbers<[1], [1], [0], [0], [0, 0, 1, 0], [], []>} : vector<16x4xbf16>, vector<16x4xbf16>, vector<16x16xf32> -> vector<16x16xf32>
    %cst_63 = arith.constant 5.000000e-01 : f32
    %170 = vector.broadcast %cst_63 : f32 to vector<16x16xf32>
    %171 = arith.mulf %169, %170 : vector<16x16xf32>
    %172 = arith.addf %171, %9 : vector<16x16xf32>
    %cst_64 = arith.constant dense<0xFF800000> : vector<16xf32>
    %173 = vector.multi_reduction <maximumf>, %172, %cst_64 [1] : vector<16x16xf32> to vector<16xf32>
    %174 = vector.shape_cast %173 : vector<16xf32> to vector<16x1xf32>
    %175 = vector.broadcast %174 : vector<16x1xf32> to vector<16x16xf32>
    %176 = arith.subf %172, %175 : vector<16x16xf32>
    %177 = math.exp %176 : vector<16x16xf32>
    %cst_65 = arith.constant dense<0.000000e+00> : vector<16xf32>
    %178 = vector.multi_reduction <add>, %177, %cst_65 [1] : vector<16x16xf32> to vector<16xf32>
    %179 = vector.shape_cast %178 : vector<16xf32> to vector<16x1xf32>
    %180 = tpu.reciprocal %179 {approx = true} : vector<16x1xf32> -> vector<16x1xf32>
    %181 = vector.broadcast %180 : vector<16x1xf32> to vector<16x16xf32>
    %182 = arith.mulf %177, %181 : vector<16x16xf32>
    %183 = arith.truncf %182 : vector<16x16xf32> to vector<16x16xbf16>
    %184 = arith.truncf %168 : vector<16x32xf32> to vector<16x32xbf16>
    %cst_66 = arith.constant dense<0.000000e+00> : vector<16x32xf32>
    %185 = tpu.matmul %183, %184, %cst_66 {dimension_numbers = #tpu.dot_dimension_numbers<[1], [0], [0], [1], [0, 0, 1, 1], [], []>} : vector<16x16xbf16>, vector<16x32xbf16>, vector<16x32xf32> -> vector<16x32xf32>
    %186 = arith.addf %161, %185 : vector<16x32xf32>
    %187 = vector.extract_strided_slice %8 {offsets = [0, 28], sizes = [16, 4], strides = [1, 1]} : vector<16x64xf32> to vector<16x4xf32>
    %188 = arith.truncf %187 : vector<16x4xf32> to vector<16x4xbf16>
    %189 = vector.extract_strided_slice %8 {offsets = [0, 60], sizes = [16, 4], strides = [1, 1]} : vector<16x64xf32> to vector<16x4xf32>
    %190 = arith.truncf %189 : vector<16x4xf32> to vector<16x4xbf16>
    %c7 = arith.constant 7 : index
    %c0_67 = arith.constant 0 : index
    %c0_68 = arith.constant 0 : index
    %191 = vector.load %arg5[%c7, %c0_67, %c0_68] : memref<8x32x32xbf16, #tpu.memory_space<vmem>>, vector<1x32x32xbf16>
    %192 = vector.shape_cast %191 : vector<1x32x32xbf16> to vector<32x32xbf16>
    %cst_69 = arith.constant dense<0.000000e+00> : vector<16x32xf32>
    %193 = tpu.matmul %10, %192, %cst_69 {dimension_numbers = #tpu.dot_dimension_numbers<[1], [0], [0], [1], [0, 0, 1, 1], [], []>} : vector<16x32xbf16>, vector<32x32xbf16>, vector<16x32xf32> -> vector<16x32xf32>
    %cst_70 = arith.constant dense<0.000000e+00> : vector<16x16xf32>
    %194 = tpu.matmul %188, %190, %cst_70 {dimension_numbers = #tpu.dot_dimension_numbers<[1], [1], [0], [0], [0, 0, 1, 0], [], []>} : vector<16x4xbf16>, vector<16x4xbf16>, vector<16x16xf32> -> vector<16x16xf32>
    %cst_71 = arith.constant 5.000000e-01 : f32
    %195 = vector.broadcast %cst_71 : f32 to vector<16x16xf32>
    %196 = arith.mulf %194, %195 : vector<16x16xf32>
    %197 = arith.addf %196, %9 : vector<16x16xf32>
    %cst_72 = arith.constant dense<0xFF800000> : vector<16xf32>
    %198 = vector.multi_reduction <maximumf>, %197, %cst_72 [1] : vector<16x16xf32> to vector<16xf32>
    %199 = vector.shape_cast %198 : vector<16xf32> to vector<16x1xf32>
    %200 = vector.broadcast %199 : vector<16x1xf32> to vector<16x16xf32>
    %201 = arith.subf %197, %200 : vector<16x16xf32>
    %202 = math.exp %201 : vector<16x16xf32>
    %cst_73 = arith.constant dense<0.000000e+00> : vector<16xf32>
    %203 = vector.multi_reduction <add>, %202, %cst_73 [1] : vector<16x16xf32> to vector<16xf32>
    %204 = vector.shape_cast %203 : vector<16xf32> to vector<16x1xf32>
    %205 = tpu.reciprocal %204 {approx = true} : vector<16x1xf32> -> vector<16x1xf32>
    %206 = vector.broadcast %205 : vector<16x1xf32> to vector<16x16xf32>
    %207 = arith.mulf %202, %206 : vector<16x16xf32>
    %208 = arith.truncf %207 : vector<16x16xf32> to vector<16x16xbf16>
    %209 = arith.truncf %193 : vector<16x32xf32> to vector<16x32xbf16>
    %cst_74 = arith.constant dense<0.000000e+00> : vector<16x32xf32>
    %210 = tpu.matmul %208, %209, %cst_74 {dimension_numbers = #tpu.dot_dimension_numbers<[1], [0], [0], [1], [0, 0, 1, 1], [], []>} : vector<16x16xbf16>, vector<16x32xbf16>, vector<16x32xf32> -> vector<16x32xf32>
    %211 = arith.addf %186, %210 : vector<16x32xf32>
    %c0_75 = arith.constant 0 : index
    %c0_76 = arith.constant 0 : index
    %212 = vector.load %arg6[%c0_75, %c0_76] : memref<1x32xf32, #tpu.memory_space<vmem>>, vector<1x32xf32>
    %213 = vector.broadcast %212 : vector<1x32xf32> to vector<16x32xf32>
    %214 = arith.addf %211, %213 : vector<16x32xf32>
    %215 = arith.addf %0, %214 : vector<16x32xf32>
    %c0_77 = arith.constant 0 : index
    %c0_78 = arith.constant 0 : index
    %216 = vector.load %arg7[%c0_77, %c0_78] : memref<1x32xf32, #tpu.memory_space<vmem>>, vector<1x32xf32>
    %c0_79 = arith.constant 0 : index
    %c0_80 = arith.constant 0 : index
    %217 = vector.load %arg8[%c0_79, %c0_80] : memref<1x32xf32, #tpu.memory_space<vmem>>, vector<1x32xf32>
    %cst_81 = arith.constant dense<0.000000e+00> : vector<16xf32>
    %218 = vector.multi_reduction <add>, %215, %cst_81 [1] : vector<16x32xf32> to vector<16xf32>
    %219 = vector.shape_cast %218 : vector<16xf32> to vector<16x1xf32>
    %cst_82 = arith.constant 3.200000e+01 : f32
    %220 = vector.broadcast %cst_82 : f32 to vector<16x1xf32>
    %221 = arith.divf %219, %220 : vector<16x1xf32>
    %222 = vector.broadcast %221 : vector<16x1xf32> to vector<16x32xf32>
    %223 = arith.subf %215, %222 : vector<16x32xf32>
    %224 = arith.mulf %223, %223 : vector<16x32xf32>
    %cst_83 = arith.constant dense<0.000000e+00> : vector<16xf32>
    %225 = vector.multi_reduction <add>, %224, %cst_83 [1] : vector<16x32xf32> to vector<16xf32>
    %226 = vector.shape_cast %225 : vector<16xf32> to vector<16x1xf32>
    %cst_84 = arith.constant 3.200000e+01 : f32
    %227 = vector.broadcast %cst_84 : f32 to vector<16x1xf32>
    %228 = arith.divf %226, %227 : vector<16x1xf32>
    %229 = vector.broadcast %221 : vector<16x1xf32> to vector<16x32xf32>
    %230 = arith.subf %215, %229 : vector<16x32xf32>
    %cst_85 = arith.constant 9.99999974E-6 : f32
    %231 = vector.broadcast %cst_85 : f32 to vector<16x1xf32>
    %232 = arith.addf %228, %231 : vector<16x1xf32>
    %233 = math.rsqrt %232 : vector<16x1xf32>
    %234 = vector.broadcast %233 : vector<16x1xf32> to vector<16x32xf32>
    %235 = arith.mulf %230, %234 : vector<16x32xf32>
    %236 = vector.broadcast %216 : vector<1x32xf32> to vector<16x32xf32>
    %237 = arith.mulf %235, %236 : vector<16x32xf32>
    %238 = vector.broadcast %217 : vector<1x32xf32> to vector<16x32xf32>
    %239 = arith.addf %237, %238 : vector<16x32xf32>
    %240 = arith.addf %239, %1 : vector<16x32xf32>
    %241 = arith.truncf %240 : vector<16x32xf32> to vector<16x32xbf16>
    %c0_86 = arith.constant 0 : index
    %c0_87 = arith.constant 0 : index
    %242 = vector.load %arg9[%c0_86, %c0_87] : memref<32x192xbf16, #tpu.memory_space<vmem>>, vector<32x192xbf16>
    %cst_88 = arith.constant dense<0.000000e+00> : vector<16x192xf32>
    %243 = tpu.matmul %241, %242, %cst_88 {dimension_numbers = #tpu.dot_dimension_numbers<[1], [0], [0], [1], [0, 0, 1, 1], [], []>} : vector<16x32xbf16>, vector<32x192xbf16>, vector<16x192xf32> -> vector<16x192xf32>
    %c0_89 = arith.constant 0 : index
    %c0_90 = arith.constant 0 : index
    %244 = vector.load %arg10[%c0_89, %c0_90] : memref<1x192xf32, #tpu.memory_space<vmem>>, vector<1x192xf32>
    %245 = vector.broadcast %244 : vector<1x192xf32> to vector<16x192xf32>
    %246 = arith.addf %243, %245 : vector<16x192xf32>
    %247 = vector.extract_strided_slice %246 {offsets = [0, 0], sizes = [16, 128], strides = [1, 1]} : vector<16x192xf32> to vector<16x128xf32>
    %248 = vector.extract_strided_slice %246 {offsets = [0, 128], sizes = [16, 64], strides = [1, 1]} : vector<16x192xf32> to vector<16x64xf32>
    %cst_91 = arith.constant dense<0xFF800000> : vector<16xf32>
    %249 = vector.multi_reduction <maximumf>, %248, %cst_91 [1] : vector<16x64xf32> to vector<16xf32>
    %250 = vector.shape_cast %249 : vector<16xf32> to vector<16x1xf32>
    %251 = vector.broadcast %250 : vector<16x1xf32> to vector<16x64xf32>
    %252 = arith.subf %248, %251 : vector<16x64xf32>
    %253 = math.exp %252 : vector<16x64xf32>
    %254 = arith.truncf %253 : vector<16x64xf32> to vector<16x64xbf16>
    %c0_92 = arith.constant 0 : index
    %c0_93 = arith.constant 0 : index
    %255 = vector.load %arg12[%c0_92, %c0_93] : memref<64x64xbf16, #tpu.memory_space<vmem>>, vector<64x64xbf16>
    %cst_94 = arith.constant dense<0.000000e+00> : vector<16x64xf32>
    %256 = tpu.matmul %254, %255, %cst_94 {dimension_numbers = #tpu.dot_dimension_numbers<[1], [0], [0], [1], [0, 0, 1, 1], [], []>} : vector<16x64xbf16>, vector<64x64xbf16>, vector<16x64xf32> -> vector<16x64xf32>
    %cst_95 = arith.constant 9.99999968E-21 : f32
    %257 = vector.broadcast %cst_95 : f32 to vector<16x64xf32>
    %258 = arith.maximumf %256, %257 : vector<16x64xf32>
    %259 = tpu.reciprocal %258 {approx = true} : vector<16x64xf32> -> vector<16x64xf32>
    %260 = arith.mulf %253, %259 : vector<16x64xf32>
    %c0_96 = arith.constant 0 : index
    %c0_97 = arith.constant 0 : index
    %261 = vector.load %arg13[%c0_96, %c0_97] : memref<16x256xf32, #tpu.memory_space<vmem>>, vector<16x32xf32>
    tpu.vector_store %arg13[%c0_96, %c0_97], %239 {strides = array<i32>} : memref<16x256xf32, #tpu.memory_space<vmem>>, vector<16x32xf32>,
    %c0_98 = arith.constant 0 : index
    %c32 = arith.constant 32 : index
    %262 = vector.load %arg13[%c0_98, %c32] : memref<16x256xf32, #tpu.memory_space<vmem>>, vector<16x128xf32>
    tpu.vector_store %arg13[%c0_98, %c32], %247 {strides = array<i32>} : memref<16x256xf32, #tpu.memory_space<vmem>>, vector<16x128xf32>,
    %c0_99 = arith.constant 0 : index
    %c160 = arith.constant 160 : index
    %263 = vector.load %arg13[%c0_99, %c160] : memref<16x256xf32, #tpu.memory_space<vmem>>, vector<16x64xf32>
    tpu.vector_store %arg13[%c0_99, %c160], %260 {strides = array<i32>} : memref<16x256xf32, #tpu.memory_space<vmem>>, vector<16x64xf32>,
    %cst_100 = arith.constant 0.000000e+00 : f32
    %264 = vector.broadcast %cst_100 : f32 to vector<16x32xf32>
    %c0_101 = arith.constant 0 : index
    %c224 = arith.constant 224 : index
    %265 = vector.load %arg13[%c0_101, %c224] : memref<16x256xf32, #tpu.memory_space<vmem>>, vector<16x32xf32>
    tpu.vector_store %arg13[%c0_101, %c224], %264 {strides = array<i32>} : memref<16x256xf32, #tpu.memory_space<vmem>>, vector<16x32xf32>,
    return
  }
  func.func @transform_0(%arg0: i32) -> (i32, i32) {
    %c0_i32 = arith.constant 0 : i32
    %c0_i32_0 = arith.constant 0 : i32
    return %arg0, %c0_i32 : i32, i32
  }
  func.func @transform_1(%arg0: i32) -> (i32, i32) {
    %c0_i32 = arith.constant 0 : i32
    %c0_i32_0 = arith.constant 0 : i32
    return %arg0, %c0_i32 : i32, i32
  }
  func.func @transform_2(%arg0: i32) -> (i32, i32) {
    %c0_i32 = arith.constant 0 : i32
    %c0_i32_0 = arith.constant 0 : i32
    %c0_i32_1 = arith.constant 0 : i32
    return %c0_i32, %c0_i32_0 : i32, i32
  }
  func.func @transform_3(%arg0: i32) -> (i32, i32) {
    %c0_i32 = arith.constant 0 : i32
    %c0_i32_0 = arith.constant 0 : i32
    %c0_i32_1 = arith.constant 0 : i32
    return %c0_i32, %c0_i32_0 : i32, i32
  }
  func.func @transform_4(%arg0: i32) -> (i32, i32, i32) {
    %c0_i32 = arith.constant 0 : i32
    %c0_i32_0 = arith.constant 0 : i32
    %c0_i32_1 = arith.constant 0 : i32
    %c0_i32_2 = arith.constant 0 : i32
    return %c0_i32, %c0_i32_0, %c0_i32_1 : i32, i32, i32
  }
  func.func @transform_5(%arg0: i32) -> (i32, i32) {
    %c0_i32 = arith.constant 0 : i32
    %c0_i32_0 = arith.constant 0 : i32
    %c0_i32_1 = arith.constant 0 : i32
    return %c0_i32, %c0_i32_0 : i32, i32
  }
  func.func @transform_6(%arg0: i32) -> (i32, i32) {
    %c0_i32 = arith.constant 0 : i32
    %c0_i32_0 = arith.constant 0 : i32
    %c0_i32_1 = arith.constant 0 : i32
    return %c0_i32, %c0_i32_0 : i32, i32
  }
  func.func @transform_7(%arg0: i32) -> (i32, i32) {
    %c0_i32 = arith.constant 0 : i32
    %c0_i32_0 = arith.constant 0 : i32
    %c0_i32_1 = arith.constant 0 : i32
    return %c0_i32, %c0_i32_0 : i32, i32
  }
  func.func @transform_8(%arg0: i32) -> (i32, i32) {
    %c0_i32 = arith.constant 0 : i32
    %c0_i32_0 = arith.constant 0 : i32
    %c0_i32_1 = arith.constant 0 : i32
    return %c0_i32, %c0_i32_0 : i32, i32
  }
  func.func @transform_9(%arg0: i32) -> (i32, i32) {
    %c0_i32 = arith.constant 0 : i32
    %c0_i32_0 = arith.constant 0 : i32
    %c0_i32_1 = arith.constant 0 : i32
    return %c0_i32, %c0_i32_0 : i32, i32
  }
  func.func @transform_10(%arg0: i32) -> (i32, i32) {
    %c0_i32 = arith.constant 0 : i32
    %c0_i32_0 = arith.constant 0 : i32
    %c0_i32_1 = arith.constant 0 : i32
    return %c0_i32, %c0_i32_0 : i32, i32
  }
  func.func @transform_11(%arg0: i32) -> (i32, i32) {
    %c0_i32 = arith.constant 0 : i32
    %c0_i32_0 = arith.constant 0 : i32
    %c0_i32_1 = arith.constant 0 : i32
    return %c0_i32, %c0_i32_0 : i32, i32
  }
  func.func @transform_12(%arg0: i32) -> (i32, i32) {
    %c0_i32 = arith.constant 0 : i32
    %c0_i32_0 = arith.constant 0 : i32
    return %arg0, %c0_i32 : i32, i32
  }
}

module attributes {stable_mosaic.version = 11 : i64} {
  func.func @_value_proj_kernel(%arg0: i32, %arg1: memref<640x32xbf16, #tpu.memory_space<vmem>>, %arg2: memref<1x32x32xbf16, #tpu.memory_space<vmem>>, %arg3: memref<1x1x32xf32, #tpu.memory_space<vmem>>, %arg4: memref<1x640x32xf32, #tpu.memory_space<vmem>>) attributes {dimension_semantics = [#tpu.dimension_semantics<parallel>], iteration_bounds = array<i64: 2>, scalar_prefetch = 0 : i64, scratch_operands = 0 : i64, tpu.core_type = #tpu.core_type<tc>, window_params = [{pipeline_mode = #tpu.pipeline_mode<synchronous>, transform_indices = @transform_0, window_bounds = array<i64: 640, 32>}, {transform_indices = @transform_1, window_bounds = array<i64: 1, 32, 32>}, {transform_indices = @transform_2, window_bounds = array<i64: 1, 1, 32>}, {transform_indices = @transform_3, window_bounds = array<i64: 1, 640, 32>}]} {
    %c0 = arith.constant 0 : index
    %c0_0 = arith.constant 0 : index
    %0 = vector.load %arg1[%c0, %c0_0] : memref<640x32xbf16, #tpu.memory_space<vmem>>, vector<640x32xbf16>
    %c0_1 = arith.constant 0 : index
    %c0_2 = arith.constant 0 : index
    %c0_3 = arith.constant 0 : index
    %1 = vector.load %arg2[%c0_1, %c0_2, %c0_3] : memref<1x32x32xbf16, #tpu.memory_space<vmem>>, vector<1x32x32xbf16>
    %2 = vector.shape_cast %1 : vector<1x32x32xbf16> to vector<32x32xbf16>
    %cst = arith.constant dense<0.000000e+00> : vector<640x32xf32>
    %3 = tpu.matmul %0, %2, %cst {dimension_numbers = #tpu.dot_dimension_numbers<[1], [0], [0], [1], [0, 0, 1, 1], [], []>} : vector<640x32xbf16>, vector<32x32xbf16>, vector<640x32xf32> -> vector<640x32xf32>
    %c0_4 = arith.constant 0 : index
    %c0_5 = arith.constant 0 : index
    %c0_6 = arith.constant 0 : index
    %4 = vector.load %arg3[%c0_4, %c0_5, %c0_6] : memref<1x1x32xf32, #tpu.memory_space<vmem>>, vector<1x1x32xf32>
    %5 = vector.shape_cast %4 : vector<1x1x32xf32> to vector<1x32xf32>
    %6 = vector.broadcast %5 : vector<1x32xf32> to vector<640x32xf32>
    %7 = arith.addf %3, %6 : vector<640x32xf32>
    %c0_7 = arith.constant 0 : index
    %c0_8 = arith.constant 0 : index
    %c0_9 = arith.constant 0 : index
    %8 = vector.load %arg4[%c0_7, %c0_8, %c0_9] : memref<1x640x32xf32, #tpu.memory_space<vmem>>, vector<1x640x32xf32>
    %9 = vector.shape_cast %8 : vector<1x640x32xf32> to vector<640x32xf32>
    %10 = vector.shape_cast %7 : vector<640x32xf32> to vector<1x640x32xf32>
    tpu.vector_store %arg4[%c0_7, %c0_8, %c0_9], %10 {strides = array<i32>} : memref<1x640x32xf32, #tpu.memory_space<vmem>>, vector<1x640x32xf32>,
    return
  }
  func.func @transform_0(%arg0: i32) -> (i32, i32) {
    %c0_i32 = arith.constant 0 : i32
    %c0_i32_0 = arith.constant 0 : i32
    %c0_i32_1 = arith.constant 0 : i32
    return %c0_i32, %c0_i32_0 : i32, i32
  }
  func.func @transform_1(%arg0: i32) -> (i32, i32, i32) {
    %c0_i32 = arith.constant 0 : i32
    %c0_i32_0 = arith.constant 0 : i32
    %c0_i32_1 = arith.constant 0 : i32
    return %arg0, %c0_i32, %c0_i32_0 : i32, i32, i32
  }
  func.func @transform_2(%arg0: i32) -> (i32, i32, i32) {
    %c0_i32 = arith.constant 0 : i32
    %c0_i32_0 = arith.constant 0 : i32
    %c0_i32_1 = arith.constant 0 : i32
    return %arg0, %c0_i32, %c0_i32_0 : i32, i32, i32
  }
  func.func @transform_3(%arg0: i32) -> (i32, i32, i32) {
    %c0_i32 = arith.constant 0 : i32
    %c0_i32_0 = arith.constant 0 : i32
    %c0_i32_1 = arith.constant 0 : i32
    return %arg0, %c0_i32, %c0_i32_0 : i32, i32, i32
  }
}

module attributes {stable_mosaic.version = 11 : i64} {
  func.func @_ca_out_ffn_xy_kernel(%arg0: i32, %arg1: memref<16x32xf32, #tpu.memory_space<vmem>>, %arg2: memref<16x32xf32, #tpu.memory_space<vmem>>, %arg3: memref<16x2xf32, #tpu.memory_space<vmem>>, %arg4: memref<32x32xbf16, #tpu.memory_space<vmem>>, %arg5: memref<1x32xf32, #tpu.memory_space<vmem>>, %arg6: memref<1x32xf32, #tpu.memory_space<vmem>>, %arg7: memref<1x32xf32, #tpu.memory_space<vmem>>, %arg8: memref<32x64xbf16, #tpu.memory_space<vmem>>, %arg9: memref<1x64xf32, #tpu.memory_space<vmem>>, %arg10: memref<64x32xbf16, #tpu.memory_space<vmem>>, %arg11: memref<1x32xf32, #tpu.memory_space<vmem>>, %arg12: memref<1x32xf32, #tpu.memory_space<vmem>>, %arg13: memref<1x32xf32, #tpu.memory_space<vmem>>, %arg14: memref<32x32xbf16, #tpu.memory_space<vmem>>, %arg15: memref<1x32xf32, #tpu.memory_space<vmem>>, %arg16: memref<32x32xbf16, #tpu.memory_space<vmem>>, %arg17: memref<1x32xf32, #tpu.memory_space<vmem>>, %arg18: memref<32x2xbf16, #tpu.memory_space<vmem>>, %arg19: memref<1x2xf32, #tpu.memory_space<vmem>>, %arg20: memref<16x128xf32, #tpu.memory_space<vmem>>) attributes {dimension_semantics = [#tpu.dimension_semantics<parallel>], iteration_bounds = array<i64: 2>, scalar_prefetch = 0 : i64, scratch_operands = 0 : i64, tpu.core_type = #tpu.core_type<tc>, window_params = [{transform_indices = @transform_0, window_bounds = array<i64: 16, 32>}, {transform_indices = @transform_1, window_bounds = array<i64: 16, 32>}, {transform_indices = @transform_2, window_bounds = array<i64: 16, 2>}, {pipeline_mode = #tpu.pipeline_mode<synchronous>, transform_indices = @transform_3, window_bounds = array<i64: 32, 32>}, {pipeline_mode = #tpu.pipeline_mode<synchronous>, transform_indices = @transform_4, window_bounds = array<i64: 1, 32>}, {pipeline_mode = #tpu.pipeline_mode<synchronous>, transform_indices = @transform_5, window_bounds = array<i64: 1, 32>}, {pipeline_mode = #tpu.pipeline_mode<synchronous>, transform_indices = @transform_6, window_bounds = array<i64: 1, 32>}, {pipeline_mode = #tpu.pipeline_mode<synchronous>, transform_indices = @transform_7, window_bounds = array<i64: 32, 64>}, {pipeline_mode = #tpu.pipeline_mode<synchronous>, transform_indices = @transform_8, window_bounds = array<i64: 1, 64>}, {pipeline_mode = #tpu.pipeline_mode<synchronous>, transform_indices = @transform_9, window_bounds = array<i64: 64, 32>}, {pipeline_mode = #tpu.pipeline_mode<synchronous>, transform_indices = @transform_10, window_bounds = array<i64: 1, 32>}, {pipeline_mode = #tpu.pipeline_mode<synchronous>, transform_indices = @transform_11, window_bounds = array<i64: 1, 32>}, {pipeline_mode = #tpu.pipeline_mode<synchronous>, transform_indices = @transform_12, window_bounds = array<i64: 1, 32>}, {pipeline_mode = #tpu.pipeline_mode<synchronous>, transform_indices = @transform_13, window_bounds = array<i64: 32, 32>}, {pipeline_mode = #tpu.pipeline_mode<synchronous>, transform_indices = @transform_14, window_bounds = array<i64: 1, 32>}, {pipeline_mode = #tpu.pipeline_mode<synchronous>, transform_indices = @transform_15, window_bounds = array<i64: 32, 32>}, {pipeline_mode = #tpu.pipeline_mode<synchronous>, transform_indices = @transform_16, window_bounds = array<i64: 1, 32>}, {pipeline_mode = #tpu.pipeline_mode<synchronous>, transform_indices = @transform_17, window_bounds = array<i64: 32, 2>}, {pipeline_mode = #tpu.pipeline_mode<synchronous>, transform_indices = @transform_18, window_bounds = array<i64: 1, 2>}, {transform_indices = @transform_19, window_bounds = array<i64: 16, 128>}]} {
    %c0 = arith.constant 0 : index
    %c0_0 = arith.constant 0 : index
    %0 = vector.load %arg1[%c0, %c0_0] : memref<16x32xf32, #tpu.memory_space<vmem>>, vector<16x32xf32>
    %c0_1 = arith.constant 0 : index
    %c0_2 = arith.constant 0 : index
    %1 = vector.load %arg2[%c0_1, %c0_2] : memref<16x32xf32, #tpu.memory_space<vmem>>, vector<16x32xf32>
    %2 = arith.truncf %1 : vector<16x32xf32> to vector<16x32xbf16>
    %c0_3 = arith.constant 0 : index
    %c0_4 = arith.constant 0 : index
    %3 = vector.load %arg4[%c0_3, %c0_4] : memref<32x32xbf16, #tpu.memory_space<vmem>>, vector<32x32xbf16>
    %cst = arith.constant dense<0.000000e+00> : vector<16x32xf32>
    %4 = tpu.matmul %2, %3, %cst {dimension_numbers = #tpu.dot_dimension_numbers<[1], [0], [0], [1], [0, 0, 1, 1], [], []>} : vector<16x32xbf16>, vector<32x32xbf16>, vector<16x32xf32> -> vector<16x32xf32>
    %c0_5 = arith.constant 0 : index
    %c0_6 = arith.constant 0 : index
    %5 = vector.load %arg5[%c0_5, %c0_6] : memref<1x32xf32, #tpu.memory_space<vmem>>, vector<1x32xf32>
    %6 = vector.broadcast %5 : vector<1x32xf32> to vector<16x32xf32>
    %7 = arith.addf %4, %6 : vector<16x32xf32>
    %8 = arith.addf %0, %7 : vector<16x32xf32>
    %c0_7 = arith.constant 0 : index
    %c0_8 = arith.constant 0 : index
    %9 = vector.load %arg6[%c0_7, %c0_8] : memref<1x32xf32, #tpu.memory_space<vmem>>, vector<1x32xf32>
    %c0_9 = arith.constant 0 : index
    %c0_10 = arith.constant 0 : index
    %10 = vector.load %arg7[%c0_9, %c0_10] : memref<1x32xf32, #tpu.memory_space<vmem>>, vector<1x32xf32>
    %cst_11 = arith.constant dense<0.000000e+00> : vector<16xf32>
    %11 = vector.multi_reduction <add>, %8, %cst_11 [1] : vector<16x32xf32> to vector<16xf32>
    %12 = vector.shape_cast %11 : vector<16xf32> to vector<16x1xf32>
    %cst_12 = arith.constant 3.200000e+01 : f32
    %13 = vector.broadcast %cst_12 : f32 to vector<16x1xf32>
    %14 = arith.divf %12, %13 : vector<16x1xf32>
    %15 = vector.broadcast %14 : vector<16x1xf32> to vector<16x32xf32>
    %16 = arith.subf %8, %15 : vector<16x32xf32>
    %17 = arith.mulf %16, %16 : vector<16x32xf32>
    %cst_13 = arith.constant dense<0.000000e+00> : vector<16xf32>
    %18 = vector.multi_reduction <add>, %17, %cst_13 [1] : vector<16x32xf32> to vector<16xf32>
    %19 = vector.shape_cast %18 : vector<16xf32> to vector<16x1xf32>
    %cst_14 = arith.constant 3.200000e+01 : f32
    %20 = vector.broadcast %cst_14 : f32 to vector<16x1xf32>
    %21 = arith.divf %19, %20 : vector<16x1xf32>
    %22 = vector.broadcast %14 : vector<16x1xf32> to vector<16x32xf32>
    %23 = arith.subf %8, %22 : vector<16x32xf32>
    %cst_15 = arith.constant 9.99999974E-6 : f32
    %24 = vector.broadcast %cst_15 : f32 to vector<16x1xf32>
    %25 = arith.addf %21, %24 : vector<16x1xf32>
    %26 = math.rsqrt %25 : vector<16x1xf32>
    %27 = vector.broadcast %26 : vector<16x1xf32> to vector<16x32xf32>
    %28 = arith.mulf %23, %27 : vector<16x32xf32>
    %29 = vector.broadcast %9 : vector<1x32xf32> to vector<16x32xf32>
    %30 = arith.mulf %28, %29 : vector<16x32xf32>
    %31 = vector.broadcast %10 : vector<1x32xf32> to vector<16x32xf32>
    %32 = arith.addf %30, %31 : vector<16x32xf32>
    %33 = arith.truncf %32 : vector<16x32xf32> to vector<16x32xbf16>
    %c0_16 = arith.constant 0 : index
    %c0_17 = arith.constant 0 : index
    %34 = vector.load %arg8[%c0_16, %c0_17] : memref<32x64xbf16, #tpu.memory_space<vmem>>, vector<32x64xbf16>
    %cst_18 = arith.constant dense<0.000000e+00> : vector<16x64xf32>
    %35 = tpu.matmul %33, %34, %cst_18 {dimension_numbers = #tpu.dot_dimension_numbers<[1], [0], [0], [1], [0, 0, 1, 1], [], []>} : vector<16x32xbf16>, vector<32x64xbf16>, vector<16x64xf32> -> vector<16x64xf32>
    %c0_19 = arith.constant 0 : index
    %c0_20 = arith.constant 0 : index
    %36 = vector.load %arg9[%c0_19, %c0_20] : memref<1x64xf32, #tpu.memory_space<vmem>>, vector<1x64xf32>
    %37 = vector.broadcast %36 : vector<1x64xf32> to vector<16x64xf32>
    %38 = arith.addf %35, %37 : vector<16x64xf32>
    %cst_21 = arith.constant 0.000000e+00 : f32
    %39 = vector.broadcast %cst_21 : f32 to vector<16x64xf32>
    %40 = arith.maximumf %38, %39 : vector<16x64xf32>
    %41 = arith.truncf %40 : vector<16x64xf32> to vector<16x64xbf16>
    %c0_22 = arith.constant 0 : index
    %c0_23 = arith.constant 0 : index
    %42 = vector.load %arg10[%c0_22, %c0_23] : memref<64x32xbf16, #tpu.memory_space<vmem>>, vector<64x32xbf16>
    %cst_24 = arith.constant dense<0.000000e+00> : vector<16x32xf32>
    %43 = tpu.matmul %41, %42, %cst_24 {dimension_numbers = #tpu.dot_dimension_numbers<[1], [0], [0], [1], [0, 0, 1, 1], [], []>} : vector<16x64xbf16>, vector<64x32xbf16>, vector<16x32xf32> -> vector<16x32xf32>
    %44 = arith.addf %32, %43 : vector<16x32xf32>
    %c0_25 = arith.constant 0 : index
    %c0_26 = arith.constant 0 : index
    %45 = vector.load %arg11[%c0_25, %c0_26] : memref<1x32xf32, #tpu.memory_space<vmem>>, vector<1x32xf32>
    %46 = vector.broadcast %45 : vector<1x32xf32> to vector<16x32xf32>
    %47 = arith.addf %44, %46 : vector<16x32xf32>
    %c0_27 = arith.constant 0 : index
    %c0_28 = arith.constant 0 : index
    %48 = vector.load %arg12[%c0_27, %c0_28] : memref<1x32xf32, #tpu.memory_space<vmem>>, vector<1x32xf32>
    %c0_29 = arith.constant 0 : index
    %c0_30 = arith.constant 0 : index
    %49 = vector.load %arg13[%c0_29, %c0_30] : memref<1x32xf32, #tpu.memory_space<vmem>>, vector<1x32xf32>
    %cst_31 = arith.constant dense<0.000000e+00> : vector<16xf32>
    %50 = vector.multi_reduction <add>, %47, %cst_31 [1] : vector<16x32xf32> to vector<16xf32>
    %51 = vector.shape_cast %50 : vector<16xf32> to vector<16x1xf32>
    %cst_32 = arith.constant 3.200000e+01 : f32
    %52 = vector.broadcast %cst_32 : f32 to vector<16x1xf32>
    %53 = arith.divf %51, %52 : vector<16x1xf32>
    %54 = vector.broadcast %53 : vector<16x1xf32> to vector<16x32xf32>
    %55 = arith.subf %47, %54 : vector<16x32xf32>
    %56 = arith.mulf %55, %55 : vector<16x32xf32>
    %cst_33 = arith.constant dense<0.000000e+00> : vector<16xf32>
    %57 = vector.multi_reduction <add>, %56, %cst_33 [1] : vector<16x32xf32> to vector<16xf32>
    %58 = vector.shape_cast %57 : vector<16xf32> to vector<16x1xf32>
    %cst_34 = arith.constant 3.200000e+01 : f32
    %59 = vector.broadcast %cst_34 : f32 to vector<16x1xf32>
    %60 = arith.divf %58, %59 : vector<16x1xf32>
    %61 = vector.broadcast %53 : vector<16x1xf32> to vector<16x32xf32>
    %62 = arith.subf %47, %61 : vector<16x32xf32>
    %cst_35 = arith.constant 9.99999974E-6 : f32
    %63 = vector.broadcast %cst_35 : f32 to vector<16x1xf32>
    %64 = arith.addf %60, %63 : vector<16x1xf32>
    %65 = math.rsqrt %64 : vector<16x1xf32>
    %66 = vector.broadcast %65 : vector<16x1xf32> to vector<16x32xf32>
    %67 = arith.mulf %62, %66 : vector<16x32xf32>
    %68 = vector.broadcast %48 : vector<1x32xf32> to vector<16x32xf32>
    %69 = arith.mulf %67, %68 : vector<16x32xf32>
    %70 = vector.broadcast %49 : vector<1x32xf32> to vector<16x32xf32>
    %71 = arith.addf %69, %70 : vector<16x32xf32>
    %72 = arith.truncf %71 : vector<16x32xf32> to vector<16x32xbf16>
    %c0_36 = arith.constant 0 : index
    %c0_37 = arith.constant 0 : index
    %73 = vector.load %arg14[%c0_36, %c0_37] : memref<32x32xbf16, #tpu.memory_space<vmem>>, vector<32x32xbf16>
    %cst_38 = arith.constant dense<0.000000e+00> : vector<16x32xf32>
    %74 = tpu.matmul %72, %73, %cst_38 {dimension_numbers = #tpu.dot_dimension_numbers<[1], [0], [0], [1], [0, 0, 1, 1], [], []>} : vector<16x32xbf16>, vector<32x32xbf16>, vector<16x32xf32> -> vector<16x32xf32>
    %c0_39 = arith.constant 0 : index
    %c0_40 = arith.constant 0 : index
    %75 = vector.load %arg15[%c0_39, %c0_40] : memref<1x32xf32, #tpu.memory_space<vmem>>, vector<1x32xf32>
    %76 = vector.broadcast %75 : vector<1x32xf32> to vector<16x32xf32>
    %77 = arith.addf %74, %76 : vector<16x32xf32>
    %cst_41 = arith.constant 0.000000e+00 : f32
    %78 = vector.broadcast %cst_41 : f32 to vector<16x32xf32>
    %79 = arith.maximumf %77, %78 : vector<16x32xf32>
    %80 = arith.truncf %79 : vector<16x32xf32> to vector<16x32xbf16>
    %c0_42 = arith.constant 0 : index
    %c0_43 = arith.constant 0 : index
    %81 = vector.load %arg16[%c0_42, %c0_43] : memref<32x32xbf16, #tpu.memory_space<vmem>>, vector<32x32xbf16>
    %cst_44 = arith.constant dense<0.000000e+00> : vector<16x32xf32>
    %82 = tpu.matmul %80, %81, %cst_44 {dimension_numbers = #tpu.dot_dimension_numbers<[1], [0], [0], [1], [0, 0, 1, 1], [], []>} : vector<16x32xbf16>, vector<32x32xbf16>, vector<16x32xf32> -> vector<16x32xf32>
    %c0_45 = arith.constant 0 : index
    %c0_46 = arith.constant 0 : index
    %83 = vector.load %arg17[%c0_45, %c0_46] : memref<1x32xf32, #tpu.memory_space<vmem>>, vector<1x32xf32>
    %84 = vector.broadcast %83 : vector<1x32xf32> to vector<16x32xf32>
    %85 = arith.addf %82, %84 : vector<16x32xf32>
    %cst_47 = arith.constant 0.000000e+00 : f32
    %86 = vector.broadcast %cst_47 : f32 to vector<16x32xf32>
    %87 = arith.maximumf %85, %86 : vector<16x32xf32>
    %88 = arith.truncf %87 : vector<16x32xf32> to vector<16x32xbf16>
    %c0_48 = arith.constant 0 : index
    %c0_49 = arith.constant 0 : index
    %89 = vector.load %arg18[%c0_48, %c0_49] : memref<32x2xbf16, #tpu.memory_space<vmem>>, vector<32x2xbf16>
    %cst_50 = arith.constant dense<0.000000e+00> : vector<16x2xf32>
    %90 = tpu.matmul %88, %89, %cst_50 {dimension_numbers = #tpu.dot_dimension_numbers<[1], [0], [0], [1], [0, 0, 1, 1], [], []>} : vector<16x32xbf16>, vector<32x2xbf16>, vector<16x2xf32> -> vector<16x2xf32>
    %c0_51 = arith.constant 0 : index
    %c0_52 = arith.constant 0 : index
    %91 = vector.load %arg19[%c0_51, %c0_52] : memref<1x2xf32, #tpu.memory_space<vmem>>, vector<1x2xf32>
    %92 = vector.broadcast %91 : vector<1x2xf32> to vector<16x2xf32>
    %93 = arith.addf %90, %92 : vector<16x2xf32>
    %c0_53 = arith.constant 0 : index
    %c0_54 = arith.constant 0 : index
    %94 = vector.load %arg3[%c0_53, %c0_54] : memref<16x2xf32, #tpu.memory_space<vmem>>, vector<16x2xf32>
    %cst_55 = arith.constant 0.000000e+00 : f32
    %95 = vector.broadcast %cst_55 : f32 to vector<16x2xf32>
    %96 = arith.maximumf %94, %95 : vector<16x2xf32>
    %cst_56 = arith.constant 1.000000e+00 : f32
    %97 = vector.broadcast %cst_56 : f32 to vector<16x2xf32>
    %98 = arith.minimumf %96, %97 : vector<16x2xf32>
    %cst_57 = arith.constant 9.99999974E-6 : f32
    %99 = vector.broadcast %cst_57 : f32 to vector<16x2xf32>
    %100 = arith.maximumf %98, %99 : vector<16x2xf32>
    %101 = math.log %100 : vector<16x2xf32>
    %cst_58 = arith.constant 1.000000e+00 : f32
    %102 = vector.broadcast %cst_58 : f32 to vector<16x2xf32>
    %103 = arith.subf %102, %98 : vector<16x2xf32>
    %cst_59 = arith.constant 9.99999974E-6 : f32
    %104 = vector.broadcast %cst_59 : f32 to vector<16x2xf32>
    %105 = arith.maximumf %103, %104 : vector<16x2xf32>
    %106 = math.log %105 : vector<16x2xf32>
    %107 = arith.subf %101, %106 : vector<16x2xf32>
    %108 = arith.addf %107, %93 : vector<16x2xf32>
    %cst_60 = arith.constant 0.000000e+00 : f32
    %109 = vector.broadcast %cst_60 : f32 to vector<16x2xf32>
    %110 = arith.subf %109, %108 : vector<16x2xf32>
    %111 = math.exp %110 : vector<16x2xf32>
    %cst_61 = arith.constant 1.000000e+00 : f32
    %112 = vector.broadcast %cst_61 : f32 to vector<16x2xf32>
    %113 = arith.addf %112, %111 : vector<16x2xf32>
    %cst_62 = arith.constant 1.000000e+00 : f32
    %114 = vector.broadcast %cst_62 : f32 to vector<16x2xf32>
    %115 = arith.divf %114, %113 : vector<16x2xf32>
    %c0_63 = arith.constant 0 : index
    %c0_64 = arith.constant 0 : index
    %116 = vector.load %arg20[%c0_63, %c0_64] : memref<16x128xf32, #tpu.memory_space<vmem>>, vector<16x32xf32>
    tpu.vector_store %arg20[%c0_63, %c0_64], %71 {strides = array<i32>} : memref<16x128xf32, #tpu.memory_space<vmem>>, vector<16x32xf32>,
    %c0_65 = arith.constant 0 : index
    %c32 = arith.constant 32 : index
    %117 = vector.load %arg20[%c0_65, %c32] : memref<16x128xf32, #tpu.memory_space<vmem>>, vector<16x2xf32>
    tpu.vector_store %arg20[%c0_65, %c32], %115 {strides = array<i32>} : memref<16x128xf32, #tpu.memory_space<vmem>>, vector<16x2xf32>,
    %cst_66 = arith.constant 0.000000e+00 : f32
    %118 = vector.broadcast %cst_66 : f32 to vector<16x94xf32>
    %c0_67 = arith.constant 0 : index
    %c34 = arith.constant 34 : index
    %119 = vector.load %arg20[%c0_67, %c34] : memref<16x128xf32, #tpu.memory_space<vmem>>, vector<16x94xf32>
    tpu.vector_store %arg20[%c0_67, %c34], %118 {strides = array<i32>} : memref<16x128xf32, #tpu.memory_space<vmem>>, vector<16x94xf32>,
    return
  }
  func.func @transform_0(%arg0: i32) -> (i32, i32) {
    %c0_i32 = arith.constant 0 : i32
    %c0_i32_0 = arith.constant 0 : i32
    return %arg0, %c0_i32 : i32, i32
  }
  func.func @transform_1(%arg0: i32) -> (i32, i32) {
    %c0_i32 = arith.constant 0 : i32
    %c0_i32_0 = arith.constant 0 : i32
    return %arg0, %c0_i32 : i32, i32
  }
  func.func @transform_2(%arg0: i32) -> (i32, i32) {
    %c0_i32 = arith.constant 0 : i32
    %c0_i32_0 = arith.constant 0 : i32
    return %arg0, %c0_i32 : i32, i32
  }
  func.func @transform_3(%arg0: i32) -> (i32, i32) {
    %c0_i32 = arith.constant 0 : i32
    %c0_i32_0 = arith.constant 0 : i32
    %c0_i32_1 = arith.constant 0 : i32
    return %c0_i32, %c0_i32_0 : i32, i32
  }
  func.func @transform_4(%arg0: i32) -> (i32, i32) {
    %c0_i32 = arith.constant 0 : i32
    %c0_i32_0 = arith.constant 0 : i32
    %c0_i32_1 = arith.constant 0 : i32
    return %c0_i32, %c0_i32_0 : i32, i32
  }
  func.func @transform_5(%arg0: i32) -> (i32, i32) {
    %c0_i32 = arith.constant 0 : i32
    %c0_i32_0 = arith.constant 0 : i32
    %c0_i32_1 = arith.constant 0 : i32
    return %c0_i32, %c0_i32_0 : i32, i32
  }
  func.func @transform_6(%arg0: i32) -> (i32, i32) {
    %c0_i32 = arith.constant 0 : i32
    %c0_i32_0 = arith.constant 0 : i32
    %c0_i32_1 = arith.constant 0 : i32
    return %c0_i32, %c0_i32_0 : i32, i32
  }
  func.func @transform_7(%arg0: i32) -> (i32, i32) {
    %c0_i32 = arith.constant 0 : i32
    %c0_i32_0 = arith.constant 0 : i32
    %c0_i32_1 = arith.constant 0 : i32
    return %c0_i32, %c0_i32_0 : i32, i32
  }
  func.func @transform_8(%arg0: i32) -> (i32, i32) {
    %c0_i32 = arith.constant 0 : i32
    %c0_i32_0 = arith.constant 0 : i32
    %c0_i32_1 = arith.constant 0 : i32
    return %c0_i32, %c0_i32_0 : i32, i32
  }
  func.func @transform_9(%arg0: i32) -> (i32, i32) {
    %c0_i32 = arith.constant 0 : i32
    %c0_i32_0 = arith.constant 0 : i32
    %c0_i32_1 = arith.constant 0 : i32
    return %c0_i32, %c0_i32_0 : i32, i32
  }
  func.func @transform_10(%arg0: i32) -> (i32, i32) {
    %c0_i32 = arith.constant 0 : i32
    %c0_i32_0 = arith.constant 0 : i32
    %c0_i32_1 = arith.constant 0 : i32
    return %c0_i32, %c0_i32_0 : i32, i32
  }
  func.func @transform_11(%arg0: i32) -> (i32, i32) {
    %c0_i32 = arith.constant 0 : i32
    %c0_i32_0 = arith.constant 0 : i32
    %c0_i32_1 = arith.constant 0 : i32
    return %c0_i32, %c0_i32_0 : i32, i32
  }
  func.func @transform_12(%arg0: i32) -> (i32, i32) {
    %c0_i32 = arith.constant 0 : i32
    %c0_i32_0 = arith.constant 0 : i32
    %c0_i32_1 = arith.constant 0 : i32
    return %c0_i32, %c0_i32_0 : i32, i32
  }
  func.func @transform_13(%arg0: i32) -> (i32, i32) {
    %c0_i32 = arith.constant 0 : i32
    %c0_i32_0 = arith.constant 0 : i32
    %c0_i32_1 = arith.constant 0 : i32
    return %c0_i32, %c0_i32_0 : i32, i32
  }
  func.func @transform_14(%arg0: i32) -> (i32, i32) {
    %c0_i32 = arith.constant 0 : i32
    %c0_i32_0 = arith.constant 0 : i32
    %c0_i32_1 = arith.constant 0 : i32
    return %c0_i32, %c0_i32_0 : i32, i32
  }
  func.func @transform_15(%arg0: i32) -> (i32, i32) {
    %c0_i32 = arith.constant 0 : i32
    %c0_i32_0 = arith.constant 0 : i32
    %c0_i32_1 = arith.constant 0 : i32
    return %c0_i32, %c0_i32_0 : i32, i32
  }
  func.func @transform_16(%arg0: i32) -> (i32, i32) {
    %c0_i32 = arith.constant 0 : i32
    %c0_i32_0 = arith.constant 0 : i32
    %c0_i32_1 = arith.constant 0 : i32
    return %c0_i32, %c0_i32_0 : i32, i32
  }
  func.func @transform_17(%arg0: i32) -> (i32, i32) {
    %c0_i32 = arith.constant 0 : i32
    %c0_i32_0 = arith.constant 0 : i32
    %c0_i32_1 = arith.constant 0 : i32
    return %c0_i32, %c0_i32_0 : i32, i32
  }
  func.func @transform_18(%arg0: i32) -> (i32, i32) {
    %c0_i32 = arith.constant 0 : i32
    %c0_i32_0 = arith.constant 0 : i32
    %c0_i32_1 = arith.constant 0 : i32
    return %c0_i32, %c0_i32_0 : i32, i32
  }
  func.func @transform_19(%arg0: i32) -> (i32, i32) {
    %c0_i32 = arith.constant 0 : i32
    %c0_i32_0 = arith.constant 0 : i32
    return %arg0, %c0_i32 : i32, i32
  }
}

module attributes {stable_mosaic.version = 11 : i64} {
  func.func @_sa_ca_proj_kernel(%arg0: i32, %arg1: memref<32x32xf32, #tpu.memory_space<vmem>>, %arg2: memref<32x32xf32, #tpu.memory_space<vmem>>, %arg3: memref<32x64xbf16, #tpu.memory_space<vmem>>, %arg4: memref<1x64xf32, #tpu.memory_space<vmem>>, %arg5: memref<8x32x32xbf16, #tpu.memory_space<vmem>>, %arg6: memref<1x32xf32, #tpu.memory_space<vmem>>, %arg7: memref<1x32xf32, #tpu.memory_space<vmem>>, %arg8: memref<1x32xf32, #tpu.memory_space<vmem>>, %arg9: memref<32x192xbf16, #tpu.memory_space<vmem>>, %arg10: memref<1x192xf32, #tpu.memory_space<vmem>>, %arg11: memref<32x32xf32, #tpu.memory_space<vmem>>, %arg12: memref<64x64xbf16, #tpu.memory_space<vmem>>, %arg13: memref<32x256xf32, #tpu.memory_space<vmem>>) attributes {dimension_semantics = [#tpu.dimension_semantics<parallel>], iteration_bounds = array<i64: 2>, scalar_prefetch = 0 : i64, scratch_operands = 0 : i64, tpu.core_type = #tpu.core_type<tc>, window_params = [{transform_indices = @transform_0, window_bounds = array<i64: 32, 32>}, {transform_indices = @transform_1, window_bounds = array<i64: 32, 32>}, {pipeline_mode = #tpu.pipeline_mode<synchronous>, transform_indices = @transform_2, window_bounds = array<i64: 32, 64>}, {pipeline_mode = #tpu.pipeline_mode<synchronous>, transform_indices = @transform_3, window_bounds = array<i64: 1, 64>}, {pipeline_mode = #tpu.pipeline_mode<synchronous>, transform_indices = @transform_4, window_bounds = array<i64: 8, 32, 32>}, {pipeline_mode = #tpu.pipeline_mode<synchronous>, transform_indices = @transform_5, window_bounds = array<i64: 1, 32>}, {pipeline_mode = #tpu.pipeline_mode<synchronous>, transform_indices = @transform_6, window_bounds = array<i64: 1, 32>}, {pipeline_mode = #tpu.pipeline_mode<synchronous>, transform_indices = @transform_7, window_bounds = array<i64: 1, 32>}, {pipeline_mode = #tpu.pipeline_mode<synchronous>, transform_indices = @transform_8, window_bounds = array<i64: 32, 192>}, {pipeline_mode = #tpu.pipeline_mode<synchronous>, transform_indices = @transform_9, window_bounds = array<i64: 1, 192>}, {pipeline_mode = #tpu.pipeline_mode<synchronous>, transform_indices = @transform_10, window_bounds = array<i64: 32, 32>}, {pipeline_mode = #tpu.pipeline_mode<synchronous>, transform_indices = @transform_11, window_bounds = array<i64: 64, 64>}, {transform_indices = @transform_12, window_bounds = array<i64: 32, 256>}]} {
    %c0 = arith.constant 0 : index
    %c0_0 = arith.constant 0 : index
    %0 = vector.load %arg1[%c0, %c0_0] : memref<32x32xf32, #tpu.memory_space<vmem>>, vector<32x32xf32>
    %c0_1 = arith.constant 0 : index
    %c0_2 = arith.constant 0 : index
    %1 = vector.load %arg2[%c0_1, %c0_2] : memref<32x32xf32, #tpu.memory_space<vmem>>, vector<32x32xf32>
    %2 = arith.addf %0, %1 : vector<32x32xf32>
    %3 = arith.truncf %2 : vector<32x32xf32> to vector<32x32xbf16>
    %c0_3 = arith.constant 0 : index
    %c0_4 = arith.constant 0 : index
    %4 = vector.load %arg3[%c0_3, %c0_4] : memref<32x64xbf16, #tpu.memory_space<vmem>>, vector<32x64xbf16>
    %cst = arith.constant dense<0.000000e+00> : vector<32x64xf32>
    %5 = tpu.matmul %3, %4, %cst {dimension_numbers = #tpu.dot_dimension_numbers<[1], [0], [0], [1], [0, 0, 1, 1], [], []>} : vector<32x32xbf16>, vector<32x64xbf16>, vector<32x64xf32> -> vector<32x64xf32>
    %c0_5 = arith.constant 0 : index
    %c0_6 = arith.constant 0 : index
    %6 = vector.load %arg4[%c0_5, %c0_6] : memref<1x64xf32, #tpu.memory_space<vmem>>, vector<1x64xf32>
    %7 = vector.broadcast %6 : vector<1x64xf32> to vector<32x64xf32>
    %8 = arith.addf %5, %7 : vector<32x64xf32>
    %c0_7 = arith.constant 0 : index
    %c0_8 = arith.constant 0 : index
    %9 = vector.load %arg11[%c0_7, %c0_8] : memref<32x32xf32, #tpu.memory_space<vmem>>, vector<32x32xf32>
    %10 = arith.truncf %0 : vector<32x32xf32> to vector<32x32xbf16>
    %cst_9 = arith.constant 0.000000e+00 : f32
    %11 = vector.broadcast %cst_9 : f32 to vector<32x32xf32>
    %12 = vector.extract_strided_slice %8 {offsets = [0, 0], sizes = [32, 4], strides = [1, 1]} : vector<32x64xf32> to vector<32x4xf32>
    %13 = arith.truncf %12 : vector<32x4xf32> to vector<32x4xbf16>
    %14 = vector.extract_strided_slice %8 {offsets = [0, 32], sizes = [32, 4], strides = [1, 1]} : vector<32x64xf32> to vector<32x4xf32>
    %15 = arith.truncf %14 : vector<32x4xf32> to vector<32x4xbf16>
    %c0_10 = arith.constant 0 : index
    %c0_11 = arith.constant 0 : index
    %c0_12 = arith.constant 0 : index
    %16 = vector.load %arg5[%c0_10, %c0_11, %c0_12] : memref<8x32x32xbf16, #tpu.memory_space<vmem>>, vector<1x32x32xbf16>
    %17 = vector.shape_cast %16 : vector<1x32x32xbf16> to vector<32x32xbf16>
    %cst_13 = arith.constant dense<0.000000e+00> : vector<32x32xf32>
    %18 = tpu.matmul %10, %17, %cst_13 {dimension_numbers = #tpu.dot_dimension_numbers<[1], [0], [0], [1], [0, 0, 1, 1], [], []>} : vector<32x32xbf16>, vector<32x32xbf16>, vector<32x32xf32> -> vector<32x32xf32>
    %cst_14 = arith.constant dense<0.000000e+00> : vector<32x32xf32>
    %19 = tpu.matmul %13, %15, %cst_14 {dimension_numbers = #tpu.dot_dimension_numbers<[1], [1], [0], [0], [0, 0, 1, 0], [], []>} : vector<32x4xbf16>, vector<32x4xbf16>, vector<32x32xf32> -> vector<32x32xf32>
    %cst_15 = arith.constant 5.000000e-01 : f32
    %20 = vector.broadcast %cst_15 : f32 to vector<32x32xf32>
    %21 = arith.mulf %19, %20 : vector<32x32xf32>
    %22 = arith.addf %21, %9 : vector<32x32xf32>
    %cst_16 = arith.constant dense<0xFF800000> : vector<32xf32>
    %23 = vector.multi_reduction <maximumf>, %22, %cst_16 [1] : vector<32x32xf32> to vector<32xf32>
    %24 = vector.shape_cast %23 : vector<32xf32> to vector<32x1xf32>
    %25 = vector.broadcast %24 : vector<32x1xf32> to vector<32x32xf32>
    %26 = arith.subf %22, %25 : vector<32x32xf32>
    %27 = math.exp %26 : vector<32x32xf32>
    %cst_17 = arith.constant dense<0.000000e+00> : vector<32xf32>
    %28 = vector.multi_reduction <add>, %27, %cst_17 [1] : vector<32x32xf32> to vector<32xf32>
    %29 = vector.shape_cast %28 : vector<32xf32> to vector<32x1xf32>
    %30 = tpu.reciprocal %29 {approx = true} : vector<32x1xf32> -> vector<32x1xf32>
    %31 = vector.broadcast %30 : vector<32x1xf32> to vector<32x32xf32>
    %32 = arith.mulf %27, %31 : vector<32x32xf32>
    %33 = arith.truncf %32 : vector<32x32xf32> to vector<32x32xbf16>
    %34 = arith.truncf %18 : vector<32x32xf32> to vector<32x32xbf16>
    %cst_18 = arith.constant dense<0.000000e+00> : vector<32x32xf32>
    %35 = tpu.matmul %33, %34, %cst_18 {dimension_numbers = #tpu.dot_dimension_numbers<[1], [0], [0], [1], [0, 0, 1, 1], [], []>} : vector<32x32xbf16>, vector<32x32xbf16>, vector<32x32xf32> -> vector<32x32xf32>
    %36 = arith.addf %11, %35 : vector<32x32xf32>
    %37 = vector.extract_strided_slice %8 {offsets = [0, 4], sizes = [32, 4], strides = [1, 1]} : vector<32x64xf32> to vector<32x4xf32>
    %38 = arith.truncf %37 : vector<32x4xf32> to vector<32x4xbf16>
    %39 = vector.extract_strided_slice %8 {offsets = [0, 36], sizes = [32, 4], strides = [1, 1]} : vector<32x64xf32> to vector<32x4xf32>
    %40 = arith.truncf %39 : vector<32x4xf32> to vector<32x4xbf16>
    %c1 = arith.constant 1 : index
    %c0_19 = arith.constant 0 : index
    %c0_20 = arith.constant 0 : index
    %41 = vector.load %arg5[%c1, %c0_19, %c0_20] : memref<8x32x32xbf16, #tpu.memory_space<vmem>>, vector<1x32x32xbf16>
    %42 = vector.shape_cast %41 : vector<1x32x32xbf16> to vector<32x32xbf16>
    %cst_21 = arith.constant dense<0.000000e+00> : vector<32x32xf32>
    %43 = tpu.matmul %10, %42, %cst_21 {dimension_numbers = #tpu.dot_dimension_numbers<[1], [0], [0], [1], [0, 0, 1, 1], [], []>} : vector<32x32xbf16>, vector<32x32xbf16>, vector<32x32xf32> -> vector<32x32xf32>
    %cst_22 = arith.constant dense<0.000000e+00> : vector<32x32xf32>
    %44 = tpu.matmul %38, %40, %cst_22 {dimension_numbers = #tpu.dot_dimension_numbers<[1], [1], [0], [0], [0, 0, 1, 0], [], []>} : vector<32x4xbf16>, vector<32x4xbf16>, vector<32x32xf32> -> vector<32x32xf32>
    %cst_23 = arith.constant 5.000000e-01 : f32
    %45 = vector.broadcast %cst_23 : f32 to vector<32x32xf32>
    %46 = arith.mulf %44, %45 : vector<32x32xf32>
    %47 = arith.addf %46, %9 : vector<32x32xf32>
    %cst_24 = arith.constant dense<0xFF800000> : vector<32xf32>
    %48 = vector.multi_reduction <maximumf>, %47, %cst_24 [1] : vector<32x32xf32> to vector<32xf32>
    %49 = vector.shape_cast %48 : vector<32xf32> to vector<32x1xf32>
    %50 = vector.broadcast %49 : vector<32x1xf32> to vector<32x32xf32>
    %51 = arith.subf %47, %50 : vector<32x32xf32>
    %52 = math.exp %51 : vector<32x32xf32>
    %cst_25 = arith.constant dense<0.000000e+00> : vector<32xf32>
    %53 = vector.multi_reduction <add>, %52, %cst_25 [1] : vector<32x32xf32> to vector<32xf32>
    %54 = vector.shape_cast %53 : vector<32xf32> to vector<32x1xf32>
    %55 = tpu.reciprocal %54 {approx = true} : vector<32x1xf32> -> vector<32x1xf32>
    %56 = vector.broadcast %55 : vector<32x1xf32> to vector<32x32xf32>
    %57 = arith.mulf %52, %56 : vector<32x32xf32>
    %58 = arith.truncf %57 : vector<32x32xf32> to vector<32x32xbf16>
    %59 = arith.truncf %43 : vector<32x32xf32> to vector<32x32xbf16>
    %cst_26 = arith.constant dense<0.000000e+00> : vector<32x32xf32>
    %60 = tpu.matmul %58, %59, %cst_26 {dimension_numbers = #tpu.dot_dimension_numbers<[1], [0], [0], [1], [0, 0, 1, 1], [], []>} : vector<32x32xbf16>, vector<32x32xbf16>, vector<32x32xf32> -> vector<32x32xf32>
    %61 = arith.addf %36, %60 : vector<32x32xf32>
    %62 = vector.extract_strided_slice %8 {offsets = [0, 8], sizes = [32, 4], strides = [1, 1]} : vector<32x64xf32> to vector<32x4xf32>
    %63 = arith.truncf %62 : vector<32x4xf32> to vector<32x4xbf16>
    %64 = vector.extract_strided_slice %8 {offsets = [0, 40], sizes = [32, 4], strides = [1, 1]} : vector<32x64xf32> to vector<32x4xf32>
    %65 = arith.truncf %64 : vector<32x4xf32> to vector<32x4xbf16>
    %c2 = arith.constant 2 : index
    %c0_27 = arith.constant 0 : index
    %c0_28 = arith.constant 0 : index
    %66 = vector.load %arg5[%c2, %c0_27, %c0_28] : memref<8x32x32xbf16, #tpu.memory_space<vmem>>, vector<1x32x32xbf16>
    %67 = vector.shape_cast %66 : vector<1x32x32xbf16> to vector<32x32xbf16>
    %cst_29 = arith.constant dense<0.000000e+00> : vector<32x32xf32>
    %68 = tpu.matmul %10, %67, %cst_29 {dimension_numbers = #tpu.dot_dimension_numbers<[1], [0], [0], [1], [0, 0, 1, 1], [], []>} : vector<32x32xbf16>, vector<32x32xbf16>, vector<32x32xf32> -> vector<32x32xf32>
    %cst_30 = arith.constant dense<0.000000e+00> : vector<32x32xf32>
    %69 = tpu.matmul %63, %65, %cst_30 {dimension_numbers = #tpu.dot_dimension_numbers<[1], [1], [0], [0], [0, 0, 1, 0], [], []>} : vector<32x4xbf16>, vector<32x4xbf16>, vector<32x32xf32> -> vector<32x32xf32>
    %cst_31 = arith.constant 5.000000e-01 : f32
    %70 = vector.broadcast %cst_31 : f32 to vector<32x32xf32>
    %71 = arith.mulf %69, %70 : vector<32x32xf32>
    %72 = arith.addf %71, %9 : vector<32x32xf32>
    %cst_32 = arith.constant dense<0xFF800000> : vector<32xf32>
    %73 = vector.multi_reduction <maximumf>, %72, %cst_32 [1] : vector<32x32xf32> to vector<32xf32>
    %74 = vector.shape_cast %73 : vector<32xf32> to vector<32x1xf32>
    %75 = vector.broadcast %74 : vector<32x1xf32> to vector<32x32xf32>
    %76 = arith.subf %72, %75 : vector<32x32xf32>
    %77 = math.exp %76 : vector<32x32xf32>
    %cst_33 = arith.constant dense<0.000000e+00> : vector<32xf32>
    %78 = vector.multi_reduction <add>, %77, %cst_33 [1] : vector<32x32xf32> to vector<32xf32>
    %79 = vector.shape_cast %78 : vector<32xf32> to vector<32x1xf32>
    %80 = tpu.reciprocal %79 {approx = true} : vector<32x1xf32> -> vector<32x1xf32>
    %81 = vector.broadcast %80 : vector<32x1xf32> to vector<32x32xf32>
    %82 = arith.mulf %77, %81 : vector<32x32xf32>
    %83 = arith.truncf %82 : vector<32x32xf32> to vector<32x32xbf16>
    %84 = arith.truncf %68 : vector<32x32xf32> to vector<32x32xbf16>
    %cst_34 = arith.constant dense<0.000000e+00> : vector<32x32xf32>
    %85 = tpu.matmul %83, %84, %cst_34 {dimension_numbers = #tpu.dot_dimension_numbers<[1], [0], [0], [1], [0, 0, 1, 1], [], []>} : vector<32x32xbf16>, vector<32x32xbf16>, vector<32x32xf32> -> vector<32x32xf32>
    %86 = arith.addf %61, %85 : vector<32x32xf32>
    %87 = vector.extract_strided_slice %8 {offsets = [0, 12], sizes = [32, 4], strides = [1, 1]} : vector<32x64xf32> to vector<32x4xf32>
    %88 = arith.truncf %87 : vector<32x4xf32> to vector<32x4xbf16>
    %89 = vector.extract_strided_slice %8 {offsets = [0, 44], sizes = [32, 4], strides = [1, 1]} : vector<32x64xf32> to vector<32x4xf32>
    %90 = arith.truncf %89 : vector<32x4xf32> to vector<32x4xbf16>
    %c3 = arith.constant 3 : index
    %c0_35 = arith.constant 0 : index
    %c0_36 = arith.constant 0 : index
    %91 = vector.load %arg5[%c3, %c0_35, %c0_36] : memref<8x32x32xbf16, #tpu.memory_space<vmem>>, vector<1x32x32xbf16>
    %92 = vector.shape_cast %91 : vector<1x32x32xbf16> to vector<32x32xbf16>
    %cst_37 = arith.constant dense<0.000000e+00> : vector<32x32xf32>
    %93 = tpu.matmul %10, %92, %cst_37 {dimension_numbers = #tpu.dot_dimension_numbers<[1], [0], [0], [1], [0, 0, 1, 1], [], []>} : vector<32x32xbf16>, vector<32x32xbf16>, vector<32x32xf32> -> vector<32x32xf32>
    %cst_38 = arith.constant dense<0.000000e+00> : vector<32x32xf32>
    %94 = tpu.matmul %88, %90, %cst_38 {dimension_numbers = #tpu.dot_dimension_numbers<[1], [1], [0], [0], [0, 0, 1, 0], [], []>} : vector<32x4xbf16>, vector<32x4xbf16>, vector<32x32xf32> -> vector<32x32xf32>
    %cst_39 = arith.constant 5.000000e-01 : f32
    %95 = vector.broadcast %cst_39 : f32 to vector<32x32xf32>
    %96 = arith.mulf %94, %95 : vector<32x32xf32>
    %97 = arith.addf %96, %9 : vector<32x32xf32>
    %cst_40 = arith.constant dense<0xFF800000> : vector<32xf32>
    %98 = vector.multi_reduction <maximumf>, %97, %cst_40 [1] : vector<32x32xf32> to vector<32xf32>
    %99 = vector.shape_cast %98 : vector<32xf32> to vector<32x1xf32>
    %100 = vector.broadcast %99 : vector<32x1xf32> to vector<32x32xf32>
    %101 = arith.subf %97, %100 : vector<32x32xf32>
    %102 = math.exp %101 : vector<32x32xf32>
    %cst_41 = arith.constant dense<0.000000e+00> : vector<32xf32>
    %103 = vector.multi_reduction <add>, %102, %cst_41 [1] : vector<32x32xf32> to vector<32xf32>
    %104 = vector.shape_cast %103 : vector<32xf32> to vector<32x1xf32>
    %105 = tpu.reciprocal %104 {approx = true} : vector<32x1xf32> -> vector<32x1xf32>
    %106 = vector.broadcast %105 : vector<32x1xf32> to vector<32x32xf32>
    %107 = arith.mulf %102, %106 : vector<32x32xf32>
    %108 = arith.truncf %107 : vector<32x32xf32> to vector<32x32xbf16>
    %109 = arith.truncf %93 : vector<32x32xf32> to vector<32x32xbf16>
    %cst_42 = arith.constant dense<0.000000e+00> : vector<32x32xf32>
    %110 = tpu.matmul %108, %109, %cst_42 {dimension_numbers = #tpu.dot_dimension_numbers<[1], [0], [0], [1], [0, 0, 1, 1], [], []>} : vector<32x32xbf16>, vector<32x32xbf16>, vector<32x32xf32> -> vector<32x32xf32>
    %111 = arith.addf %86, %110 : vector<32x32xf32>
    %112 = vector.extract_strided_slice %8 {offsets = [0, 16], sizes = [32, 4], strides = [1, 1]} : vector<32x64xf32> to vector<32x4xf32>
    %113 = arith.truncf %112 : vector<32x4xf32> to vector<32x4xbf16>
    %114 = vector.extract_strided_slice %8 {offsets = [0, 48], sizes = [32, 4], strides = [1, 1]} : vector<32x64xf32> to vector<32x4xf32>
    %115 = arith.truncf %114 : vector<32x4xf32> to vector<32x4xbf16>
    %c4 = arith.constant 4 : index
    %c0_43 = arith.constant 0 : index
    %c0_44 = arith.constant 0 : index
    %116 = vector.load %arg5[%c4, %c0_43, %c0_44] : memref<8x32x32xbf16, #tpu.memory_space<vmem>>, vector<1x32x32xbf16>
    %117 = vector.shape_cast %116 : vector<1x32x32xbf16> to vector<32x32xbf16>
    %cst_45 = arith.constant dense<0.000000e+00> : vector<32x32xf32>
    %118 = tpu.matmul %10, %117, %cst_45 {dimension_numbers = #tpu.dot_dimension_numbers<[1], [0], [0], [1], [0, 0, 1, 1], [], []>} : vector<32x32xbf16>, vector<32x32xbf16>, vector<32x32xf32> -> vector<32x32xf32>
    %cst_46 = arith.constant dense<0.000000e+00> : vector<32x32xf32>
    %119 = tpu.matmul %113, %115, %cst_46 {dimension_numbers = #tpu.dot_dimension_numbers<[1], [1], [0], [0], [0, 0, 1, 0], [], []>} : vector<32x4xbf16>, vector<32x4xbf16>, vector<32x32xf32> -> vector<32x32xf32>
    %cst_47 = arith.constant 5.000000e-01 : f32
    %120 = vector.broadcast %cst_47 : f32 to vector<32x32xf32>
    %121 = arith.mulf %119, %120 : vector<32x32xf32>
    %122 = arith.addf %121, %9 : vector<32x32xf32>
    %cst_48 = arith.constant dense<0xFF800000> : vector<32xf32>
    %123 = vector.multi_reduction <maximumf>, %122, %cst_48 [1] : vector<32x32xf32> to vector<32xf32>
    %124 = vector.shape_cast %123 : vector<32xf32> to vector<32x1xf32>
    %125 = vector.broadcast %124 : vector<32x1xf32> to vector<32x32xf32>
    %126 = arith.subf %122, %125 : vector<32x32xf32>
    %127 = math.exp %126 : vector<32x32xf32>
    %cst_49 = arith.constant dense<0.000000e+00> : vector<32xf32>
    %128 = vector.multi_reduction <add>, %127, %cst_49 [1] : vector<32x32xf32> to vector<32xf32>
    %129 = vector.shape_cast %128 : vector<32xf32> to vector<32x1xf32>
    %130 = tpu.reciprocal %129 {approx = true} : vector<32x1xf32> -> vector<32x1xf32>
    %131 = vector.broadcast %130 : vector<32x1xf32> to vector<32x32xf32>
    %132 = arith.mulf %127, %131 : vector<32x32xf32>
    %133 = arith.truncf %132 : vector<32x32xf32> to vector<32x32xbf16>
    %134 = arith.truncf %118 : vector<32x32xf32> to vector<32x32xbf16>
    %cst_50 = arith.constant dense<0.000000e+00> : vector<32x32xf32>
    %135 = tpu.matmul %133, %134, %cst_50 {dimension_numbers = #tpu.dot_dimension_numbers<[1], [0], [0], [1], [0, 0, 1, 1], [], []>} : vector<32x32xbf16>, vector<32x32xbf16>, vector<32x32xf32> -> vector<32x32xf32>
    %136 = arith.addf %111, %135 : vector<32x32xf32>
    %137 = vector.extract_strided_slice %8 {offsets = [0, 20], sizes = [32, 4], strides = [1, 1]} : vector<32x64xf32> to vector<32x4xf32>
    %138 = arith.truncf %137 : vector<32x4xf32> to vector<32x4xbf16>
    %139 = vector.extract_strided_slice %8 {offsets = [0, 52], sizes = [32, 4], strides = [1, 1]} : vector<32x64xf32> to vector<32x4xf32>
    %140 = arith.truncf %139 : vector<32x4xf32> to vector<32x4xbf16>
    %c5 = arith.constant 5 : index
    %c0_51 = arith.constant 0 : index
    %c0_52 = arith.constant 0 : index
    %141 = vector.load %arg5[%c5, %c0_51, %c0_52] : memref<8x32x32xbf16, #tpu.memory_space<vmem>>, vector<1x32x32xbf16>
    %142 = vector.shape_cast %141 : vector<1x32x32xbf16> to vector<32x32xbf16>
    %cst_53 = arith.constant dense<0.000000e+00> : vector<32x32xf32>
    %143 = tpu.matmul %10, %142, %cst_53 {dimension_numbers = #tpu.dot_dimension_numbers<[1], [0], [0], [1], [0, 0, 1, 1], [], []>} : vector<32x32xbf16>, vector<32x32xbf16>, vector<32x32xf32> -> vector<32x32xf32>
    %cst_54 = arith.constant dense<0.000000e+00> : vector<32x32xf32>
    %144 = tpu.matmul %138, %140, %cst_54 {dimension_numbers = #tpu.dot_dimension_numbers<[1], [1], [0], [0], [0, 0, 1, 0], [], []>} : vector<32x4xbf16>, vector<32x4xbf16>, vector<32x32xf32> -> vector<32x32xf32>
    %cst_55 = arith.constant 5.000000e-01 : f32
    %145 = vector.broadcast %cst_55 : f32 to vector<32x32xf32>
    %146 = arith.mulf %144, %145 : vector<32x32xf32>
    %147 = arith.addf %146, %9 : vector<32x32xf32>
    %cst_56 = arith.constant dense<0xFF800000> : vector<32xf32>
    %148 = vector.multi_reduction <maximumf>, %147, %cst_56 [1] : vector<32x32xf32> to vector<32xf32>
    %149 = vector.shape_cast %148 : vector<32xf32> to vector<32x1xf32>
    %150 = vector.broadcast %149 : vector<32x1xf32> to vector<32x32xf32>
    %151 = arith.subf %147, %150 : vector<32x32xf32>
    %152 = math.exp %151 : vector<32x32xf32>
    %cst_57 = arith.constant dense<0.000000e+00> : vector<32xf32>
    %153 = vector.multi_reduction <add>, %152, %cst_57 [1] : vector<32x32xf32> to vector<32xf32>
    %154 = vector.shape_cast %153 : vector<32xf32> to vector<32x1xf32>
    %155 = tpu.reciprocal %154 {approx = true} : vector<32x1xf32> -> vector<32x1xf32>
    %156 = vector.broadcast %155 : vector<32x1xf32> to vector<32x32xf32>
    %157 = arith.mulf %152, %156 : vector<32x32xf32>
    %158 = arith.truncf %157 : vector<32x32xf32> to vector<32x32xbf16>
    %159 = arith.truncf %143 : vector<32x32xf32> to vector<32x32xbf16>
    %cst_58 = arith.constant dense<0.000000e+00> : vector<32x32xf32>
    %160 = tpu.matmul %158, %159, %cst_58 {dimension_numbers = #tpu.dot_dimension_numbers<[1], [0], [0], [1], [0, 0, 1, 1], [], []>} : vector<32x32xbf16>, vector<32x32xbf16>, vector<32x32xf32> -> vector<32x32xf32>
    %161 = arith.addf %136, %160 : vector<32x32xf32>
    %162 = vector.extract_strided_slice %8 {offsets = [0, 24], sizes = [32, 4], strides = [1, 1]} : vector<32x64xf32> to vector<32x4xf32>
    %163 = arith.truncf %162 : vector<32x4xf32> to vector<32x4xbf16>
    %164 = vector.extract_strided_slice %8 {offsets = [0, 56], sizes = [32, 4], strides = [1, 1]} : vector<32x64xf32> to vector<32x4xf32>
    %165 = arith.truncf %164 : vector<32x4xf32> to vector<32x4xbf16>
    %c6 = arith.constant 6 : index
    %c0_59 = arith.constant 0 : index
    %c0_60 = arith.constant 0 : index
    %166 = vector.load %arg5[%c6, %c0_59, %c0_60] : memref<8x32x32xbf16, #tpu.memory_space<vmem>>, vector<1x32x32xbf16>
    %167 = vector.shape_cast %166 : vector<1x32x32xbf16> to vector<32x32xbf16>
    %cst_61 = arith.constant dense<0.000000e+00> : vector<32x32xf32>
    %168 = tpu.matmul %10, %167, %cst_61 {dimension_numbers = #tpu.dot_dimension_numbers<[1], [0], [0], [1], [0, 0, 1, 1], [], []>} : vector<32x32xbf16>, vector<32x32xbf16>, vector<32x32xf32> -> vector<32x32xf32>
    %cst_62 = arith.constant dense<0.000000e+00> : vector<32x32xf32>
    %169 = tpu.matmul %163, %165, %cst_62 {dimension_numbers = #tpu.dot_dimension_numbers<[1], [1], [0], [0], [0, 0, 1, 0], [], []>} : vector<32x4xbf16>, vector<32x4xbf16>, vector<32x32xf32> -> vector<32x32xf32>
    %cst_63 = arith.constant 5.000000e-01 : f32
    %170 = vector.broadcast %cst_63 : f32 to vector<32x32xf32>
    %171 = arith.mulf %169, %170 : vector<32x32xf32>
    %172 = arith.addf %171, %9 : vector<32x32xf32>
    %cst_64 = arith.constant dense<0xFF800000> : vector<32xf32>
    %173 = vector.multi_reduction <maximumf>, %172, %cst_64 [1] : vector<32x32xf32> to vector<32xf32>
    %174 = vector.shape_cast %173 : vector<32xf32> to vector<32x1xf32>
    %175 = vector.broadcast %174 : vector<32x1xf32> to vector<32x32xf32>
    %176 = arith.subf %172, %175 : vector<32x32xf32>
    %177 = math.exp %176 : vector<32x32xf32>
    %cst_65 = arith.constant dense<0.000000e+00> : vector<32xf32>
    %178 = vector.multi_reduction <add>, %177, %cst_65 [1] : vector<32x32xf32> to vector<32xf32>
    %179 = vector.shape_cast %178 : vector<32xf32> to vector<32x1xf32>
    %180 = tpu.reciprocal %179 {approx = true} : vector<32x1xf32> -> vector<32x1xf32>
    %181 = vector.broadcast %180 : vector<32x1xf32> to vector<32x32xf32>
    %182 = arith.mulf %177, %181 : vector<32x32xf32>
    %183 = arith.truncf %182 : vector<32x32xf32> to vector<32x32xbf16>
    %184 = arith.truncf %168 : vector<32x32xf32> to vector<32x32xbf16>
    %cst_66 = arith.constant dense<0.000000e+00> : vector<32x32xf32>
    %185 = tpu.matmul %183, %184, %cst_66 {dimension_numbers = #tpu.dot_dimension_numbers<[1], [0], [0], [1], [0, 0, 1, 1], [], []>} : vector<32x32xbf16>, vector<32x32xbf16>, vector<32x32xf32> -> vector<32x32xf32>
    %186 = arith.addf %161, %185 : vector<32x32xf32>
    %187 = vector.extract_strided_slice %8 {offsets = [0, 28], sizes = [32, 4], strides = [1, 1]} : vector<32x64xf32> to vector<32x4xf32>
    %188 = arith.truncf %187 : vector<32x4xf32> to vector<32x4xbf16>
    %189 = vector.extract_strided_slice %8 {offsets = [0, 60], sizes = [32, 4], strides = [1, 1]} : vector<32x64xf32> to vector<32x4xf32>
    %190 = arith.truncf %189 : vector<32x4xf32> to vector<32x4xbf16>
    %c7 = arith.constant 7 : index
    %c0_67 = arith.constant 0 : index
    %c0_68 = arith.constant 0 : index
    %191 = vector.load %arg5[%c7, %c0_67, %c0_68] : memref<8x32x32xbf16, #tpu.memory_space<vmem>>, vector<1x32x32xbf16>
    %192 = vector.shape_cast %191 : vector<1x32x32xbf16> to vector<32x32xbf16>
    %cst_69 = arith.constant dense<0.000000e+00> : vector<32x32xf32>
    %193 = tpu.matmul %10, %192, %cst_69 {dimension_numbers = #tpu.dot_dimension_numbers<[1], [0], [0], [1], [0, 0, 1, 1], [], []>} : vector<32x32xbf16>, vector<32x32xbf16>, vector<32x32xf32> -> vector<32x32xf32>
    %cst_70 = arith.constant dense<0.000000e+00> : vector<32x32xf32>
    %194 = tpu.matmul %188, %190, %cst_70 {dimension_numbers = #tpu.dot_dimension_numbers<[1], [1], [0], [0], [0, 0, 1, 0], [], []>} : vector<32x4xbf16>, vector<32x4xbf16>, vector<32x32xf32> -> vector<32x32xf32>
    %cst_71 = arith.constant 5.000000e-01 : f32
    %195 = vector.broadcast %cst_71 : f32 to vector<32x32xf32>
    %196 = arith.mulf %194, %195 : vector<32x32xf32>
    %197 = arith.addf %196, %9 : vector<32x32xf32>
    %cst_72 = arith.constant dense<0xFF800000> : vector<32xf32>
    %198 = vector.multi_reduction <maximumf>, %197, %cst_72 [1] : vector<32x32xf32> to vector<32xf32>
    %199 = vector.shape_cast %198 : vector<32xf32> to vector<32x1xf32>
    %200 = vector.broadcast %199 : vector<32x1xf32> to vector<32x32xf32>
    %201 = arith.subf %197, %200 : vector<32x32xf32>
    %202 = math.exp %201 : vector<32x32xf32>
    %cst_73 = arith.constant dense<0.000000e+00> : vector<32xf32>
    %203 = vector.multi_reduction <add>, %202, %cst_73 [1] : vector<32x32xf32> to vector<32xf32>
    %204 = vector.shape_cast %203 : vector<32xf32> to vector<32x1xf32>
    %205 = tpu.reciprocal %204 {approx = true} : vector<32x1xf32> -> vector<32x1xf32>
    %206 = vector.broadcast %205 : vector<32x1xf32> to vector<32x32xf32>
    %207 = arith.mulf %202, %206 : vector<32x32xf32>
    %208 = arith.truncf %207 : vector<32x32xf32> to vector<32x32xbf16>
    %209 = arith.truncf %193 : vector<32x32xf32> to vector<32x32xbf16>
    %cst_74 = arith.constant dense<0.000000e+00> : vector<32x32xf32>
    %210 = tpu.matmul %208, %209, %cst_74 {dimension_numbers = #tpu.dot_dimension_numbers<[1], [0], [0], [1], [0, 0, 1, 1], [], []>} : vector<32x32xbf16>, vector<32x32xbf16>, vector<32x32xf32> -> vector<32x32xf32>
    %211 = arith.addf %186, %210 : vector<32x32xf32>
    %c0_75 = arith.constant 0 : index
    %c0_76 = arith.constant 0 : index
    %212 = vector.load %arg6[%c0_75, %c0_76] : memref<1x32xf32, #tpu.memory_space<vmem>>, vector<1x32xf32>
    %213 = vector.broadcast %212 : vector<1x32xf32> to vector<32x32xf32>
    %214 = arith.addf %211, %213 : vector<32x32xf32>
    %215 = arith.addf %0, %214 : vector<32x32xf32>
    %c0_77 = arith.constant 0 : index
    %c0_78 = arith.constant 0 : index
    %216 = vector.load %arg7[%c0_77, %c0_78] : memref<1x32xf32, #tpu.memory_space<vmem>>, vector<1x32xf32>
    %c0_79 = arith.constant 0 : index
    %c0_80 = arith.constant 0 : index
    %217 = vector.load %arg8[%c0_79, %c0_80] : memref<1x32xf32, #tpu.memory_space<vmem>>, vector<1x32xf32>
    %cst_81 = arith.constant dense<0.000000e+00> : vector<32xf32>
    %218 = vector.multi_reduction <add>, %215, %cst_81 [1] : vector<32x32xf32> to vector<32xf32>
    %219 = vector.shape_cast %218 : vector<32xf32> to vector<32x1xf32>
    %cst_82 = arith.constant 3.200000e+01 : f32
    %220 = vector.broadcast %cst_82 : f32 to vector<32x1xf32>
    %221 = arith.divf %219, %220 : vector<32x1xf32>
    %222 = vector.broadcast %221 : vector<32x1xf32> to vector<32x32xf32>
    %223 = arith.subf %215, %222 : vector<32x32xf32>
    %224 = arith.mulf %223, %223 : vector<32x32xf32>
    %cst_83 = arith.constant dense<0.000000e+00> : vector<32xf32>
    %225 = vector.multi_reduction <add>, %224, %cst_83 [1] : vector<32x32xf32> to vector<32xf32>
    %226 = vector.shape_cast %225 : vector<32xf32> to vector<32x1xf32>
    %cst_84 = arith.constant 3.200000e+01 : f32
    %227 = vector.broadcast %cst_84 : f32 to vector<32x1xf32>
    %228 = arith.divf %226, %227 : vector<32x1xf32>
    %229 = vector.broadcast %221 : vector<32x1xf32> to vector<32x32xf32>
    %230 = arith.subf %215, %229 : vector<32x32xf32>
    %cst_85 = arith.constant 9.99999974E-6 : f32
    %231 = vector.broadcast %cst_85 : f32 to vector<32x1xf32>
    %232 = arith.addf %228, %231 : vector<32x1xf32>
    %233 = math.rsqrt %232 : vector<32x1xf32>
    %234 = vector.broadcast %233 : vector<32x1xf32> to vector<32x32xf32>
    %235 = arith.mulf %230, %234 : vector<32x32xf32>
    %236 = vector.broadcast %216 : vector<1x32xf32> to vector<32x32xf32>
    %237 = arith.mulf %235, %236 : vector<32x32xf32>
    %238 = vector.broadcast %217 : vector<1x32xf32> to vector<32x32xf32>
    %239 = arith.addf %237, %238 : vector<32x32xf32>
    %240 = arith.addf %239, %1 : vector<32x32xf32>
    %241 = arith.truncf %240 : vector<32x32xf32> to vector<32x32xbf16>
    %c0_86 = arith.constant 0 : index
    %c0_87 = arith.constant 0 : index
    %242 = vector.load %arg9[%c0_86, %c0_87] : memref<32x192xbf16, #tpu.memory_space<vmem>>, vector<32x192xbf16>
    %cst_88 = arith.constant dense<0.000000e+00> : vector<32x192xf32>
    %243 = tpu.matmul %241, %242, %cst_88 {dimension_numbers = #tpu.dot_dimension_numbers<[1], [0], [0], [1], [0, 0, 1, 1], [], []>} : vector<32x32xbf16>, vector<32x192xbf16>, vector<32x192xf32> -> vector<32x192xf32>
    %c0_89 = arith.constant 0 : index
    %c0_90 = arith.constant 0 : index
    %244 = vector.load %arg10[%c0_89, %c0_90] : memref<1x192xf32, #tpu.memory_space<vmem>>, vector<1x192xf32>
    %245 = vector.broadcast %244 : vector<1x192xf32> to vector<32x192xf32>
    %246 = arith.addf %243, %245 : vector<32x192xf32>
    %247 = vector.extract_strided_slice %246 {offsets = [0, 0], sizes = [32, 128], strides = [1, 1]} : vector<32x192xf32> to vector<32x128xf32>
    %248 = vector.extract_strided_slice %246 {offsets = [0, 128], sizes = [32, 64], strides = [1, 1]} : vector<32x192xf32> to vector<32x64xf32>
    %cst_91 = arith.constant dense<0xFF800000> : vector<32xf32>
    %249 = vector.multi_reduction <maximumf>, %248, %cst_91 [1] : vector<32x64xf32> to vector<32xf32>
    %250 = vector.shape_cast %249 : vector<32xf32> to vector<32x1xf32>
    %251 = vector.broadcast %250 : vector<32x1xf32> to vector<32x64xf32>
    %252 = arith.subf %248, %251 : vector<32x64xf32>
    %253 = math.exp %252 : vector<32x64xf32>
    %254 = arith.truncf %253 : vector<32x64xf32> to vector<32x64xbf16>
    %c0_92 = arith.constant 0 : index
    %c0_93 = arith.constant 0 : index
    %255 = vector.load %arg12[%c0_92, %c0_93] : memref<64x64xbf16, #tpu.memory_space<vmem>>, vector<64x64xbf16>
    %cst_94 = arith.constant dense<0.000000e+00> : vector<32x64xf32>
    %256 = tpu.matmul %254, %255, %cst_94 {dimension_numbers = #tpu.dot_dimension_numbers<[1], [0], [0], [1], [0, 0, 1, 1], [], []>} : vector<32x64xbf16>, vector<64x64xbf16>, vector<32x64xf32> -> vector<32x64xf32>
    %cst_95 = arith.constant 9.99999968E-21 : f32
    %257 = vector.broadcast %cst_95 : f32 to vector<32x64xf32>
    %258 = arith.maximumf %256, %257 : vector<32x64xf32>
    %259 = tpu.reciprocal %258 {approx = true} : vector<32x64xf32> -> vector<32x64xf32>
    %260 = arith.mulf %253, %259 : vector<32x64xf32>
    %c0_96 = arith.constant 0 : index
    %c0_97 = arith.constant 0 : index
    %261 = vector.load %arg13[%c0_96, %c0_97] : memref<32x256xf32, #tpu.memory_space<vmem>>, vector<32x32xf32>
    tpu.vector_store %arg13[%c0_96, %c0_97], %239 {strides = array<i32>} : memref<32x256xf32, #tpu.memory_space<vmem>>, vector<32x32xf32>,
    %c0_98 = arith.constant 0 : index
    %c32 = arith.constant 32 : index
    %262 = vector.load %arg13[%c0_98, %c32] : memref<32x256xf32, #tpu.memory_space<vmem>>, vector<32x128xf32>
    tpu.vector_store %arg13[%c0_98, %c32], %247 {strides = array<i32>} : memref<32x256xf32, #tpu.memory_space<vmem>>, vector<32x128xf32>,
    %c0_99 = arith.constant 0 : index
    %c160 = arith.constant 160 : index
    %263 = vector.load %arg13[%c0_99, %c160] : memref<32x256xf32, #tpu.memory_space<vmem>>, vector<32x64xf32>
    tpu.vector_store %arg13[%c0_99, %c160], %260 {strides = array<i32>} : memref<32x256xf32, #tpu.memory_space<vmem>>, vector<32x64xf32>,
    %cst_100 = arith.constant 0.000000e+00 : f32
    %264 = vector.broadcast %cst_100 : f32 to vector<32x32xf32>
    %c0_101 = arith.constant 0 : index
    %c224 = arith.constant 224 : index
    %265 = vector.load %arg13[%c0_101, %c224] : memref<32x256xf32, #tpu.memory_space<vmem>>, vector<32x32xf32>
    tpu.vector_store %arg13[%c0_101, %c224], %264 {strides = array<i32>} : memref<32x256xf32, #tpu.memory_space<vmem>>, vector<32x32xf32>,
    return
  }
  func.func @transform_0(%arg0: i32) -> (i32, i32) {
    %c0_i32 = arith.constant 0 : i32
    %c0_i32_0 = arith.constant 0 : i32
    return %arg0, %c0_i32 : i32, i32
  }
  func.func @transform_1(%arg0: i32) -> (i32, i32) {
    %c0_i32 = arith.constant 0 : i32
    %c0_i32_0 = arith.constant 0 : i32
    return %arg0, %c0_i32 : i32, i32
  }
  func.func @transform_2(%arg0: i32) -> (i32, i32) {
    %c0_i32 = arith.constant 0 : i32
    %c0_i32_0 = arith.constant 0 : i32
    %c0_i32_1 = arith.constant 0 : i32
    return %c0_i32, %c0_i32_0 : i32, i32
  }
  func.func @transform_3(%arg0: i32) -> (i32, i32) {
    %c0_i32 = arith.constant 0 : i32
    %c0_i32_0 = arith.constant 0 : i32
    %c0_i32_1 = arith.constant 0 : i32
    return %c0_i32, %c0_i32_0 : i32, i32
  }
  func.func @transform_4(%arg0: i32) -> (i32, i32, i32) {
    %c0_i32 = arith.constant 0 : i32
    %c0_i32_0 = arith.constant 0 : i32
    %c0_i32_1 = arith.constant 0 : i32
    %c0_i32_2 = arith.constant 0 : i32
    return %c0_i32, %c0_i32_0, %c0_i32_1 : i32, i32, i32
  }
  func.func @transform_5(%arg0: i32) -> (i32, i32) {
    %c0_i32 = arith.constant 0 : i32
    %c0_i32_0 = arith.constant 0 : i32
    %c0_i32_1 = arith.constant 0 : i32
    return %c0_i32, %c0_i32_0 : i32, i32
  }
  func.func @transform_6(%arg0: i32) -> (i32, i32) {
    %c0_i32 = arith.constant 0 : i32
    %c0_i32_0 = arith.constant 0 : i32
    %c0_i32_1 = arith.constant 0 : i32
    return %c0_i32, %c0_i32_0 : i32, i32
  }
  func.func @transform_7(%arg0: i32) -> (i32, i32) {
    %c0_i32 = arith.constant 0 : i32
    %c0_i32_0 = arith.constant 0 : i32
    %c0_i32_1 = arith.constant 0 : i32
    return %c0_i32, %c0_i32_0 : i32, i32
  }
  func.func @transform_8(%arg0: i32) -> (i32, i32) {
    %c0_i32 = arith.constant 0 : i32
    %c0_i32_0 = arith.constant 0 : i32
    %c0_i32_1 = arith.constant 0 : i32
    return %c0_i32, %c0_i32_0 : i32, i32
  }
  func.func @transform_9(%arg0: i32) -> (i32, i32) {
    %c0_i32 = arith.constant 0 : i32
    %c0_i32_0 = arith.constant 0 : i32
    %c0_i32_1 = arith.constant 0 : i32
    return %c0_i32, %c0_i32_0 : i32, i32
  }
  func.func @transform_10(%arg0: i32) -> (i32, i32) {
    %c0_i32 = arith.constant 0 : i32
    %c0_i32_0 = arith.constant 0 : i32
    %c0_i32_1 = arith.constant 0 : i32
    return %c0_i32, %c0_i32_0 : i32, i32
  }
  func.func @transform_11(%arg0: i32) -> (i32, i32) {
    %c0_i32 = arith.constant 0 : i32
    %c0_i32_0 = arith.constant 0 : i32
    %c0_i32_1 = arith.constant 0 : i32
    return %c0_i32, %c0_i32_0 : i32, i32
  }
  func.func @transform_12(%arg0: i32) -> (i32, i32) {
    %c0_i32 = arith.constant 0 : i32
    %c0_i32_0 = arith.constant 0 : i32
    return %arg0, %c0_i32 : i32, i32
  }
}

module attributes {stable_mosaic.version = 11 : i64} {
  func.func @_ca_out_ffn_xy_kernel(%arg0: i32, %arg1: memref<32x32xf32, #tpu.memory_space<vmem>>, %arg2: memref<32x32xf32, #tpu.memory_space<vmem>>, %arg3: memref<32x2xf32, #tpu.memory_space<vmem>>, %arg4: memref<32x32xbf16, #tpu.memory_space<vmem>>, %arg5: memref<1x32xf32, #tpu.memory_space<vmem>>, %arg6: memref<1x32xf32, #tpu.memory_space<vmem>>, %arg7: memref<1x32xf32, #tpu.memory_space<vmem>>, %arg8: memref<32x64xbf16, #tpu.memory_space<vmem>>, %arg9: memref<1x64xf32, #tpu.memory_space<vmem>>, %arg10: memref<64x32xbf16, #tpu.memory_space<vmem>>, %arg11: memref<1x32xf32, #tpu.memory_space<vmem>>, %arg12: memref<1x32xf32, #tpu.memory_space<vmem>>, %arg13: memref<1x32xf32, #tpu.memory_space<vmem>>, %arg14: memref<32x32xbf16, #tpu.memory_space<vmem>>, %arg15: memref<1x32xf32, #tpu.memory_space<vmem>>, %arg16: memref<32x32xbf16, #tpu.memory_space<vmem>>, %arg17: memref<1x32xf32, #tpu.memory_space<vmem>>, %arg18: memref<32x2xbf16, #tpu.memory_space<vmem>>, %arg19: memref<1x2xf32, #tpu.memory_space<vmem>>, %arg20: memref<32x128xf32, #tpu.memory_space<vmem>>) attributes {dimension_semantics = [#tpu.dimension_semantics<parallel>], iteration_bounds = array<i64: 2>, scalar_prefetch = 0 : i64, scratch_operands = 0 : i64, tpu.core_type = #tpu.core_type<tc>, window_params = [{transform_indices = @transform_0, window_bounds = array<i64: 32, 32>}, {transform_indices = @transform_1, window_bounds = array<i64: 32, 32>}, {transform_indices = @transform_2, window_bounds = array<i64: 32, 2>}, {pipeline_mode = #tpu.pipeline_mode<synchronous>, transform_indices = @transform_3, window_bounds = array<i64: 32, 32>}, {pipeline_mode = #tpu.pipeline_mode<synchronous>, transform_indices = @transform_4, window_bounds = array<i64: 1, 32>}, {pipeline_mode = #tpu.pipeline_mode<synchronous>, transform_indices = @transform_5, window_bounds = array<i64: 1, 32>}, {pipeline_mode = #tpu.pipeline_mode<synchronous>, transform_indices = @transform_6, window_bounds = array<i64: 1, 32>}, {pipeline_mode = #tpu.pipeline_mode<synchronous>, transform_indices = @transform_7, window_bounds = array<i64: 32, 64>}, {pipeline_mode = #tpu.pipeline_mode<synchronous>, transform_indices = @transform_8, window_bounds = array<i64: 1, 64>}, {pipeline_mode = #tpu.pipeline_mode<synchronous>, transform_indices = @transform_9, window_bounds = array<i64: 64, 32>}, {pipeline_mode = #tpu.pipeline_mode<synchronous>, transform_indices = @transform_10, window_bounds = array<i64: 1, 32>}, {pipeline_mode = #tpu.pipeline_mode<synchronous>, transform_indices = @transform_11, window_bounds = array<i64: 1, 32>}, {pipeline_mode = #tpu.pipeline_mode<synchronous>, transform_indices = @transform_12, window_bounds = array<i64: 1, 32>}, {pipeline_mode = #tpu.pipeline_mode<synchronous>, transform_indices = @transform_13, window_bounds = array<i64: 32, 32>}, {pipeline_mode = #tpu.pipeline_mode<synchronous>, transform_indices = @transform_14, window_bounds = array<i64: 1, 32>}, {pipeline_mode = #tpu.pipeline_mode<synchronous>, transform_indices = @transform_15, window_bounds = array<i64: 32, 32>}, {pipeline_mode = #tpu.pipeline_mode<synchronous>, transform_indices = @transform_16, window_bounds = array<i64: 1, 32>}, {pipeline_mode = #tpu.pipeline_mode<synchronous>, transform_indices = @transform_17, window_bounds = array<i64: 32, 2>}, {pipeline_mode = #tpu.pipeline_mode<synchronous>, transform_indices = @transform_18, window_bounds = array<i64: 1, 2>}, {transform_indices = @transform_19, window_bounds = array<i64: 32, 128>}]} {
    %c0 = arith.constant 0 : index
    %c0_0 = arith.constant 0 : index
    %0 = vector.load %arg1[%c0, %c0_0] : memref<32x32xf32, #tpu.memory_space<vmem>>, vector<32x32xf32>
    %c0_1 = arith.constant 0 : index
    %c0_2 = arith.constant 0 : index
    %1 = vector.load %arg2[%c0_1, %c0_2] : memref<32x32xf32, #tpu.memory_space<vmem>>, vector<32x32xf32>
    %2 = arith.truncf %1 : vector<32x32xf32> to vector<32x32xbf16>
    %c0_3 = arith.constant 0 : index
    %c0_4 = arith.constant 0 : index
    %3 = vector.load %arg4[%c0_3, %c0_4] : memref<32x32xbf16, #tpu.memory_space<vmem>>, vector<32x32xbf16>
    %cst = arith.constant dense<0.000000e+00> : vector<32x32xf32>
    %4 = tpu.matmul %2, %3, %cst {dimension_numbers = #tpu.dot_dimension_numbers<[1], [0], [0], [1], [0, 0, 1, 1], [], []>} : vector<32x32xbf16>, vector<32x32xbf16>, vector<32x32xf32> -> vector<32x32xf32>
    %c0_5 = arith.constant 0 : index
    %c0_6 = arith.constant 0 : index
    %5 = vector.load %arg5[%c0_5, %c0_6] : memref<1x32xf32, #tpu.memory_space<vmem>>, vector<1x32xf32>
    %6 = vector.broadcast %5 : vector<1x32xf32> to vector<32x32xf32>
    %7 = arith.addf %4, %6 : vector<32x32xf32>
    %8 = arith.addf %0, %7 : vector<32x32xf32>
    %c0_7 = arith.constant 0 : index
    %c0_8 = arith.constant 0 : index
    %9 = vector.load %arg6[%c0_7, %c0_8] : memref<1x32xf32, #tpu.memory_space<vmem>>, vector<1x32xf32>
    %c0_9 = arith.constant 0 : index
    %c0_10 = arith.constant 0 : index
    %10 = vector.load %arg7[%c0_9, %c0_10] : memref<1x32xf32, #tpu.memory_space<vmem>>, vector<1x32xf32>
    %cst_11 = arith.constant dense<0.000000e+00> : vector<32xf32>
    %11 = vector.multi_reduction <add>, %8, %cst_11 [1] : vector<32x32xf32> to vector<32xf32>
    %12 = vector.shape_cast %11 : vector<32xf32> to vector<32x1xf32>
    %cst_12 = arith.constant 3.200000e+01 : f32
    %13 = vector.broadcast %cst_12 : f32 to vector<32x1xf32>
    %14 = arith.divf %12, %13 : vector<32x1xf32>
    %15 = vector.broadcast %14 : vector<32x1xf32> to vector<32x32xf32>
    %16 = arith.subf %8, %15 : vector<32x32xf32>
    %17 = arith.mulf %16, %16 : vector<32x32xf32>
    %cst_13 = arith.constant dense<0.000000e+00> : vector<32xf32>
    %18 = vector.multi_reduction <add>, %17, %cst_13 [1] : vector<32x32xf32> to vector<32xf32>
    %19 = vector.shape_cast %18 : vector<32xf32> to vector<32x1xf32>
    %cst_14 = arith.constant 3.200000e+01 : f32
    %20 = vector.broadcast %cst_14 : f32 to vector<32x1xf32>
    %21 = arith.divf %19, %20 : vector<32x1xf32>
    %22 = vector.broadcast %14 : vector<32x1xf32> to vector<32x32xf32>
    %23 = arith.subf %8, %22 : vector<32x32xf32>
    %cst_15 = arith.constant 9.99999974E-6 : f32
    %24 = vector.broadcast %cst_15 : f32 to vector<32x1xf32>
    %25 = arith.addf %21, %24 : vector<32x1xf32>
    %26 = math.rsqrt %25 : vector<32x1xf32>
    %27 = vector.broadcast %26 : vector<32x1xf32> to vector<32x32xf32>
    %28 = arith.mulf %23, %27 : vector<32x32xf32>
    %29 = vector.broadcast %9 : vector<1x32xf32> to vector<32x32xf32>
    %30 = arith.mulf %28, %29 : vector<32x32xf32>
    %31 = vector.broadcast %10 : vector<1x32xf32> to vector<32x32xf32>
    %32 = arith.addf %30, %31 : vector<32x32xf32>
    %33 = arith.truncf %32 : vector<32x32xf32> to vector<32x32xbf16>
    %c0_16 = arith.constant 0 : index
    %c0_17 = arith.constant 0 : index
    %34 = vector.load %arg8[%c0_16, %c0_17] : memref<32x64xbf16, #tpu.memory_space<vmem>>, vector<32x64xbf16>
    %cst_18 = arith.constant dense<0.000000e+00> : vector<32x64xf32>
    %35 = tpu.matmul %33, %34, %cst_18 {dimension_numbers = #tpu.dot_dimension_numbers<[1], [0], [0], [1], [0, 0, 1, 1], [], []>} : vector<32x32xbf16>, vector<32x64xbf16>, vector<32x64xf32> -> vector<32x64xf32>
    %c0_19 = arith.constant 0 : index
    %c0_20 = arith.constant 0 : index
    %36 = vector.load %arg9[%c0_19, %c0_20] : memref<1x64xf32, #tpu.memory_space<vmem>>, vector<1x64xf32>
    %37 = vector.broadcast %36 : vector<1x64xf32> to vector<32x64xf32>
    %38 = arith.addf %35, %37 : vector<32x64xf32>
    %cst_21 = arith.constant 0.000000e+00 : f32
    %39 = vector.broadcast %cst_21 : f32 to vector<32x64xf32>
    %40 = arith.maximumf %38, %39 : vector<32x64xf32>
    %41 = arith.truncf %40 : vector<32x64xf32> to vector<32x64xbf16>
    %c0_22 = arith.constant 0 : index
    %c0_23 = arith.constant 0 : index
    %42 = vector.load %arg10[%c0_22, %c0_23] : memref<64x32xbf16, #tpu.memory_space<vmem>>, vector<64x32xbf16>
    %cst_24 = arith.constant dense<0.000000e+00> : vector<32x32xf32>
    %43 = tpu.matmul %41, %42, %cst_24 {dimension_numbers = #tpu.dot_dimension_numbers<[1], [0], [0], [1], [0, 0, 1, 1], [], []>} : vector<32x64xbf16>, vector<64x32xbf16>, vector<32x32xf32> -> vector<32x32xf32>
    %44 = arith.addf %32, %43 : vector<32x32xf32>
    %c0_25 = arith.constant 0 : index
    %c0_26 = arith.constant 0 : index
    %45 = vector.load %arg11[%c0_25, %c0_26] : memref<1x32xf32, #tpu.memory_space<vmem>>, vector<1x32xf32>
    %46 = vector.broadcast %45 : vector<1x32xf32> to vector<32x32xf32>
    %47 = arith.addf %44, %46 : vector<32x32xf32>
    %c0_27 = arith.constant 0 : index
    %c0_28 = arith.constant 0 : index
    %48 = vector.load %arg12[%c0_27, %c0_28] : memref<1x32xf32, #tpu.memory_space<vmem>>, vector<1x32xf32>
    %c0_29 = arith.constant 0 : index
    %c0_30 = arith.constant 0 : index
    %49 = vector.load %arg13[%c0_29, %c0_30] : memref<1x32xf32, #tpu.memory_space<vmem>>, vector<1x32xf32>
    %cst_31 = arith.constant dense<0.000000e+00> : vector<32xf32>
    %50 = vector.multi_reduction <add>, %47, %cst_31 [1] : vector<32x32xf32> to vector<32xf32>
    %51 = vector.shape_cast %50 : vector<32xf32> to vector<32x1xf32>
    %cst_32 = arith.constant 3.200000e+01 : f32
    %52 = vector.broadcast %cst_32 : f32 to vector<32x1xf32>
    %53 = arith.divf %51, %52 : vector<32x1xf32>
    %54 = vector.broadcast %53 : vector<32x1xf32> to vector<32x32xf32>
    %55 = arith.subf %47, %54 : vector<32x32xf32>
    %56 = arith.mulf %55, %55 : vector<32x32xf32>
    %cst_33 = arith.constant dense<0.000000e+00> : vector<32xf32>
    %57 = vector.multi_reduction <add>, %56, %cst_33 [1] : vector<32x32xf32> to vector<32xf32>
    %58 = vector.shape_cast %57 : vector<32xf32> to vector<32x1xf32>
    %cst_34 = arith.constant 3.200000e+01 : f32
    %59 = vector.broadcast %cst_34 : f32 to vector<32x1xf32>
    %60 = arith.divf %58, %59 : vector<32x1xf32>
    %61 = vector.broadcast %53 : vector<32x1xf32> to vector<32x32xf32>
    %62 = arith.subf %47, %61 : vector<32x32xf32>
    %cst_35 = arith.constant 9.99999974E-6 : f32
    %63 = vector.broadcast %cst_35 : f32 to vector<32x1xf32>
    %64 = arith.addf %60, %63 : vector<32x1xf32>
    %65 = math.rsqrt %64 : vector<32x1xf32>
    %66 = vector.broadcast %65 : vector<32x1xf32> to vector<32x32xf32>
    %67 = arith.mulf %62, %66 : vector<32x32xf32>
    %68 = vector.broadcast %48 : vector<1x32xf32> to vector<32x32xf32>
    %69 = arith.mulf %67, %68 : vector<32x32xf32>
    %70 = vector.broadcast %49 : vector<1x32xf32> to vector<32x32xf32>
    %71 = arith.addf %69, %70 : vector<32x32xf32>
    %72 = arith.truncf %71 : vector<32x32xf32> to vector<32x32xbf16>
    %c0_36 = arith.constant 0 : index
    %c0_37 = arith.constant 0 : index
    %73 = vector.load %arg14[%c0_36, %c0_37] : memref<32x32xbf16, #tpu.memory_space<vmem>>, vector<32x32xbf16>
    %cst_38 = arith.constant dense<0.000000e+00> : vector<32x32xf32>
    %74 = tpu.matmul %72, %73, %cst_38 {dimension_numbers = #tpu.dot_dimension_numbers<[1], [0], [0], [1], [0, 0, 1, 1], [], []>} : vector<32x32xbf16>, vector<32x32xbf16>, vector<32x32xf32> -> vector<32x32xf32>
    %c0_39 = arith.constant 0 : index
    %c0_40 = arith.constant 0 : index
    %75 = vector.load %arg15[%c0_39, %c0_40] : memref<1x32xf32, #tpu.memory_space<vmem>>, vector<1x32xf32>
    %76 = vector.broadcast %75 : vector<1x32xf32> to vector<32x32xf32>
    %77 = arith.addf %74, %76 : vector<32x32xf32>
    %cst_41 = arith.constant 0.000000e+00 : f32
    %78 = vector.broadcast %cst_41 : f32 to vector<32x32xf32>
    %79 = arith.maximumf %77, %78 : vector<32x32xf32>
    %80 = arith.truncf %79 : vector<32x32xf32> to vector<32x32xbf16>
    %c0_42 = arith.constant 0 : index
    %c0_43 = arith.constant 0 : index
    %81 = vector.load %arg16[%c0_42, %c0_43] : memref<32x32xbf16, #tpu.memory_space<vmem>>, vector<32x32xbf16>
    %cst_44 = arith.constant dense<0.000000e+00> : vector<32x32xf32>
    %82 = tpu.matmul %80, %81, %cst_44 {dimension_numbers = #tpu.dot_dimension_numbers<[1], [0], [0], [1], [0, 0, 1, 1], [], []>} : vector<32x32xbf16>, vector<32x32xbf16>, vector<32x32xf32> -> vector<32x32xf32>
    %c0_45 = arith.constant 0 : index
    %c0_46 = arith.constant 0 : index
    %83 = vector.load %arg17[%c0_45, %c0_46] : memref<1x32xf32, #tpu.memory_space<vmem>>, vector<1x32xf32>
    %84 = vector.broadcast %83 : vector<1x32xf32> to vector<32x32xf32>
    %85 = arith.addf %82, %84 : vector<32x32xf32>
    %cst_47 = arith.constant 0.000000e+00 : f32
    %86 = vector.broadcast %cst_47 : f32 to vector<32x32xf32>
    %87 = arith.maximumf %85, %86 : vector<32x32xf32>
    %88 = arith.truncf %87 : vector<32x32xf32> to vector<32x32xbf16>
    %c0_48 = arith.constant 0 : index
    %c0_49 = arith.constant 0 : index
    %89 = vector.load %arg18[%c0_48, %c0_49] : memref<32x2xbf16, #tpu.memory_space<vmem>>, vector<32x2xbf16>
    %cst_50 = arith.constant dense<0.000000e+00> : vector<32x2xf32>
    %90 = tpu.matmul %88, %89, %cst_50 {dimension_numbers = #tpu.dot_dimension_numbers<[1], [0], [0], [1], [0, 0, 1, 1], [], []>} : vector<32x32xbf16>, vector<32x2xbf16>, vector<32x2xf32> -> vector<32x2xf32>
    %c0_51 = arith.constant 0 : index
    %c0_52 = arith.constant 0 : index
    %91 = vector.load %arg19[%c0_51, %c0_52] : memref<1x2xf32, #tpu.memory_space<vmem>>, vector<1x2xf32>
    %92 = vector.broadcast %91 : vector<1x2xf32> to vector<32x2xf32>
    %93 = arith.addf %90, %92 : vector<32x2xf32>
    %c0_53 = arith.constant 0 : index
    %c0_54 = arith.constant 0 : index
    %94 = vector.load %arg3[%c0_53, %c0_54] : memref<32x2xf32, #tpu.memory_space<vmem>>, vector<32x2xf32>
    %cst_55 = arith.constant 0.000000e+00 : f32
    %95 = vector.broadcast %cst_55 : f32 to vector<32x2xf32>
    %96 = arith.maximumf %94, %95 : vector<32x2xf32>
    %cst_56 = arith.constant 1.000000e+00 : f32
    %97 = vector.broadcast %cst_56 : f32 to vector<32x2xf32>
    %98 = arith.minimumf %96, %97 : vector<32x2xf32>
    %cst_57 = arith.constant 9.99999974E-6 : f32
    %99 = vector.broadcast %cst_57 : f32 to vector<32x2xf32>
    %100 = arith.maximumf %98, %99 : vector<32x2xf32>
    %101 = math.log %100 : vector<32x2xf32>
    %cst_58 = arith.constant 1.000000e+00 : f32
    %102 = vector.broadcast %cst_58 : f32 to vector<32x2xf32>
    %103 = arith.subf %102, %98 : vector<32x2xf32>
    %cst_59 = arith.constant 9.99999974E-6 : f32
    %104 = vector.broadcast %cst_59 : f32 to vector<32x2xf32>
    %105 = arith.maximumf %103, %104 : vector<32x2xf32>
    %106 = math.log %105 : vector<32x2xf32>
    %107 = arith.subf %101, %106 : vector<32x2xf32>
    %108 = arith.addf %107, %93 : vector<32x2xf32>
    %cst_60 = arith.constant 0.000000e+00 : f32
    %109 = vector.broadcast %cst_60 : f32 to vector<32x2xf32>
    %110 = arith.subf %109, %108 : vector<32x2xf32>
    %111 = math.exp %110 : vector<32x2xf32>
    %cst_61 = arith.constant 1.000000e+00 : f32
    %112 = vector.broadcast %cst_61 : f32 to vector<32x2xf32>
    %113 = arith.addf %112, %111 : vector<32x2xf32>
    %cst_62 = arith.constant 1.000000e+00 : f32
    %114 = vector.broadcast %cst_62 : f32 to vector<32x2xf32>
    %115 = arith.divf %114, %113 : vector<32x2xf32>
    %c0_63 = arith.constant 0 : index
    %c0_64 = arith.constant 0 : index
    %116 = vector.load %arg20[%c0_63, %c0_64] : memref<32x128xf32, #tpu.memory_space<vmem>>, vector<32x32xf32>
    tpu.vector_store %arg20[%c0_63, %c0_64], %71 {strides = array<i32>} : memref<32x128xf32, #tpu.memory_space<vmem>>, vector<32x32xf32>,
    %c0_65 = arith.constant 0 : index
    %c32 = arith.constant 32 : index
    %117 = vector.load %arg20[%c0_65, %c32] : memref<32x128xf32, #tpu.memory_space<vmem>>, vector<32x2xf32>
    tpu.vector_store %arg20[%c0_65, %c32], %115 {strides = array<i32>} : memref<32x128xf32, #tpu.memory_space<vmem>>, vector<32x2xf32>,
    %cst_66 = arith.constant 0.000000e+00 : f32
    %118 = vector.broadcast %cst_66 : f32 to vector<32x94xf32>
    %c0_67 = arith.constant 0 : index
    %c34 = arith.constant 34 : index
    %119 = vector.load %arg20[%c0_67, %c34] : memref<32x128xf32, #tpu.memory_space<vmem>>, vector<32x94xf32>
    tpu.vector_store %arg20[%c0_67, %c34], %118 {strides = array<i32>} : memref<32x128xf32, #tpu.memory_space<vmem>>, vector<32x94xf32>,
    return
  }
  func.func @transform_0(%arg0: i32) -> (i32, i32) {
    %c0_i32 = arith.constant 0 : i32
    %c0_i32_0 = arith.constant 0 : i32
    return %arg0, %c0_i32 : i32, i32
  }
  func.func @transform_1(%arg0: i32) -> (i32, i32) {
    %c0_i32 = arith.constant 0 : i32
    %c0_i32_0 = arith.constant 0 : i32
    return %arg0, %c0_i32 : i32, i32
  }
  func.func @transform_2(%arg0: i32) -> (i32, i32) {
    %c0_i32 = arith.constant 0 : i32
    %c0_i32_0 = arith.constant 0 : i32
    return %arg0, %c0_i32 : i32, i32
  }
  func.func @transform_3(%arg0: i32) -> (i32, i32) {
    %c0_i32 = arith.constant 0 : i32
    %c0_i32_0 = arith.constant 0 : i32
    %c0_i32_1 = arith.constant 0 : i32
    return %c0_i32, %c0_i32_0 : i32, i32
  }
  func.func @transform_4(%arg0: i32) -> (i32, i32) {
    %c0_i32 = arith.constant 0 : i32
    %c0_i32_0 = arith.constant 0 : i32
    %c0_i32_1 = arith.constant 0 : i32
    return %c0_i32, %c0_i32_0 : i32, i32
  }
  func.func @transform_5(%arg0: i32) -> (i32, i32) {
    %c0_i32 = arith.constant 0 : i32
    %c0_i32_0 = arith.constant 0 : i32
    %c0_i32_1 = arith.constant 0 : i32
    return %c0_i32, %c0_i32_0 : i32, i32
  }
  func.func @transform_6(%arg0: i32) -> (i32, i32) {
    %c0_i32 = arith.constant 0 : i32
    %c0_i32_0 = arith.constant 0 : i32
    %c0_i32_1 = arith.constant 0 : i32
    return %c0_i32, %c0_i32_0 : i32, i32
  }
  func.func @transform_7(%arg0: i32) -> (i32, i32) {
    %c0_i32 = arith.constant 0 : i32
    %c0_i32_0 = arith.constant 0 : i32
    %c0_i32_1 = arith.constant 0 : i32
    return %c0_i32, %c0_i32_0 : i32, i32
  }
  func.func @transform_8(%arg0: i32) -> (i32, i32) {
    %c0_i32 = arith.constant 0 : i32
    %c0_i32_0 = arith.constant 0 : i32
    %c0_i32_1 = arith.constant 0 : i32
    return %c0_i32, %c0_i32_0 : i32, i32
  }
  func.func @transform_9(%arg0: i32) -> (i32, i32) {
    %c0_i32 = arith.constant 0 : i32
    %c0_i32_0 = arith.constant 0 : i32
    %c0_i32_1 = arith.constant 0 : i32
    return %c0_i32, %c0_i32_0 : i32, i32
  }
  func.func @transform_10(%arg0: i32) -> (i32, i32) {
    %c0_i32 = arith.constant 0 : i32
    %c0_i32_0 = arith.constant 0 : i32
    %c0_i32_1 = arith.constant 0 : i32
    return %c0_i32, %c0_i32_0 : i32, i32
  }
  func.func @transform_11(%arg0: i32) -> (i32, i32) {
    %c0_i32 = arith.constant 0 : i32
    %c0_i32_0 = arith.constant 0 : i32
    %c0_i32_1 = arith.constant 0 : i32
    return %c0_i32, %c0_i32_0 : i32, i32
  }
  func.func @transform_12(%arg0: i32) -> (i32, i32) {
    %c0_i32 = arith.constant 0 : i32
    %c0_i32_0 = arith.constant 0 : i32
    %c0_i32_1 = arith.constant 0 : i32
    return %c0_i32, %c0_i32_0 : i32, i32
  }
  func.func @transform_13(%arg0: i32) -> (i32, i32) {
    %c0_i32 = arith.constant 0 : i32
    %c0_i32_0 = arith.constant 0 : i32
    %c0_i32_1 = arith.constant 0 : i32
    return %c0_i32, %c0_i32_0 : i32, i32
  }
  func.func @transform_14(%arg0: i32) -> (i32, i32) {
    %c0_i32 = arith.constant 0 : i32
    %c0_i32_0 = arith.constant 0 : i32
    %c0_i32_1 = arith.constant 0 : i32
    return %c0_i32, %c0_i32_0 : i32, i32
  }
  func.func @transform_15(%arg0: i32) -> (i32, i32) {
    %c0_i32 = arith.constant 0 : i32
    %c0_i32_0 = arith.constant 0 : i32
    %c0_i32_1 = arith.constant 0 : i32
    return %c0_i32, %c0_i32_0 : i32, i32
  }
  func.func @transform_16(%arg0: i32) -> (i32, i32) {
    %c0_i32 = arith.constant 0 : i32
    %c0_i32_0 = arith.constant 0 : i32
    %c0_i32_1 = arith.constant 0 : i32
    return %c0_i32, %c0_i32_0 : i32, i32
  }
  func.func @transform_17(%arg0: i32) -> (i32, i32) {
    %c0_i32 = arith.constant 0 : i32
    %c0_i32_0 = arith.constant 0 : i32
    %c0_i32_1 = arith.constant 0 : i32
    return %c0_i32, %c0_i32_0 : i32, i32
  }
  func.func @transform_18(%arg0: i32) -> (i32, i32) {
    %c0_i32 = arith.constant 0 : i32
    %c0_i32_0 = arith.constant 0 : i32
    %c0_i32_1 = arith.constant 0 : i32
    return %c0_i32, %c0_i32_0 : i32, i32
  }
  func.func @transform_19(%arg0: i32) -> (i32, i32) {
    %c0_i32 = arith.constant 0 : i32
    %c0_i32_0 = arith.constant 0 : i32
    return %arg0, %c0_i32 : i32, i32
  }
}

</mosaic_0001>

<bundles_post_ra>
// kernel: _polygon_head_jit.6
= control target key start
LH: loop header
LB: loop body
LE: loop exit
PB: predicated region body
PF: predicated region fallthrough
CT: control target
= control target key end

     0   :  { %17 = vsyncpa [#allocation3], 0  ;;  %s3973_s0 = inlined_call_operand.vmem [shape: f32[32,32], index: 0, kind: input, shape index: {}]   ;;  %s3974_s1 = inlined_call_operand.vmem [shape: f32[32,32], index: 1, kind: input, shape index: {}]   ;;  %s3975_s2 = inlined_call_operand.hbm [shape: bf16[32,64], index: 2, kind: input, shape index: {}]   ;;  %s3976_s3 = inlined_call_operand.hbm [shape: f32[1,64], index: 3, kind: input, shape index: {}]   ;;  %s3977_s4 = inlined_call_operand.hbm [shape: bf16[8,32,32], index: 4, kind: input, shape index: {}]   ;;  %s3978_s5 = inlined_call_operand.hbm [shape: f32[1,32], index: 5, kind: input, shape index: {}]   ;;  %s3979_s6 = inlined_call_operand.hbm [shape: f32[1,32], index: 6, kind: input, shape index: {}]   ;;  %s3980_s7 = inlined_call_operand.hbm [shape: f32[1,32], index: 7, kind: input, shape index: {}]   ;;  %s3981_s8 = inlined_call_operand.hbm [shape: bf16[32,192], index: 8, kind: input, shape index: {}]   ;;  %s3982_s9 = inlined_call_operand.hbm [shape: f32[1,192], index: 9, kind: input, shape index: {}]   ;;  %s3983_s10 = inlined_call_operand.hbm [shape: f32[16,16], index: 10, kind: input, shape index: {}]   ;;  %s3984_s11 = inlined_call_operand.hbm [shape: bf16[64,64], index: 11, kind: input, shape index: {}]   ;;  %s3985_s12 = inlined_call_operand.vmem [shape: f32[32,256], index: 12, kind: output, shape index: {}]  }
   0x1   :  { %18 = vsyncpa [#allocation5], 0 }
   0x2   :  { %19 = vsyncpa [#allocation8], 0 }
   0x3   :  { %20 = vsyncpa [#allocation11], 0 }
   0x4   :  { %21 = vsyncpa [#allocation14], 0 }
   0x5   :  { %22 = vsyncpa [#allocation17], 0  ;;  %s3520_s21 = smov 0  }
   0x6 LB: > { %s3422_s22 = smov [#allocation4]   ;;  %s3986_s24 = sadd.s32 4294967295, %s3420_s21   ;;  %s3420_s21 = sphi %s3520_s21, %s28_s21  }
   0x7   : > { %s347_s23 = sshll.u32 %s3422_s22, 4  ;;  %p2556_p0 = scmp.ge.s32.totalorder %s3420_s21, 1  ;;  %s348_s23 = int_to_ptr.vmem [resolvable:$true] %s347_s23 }
   0x8   : > { %p321_p1 = scmp.lt.s32.totalorder %s3420_s21, 3  ;;  %p3530_p2 = scmp.eq.s32.totalorder %s3986_s24, 0 }
   0x9   : > { %s3423_s27 = smov [#allocation7]   ;;  %s3424_s29 = smov [#allocation10]  }
   0xa   : > { %s3990_s25 = scalar_select %p3530_p2, 1, 0 }
   0xb   : > { %p3534_p3 = pnand %p2556_p0, %p321_p1  ;;  %s371_s28 = sshll.u32 %s3423_s27, 4  ;;  %s3540_s28 = int_to_ptr.vmem [resolvable:$true] %s371_s28 }
   0xc   : > { %s393_s30 = sshll.u32 %s3424_s29, 4  ;;  %s3425_s14 = smov [#allocation13]   ;;  %s3548_s30 = int_to_ptr.vmem [resolvable:$true] %s393_s30 }
   0xd   : > { %s3991_s26 = scalar_select %p3534_p3, 1, 0 }
   0xe   : > { %p2930_p4 = pneg %p3534_p3  ;;  %s417_s15 = sshll.u32 %s3425_s14, 4  ;;  %s3550_s15 = int_to_ptr.vmem [resolvable:$true] %s417_s15 }
   0xf   : > { %s3141_s17 = scalar_lea.vmem %s348_s23, 16  ;;  %s3148_s18 = scalar_lea.vmem %s348_s23, 32 }
  0x10   : > { %p3544_p5 = pnand %p3530_p2, %p2930_p4  ;;  %p3142_p7 = scmp.ne.s32.totalorder %s348_s23, %s3141_s17 }
  0x11   : > { %p3149_p10 = scmp.lt.s32.totalorder %s348_s23, %s348_s23  ;;  %p3150_p11 = scmp.lt.s32.totalorder %s3148_s18, %s3141_s17 }
  0x12   : > { %p3554_p6 = pneg %p3544_p5 }
  0x13   : > { %p3151_p12 = por %p3150_p11, %p3149_p10 }
  0x14   : > { %p3144_p8 = pnand %p3142_p7, %p3554_p6 }
  0x16   : > { %p3145_p9 = pneg %p3144_p8 }
  0x18   : > { %p3152_p13 = pnand %p3151_p12, %p3145_p9 }
  0x1a   : > { %3155 = shalt.err (!%p3152_p13)
}
  0x1b   : > { %2936 = dma.hbm_to_vmem [thread:$0]  (!%p3544_p5), %s3976_s3, 16, %s348_s23, [#allocation5]  }
  0x1c   : > { %s3167_s22 = scalar_lea.vmem %s3540_s28, 16  ;;  %s3174_s27 = scalar_lea.vmem %s3540_s28, 32 }
  0x1d   : > { %p3168_p0 = scmp.ne.s32.totalorder %s3540_s28, %s3167_s22  ;;  %p3175_p7 = scmp.lt.s32.totalorder %s3540_s28, %s3540_s28 }
  0x1e   : > { %p3176_p8 = scmp.lt.s32.totalorder %s3174_s27, %s3167_s22 }
  0x1f   : > { %p3170_p1 = pnand %p3168_p0, %p3554_p6 }
  0x20   : > { %p3177_p9 = por %p3176_p8, %p3175_p7 }
  0x21   : > { %p3171_p4 = pneg %p3170_p1 }
  0x23   : > { %p3178_p10 = pnand %p3177_p9, %p3171_p4 }
  0x25   : > { %3181 = shalt.err (!%p3178_p10)
}
  0x26   : > { %2942 = dma.hbm_to_vmem [thread:$0]  (!%p3544_p5), %s3978_s5, 16, %s3540_s28, [#allocation8]  }
  0x27   : > { %s3193_s23 = scalar_lea.vmem %s3548_s30, 16  ;;  %s3200_s17 = scalar_lea.vmem %s3548_s30, 32 }
  0x28   : > { %p3194_p11 = scmp.ne.s32.totalorder %s3548_s30, %s3193_s23  ;;  %p3201_p0 = scmp.lt.s32.totalorder %s3548_s30, %s3548_s30 }
  0x29   : > { %p3202_p1 = scmp.lt.s32.totalorder %s3200_s17, %s3193_s23 }
  0x2a   : > { %p3196_p12 = pnand %p3194_p11, %p3554_p6 }
  0x2b   : > { %p3203_p4 = por %p3202_p1, %p3201_p0 }
  0x2c   : > { %p3197_p13 = pneg %p3196_p12 }
  0x2e   : > { %p3204_p7 = pnand %p3203_p4, %p3197_p13 }
  0x30   : > { %3207 = shalt.err (!%p3204_p7)
}
  0x31   : > { %2948 = dma.hbm_to_vmem [thread:$0]  (!%p3544_p5), %s3980_s7, 16, %s3548_s30, [#allocation11]  }
  0x32   : > { %s3219_s28 = scalar_lea.vmem %s3550_s15, 32  ;;  %p3227_p11 = scmp.lt.s32.totalorder %s3550_s15, %s3550_s15 }
  0x33   : > { %p3220_p8 = scmp.ne.s32.totalorder %s3550_s15, %s3219_s28  ;;  %p3228_p12 = scmp.lt.s32.totalorder %s3219_s28, %s3219_s28 }
  0x35   : > { %p3222_p9 = pnand %p3220_p8, %p3554_p6  ;;  %p3229_p13 = por %p3228_p12, %p3227_p11 }
  0x37   : > { %p3223_p10 = pneg %p3222_p9 }
  0x39   : > { %p3230_p0 = pnand %p3229_p13, %p3223_p10 }
  0x3b   : > { %3233 = shalt.err (!%p3230_p0)
}
  0x3c   : > { %2954 = dma.hbm_to_vmem [thread:$0]  (!%p3544_p5), %s3982_s9, 32, %s3550_s15, [#allocation14]  }
  0x3d   : > { %s3426_s30 = smov [#allocation2]  }
  0x3e   : > { %s333_s27 = sshll.u32 %s3426_s30, 4  ;;  %s334_s27 = int_to_ptr.vmem [resolvable:$true] %s333_s27 }
  0x3f   : > { %s3245_s29 = scalar_lea.vmem %s334_s27, 256  ;;  %p3253_p8 = scmp.lt.s32.totalorder %s334_s27, %s334_s27 }
  0x40   : > { %p3246_p1 = scmp.ne.s32.totalorder %s334_s27, %s3245_s29  ;;  %p3254_p9 = scmp.lt.s32.totalorder %s3245_s29, %s3245_s29 }
  0x42   : > { %p3248_p4 = pnand %p3246_p1, %p3554_p6  ;;  %p3255_p10 = por %p3254_p9, %p3253_p8 }
  0x44   : > { %p3249_p7 = pneg %p3248_p4 }
  0x46   : > { %p3256_p11 = pnand %p3255_p10, %p3249_p7 }
  0x48   : > { %3259 = shalt.err (!%p3256_p11)
}
  0x49   : > { %s3427_s14 = smov 64   ;;  %s3428_s23 = smov 4  }
  0x4a   : > { %2933 = dma.hbm_to_vmem [thread:$0]  (!%p3544_p5), %s3975_s2, 256, %s334_s27, [#allocation3], %s3427_s14, %s3427_s14, %s3428_s23  }
  0x4b   : > { %s3429_s18 = smov [#allocation6]   ;;  %s3430_s28 = smov [#allocation9]  }
  0x4c   : > { %s357_s19 = sshll.u32 %s3429_s18, 4  ;;  %s382_s20 = sshll.u32 %s3430_s28, 4  ;;  %s358_s19 = int_to_ptr.vmem [resolvable:$true] %s357_s19  ;;  %s383_s20 = int_to_ptr.vmem [resolvable:$true] %s382_s20 }
  0x4d   : > { %s3271_s22 = scalar_lea.vmem %s358_s19, 2048  ;;  %p3279_p1 = scmp.lt.s32.totalorder %s358_s19, %s358_s19 }
  0x4e   : > { %p3272_p12 = scmp.ne.s32.totalorder %s358_s19, %s3271_s22  ;;  %p3280_p4 = scmp.lt.s32.totalorder %s3271_s22, %s3271_s22 }
  0x50   : > { %p3274_p13 = pnand %p3272_p12, %p3554_p6  ;;  %p3281_p7 = por %p3280_p4, %p3279_p1 }
  0x52   : > { %p3275_p0 = pneg %p3274_p13 }
  0x54   : > { %p3282_p8 = pnand %p3281_p7, %p3275_p0 }
  0x56   : > { %3285 = shalt.err (!%p3282_p8)
}
  0x57   : > { %2939 = dma.hbm_to_vmem [thread:$0]  (!%p3544_p5), %s3977_s4, 2048, %s358_s19, [#allocation5], %s3427_s14, %s3427_s14, %s3428_s23  }
  0x58   : > { %s3297_s29 = scalar_lea.vmem %s383_s20, 16  ;;  %s3304_s15 = scalar_lea.vmem %s383_s20, 32 }
  0x59   : > { %p3298_p9 = scmp.ne.s32.totalorder %s383_s20, %s3297_s29  ;;  %p3305_p12 = scmp.lt.s32.totalorder %s383_s20, %s383_s20 }
  0x5a   : > { %p3306_p13 = scmp.lt.s32.totalorder %s3304_s15, %s3297_s29 }
  0x5b   : > { %p3300_p10 = pnand %p3298_p9, %p3554_p6 }
  0x5c   : > { %p3307_p0 = por %p3306_p13, %p3305_p12 }
  0x5d   : > { %p3301_p11 = pneg %p3300_p10 }
  0x5f   : > { %p3308_p1 = pnand %p3307_p0, %p3301_p11 }
  0x61   : > { %3311 = shalt.err (!%p3308_p1)
}
  0x62   : > { %2945 = dma.hbm_to_vmem [thread:$0]  (!%p3544_p5), %s3979_s6, 16, %s383_s20, [#allocation8]  }
  0x63   : > { %s3431_s28 = smov [#allocation12]  }
  0x64   : > { %s403_s19 = sshll.u32 %s3431_s28, 4  ;;  %s404_s19 = int_to_ptr.vmem [resolvable:$true] %s403_s19 }
  0x65   : > { %s3323_s22 = scalar_lea.vmem %s404_s19, 512  ;;  %p3331_p9 = scmp.lt.s32.totalorder %s404_s19, %s404_s19 }
  0x66   : > { %p3324_p4 = scmp.ne.s32.totalorder %s404_s19, %s3323_s22  ;;  %p3332_p10 = scmp.lt.s32.totalorder %s3323_s22, %s3323_s22 }
  0x68   : > { %p3326_p7 = pnand %p3324_p4, %p3554_p6  ;;  %p3333_p12 = por %p3332_p10, %p3331_p9 }
  0x6a   : > { %p3327_p8 = pneg %p3326_p7 }
  0x6c   : > { %p3334_p11 = pnand %p3333_p12, %p3327_p8 }
  0x6e   : > { %3337 = shalt.err (!%p3334_p11)
}
  0x6f   : > { %s3432_s30 = smov 128   ;;  %s3433_s27 = smov 8  }
  0x70   : > { %2951 = dma.hbm_to_vmem [thread:$0]  (!%p3544_p5), %s3981_s8, 512, %s404_s19, [#allocation11], %s3432_s30, %s3432_s30, %s3433_s27  }
  0x71   : > { %s3434_s15 = smov [#allocation15]   ;;  %s3435_s18 = smov [#allocation16]  }
  0x72   : > { %s427_s17 = sshll.u32 %s3434_s15, 4  ;;  %s440_s28 = sshll.u32 %s3435_s18, 4  ;;  %s428_s17 = int_to_ptr.vmem [resolvable:$true] %s427_s17  ;;  %s441_s28 = int_to_ptr.vmem [resolvable:$true] %s440_s28 }
  0x73   : > { %s3349_s24 = scalar_lea.vmem %s428_s17, 256  ;;  %p3357_p4 = scmp.lt.s32.totalorder %s428_s17, %s428_s17 }
  0x74   : > { %p3350_p13 = scmp.ne.s32.totalorder %s428_s17, %s3349_s24  ;;  %p3358_p7 = scmp.lt.s32.totalorder %s3349_s24, %s3349_s24 }
  0x76   : > { %p3352_p0 = pnand %p3350_p13, %p3554_p6  ;;  %p3359_p8 = por %p3358_p7, %p3357_p4 }
  0x78   : > { %p3353_p1 = pneg %p3352_p0 }
  0x7a   : > { %p3360_p9 = pnand %p3359_p8, %p3353_p1 }
  0x7c   : > { %3363 = shalt.err (!%p3360_p9)
}
  0x7d   : > { %2957 = dma.hbm_to_vmem [thread:$0]  (!%p3544_p5), %s3983_s10, 256, %s428_s17, [#allocation14], %s3432_s30, %s3432_s30, %s3433_s27  }
  0x7e   : > { %s3375_s19 = scalar_lea.vmem %s441_s28, 512  ;;  %p3383_p13 = scmp.lt.s32.totalorder %s441_s28, %s441_s28 }
  0x7f   : > { %p3376_p10 = scmp.ne.s32.totalorder %s441_s28, %s3375_s19  ;;  %p3384_p0 = scmp.lt.s32.totalorder %s3375_s19, %s3375_s19 }
  0x81   : > { %p3378_p12 = pnand %p3376_p10, %p3554_p6  ;;  %p3385_p2 = por %p3384_p0, %p3383_p13 }
  0x83   : > { %p3379_p11 = pneg %p3378_p12 }
  0x85   : > { %p3386_p3 = pnand %p3385_p2, %p3379_p11 }
  0x87   : > { %3389 = shalt.err (!%p3386_p3)
}
  0x88   : > { %2960 = dma.hbm_to_vmem [thread:$0]  (!%p3544_p5), %s3984_s11, 512, %s441_s28, [#allocation17], %s3427_s14, %s3427_s14, %s3428_s23  }
  0x89   : > { %p3994_p1 = scmp.ne.s32.totalorder %s3991_s26, 0 }
  0x8a   : > { %p3995_p6 = scmp.ne.s32.totalorder (!%p3994_p1), %s3990_s25, 0 }
  0x8b   : > { %474 = sbr.rel (%p3994_p1) target bundleno = 5352 (0x14e8), region = 68 }
  0x90   : > { %3395 = dma.done.wait (%p3995_p6), [#allocation3], 256  }
  0x91   : > { %3397 = vsyncadd (%p3995_p6), [#allocation3], 4294967040 }
  0x92   : > { %3399 = dma.done.wait (%p3995_p6), [#allocation5], 2064  }
  0x93   : > { %3401 = vsyncadd (%p3995_p6), [#allocation5], 4294965232 }
  0x94   : > { %3403 = dma.done.wait (%p3995_p6), [#allocation8], 32  }
  0x95   : > { %3405 = vsyncadd (%p3995_p6), [#allocation8], 4294967264 }
  0x96   : > { %3407 = dma.done.wait (%p3995_p6), [#allocation11], 528  }
  0x97   : > { %3409 = vsyncadd (%p3995_p6), [#allocation11], 4294966768 }
  0x98   : > { %3411 = dma.done.wait (%p3995_p6), [#allocation14], 288  }
  0x99   : > { %3413 = vsyncadd (%p3995_p6), [#allocation14], 4294967008 }
  0x9a   : > { %3415 = dma.done.wait (%p3995_p6), [#allocation17], 512  }
  0x9b   : > { %3417 = vsyncadd (%p3995_p6), [#allocation17], 4294966784  ;;  %s3996_s26 = sadd.s32 4294967295, %s3420_s21   ;;  %v3436_v0 = vmov 0.0   ;;  %vm3437_vm0 = vmmov 0   ;;  %v3022_v1 = vld [vmem:[#allocation2 + $0x8] sm:$0xff]  }
  0x9c   : > { %s2579_s13 = sshll.u32 %s3996_s26, 1  ;;  %2710 = vmatprep.subr.bf16.mxu1 %v3436_v0  ;;  %2714 = vmatprep.mubr.msk.bf16.mxu1 %vm3437_vm0, %v3436_v0  ;;  %v3023_v2 = vld [vmem:[#allocation2] sm:$0xff]   ;;  %vm608_vm1 = vcmask 261120   ;;  %v2586_v11 = vld [vmem:[#allocation4] ss:$0 sm:$0xff]  ;;  %s3438_s17 = smov 124  }
  0x9d   : > { %p559_p2 = scmp.lt.s32.totalorder %s2579_s13, 3  ;;  %2726 = vmatprep.subr.bf16.mxu0 %v3436_v0  ;;  %2728 = vmatprep.mubr.msk.bf16.mxu0 %vm3437_vm0, %v3436_v0  ;;  %s3439_s18 = smov 96   ;;  %vm720_vm2 = vcmask 31744   ;;  %v3024_v23 = vld [vmem:[#allocation6 + $0x8] sm:$0xff]   ;;  %v3025_v24 = vld [vmem:[#allocation6] sm:$0xff]   ;;  %vm772_vm3 = vcmask 130048  }
  0x9e   : > { %2711 = vmatpush3.bf16.msra.mxu1 %v3022_v1  ;;  %s3440_s28 = smov 92   ;;  %v3734_v27 = vld [vmem:[#allocation15] sm:$0xff]  ;;  %v3737_v32 = vld [vmem:[#allocation15 + $0x8] sm:$0xff]  ;;  %s3441_s22 = smov 120   ;;  %v3026_v57 = vld [vmem:[#allocation6 + $0x18] sm:$0xff]   ;;  %vm2261_vm4 = vcmask 523264  }
  0x9f   : > { %s3998_s13 = smov (!%p559_p2, %s2579_s13), 3  ;;  %2712 = vmatprep.subr.bf16.mxu1 %v3436_v0  ;;  %s3442_s29 = smov 88   ;;  %v3027_v58 = vld [vmem:[#allocation6 + $0x10] sm:$0xff]   ;;  %vm2367_vm5 = vcmask 1047808   ;;  %vm2380_vm6 = vcmask 785664   ;;  %vm2383_vm7 = vcmask 1048320  }
  0xa0   : > { %s2580_s25 = sshll.u32 %s3998_s13, 3  ;;  %s3443_s19 = smov 116  }
  0xa1   : > { %s3694_s23 = scalar_lea.vmem %s3973_s0, %s2580_s25  ;;  %s3699_s15 = scalar_lea.vmem %s3974_s1, %s2580_s25 }
  0xa2   : > { %v578_v3 = vld [vmem:[%s3694_s23] sm:$0xff]  ;;  %v579_v4 = vld [vmem:[%s3694_s23 + $0x8] sm:$0xff]  ;;  %2713 = vmatpush3.bf16.msra.mxu1 %v3023_v2  ;;  %s3444_s24 = smov 84   ;;  %s3445_s20 = smov 112  }
  0xa3   : > { %v580_v5 = vld [vmem:[%s3699_s15] sm:$0xff]  ;;  %v581_v6 = vld [vmem:[%s3699_s15 + $0x8] sm:$0xff]  ;;  %2718 = vmatprep.subr.bf16.mxu1 %v3436_v0  ;;  %v3727_v25 = vpack.c.bf16 %v579_v4, %v578_v3  ;;  %s3446_s26 = smov 80   ;;  %s3447_s25 = smov 108  }
  0xa4   : > { %v582_v7 = vadd.f32 %v580_v5, %v578_v3  ;;  %v583_v8 = vadd.f32 %v581_v6, %v579_v4  ;;  %s3448_s16 = smov 76   ;;  %s3449_s14 = smov 104  }
  0xa5   : > { %s3450_s30 = smov 72   ;;  %s3451_s27 = smov 100  }
  0xa6   : > { %v584_v9 = vpack.c.bf16 %v583_v8, %v582_v7 }
  0xa8   : > { %2715 = vmatmul.mubr.msk.bf16.vlgmr.msra.gmra.mxu1 %vm608_vm1, %v584_v9 }
  0xa9   : > { %2722 = vmatprep.mubr.msk.bf16.mxu1 %vm3437_vm0, %v3436_v0  ;;  %2719 = vmatpush3.bf16.msra.mxu1 %v3024_v23 }
  0xaa   : > { %2720 = vmatprep.subr.bf16.mxu1 %v3436_v0 }
  0xad   : > { %2721 = vmatpush3.bf16.msra.mxu1 %v3025_v24 }
  0xae   : > { %2732 = vmatprep.subr.bf16.mxu1 %v3436_v0 }
  0xb0   : > { %2723 = vmatmul.mubr.msk.bf16.vlgmr.msra.gmra.mxu1 %vm608_vm1, %v3727_v25 }
  0xb1   : > { %2736 = vmatprep.mubr.msk.bf16.mxu1 %vm3437_vm0, %v3436_v0  ;;  %2733 = vmatpush3.bf16.msra.mxu1 %v3026_v57 }
  0xb2   : > { %2734 = vmatprep.subr.bf16.mxu1 %v3436_v0 }
  0xb5   : > { %2735 = vmatpush3.bf16.msra.mxu1 %v3027_v58 }
  0xb6   : > { %2746 = vmatprep.subr.bf16.mxu1 %v3436_v0 }
  0xb8   : > { %2737 = vmatmul.mubr.msk.bf16.vlgmr.msra.gmra.mxu1 %vm608_vm1, %v3727_v25 }
  0xb9   : > { %2748 = vmatprep.mubr.msk.bf16.mxu1 %vm3437_vm0, %v3436_v0 }
 0x168   : > { %v646_v10 = vpop.f32.mrf.mxu1 }
 0x169   : > { %v647_v14 = vadd.f32 %v2586_v11, %v646_v10 }
 0x16a   : > { %v2716_v12 = vpop.f32.mrf.mxu1 }
 0x16c   : > { %v649_v13 = vpop.f32.mrf.mxu1 }
 0x16d   : > { %v650_v15 = vadd.f32 %v2586_v11, %v649_v13 }
 0x16e   : > { %v2717_v16 = vpop.f32.mrf.mxu1 }
 0x16f   : > { %v3710_v17 = vpack.c.bf16 %v650_v15, %v647_v14 }
 0x170   : > { %v710_v52 = vpop.f32.mrf.mxu1 }
 0x171   : > { %855 = vrot.lane.b32.xlu1 %v3710_v17, %s3438_s17  ;;  %718 = vrot.lane.b32.xlu0 %v3710_v17, %s3439_s18  ;;  %s3452_s17 = smov 68  }
 0x172   : > { %v2724_v53 = vpop.f32.mrf.mxu1 }
 0x173   : > { %v3029_v53 = vld [vmem:[#allocation6 + $0x20] sm:$0xff]  }
 0x174   : > { %v713_v54 = vpop.f32.mrf.mxu1 }
 0x175   : > { %857 = vrot.lane.b32.xlu0 %v3710_v17, %s3440_s28  ;;  %v796_v55 = vpack.c.bf16 %v713_v54, %v710_v52 }
 0x176   : > { %v2725_v56 = vpop.f32.mrf.mxu1 }
 0x178   : > { %v848_v23 = vpop.f32.mrf.mxu1 }
 0x17a   : > { %v2738_v24 = vpop.f32.mrf.mxu1 }
 0x1e3   : > { %v719_v18 = vpop.permute.xlu0 %718  ;;  %v856_v22 = vpop.permute.xlu1 %855 }
 0x1e4   : > { %v725_v19 = vsel %vm720_vm2, %v719_v18, 0 }
 0x1e5   : > { %2727 = vmatpush3.bf16.xpose.msra.mxu0 %v725_v19 }
 0x1e6   : > { %2740 = vmatprep.subr.bf16.mxu0 %v3436_v0 }
 0x1e7   : > { %v858_v20 = vpop.permute.xlu0 %857 }
 0x1e8   : > { %v863_v21 = vsel %vm720_vm2, %v858_v20, 0 }
 0x1ec   : > { %2729 = vmatmul.mubr.msk.bf16.vlgmr.msra.gmra.mxu0 %vm720_vm2, %v3710_v17 }
 0x1ed   : > { %2741 = vmatpush3.bf16.xpose.msra.mxu0 %v863_v21  ;;  %2742 = vmatprep.mubr.msk.bf16.mxu0 %vm3437_vm0, %v3436_v0 }
 0x1ee   : > { %2752 = vmatprep.subr.bf16.mxu0 %v3436_v0 }
 0x1f4   : > { %2743 = vmatmul.mubr.msk.bf16.vlgmr.msra.gmra.mxu0 %vm720_vm2, %v856_v22 }
 0x1f5   : > { %2754 = vmatprep.mubr.msk.bf16.mxu0 %vm3437_vm0, %v3436_v0  ;;  %2753 = vmatpush3.bf16.msra.mxu0 %v796_v55 }
 0x1f6   : > { %2766 = vmatprep.subr.bf16.mxu0 %v3436_v0 }
 0x2ac   : > { %v761_v26 = vpop.f32.mrf.mxu0 }
 0x2ad   : > { %v768_v28 = vmul.f32 0.5, %v761_v26  ;;  %v851_v26 = vpop.f32.mrf.mxu1 }
 0x2ae   : > { %v2730_v29 = vpop.f32.mrf.mxu0 }
 0x2af   : > { %v770_v30 = vadd.f32 %v768_v28, %v3734_v27  ;;  %v933_v28 = vpack.c.bf16 %v851_v26, %v848_v23  ;;  %v2739_v29 = vpop.f32.mrf.mxu1 }
 0x2b0   : > { %v764_v31 = vpop.f32.mrf.mxu0 }
 0x2b1   : > { %v769_v33 = vmul.f32 0.5, %v764_v31  ;;  %v773_v34 = vsel %vm772_vm3, %v770_v30, -inf  ;;  %2747 = vmatpush3.bf16.msra.mxu1 %v933_v28 }
 0x2b2   : > { %774 = vmax.xlane.f32.xlu1 %v773_v34  ;;  %v2731_v35 = vpop.f32.mrf.mxu0  ;;  %2758 = vmatprep.subr.bf16.mxu1 %v3436_v0 }
 0x2b3   : > { %v771_v36 = vadd.f32 %v769_v33, %v3737_v32 }
 0x2b4   : > { %v899_v37 = vpop.f32.mrf.mxu0 }
 0x2b5   : > { %v776_v38 = vsel %vm772_vm3, %v771_v36, -inf  ;;  %v906_v60 = vmul.f32 0.5, %v899_v37 }
 0x2b6   : > { %777 = vmax.xlane.f32.xlu0 %v776_v38  ;;  %v2744_v39 = vpop.f32.mrf.mxu0 }
 0x2b7   : > { %v908_v63 = vadd.f32 %v906_v60, %v3734_v27 }
 0x2b8   : > { %v902_v40 = vpop.f32.mrf.mxu0 }
 0x2b9   : > { %v907_v59 = vmul.f32 0.5, %v902_v40  ;;  %v910_v1 = vsel %vm772_vm3, %v908_v63, -inf }
 0x2ba   : > { %v2745_v41 = vpop.f32.mrf.mxu0 }
 0x2bb   : > { %v909_v61 = vadd.f32 %v907_v59, %v3737_v32 }
 0x2bd   : > { %v913_v62 = vsel %vm772_vm3, %v909_v61, -inf }
 0x33b   : > { %v775_v42 = vpop.xlane.xlu1 %774 }
 0x33c   : > { %v779_v43 = vsub.f32 %v770_v30, %v775_v42 }
 0x33e   : > { %v781_v44 = vmul.f32 1.442695, %v779_v43 }
 0x33f   : > { %v778_v45 = vpop.xlane.xlu0 %777 }
 0x340   : > { %3050 = vpow2.f32 %v781_v44  ;;  %v780_v46 = vsub.f32 %v771_v36, %v778_v45 }
 0x342   : > { %v783_v47 = vmul.f32 1.442695, %v780_v46 }
 0x344   : > { %3052 = vpow2.f32 %v783_v47 }
 0x34d   : > { %v3051_v48 = vpop.eup %3050 }
 0x34e   : > { %v785_v49 = vsel %vm772_vm3, %v3051_v48, 0.0 }
 0x34f   : > { %786 = vadd.xlane.f32.xlu0 %v785_v49 }
 0x351   : > { %v3053_v50 = vpop.eup %3052 }
 0x352   : > { %v788_v51 = vsel %vm772_vm3, %v3053_v50, 0.0 }
 0x353   : > { %789 = vadd.xlane.f32.xlu1 %v788_v51 }
 0x364   : > { %1080 = vrot.lane.b32.xlu1 %v3710_v17, %s3441_s22 }
 0x365   : > { %1082 = vrot.lane.b32.xlu0 %v3710_v17, %s3442_s29 }
 0x384   : > { %914 = vmax.xlane.f32.xlu0 %v913_v62 }
 0x388   : > { %911 = vmax.xlane.f32.xlu1 %v910_v1 }
 0x3d8   : > { %v787_v2 = vpop.xlane.xlu0 %786 }
 0x3d9   : > { %3054 = vrcp.f32 %v787_v2 }
 0x3dc   : > { %v790_v3 = vpop.xlane.xlu1 %789  ;;  %v1083_v8 = vpop.permute.xlu0 %1082 }
 0x3dd   : > { %3056 = vrcp.f32 %v790_v3  ;;  %v1088_v10 = vsel %vm720_vm2, %v1083_v8, 0 }
 0x3e0   : > { %v1081_v11 = vpop.permute.xlu1 %1080 }
 0x3e6   : > { %v3055_v4 = vpop.eup %3054 }
 0x3e7   : > { %v793_v6 = vmul.f32 %v3055_v4, %v3051_v48 }
 0x3ea   : > { %v3057_v5 = vpop.eup %3056 }
 0x3eb   : > { %v794_v7 = vmul.f32 %v3057_v5, %v3053_v50  ;;  %v3028_v50 = vld [vmem:[#allocation6 + $0x28] sm:$0xff]  }
 0x3ed   : > { %v795_v9 = vpack.c.bf16 %v794_v7, %v793_v6 }
 0x3ef   : > { %2755 = vmatmul.mubr.msk.bf16.vlgmr.msra.gmra.mxu0 %vm772_vm3, %v795_v9 }
 0x3f0   : > { %2767 = vmatpush3.bf16.xpose.msra.mxu0 %v1088_v10  ;;  %2768 = vmatprep.mubr.msk.bf16.mxu0 %vm3437_vm0, %v3436_v0 }
 0x3f1   : > { %2778 = vmatprep.subr.bf16.mxu0 %v3436_v0 }
 0x3f7   : > { %2769 = vmatmul.mubr.msk.bf16.vlgmr.msra.gmra.mxu0 %vm720_vm2, %v1081_v11 }
 0x3f8   : > { %2782 = vmatprep.mubr.msk.bf16.mxu0 %vm3437_vm0, %v3436_v0 }
 0x40d   : > { %v915_v12 = vpop.xlane.xlu0 %914 }
 0x40e   : > { %v917_v13 = vsub.f32 %v909_v61, %v915_v12 }
 0x410   : > { %v920_v14 = vmul.f32 1.442695, %v917_v13 }
 0x411   : > { %v912_v15 = vpop.xlane.xlu1 %911 }
 0x412   : > { %3058 = vpow2.f32 %v920_v14  ;;  %v916_v16 = vsub.f32 %v908_v63, %v912_v15 }
 0x414   : > { %v918_v18 = vmul.f32 1.442695, %v916_v16 }
 0x416   : > { %3060 = vpow2.f32 %v918_v18 }
 0x41f   : > { %v3059_v19 = vpop.eup %3058 }
 0x420   : > { %v925_v20 = vsel %vm772_vm3, %v3059_v19, 0.0 }
 0x421   : > { %926 = vadd.xlane.f32.xlu1 %v925_v20 }
 0x423   : > { %v3061_v21 = vpop.eup %3060 }
 0x424   : > { %v922_v22 = vsel %vm772_vm3, %v3061_v21, 0.0 }
 0x425   : > { %923 = vadd.xlane.f32.xlu0 %v922_v22  ;;  %v3031_v22 = vld [vmem:[#allocation6 + $0x30] sm:$0xff]  }
 0x4aa   : > { %v927_v30 = vpop.xlane.xlu1 %926 }
 0x4ab   : > { %3062 = vrcp.f32 %v927_v30 }
 0x4ae   : > { %v924_v31 = vpop.xlane.xlu0 %923 }
 0x4af   : > { %3064 = vrcp.f32 %v924_v31  ;;  %v3768_v33 = vpop.f32.mrf.mxu0 }
 0x4b1   : > { %v2756_v34 = vpop.f32.mrf.mxu0 }
 0x4b3   : > { %v3770_v35 = vpop.f32.mrf.mxu0 }
 0x4b5   : > { %v2757_v36 = vpop.f32.mrf.mxu0 }
 0x4b7   : > { %v1124_v37 = vpop.f32.mrf.mxu0 }
 0x4b8   : > { %v1131_v38 = vmul.f32 0.5, %v1124_v37  ;;  %v3063_v40 = vpop.eup %3062 }
 0x4b9   : > { %v2770_v39 = vpop.f32.mrf.mxu0  ;;  %v931_v48 = vmul.f32 %v3063_v40, %v3059_v19 }
 0x4ba   : > { %v1133_v41 = vadd.f32 %v1131_v38, %v3734_v27 }
 0x4bb   : > { %v1127_v42 = vpop.f32.mrf.mxu0 }
 0x4bc   : > { %v3065_v43 = vpop.eup %3064  ;;  %v1132_v44 = vmul.f32 0.5, %v1127_v42  ;;  %v1135_v45 = vsel %vm772_vm3, %v1133_v41, -inf }
 0x4bd   : > { %1136 = vmax.xlane.f32.xlu0 %v1135_v45  ;;  %v2771_v46 = vpop.f32.mrf.mxu0  ;;  %v930_v47 = vmul.f32 %v3065_v43, %v3061_v21  ;;  %v3030_v21 = vld [vmem:[#allocation6 + $0x38] sm:$0xff]  }
 0x4be   : > { %v1134_v49 = vadd.f32 %v1132_v44, %v3737_v32  ;;  %2779 = vmatpush3.bf16.msra.mxu0 %v3030_v21 }
 0x4bf   : > { %v932_v51 = vpack.c.bf16 %v931_v48, %v930_v47  ;;  %2780 = vmatprep.subr.bf16.mxu0 %v3436_v0 }
 0x4c0   : > { %v1138_v52 = vsel %vm772_vm3, %v1134_v49, -inf }
 0x4c1   : > { %1139 = vmax.xlane.f32.xlu1 %v1138_v52  ;;  %2749 = vmatmul.mubr.msk.bf16.vlgmr.msra.gmra.mxu1 %vm772_vm3, %v932_v51 }
 0x4c2   : > { %2759 = vmatpush3.bf16.msra.mxu1 %v3028_v50  ;;  %2762 = vmatprep.mubr.msk.bf16.mxu1 %vm3437_vm0, %v3436_v0 }
 0x4c3   : > { %2760 = vmatprep.subr.bf16.mxu1 %v3436_v0  ;;  %2781 = vmatpush3.bf16.msra.mxu0 %v3031_v22 }
 0x4c4   : > { %2792 = vmatprep.subr.bf16.mxu0 %v3436_v0 }
 0x4c6   : > { %2761 = vmatpush3.bf16.msra.mxu1 %v3029_v53  ;;  %2783 = vmatmul.mubr.msk.bf16.vlgmr.msra.gmra.mxu0 %vm608_vm1, %v3727_v25 }
 0x4c7   : > { %2772 = vmatprep.subr.bf16.mxu1 %v3436_v0  ;;  %2794 = vmatprep.mubr.msk.bf16.mxu0 %vm3437_vm0, %v3436_v0 }
 0x4c9   : > { %2763 = vmatmul.mubr.msk.bf16.vlgmr.msra.gmra.mxu1 %vm608_vm1, %v3727_v25 }
 0x4ca   : > { %2774 = vmatprep.mubr.msk.bf16.mxu1 %vm3437_vm0, %v3436_v0 }
 0x546   : > { %v1137_v54 = vpop.xlane.xlu0 %1136 }
 0x547   : > { %v1141_v55 = vsub.f32 %v1133_v41, %v1137_v54 }
 0x549   : > { %v1143_v56 = vmul.f32 1.442695, %v1141_v55 }
 0x54a   : > { %v1140_v57 = vpop.xlane.xlu1 %1139 }
 0x54b   : > { %3066 = vpow2.f32 %v1143_v56  ;;  %v1142_v58 = vsub.f32 %v1134_v49, %v1140_v57 }
 0x54d   : > { %v1145_v59 = vmul.f32 1.442695, %v1142_v58 }
 0x54f   : > { %3068 = vpow2.f32 %v1145_v59 }
 0x558   : > { %v3067_v60 = vpop.eup %3066 }
 0x559   : > { %v1147_v61 = vsel %vm772_vm3, %v3067_v60, 0.0 }
 0x55a   : > { %1148 = vadd.xlane.f32.xlu0 %v1147_v61 }
 0x55c   : > { %v3069_v62 = vpop.eup %3068 }
 0x55d   : > { %v1150_v63 = vsel %vm772_vm3, %v3069_v62, 0.0 }
 0x55e   : > { %1151 = vadd.xlane.f32.xlu1 %v1150_v63 }
 0x56f   : > { %1263 = vrot.lane.b32.xlu1 %v3710_v17, %s3443_s19 }
 0x570   : > { %1265 = vrot.lane.b32.xlu0 %v3710_v17, %s3444_s24 }
 0x581   : > { %v971_v1 = vpop.f32.mrf.mxu1 }
 0x582   : > { %v1016_v23 = vadd.f32 %v3768_v33, %v971_v1 }
 0x583   : > { %v2750_v2 = vpop.f32.mrf.mxu1 }
 0x585   : > { %v974_v3 = vpop.f32.mrf.mxu1 }
 0x586   : > { %v1019_v29 = vadd.f32 %v3770_v35, %v974_v3  ;;  %v1256_v54 = vpop.f32.mrf.mxu0 }
 0x587   : > { %v2751_v4 = vpop.f32.mrf.mxu1 }
 0x588   : > { %v2784_v55 = vpop.f32.mrf.mxu0 }
 0x589   : > { %v1073_v5 = vpop.f32.mrf.mxu1 }
 0x58a   : > { %v1259_v56 = vpop.f32.mrf.mxu0 }
 0x58b   : > { %v2764_v6 = vpop.f32.mrf.mxu1  ;;  %v1341_v57 = vpack.c.bf16 %v1259_v56, %v1256_v54  ;;  %v3035_v54 = vld [vmem:[#allocation6 + $0x50] sm:$0xff]  }
 0x58c   : > { %v2785_v58 = vpop.f32.mrf.mxu0  ;;  %v3032_v6 = vld [vmem:[#allocation6 + $0x48] sm:$0xff]  }
 0x58d   : > { %v1076_v7 = vpop.f32.mrf.mxu1  ;;  %2793 = vmatpush3.bf16.msra.mxu0 %v1341_v57 }
 0x58e   : > { %v1158_v8 = vpack.c.bf16 %v1076_v7, %v1073_v5  ;;  %2806 = vmatprep.subr.bf16.mxu0 %v3436_v0  ;;  %v3033_v7 = vld [vmem:[#allocation6 + $0x40] sm:$0xff]  }
 0x58f   : > { %v2765_v9 = vpop.f32.mrf.mxu1 }
 0x590   : > { %2773 = vmatpush3.bf16.msra.mxu1 %v1158_v8 }
 0x591   : > { %2786 = vmatprep.subr.bf16.mxu1 %v3436_v0 }
 0x5e3   : > { %v1149_v10 = vpop.xlane.xlu0 %1148 }
 0x5e4   : > { %3070 = vrcp.f32 %v1149_v10 }
 0x5e7   : > { %v1152_v11 = vpop.xlane.xlu1 %1151  ;;  %v1266_v16 = vpop.permute.xlu0 %1265 }
 0x5e8   : > { %3072 = vrcp.f32 %v1152_v11  ;;  %v1271_v19 = vsel %vm720_vm2, %v1266_v16, 0 }
 0x5eb   : > { %v1264_v20 = vpop.permute.xlu1 %1263 }
 0x5f1   : > { %v3071_v12 = vpop.eup %3070 }
 0x5f2   : > { %v1155_v14 = vmul.f32 %v3071_v12, %v3067_v60 }
 0x5f5   : > { %v3073_v13 = vpop.eup %3072 }
 0x5f6   : > { %v1156_v15 = vmul.f32 %v3073_v13, %v3069_v62 }
 0x5f8   : > { %v1157_v18 = vpack.c.bf16 %v1156_v15, %v1155_v14 }
 0x5fa   : > { %2775 = vmatmul.mubr.msk.bf16.vlgmr.msra.gmra.mxu1 %vm772_vm3, %v1157_v18 }
 0x5fb   : > { %2787 = vmatpush3.bf16.xpose.msra.mxu1 %v1271_v19  ;;  %2788 = vmatprep.mubr.msk.bf16.mxu1 %vm3437_vm0, %v3436_v0 }
 0x5fc   : > { %2798 = vmatprep.subr.bf16.mxu1 %v3436_v0 }
 0x602   : > { %2789 = vmatmul.mubr.msk.bf16.vlgmr.msra.gmra.mxu1 %vm720_vm2, %v1264_v20 }
 0x603   : > { %2802 = vmatprep.mubr.msk.bf16.mxu1 %vm3437_vm0, %v3436_v0  ;;  %2799 = vmatpush3.bf16.msra.mxu1 %v3032_v6 }
 0x604   : > { %2800 = vmatprep.subr.bf16.mxu1 %v3436_v0 }
 0x607   : > { %2801 = vmatpush3.bf16.msra.mxu1 %v3033_v7 }
 0x608   : > { %2812 = vmatprep.subr.bf16.mxu1 %v3436_v0 }
 0x60a   : > { %2803 = vmatmul.mubr.msk.bf16.vlgmr.msra.gmra.mxu1 %vm608_vm1, %v3727_v25 }
 0x60b   : > { %2814 = vmatprep.mubr.msk.bf16.mxu1 %vm3437_vm0, %v3436_v0 }
 0x6ba   : > { %v1196_v24 = vpop.f32.mrf.mxu1 }
 0x6bb   : > { %v3805_v26 = vadd.f32 %v1196_v24, %v1016_v23 }
 0x6bc   : > { %v2776_v28 = vpop.f32.mrf.mxu1 }
 0x6be   : > { %v1199_v30 = vpop.f32.mrf.mxu1 }
 0x6bf   : > { %v3808_v31 = vadd.f32 %v1199_v30, %v1019_v29 }
 0x6c0   : > { %v2777_v34 = vpop.f32.mrf.mxu1 }
 0x6c2   : > { %v1307_v36 = vpop.f32.mrf.mxu1 }
 0x6c3   : > { %v1314_v37 = vmul.f32 0.5, %v1307_v36 }
 0x6c4   : > { %v2790_v38 = vpop.f32.mrf.mxu1 }
 0x6c5   : > { %v1316_v39 = vadd.f32 %v1314_v37, %v3734_v27 }
 0x6c6   : > { %v1310_v40 = vpop.f32.mrf.mxu1 }
 0x6c7   : > { %v1315_v41 = vmul.f32 0.5, %v1310_v40  ;;  %v1318_v42 = vsel %vm772_vm3, %v1316_v39, -inf }
 0x6c8   : > { %1319 = vmax.xlane.f32.xlu1 %v1318_v42  ;;  %v2791_v33 = vpop.f32.mrf.mxu1 }
 0x6c9   : > { %v1317_v43 = vadd.f32 %v1315_v41, %v3737_v32 }
 0x6ca   : > { %v1439_v40 = vpop.f32.mrf.mxu1 }
 0x6cb   : > { %v1321_v44 = vsel %vm772_vm3, %v1317_v43, -inf }
 0x6cc   : > { %1322 = vmax.xlane.f32.xlu0 %v1321_v44  ;;  %v2804_v41 = vpop.f32.mrf.mxu1 }
 0x6ce   : > { %v1442_v42 = vpop.f32.mrf.mxu1 }
 0x6cf   : > { %v1524_v33 = vpack.c.bf16 %v1442_v42, %v1439_v40  ;;  %v3037_v40 = vld [vmem:[#allocation6 + $0x60] sm:$0xff]  }
 0x6d1   : > { %2813 = vmatpush3.bf16.msra.mxu1 %v1524_v33 }
 0x6d2   : > { %2826 = vmatprep.subr.bf16.mxu1 %v3436_v0 }
 0x751   : > { %v1320_v35 = vpop.xlane.xlu1 %1319 }
 0x752   : > { %v1324_v45 = vsub.f32 %v1316_v39, %v1320_v35 }
 0x754   : > { %v1326_v46 = vmul.f32 1.442695, %v1324_v45 }
 0x755   : > { %v1323_v47 = vpop.xlane.xlu0 %1322 }
 0x756   : > { %3074 = vpow2.f32 %v1326_v46  ;;  %v1325_v48 = vsub.f32 %v1317_v43, %v1323_v47  ;;  %v2805_v43 = vpop.f32.mrf.mxu1 }
 0x758   : > { %v1328_v49 = vmul.f32 1.442695, %v1325_v48 }
 0x75a   : > { %3076 = vpow2.f32 %v1328_v49 }
 0x763   : > { %v3075_v50 = vpop.eup %3074 }
 0x764   : > { %v1330_v51 = vsel %vm772_vm3, %v3075_v50, 0.0 }
 0x765   : > { %1331 = vadd.xlane.f32.xlu0 %v1330_v51 }
 0x767   : > { %v3077_v52 = vpop.eup %3076 }
 0x768   : > { %v1333_v53 = vsel %vm772_vm3, %v3077_v52, 0.0 }
 0x769   : > { %1334 = vadd.xlane.f32.xlu1 %v1333_v53  ;;  %v3034_v53 = vld [vmem:[#allocation6 + $0x58] sm:$0xff]  }
 0x77a   : > { %1446 = vrot.lane.b32.xlu1 %v3710_v17, %s3445_s20 }
 0x77b   : > { %1448 = vrot.lane.b32.xlu0 %v3710_v17, %s3446_s26 }
 0x7ee   : > { %v1332_v59 = vpop.xlane.xlu0 %1331 }
 0x7ef   : > { %3078 = vrcp.f32 %v1332_v59 }
 0x7f2   : > { %v1335_v60 = vpop.xlane.xlu1 %1334  ;;  %v1449_v2 = vpop.permute.xlu0 %1448 }
 0x7f3   : > { %3080 = vrcp.f32 %v1335_v60  ;;  %v1454_v4 = vsel %vm720_vm2, %v1449_v2, 0 }
 0x7f6   : > { %v1447_v5 = vpop.permute.xlu1 %1446 }
 0x7fc   : > { %v3079_v61 = vpop.eup %3078 }
 0x7fd   : > { %v1338_v63 = vmul.f32 %v3079_v61, %v3075_v50 }
 0x800   : > { %v3081_v62 = vpop.eup %3080 }
 0x801   : > { %v1339_v1 = vmul.f32 %v3081_v62, %v3077_v52 }
 0x803   : > { %v1340_v3 = vpack.c.bf16 %v1339_v1, %v1338_v63 }
 0x805   : > { %2795 = vmatmul.mubr.msk.bf16.vlgmr.msra.gmra.mxu0 %vm772_vm3, %v1340_v3 }
 0x806   : > { %2807 = vmatpush3.bf16.xpose.msra.mxu0 %v1454_v4  ;;  %2808 = vmatprep.mubr.msk.bf16.mxu0 %vm3437_vm0, %v3436_v0 }
 0x807   : > { %2818 = vmatprep.subr.bf16.mxu0 %v3436_v0 }
 0x80d   : > { %2809 = vmatmul.mubr.msk.bf16.vlgmr.msra.gmra.mxu0 %vm720_vm2, %v1447_v5 }
 0x80e   : > { %2822 = vmatprep.mubr.msk.bf16.mxu0 %vm3437_vm0, %v3436_v0  ;;  %2819 = vmatpush3.bf16.msra.mxu0 %v3034_v53 }
 0x80f   : > { %2820 = vmatprep.subr.bf16.mxu0 %v3436_v0 }
 0x812   : > { %2821 = vmatpush3.bf16.msra.mxu0 %v3035_v54 }
 0x813   : > { %2832 = vmatprep.subr.bf16.mxu0 %v3436_v0 }
 0x815   : > { %2823 = vmatmul.mubr.msk.bf16.vlgmr.msra.gmra.mxu0 %vm608_vm1, %v3727_v25 }
 0x816   : > { %2834 = vmatprep.mubr.msk.bf16.mxu0 %vm3437_vm0, %v3436_v0 }
 0x8c5   : > { %v1379_v8 = vpop.f32.mrf.mxu0 }
 0x8c6   : > { %v3834_v9 = vadd.f32 %v1379_v8, %v3805_v26 }
 0x8c7   : > { %v2796_v10 = vpop.f32.mrf.mxu0 }
 0x8c9   : > { %v1382_v11 = vpop.f32.mrf.mxu0 }
 0x8ca   : > { %v3837_v12 = vadd.f32 %v1382_v11, %v3808_v31 }
 0x8cb   : > { %v2797_v13 = vpop.f32.mrf.mxu0 }
 0x8cd   : > { %v1490_v14 = vpop.f32.mrf.mxu0 }
 0x8ce   : > { %v1497_v15 = vmul.f32 0.5, %v1490_v14 }
 0x8cf   : > { %v2810_v16 = vpop.f32.mrf.mxu0 }
 0x8d0   : > { %v1499_v18 = vadd.f32 %v1497_v15, %v3734_v27 }
 0x8d1   : > { %v1493_v19 = vpop.f32.mrf.mxu0 }
 0x8d2   : > { %v1498_v20 = vmul.f32 0.5, %v1493_v19  ;;  %v1501_v21 = vsel %vm772_vm3, %v1499_v18, -inf }
 0x8d3   : > { %1502 = vmax.xlane.f32.xlu1 %v1501_v21  ;;  %v2811_v22 = vpop.f32.mrf.mxu0 }
 0x8d4   : > { %v1500_v23 = vadd.f32 %v1498_v20, %v3737_v32 }
 0x8d5   : > { %v1622_v19 = vpop.f32.mrf.mxu0 }
 0x8d6   : > { %v1504_v24 = vsel %vm772_vm3, %v1500_v23, -inf }
 0x8d7   : > { %1505 = vmax.xlane.f32.xlu0 %v1504_v24  ;;  %v2824_v20 = vpop.f32.mrf.mxu0 }
 0x8d9   : > { %v1625_v21 = vpop.f32.mrf.mxu0 }
 0x8da   : > { %v1707_v22 = vpack.c.bf16 %v1625_v21, %v1622_v19 }
 0x8dc   : > { %2833 = vmatpush3.bf16.msra.mxu0 %v1707_v22 }
 0x8dd   : > { %2846 = vmatprep.subr.bf16.mxu0 %v3436_v0 }
 0x95c   : > { %v1503_v26 = vpop.xlane.xlu1 %1502 }
 0x95d   : > { %v1507_v28 = vsub.f32 %v1499_v18, %v1503_v26 }
 0x95f   : > { %v1509_v29 = vmul.f32 1.442695, %v1507_v28 }
 0x960   : > { %v1506_v30 = vpop.xlane.xlu0 %1505 }
 0x961   : > { %3082 = vpow2.f32 %v1509_v29  ;;  %v1508_v31 = vsub.f32 %v1500_v23, %v1506_v30  ;;  %v2825_v23 = vpop.f32.mrf.mxu0 }
 0x963   : > { %v1511_v34 = vmul.f32 1.442695, %v1508_v31 }
 0x965   : > { %3084 = vpow2.f32 %v1511_v34 }
 0x96e   : > { %v3083_v36 = vpop.eup %3082 }
 0x96f   : > { %v1513_v37 = vsel %vm772_vm3, %v3083_v36, 0.0 }
 0x970   : > { %1514 = vadd.xlane.f32.xlu0 %v1513_v37 }
 0x972   : > { %v3085_v38 = vpop.eup %3084 }
 0x973   : > { %v1516_v39 = vsel %vm772_vm3, %v3085_v38, 0.0 }
 0x974   : > { %1517 = vadd.xlane.f32.xlu1 %v1516_v39  ;;  %v3036_v39 = vld [vmem:[#allocation6 + $0x68] sm:$0xff]  }
 0x985   : > { %1629 = vrot.lane.b32.xlu1 %v3710_v17, %s3447_s25 }
 0x986   : > { %1631 = vrot.lane.b32.xlu0 %v3710_v17, %s3448_s16 }
 0x9f9   : > { %v1515_v44 = vpop.xlane.xlu0 %1514 }
 0x9fa   : > { %3086 = vrcp.f32 %v1515_v44 }
 0x9fd   : > { %v1518_v35 = vpop.xlane.xlu1 %1517  ;;  %v1632_v49 = vpop.permute.xlu0 %1631 }
 0x9fe   : > { %3088 = vrcp.f32 %v1518_v35  ;;  %v1637_v51 = vsel %vm720_vm2, %v1632_v49, 0 }
 0xa01   : > { %v1630_v52 = vpop.permute.xlu1 %1629 }
 0xa07   : > { %v3087_v45 = vpop.eup %3086 }
 0xa08   : > { %v1521_v47 = vmul.f32 %v3087_v45, %v3083_v36 }
 0xa0b   : > { %v3089_v46 = vpop.eup %3088 }
 0xa0c   : > { %v1522_v48 = vmul.f32 %v3089_v46, %v3085_v38 }
 0xa0e   : > { %v1523_v50 = vpack.c.bf16 %v1522_v48, %v1521_v47 }
 0xa10   : > { %2815 = vmatmul.mubr.msk.bf16.vlgmr.msra.gmra.mxu1 %vm772_vm3, %v1523_v50 }
 0xa11   : > { %2827 = vmatpush3.bf16.xpose.msra.mxu1 %v1637_v51  ;;  %2828 = vmatprep.mubr.msk.bf16.mxu1 %vm3437_vm0, %v3436_v0 }
 0xa12   : > { %2838 = vmatprep.subr.bf16.mxu1 %v3436_v0 }
 0xa18   : > { %2829 = vmatmul.mubr.msk.bf16.vlgmr.msra.gmra.mxu1 %vm720_vm2, %v1630_v52 }
 0xa19   : > { %2842 = vmatprep.mubr.msk.bf16.mxu1 %vm3437_vm0, %v3436_v0  ;;  %2839 = vmatpush3.bf16.msra.mxu1 %v3036_v39 }
 0xa1a   : > { %2840 = vmatprep.subr.bf16.mxu1 %v3436_v0 }
 0xa1d   : > { %2841 = vmatpush3.bf16.msra.mxu1 %v3037_v40 }
 0xa1e   : > { %2852 = vmatprep.subr.bf16.mxu1 %v3436_v0 }
 0xa20   : > { %2843 = vmatmul.mubr.msk.bf16.vlgmr.msra.gmra.mxu1 %vm608_vm1, %v3727_v25 }
 0xa21   : > { %2854 = vmatprep.mubr.msk.bf16.mxu1 %vm3437_vm0, %v3436_v0 }
 0xad0   : > { %v1562_v55 = vpop.f32.mrf.mxu1 }
 0xad1   : > { %v3863_v56 = vadd.f32 %v1562_v55, %v3834_v9 }
 0xad2   : > { %v2816_v57 = vpop.f32.mrf.mxu1 }
 0xad4   : > { %v1565_v58 = vpop.f32.mrf.mxu1 }
 0xad5   : > { %v3866_v59 = vadd.f32 %v1565_v58, %v3837_v12 }
 0xad6   : > { %v2817_v60 = vpop.f32.mrf.mxu1 }
 0xad8   : > { %v1673_v61 = vpop.f32.mrf.mxu1 }
 0xad9   : > { %v1680_v62 = vmul.f32 0.5, %v1673_v61 }
 0xada   : > { %v2830_v63 = vpop.f32.mrf.mxu1 }
 0xadb   : > { %v1682_v1 = vadd.f32 %v1680_v62, %v3734_v27 }
 0xadc   : > { %v1676_v2 = vpop.f32.mrf.mxu1 }
 0xadd   : > { %v1681_v3 = vmul.f32 0.5, %v1676_v2  ;;  %v1684_v4 = vsel %vm772_vm3, %v1682_v1, -inf }
 0xade   : > { %1685 = vmax.xlane.f32.xlu1 %v1684_v4  ;;  %v2831_v5 = vpop.f32.mrf.mxu1 }
 0xadf   : > { %v1683_v6 = vadd.f32 %v1681_v3, %v3737_v32 }
 0xae0   : > { %v1805_v2 = vpop.f32.mrf.mxu1 }
 0xae1   : > { %v1687_v7 = vsel %vm772_vm3, %v1683_v6, -inf }
 0xae2   : > { %1688 = vmax.xlane.f32.xlu0 %v1687_v7  ;;  %v2844_v3 = vpop.f32.mrf.mxu1 }
 0xae4   : > { %v1808_v4 = vpop.f32.mrf.mxu1 }
 0xae5   : > { %v1890_v5 = vpack.c.bf16 %v1808_v4, %v1805_v2 }
 0xae7   : > { %2853 = vmatpush3.bf16.msra.mxu1 %v1890_v5 }
 0xae8   : > { %2866 = vmatprep.subr.bf16.mxu1 %v3436_v0 }
 0xb67   : > { %v1686_v8 = vpop.xlane.xlu1 %1685 }
 0xb68   : > { %v1690_v9 = vsub.f32 %v1682_v1, %v1686_v8 }
 0xb6a   : > { %v1692_v10 = vmul.f32 1.442695, %v1690_v9 }
 0xb6b   : > { %v1689_v11 = vpop.xlane.xlu0 %1688 }
 0xb6c   : > { %3090 = vpow2.f32 %v1692_v10  ;;  %v1691_v12 = vsub.f32 %v1683_v6, %v1689_v11  ;;  %v2845_v6 = vpop.f32.mrf.mxu1 }
 0xb6d   : > { %v3127_v6 = vld [vmem:[%s3694_s23 + $0x8] sm:$0xff] }
 0xb6e   : > { %v1694_v13 = vmul.f32 1.442695, %v1691_v12 }
 0xb70   : > { %3092 = vpow2.f32 %v1694_v13 }
 0xb79   : > { %v3091_v14 = vpop.eup %3090 }
 0xb7a   : > { %v1696_v15 = vsel %vm772_vm3, %v3091_v14, 0.0 }
 0xb7b   : > { %1697 = vadd.xlane.f32.xlu0 %v1696_v15 }
 0xb7d   : > { %v3093_v16 = vpop.eup %3092 }
 0xb7e   : > { %v1699_v18 = vsel %vm772_vm3, %v3093_v16, 0.0 }
 0xb7f   : > { %1700 = vadd.xlane.f32.xlu1 %v1699_v18  ;;  %v3039_v18 = vld [vmem:[#allocation6 + $0x70] sm:$0xff]  }
 0xb90   : > { %1812 = vrot.lane.b32.xlu1 %v3710_v17, %s3449_s14 }
 0xb91   : > { %1814 = vrot.lane.b32.xlu0 %v3710_v17, %s3450_s30 }
 0xc04   : > { %v1698_v24 = vpop.xlane.xlu0 %1697 }
 0xc05   : > { %3094 = vrcp.f32 %v1698_v24 }
 0xc08   : > { %v1701_v26 = vpop.xlane.xlu1 %1700  ;;  %v1815_v34 = vpop.permute.xlu0 %1814 }
 0xc09   : > { %3096 = vrcp.f32 %v1701_v26  ;;  %v1820_v37 = vsel %vm720_vm2, %v1815_v34, 0 }
 0xc0c   : > { %v1813_v38 = vpop.permute.xlu1 %1812 }
 0xc12   : > { %v3095_v28 = vpop.eup %3094 }
 0xc13   : > { %v1704_v30 = vmul.f32 %v3095_v28, %v3091_v14 }
 0xc16   : > { %v3097_v29 = vpop.eup %3096 }
 0xc17   : > { %v1705_v31 = vmul.f32 %v3097_v29, %v3093_v16 }
 0xc19   : > { %v1706_v36 = vpack.c.bf16 %v1705_v31, %v1704_v30 }
 0xc1b   : > { %2835 = vmatmul.mubr.msk.bf16.vlgmr.msra.gmra.mxu0 %vm772_vm3, %v1706_v36 }
 0xc1c   : > { %2847 = vmatpush3.bf16.xpose.msra.mxu0 %v1820_v37  ;;  %2848 = vmatprep.mubr.msk.bf16.mxu0 %vm3437_vm0, %v3436_v0 }
 0xc1d   : > { %2858 = vmatprep.subr.bf16.mxu0 %v3436_v0 }
 0xc23   : > { %2849 = vmatmul.mubr.msk.bf16.vlgmr.msra.gmra.mxu0 %vm720_vm2, %v1813_v38 }
 0xc24   : > { %2862 = vmatprep.mubr.msk.bf16.mxu0 %vm3437_vm0, %v3436_v0 }
 0xcdb   : > { %v1745_v41 = vpop.f32.mrf.mxu0 }
 0xcdc   : > { %v3892_v42 = vadd.f32 %v1745_v41, %v3863_v56 }
 0xcdd   : > { %v2836_v33 = vpop.f32.mrf.mxu0 }
 0xcdf   : > { %v1748_v43 = vpop.f32.mrf.mxu0 }
 0xce0   : > { %v3895_v44 = vadd.f32 %v1748_v43, %v3866_v59 }
 0xce1   : > { %v2837_v35 = vpop.f32.mrf.mxu0 }
 0xce3   : > { %v1856_v45 = vpop.f32.mrf.mxu0 }
 0xce4   : > { %v1863_v46 = vmul.f32 0.5, %v1856_v45 }
 0xce5   : > { %v2850_v47 = vpop.f32.mrf.mxu0 }
 0xce6   : > { %v1865_v48 = vadd.f32 %v1863_v46, %v3734_v27 }
 0xce7   : > { %v1859_v49 = vpop.f32.mrf.mxu0 }
 0xce8   : > { %v1864_v50 = vmul.f32 0.5, %v1859_v49  ;;  %v1867_v51 = vsel %vm772_vm3, %v1865_v48, -inf }
 0xce9   : > { %1868 = vmax.xlane.f32.xlu1 %v1867_v51  ;;  %v2851_v52 = vpop.f32.mrf.mxu0 }
 0xcea   : > { %v1866_v53 = vadd.f32 %v1864_v50, %v3737_v32 }
 0xcec   : > { %v1870_v54 = vsel %vm772_vm3, %v1866_v53, -inf }
 0xced   : > { %1871 = vmax.xlane.f32.xlu0 %v1870_v54 }
 0xd72   : > { %v1869_v55 = vpop.xlane.xlu1 %1868 }
 0xd73   : > { %v1873_v56 = vsub.f32 %v1865_v48, %v1869_v55 }
 0xd75   : > { %v1875_v57 = vmul.f32 1.442695, %v1873_v56 }
 0xd76   : > { %v1872_v58 = vpop.xlane.xlu0 %1871 }
 0xd77   : > { %3098 = vpow2.f32 %v1875_v57  ;;  %v1874_v59 = vsub.f32 %v1866_v53, %v1872_v58  ;;  %v2630_v58 = vld [vmem:[#allocation7] ss:$0 sm:$0xff] }
 0xd79   : > { %v1877_v60 = vmul.f32 1.442695, %v1874_v59 }
 0xd7b   : > { %3100 = vpow2.f32 %v1877_v60 }
 0xd84   : > { %v3099_v61 = vpop.eup %3098 }
 0xd85   : > { %v1879_v62 = vsel %vm772_vm3, %v3099_v61, 0.0 }
 0xd86   : > { %1880 = vadd.xlane.f32.xlu0 %v1879_v62 }
 0xd88   : > { %v3101_v63 = vpop.eup %3100 }
 0xd89   : > { %v1882_v1 = vsel %vm772_vm3, %v3101_v63, 0.0 }
 0xd8a   : > { %1883 = vadd.xlane.f32.xlu1 %v1882_v1  ;;  %v3126_v1 = vld [vmem:[%s3694_s23] sm:$0xff]  ;;  %s2645_s23 = sshll.u32 %s3998_s13, 4  ;;  %s3454_s13 = smov 32  }
 0xd8b   : > { %s3939_s22 = scalar_lea.vmem %s3985_s12, %s2645_s23 }
 0xd9b   : > { %1995 = vrot.lane.b32.xlu1 %v3710_v17, %s3451_s27 }
 0xd9c   : > { %1997 = vrot.lane.b32.xlu0 %v3710_v17, %s3452_s17  ;;  %v3038_v17 = vld [vmem:[#allocation6 + $0x78] sm:$0xff]  }
 0xd9d   : > { %2859 = vmatpush3.bf16.msra.mxu0 %v3038_v17 }
 0xd9e   : > { %2860 = vmatprep.subr.bf16.mxu0 %v3436_v0 }
 0xda1   : > { %2861 = vmatpush3.bf16.msra.mxu0 %v3039_v18 }
 0xda2   : > { %2872 = vmatprep.subr.bf16.mxu0 %v3436_v0 }
 0xda4   : > { %2863 = vmatmul.mubr.msk.bf16.vlgmr.msra.gmra.mxu0 %vm608_vm1, %v3727_v25 }
 0xda5   : > { %2874 = vmatprep.mubr.msk.bf16.mxu0 %vm3437_vm0, %v3436_v0 }
 0xe0f   : > { %v1881_v7 = vpop.xlane.xlu0 %1880 }
 0xe10   : > { %3102 = vrcp.f32 %v1881_v7 }
 0xe13   : > { %v1884_v8 = vpop.xlane.xlu1 %1883  ;;  %v1998_v13 = vpop.permute.xlu0 %1997 }
 0xe14   : > { %3104 = vrcp.f32 %v1884_v8  ;;  %v2003_v15 = vsel %vm720_vm2, %v1998_v13, 0 }
 0xe17   : > { %v1996_v16 = vpop.permute.xlu1 %1995 }
 0xe1d   : > { %v3103_v9 = vpop.eup %3102 }
 0xe1e   : > { %v1887_v11 = vmul.f32 %v3103_v9, %v3099_v61 }
 0xe21   : > { %v3105_v10 = vpop.eup %3104 }
 0xe22   : > { %v1888_v12 = vmul.f32 %v3105_v10, %v3101_v63 }
 0xe24   : > { %v1889_v14 = vpack.c.bf16 %v1888_v12, %v1887_v11 }
 0xe26   : > { %2855 = vmatmul.mubr.msk.bf16.vlgmr.msra.gmra.mxu1 %vm772_vm3, %v1889_v14 }
 0xe27   : > { %2867 = vmatpush3.bf16.xpose.msra.mxu1 %v2003_v15  ;;  %2868 = vmatprep.mubr.msk.bf16.mxu1 %vm3437_vm0, %v3436_v0 }
 0xe2e   : > { %2869 = vmatmul.mubr.msk.bf16.vlgmr.msra.gmra.mxu1 %vm720_vm2, %v1996_v16 }
 0xee6   : > { %v1928_v19 = vpop.f32.mrf.mxu1 }
 0xee7   : > { %v1935_v20 = vadd.f32 %v1928_v19, %v3892_v42  ;;  %v3042_v19 = vld [vmem:[#allocation12 + $0x14] ss:$8 sps:$4 sm:$0xff]  }
 0xee8   : > { %v2856_v21 = vpop.f32.mrf.mxu1  ;;  %2230 = vmatprep.subr.bf16.mxu1 %v3042_v19 }
 0xee9   : > { %v3045_v21 = vld [vmem:[#allocation12 + $0x4] ss:$8 sps:$4 sm:$0xff]  }
 0xeea   : > { %v1931_v22 = vpop.f32.mrf.mxu1 }
 0xeeb   : > { %v1936_v23 = vadd.f32 %v1931_v22, %v3895_v44  ;;  %v3043_v22 = vld [vmem:[#allocation12] ss:$8 sps:$4 sm:$0xff]  }
 0xeec   : > { %v2857_v24 = vpop.f32.mrf.mxu1 }
 0xeee   : > { %v2039_v26 = vpop.f32.mrf.mxu1 }
 0xeef   : > { %v2046_v28 = vmul.f32 0.5, %v2039_v26 }
 0xef0   : > { %v2870_v29 = vpop.f32.mrf.mxu1 }
 0xef1   : > { %v2048_v30 = vadd.f32 %v2046_v28, %v3734_v27 }
 0xef2   : > { %v2042_v31 = vpop.f32.mrf.mxu1 }
 0xef3   : > { %v2047_v34 = vmul.f32 0.5, %v2042_v31  ;;  %v2050_v25 = vsel %vm772_vm3, %v2048_v30, -inf }
 0xef4   : > { %2051 = vmax.xlane.f32.xlu1 %v2050_v25  ;;  %v2871_v36 = vpop.f32.mrf.mxu1  ;;  %v2631_v25 = vld [vmem:[#allocation9] ss:$0 sm:$0xff] }
 0xef5   : > { %v2049_v37 = vadd.f32 %v2047_v34, %v3737_v32  ;;  %v1988_v32 = vpop.f32.mrf.mxu0 }
 0xef7   : > { %v2053_v38 = vsel %vm772_vm3, %v2049_v37, -inf  ;;  %v2864_v46 = vpop.f32.mrf.mxu0 }
 0xef8   : > { %2054 = vmax.xlane.f32.xlu0 %v2053_v38 }
 0xef9   : > { %v1991_v47 = vpop.f32.mrf.mxu0 }
 0xefa   : > { %v2073_v48 = vpack.c.bf16 %v1991_v47, %v1988_v32  ;;  %v2185_v32 = vlaneseq }
 0xefb   : > { %v2865_v49 = vpop.f32.mrf.mxu0 }
 0xefc   : > { %2873 = vmatpush3.bf16.msra.mxu0 %v2073_v48  ;;  %v2186_v46 = vshrl.u32 %v2185_v32, 7  ;;  %v2183_v48 = vld [vmem:[#allocation13] sm:$0x3] }
 0xefd   : > { %2878 = vmatprep.subr.bf16.mxu0 %v3436_v0 }
 0xefe   : > { %v2191_v47 = vsub.s32 1, %v2186_v46 }
 0xf00   : > { %v2192_v49 = vrot.slane %v2183_v48, %v2191_v47 }
 0xf7d   : > { %v2052_v39 = vpop.xlane.xlu1 %2051 }
 0xf7e   : > { %v2056_v40 = vsub.f32 %v2048_v30, %v2052_v39 }
 0xf80   : > { %v2058_v41 = vmul.f32 1.442695, %v2056_v40 }
 0xf81   : > { %v2055_v42 = vpop.xlane.xlu0 %2054 }
 0xf82   : > { %3106 = vpow2.f32 %v2058_v41  ;;  %v2057_v33 = vsub.f32 %v2049_v37, %v2055_v42  ;;  %v2632_v37 = vld [vmem:[#allocation10] ss:$0 sm:$0xff] }
 0xf84   : > { %v2060_v43 = vmul.f32 1.442695, %v2057_v33 }
 0xf86   : > { %3108 = vpow2.f32 %v2060_v43  ;;  %v3128_v43 = vld [vmem:[%s3699_s15] sm:$0xff] }
 0xf8f   : > { %v3107_v27 = vpop.eup %3106 }
 0xf90   : > { %v2062_v44 = vsel %vm772_vm3, %v3107_v27, 0.0 }
 0xf91   : > { %2063 = vadd.xlane.f32.xlu0 %v2062_v44  ;;  %v3129_v44 = vld [vmem:[%s3699_s15 + $0x8] sm:$0xff] }
 0xf93   : > { %v3109_v35 = vpop.eup %3108 }
 0xf94   : > { %v2065_v45 = vsel %vm772_vm3, %v3109_v35, 0.0 }
 0xf95   : > { %2066 = vadd.xlane.f32.xlu1 %v2065_v45 }
0x101a   : > { %v2064_v50 = vpop.xlane.xlu0 %2063 }
0x101b   : > { %3110 = vrcp.f32 %v2064_v50 }
0x101e   : > { %v2067_v51 = vpop.xlane.xlu1 %2066 }
0x101f   : > { %3112 = vrcp.f32 %v2067_v51 }
0x1028   : > { %v3111_v52 = vpop.eup %3110 }
0x1029   : > { %v2070_v54 = vmul.f32 %v3111_v52, %v3107_v27 }
0x102c   : > { %v3113_v53 = vpop.eup %3112 }
0x102d   : > { %v2071_v55 = vmul.f32 %v3113_v53, %v3109_v35 }
0x102f   : > { %v2072_v56 = vpack.c.bf16 %v2071_v55, %v2070_v54 }
0x1031   : > { %2875 = vmatmul.mubr.msk.bf16.vlgmr.msra.gmra.mxu0 %vm772_vm3, %v2072_v56 }
0x1032   : > { %2886 = vmatprep.mubr.msk.bf16.mxu0 %vm3437_vm0, %v3436_v0 }
0x10f1   : > { %v2111_v57 = vpop.f32.mrf.mxu0 }
0x10f2   : > { %v2118_v59 = vadd.f32 %v2111_v57, %v1935_v20  ;;  %v3040_v20 = vld [vmem:[#allocation12 + $0x10] ss:$8 sps:$4 sm:$0xff]  }
0x10f3   : > { %v2876_v60 = vpop.f32.mrf.mxu0  ;;  %2231 = vmatpush1.bf16.msra.mxu1 %v3040_v20 }
0x10f4   : > { %v2127_v61 = vadd.f32 %v2630_v58, %v2118_v59  ;;  %2232 = vmatprep.subr.bf16.mxu1 %v3045_v21  ;;  %v3046_v60 = vld [vmem:[#allocation16 + $0x18] sm:$0xff]  }
0x10f5   : > { %v2114_v62 = vpop.f32.mrf.mxu0  ;;  %2879 = vmatpush3.bf16.msra.mxu0 %v3046_v60 }
0x10f6   : > { %v2119_v63 = vadd.f32 %v2114_v62, %v1936_v23  ;;  %v2129_v2 = vadd.f32 %v3126_v1, %v2127_v61  ;;  %v3453_v23 = vmov 0   ;;  %2880 = vmatprep.subr.bf16.mxu0 %v3436_v0  ;;  %v3048_v1 = vld [vmem:[#allocation16 + $0x8] sm:$0xff]  }
0x10f7   : > { %v2877_v3 = vpop.f32.mrf.mxu0  ;;  %2250 = vmatprep.mubr.bf16.mxu1 %v3453_v23  ;;  %2233 = vmatpush1.bf16.msra.mxu1 %v3043_v22 }
0x10f8   : > { %v2128_v4 = vadd.f32 %v2630_v58, %v2119_v63  ;;  %v2133_v5 = vsel %vm608_vm1, %v2129_v2, 0.0  ;;  %v2187_v58 = vsub.s32 0, %v2186_v46  ;;  %v3047_v63 = vld [vmem:[#allocation16 + $0x10] sm:$0xff]  }
0x10f9   : > { %2134 = vadd.xlane.f32.xlu0 %v2133_v5  ;;  %2881 = vmatpush3.bf16.msra.mxu0 %v3047_v63 }
0x10fa   : > { %v2130_v7 = vadd.f32 %v3127_v6, %v2128_v4  ;;  %v2188_v59 = vrot.slane %v2183_v48, %v2187_v58  ;;  %2882 = vmatprep.subr.bf16.mxu0 %v3436_v0 }
0x10fc   : > { %v2136_v8 = vsel %vm608_vm1, %v2130_v7, 0.0 }
0x10fd   : > { %2137 = vadd.xlane.f32.xlu1 %v2136_v8  ;;  %2883 = vmatpush3.bf16.msra.mxu0 %v3048_v1 }
0x10fe   : > { %2884 = vmatprep.subr.bf16.mxu0 %v3436_v0 }
0x1182   : > { %v2135_v9 = vpop.xlane.xlu0 %2134 }
0x1183   : > { %v2140_v10 = vmul.f32 0.03125, %v2135_v9 }
0x1185   : > { %v2142_v11 = vsub.f32 %v2129_v2, %v2140_v10  ;;  %v3049_v2 = vld [vmem:[#allocation16] sm:$0xff]  }
0x1186   : > { %v2138_v12 = vpop.xlane.xlu1 %2137  ;;  %2885 = vmatpush3.bf16.msra.mxu0 %v3049_v2 }
0x1187   : > { %v2141_v13 = vmul.f32 0.03125, %v2138_v12  ;;  %v2144_v14 = vmul.f32 %v2142_v11, %v2142_v11 }
0x1189   : > { %v2143_v15 = vsub.f32 %v2130_v7, %v2141_v13  ;;  %v2146_v16 = vsel %vm608_vm1, %v2144_v14, 0.0 }
0x118a   : > { %2147 = vadd.xlane.f32.xlu0 %v2146_v16 }
0x118b   : > { %v2145_v17 = vmul.f32 %v2143_v15, %v2143_v15 }
0x118d   : > { %v2149_v18 = vsel %vm608_vm1, %v2145_v17, 0.0 }
0x118e   : > { %2150 = vadd.xlane.f32.xlu1 %v2149_v18 }
0x1213   : > { %v2148_v24 = vpop.xlane.xlu0 %2147 }
0x1214   : > { %v2152_v26 = vmul.f32 0.03125, %v2148_v24 }
0x1216   : > { %v2154_v28 = vadd.f32 1e-05, %v2152_v26 }
0x1217   : > { %v2151_v29 = vpop.xlane.xlu1 %2150 }
0x1218   : > { %3114 = vrsqrt.f32 %v2154_v28  ;;  %v2153_v30 = vmul.f32 0.03125, %v2151_v29 }
0x121a   : > { %v2155_v31 = vadd.f32 1e-05, %v2153_v30 }
0x121c   : > { %3116 = vrsqrt.f32 %v2155_v31 }
0x1225   : > { %v3115_v34 = vpop.eup %3114 }
0x1226   : > { %v2158_v36 = vmul.f32 %v3115_v34, %v2142_v11 }
0x1228   : > { %v2166_v38 = vmul.f32 %v2631_v25, %v2158_v36 }
0x1229   : > { %v3117_v39 = vpop.eup %3116 }
0x122a   : > { %v2159_v40 = vmul.f32 %v3117_v39, %v2143_v15  ;;  %v2174_v41 = vadd.f32 %v2632_v37, %v2166_v38 }
0x122c   : > { %v2167_v42 = vmul.f32 %v2631_v25, %v2159_v40  ;;  %2357 = vst.msk [vmem:[%s3939_s22] sm:$0xff] %vm608_vm1, %v2174_v41  ;;  %v2176_v27 = vadd.f32 %v3128_v43, %v2174_v41 }
0x122e   : > { %v2175_v33 = vadd.f32 %v2632_v37, %v2167_v42 }
0x1230   : > { %v2177_v35 = vadd.f32 %v3129_v44, %v2175_v33  ;;  %2358 = vst.msk [vmem:[%s3939_s22 + $0x10] sm:$0xff] %vm608_vm1, %v2175_v33 }
0x1232   : > { %v2178_v45 = vpack.c.bf16 %v2177_v35, %v2176_v27 }
0x1234   : > { %2637 = vmatmul.mubr.msk.bf16.vlgmr.msra.gmra.mxu1 %vm608_vm1, %v2178_v45 }
0x12f4   : > { %v2252_v50 = vpop.f32.mrf.mxu1 }
0x12f5   : > { %v2253_v62 = vadd.f32 %v2252_v50, %v2188_v59 }
0x12f6   : > { %v2254_v51 = vpop.f32.mrf.mxu1 }
0x12f7   : > { %v2255_v52 = vadd.f32 %v2254_v51, %v2192_v49 }
0x12f8   : > { %v2256_v53 = vpop.f32.mrf.mxu1 }
0x12f9   : > { %v2262_v54 = vsel %vm2261_vm4, %v2255_v52, -inf  ;;  %v2257_v61 = vadd.f32 %v2256_v53, %v2188_v59 }
0x12fa   : > { %v2258_v55 = vpop.f32.mrf.mxu1  ;;  %2263 = vmax.xlane.f32.xlu0 %v2262_v54 }
0x12fb   : > { %v2259_v56 = vadd.f32 %v2258_v55, %v2192_v49 }
0x12fd   : > { %v2265_v57 = vsel %vm2261_vm4, %v2259_v56, -inf }
0x12fe   : > { %2266 = vmax.xlane.f32.xlu1 %v2265_v57 }
0x130f   : > { %2363 = vrot.lane.b32.xlu1 %v2257_v61, %s3454_s13 }
0x1310   : > { %2361 = vrot.lane.b32.xlu0 %v2253_v62, %s3454_s13 }
0x1383   : > { %v2264_v3 = vpop.xlane.xlu0 %2263 }
0x1384   : > { %v2268_v4 = vsub.f32 %v2255_v52, %v2264_v3 }
0x1386   : > { %v2270_v5 = vmul.f32 1.442695, %v2268_v4 }
0x1387   : > { %v2267_v6 = vpop.xlane.xlu1 %2266  ;;  %v2362_v7 = vpop.permute.xlu0 %2361 }
0x1388   : > { %v2269_v8 = vsub.f32 %v2259_v56, %v2267_v6  ;;  %2368 = vst.msk [vmem:[%s3939_s22] sm:$0xff] %vm2367_vm5, %v2362_v7  ;;  %3118 = vpow2.f32 %v2270_v5 }
0x1389   : > { %2369 = vst.msk [vmem:[%s3939_s22 + $0x8] sm:$0xff] %vm608_vm1, %v2362_v7 }
0x138a   : > { %v2272_v9 = vmul.f32 1.442695, %v2269_v8 }
0x138b   : > { %v2364_v10 = vpop.permute.xlu1 %2363 }
0x138c   : > { %3120 = vpow2.f32 %v2272_v9  ;;  %2370 = vst.msk [vmem:[%s3939_s22 + $0x10] sm:$0xff] %vm2367_vm5, %v2364_v10 }
0x138d   : > { %2371 = vst.msk [vmem:[%s3939_s22 + $0x18] sm:$0xff] %vm608_vm1, %v2364_v10 }
0x1395   : > { %v3119_v11 = vpop.eup %3118 }
0x1399   : > { %v3121_v12 = vpop.eup %3120 }
0x139a   : > { %v2274_v13 = vpack.c.bf16 %v3121_v12, %v3119_v11 }
0x139c   : > { %2887 = vmatmul.mubr.msk.bf16.vlgmr.msra.gmra.mxu0 %vm2261_vm4, %v2274_v13 }
0x145c   : > { %v2344_v14 = vpop.f32.mrf.mxu0 }
0x145d   : > { %v2351_v15 = vmax.f32 %v2344_v14, 1e-20 }
0x145e   : > { %v2888_v16 = vpop.f32.mrf.mxu0 }
0x145f   : > { %3122 = vrcp.f32 %v2351_v15 }
0x1460   : > { %v2347_v17 = vpop.f32.mrf.mxu0 }
0x1461   : > { %v2352_v18 = vmax.f32 %v2347_v17, 1e-20 }
0x1462   : > { %v2889_v19 = vpop.f32.mrf.mxu0 }
0x1463   : > { %3124 = vrcp.f32 %v2352_v18 }
0x146c   : > { %v3123_v20 = vpop.eup %3122 }
0x146d   : > { %v2355_v21 = vmul.f32 %v3123_v20, %v3119_v11 }
0x146f   : > { %2374 = vrot.lane.b32.xlu1 %v2355_v21, %s3454_s13 }
0x1470   : > { %v3125_v22 = vpop.eup %3124 }
0x1471   : > { %v2356_v23 = vmul.f32 %v3125_v22, %v3121_v12 }
0x1473   : > { %2376 = vrot.lane.b32.xlu0 %v2356_v23, %s3454_s13 }
0x14e1   : > { %v2375_v24 = vpop.permute.xlu1 %2374 }
0x14e2   : > { %2381 = vst.msk [vmem:[%s3939_s22 + $0x8] sm:$0xff] %vm2380_vm6, %v2375_v24 }
0x14e3   : > { %2384 = vst.msk [vmem:[%s3939_s22 + $0x8] sm:$0xff] %vm2383_vm7, %v3436_v0 }
0x14e5   : > { %v2377_v26 = vpop.permute.xlu0 %2376 }
0x14e6   : > { %2382 = vst.msk [vmem:[%s3939_s22 + $0x18] sm:$0xff] %vm2380_vm6, %v2377_v26 }
0x14e7   : > { %2385 = vst.msk [vmem:[%s3939_s22 + $0x18] sm:$0xff] %vm2383_vm7, %v3436_v0 }
0x14e8 PF: > { %s28_s21 = sadd.s32 1, %s3420_s21  }
0x14e9   : > { %p25_p3 = scmp.ge.s32.totalorder %s28_s21, 4  }
0x14eb   :  { %27 = sbr.rel (!%p25_p3) target bundleno = 6 (0x6), region = 149 }
0x14f0   :  { %2410 = vsyncpa [#allocation3], 1 }
0x14f1   :  { %2412 = vsyncpa [#allocation3 + $0x1], 1 }
0x14f2   :  { %2413 = vsyncpa [#allocation5], 1 }
0x14f3   :  { %2414 = vsyncpa [#allocation8], 1 }
0x14f4   :  { %2415 = vsyncpa [#allocation11], 1 }
0x14f5   :  { %2416 = vsyncpa [#allocation14], 1 }
0x14f6   :  { %2417 = vsyncpa [#allocation17], 1 }

// kernel: squeeze.20
= control target key start
LH: loop header
LB: loop body
LE: loop exit
PB: predicated region body
PF: predicated region fallthrough
CT: control target
= control target key end

     0   :  { %vm4_vm0 = vcmask 523264   ;;  %s1228_s16 = smov 64   ;;  %vm92_vm1 = vcmask 1048064   ;;  %s1731_s0 = inlined_call_operand.vmem [shape: f32[1,640,32], index: 0, kind: input, shape index: {}]   ;;  %s1732_s1 = inlined_call_operand.vmem [shape: f32[2,320,8,4], index: 1, kind: output, shape index: {}]  }
   0x1   :  { %v1116_v0 = vld.sshfl [vmem:[%s1731_s0 + $0x20] sm:$0xff pattern:$0x74563012]   ;;  %v1112_v2 = vld.sshfl [vmem:[%s1731_s0 + $0x10] sm:$0xff pattern:$0x56741230]  }
   0x2   :  { %v1117_v1 = vld.sshfl [vmem:[%s1731_s0 + $0x40] sm:$0xff pattern:$0x56741230]   ;;  %v1113_v4 = vld.sshfl [vmem:[%s1731_s0 + $0x18] sm:$0xff pattern:$0x56741230]  }
   0x3   :  { %v132_v3 = vsel %vm4_vm0, %v1117_v1, %v1116_v0  ;;  %v1118_v5 = vld.sshfl [vmem:[%s1731_s0 + $0x38] sm:$0xff pattern:$0x56741230]   ;;  %v80_v6 = vsel %vm4_vm0, %v1113_v4, %v1112_v2  ;;  %v1119_v7 = vld.sshfl [vmem:[%s1731_s0 + $0x48] sm:$0xff pattern:$0x67452301]  }
   0x4   :  { %133 = vrot.lane.b32.xlu1 %v132_v3, %s1228_s16  ;;  %v1114_v8 = vld.sshfl [vmem:[%s1731_s0 + $0x18] sm:$0xff pattern:$0x67452301]   ;;  %81 = vrot.lane.b32.xlu0 %v80_v6, %s1228_s16  ;;  %v158_v9 = vsel %vm4_vm0, %v1119_v7, %v1118_v5  ;;  %v1115_v10 = vld.sshfl [vmem:[%s1731_s0 + $0x20] sm:$0xff pattern:$0x67452301]  }
   0x5   :  { %v106_v11 = vsel %vm4_vm0, %v1115_v10, %v1114_v8  ;;  %v1122_v12 = vld.sshfl [vmem:[%s1731_s0 + $0x48] sm:$0xff pattern:$0x74563012]   ;;  %v1123_v13 = vld.sshfl [vmem:[%s1731_s0 + $0x70] sm:$0xff pattern:$0x67452301]  }
   0x6   :  { %v1120_v14 = vld.sshfl [vmem:[%s1731_s0 + $0x40] sm:$0xff pattern:$0x67452301]   ;;  %v1121_v15 = vld.sshfl [vmem:[%s1731_s0 + $0x68] sm:$0xff pattern:$0x56741230]   ;;  %v210_v16 = vsel %vm4_vm0, %v1123_v13, %v1122_v12 }
   0x7   :  { %v1126_v17 = vld.sshfl [vmem:[%s1731_s0 + $0x68] sm:$0xff pattern:$0x67452301]   ;;  %v184_v18 = vsel %vm4_vm0, %v1121_v15, %v1120_v14  ;;  %v1127_v19 = vld.sshfl [vmem:[%s1731_s0 + $0x98] sm:$0xff pattern:$0x67452301]  }
   0x8   :  { %159 = vrot.lane.b32.xlu1 %v158_v9, %s1228_s16  ;;  %107 = vrot.lane.b32.xlu0 %v106_v11, %s1228_s16  ;;  %v1124_v20 = vld.sshfl [vmem:[%s1731_s0 + $0x60] sm:$0xff pattern:$0x56741230]   ;;  %v1125_v21 = vld.sshfl [vmem:[%s1731_s0 + $0x90] sm:$0xff pattern:$0x56741230]   ;;  %v262_v27 = vsel %vm4_vm0, %v1127_v19, %v1126_v17 }
   0x9   :  { %v1101_v22 = vld [vmem:[%s1731_s0 + $0x10] sm:$0xff]   ;;  %v30_v23 = vld [vmem:[%s1731_s0] sm:$0xff]   ;;  %v1106_v24 = vld [vmem:[%s1731_s0 + $0x28] sm:$0xff]   ;;  %v236_v31 = vsel %vm4_vm0, %v1125_v21, %v1124_v20 }
   0xa   :  { %6 = vst.msk [vmem:[#allocation0 + $0x10] ss:$24 sm:$0xf] %vm4_vm0, %v1101_v22   ;;  %8 = vst.msk [vmem:[#allocation0 + $0x10] ss:$24 sm:$0xf0] %vm4_vm0, %v1101_v22  }
   0xb   :  { %31 = vst [vmem:[#allocation0] ss:$24 sm:$0xf] %v30_v23   ;;  %32 = vst [vmem:[#allocation0] ss:$24 sm:$0xf0] %v30_v23  }
   0xc   :  { %211 = vrot.lane.b32.xlu1 %v210_v16, %s1228_s16  ;;  %v1105_v25 = vld [vmem:[%s1731_s0 + $0x8] sm:$0xff]   ;;  %v1102_v26 = vld [vmem:[%s1731_s0 + $0x38] sm:$0xff]   ;;  %185 = vrot.lane.b32.xlu0 %v184_v18, %s1228_s16  ;;  %42 = vst [vmem:[#allocation0 + $0xc0] ss:$24 sm:$0xf] %v1106_v24  }
   0xd   :  { %44 = vst [vmem:[#allocation0 + $0xc0] ss:$24 sm:$0xf0] %v1106_v24   ;;  %36 = vst [vmem:[#allocation0 + $0x8] ss:$24 sm:$0xf] %v1105_v25  }
   0xe   :  { %38 = vst [vmem:[#allocation0 + $0x8] ss:$24 sm:$0xf0] %v1105_v25   ;;  %13 = vst.msk [vmem:[#allocation0 + $0xd0] ss:$24 sm:$0xf] %vm4_vm0, %v1102_v26  }
   0xf   :  { %15 = vst.msk [vmem:[#allocation0 + $0xd0] ss:$24 sm:$0xf0] %vm4_vm0, %v1102_v26   ;;  %v1107_v28 = vld [vmem:[%s1731_s0 + $0x30] sm:$0xff]   ;;  %v1109_v29 = vld [vmem:[%s1731_s0 + $0x58] sm:$0xff]   ;;  %v1103_v33 = vld [vmem:[%s1731_s0 + $0x60] sm:$0xff]  }
  0x10   :  { %v1108_v30 = vld [vmem:[%s1731_s0 + $0x50] sm:$0xff]   ;;  %48 = vst [vmem:[#allocation0 + $0xc8] ss:$24 sm:$0xf] %v1107_v28   ;;  %v1110_v32 = vld [vmem:[%s1731_s0 + $0x78] sm:$0xff]   ;;  %263 = vrot.lane.b32.xlu1 %v262_v27, %s1228_s16  ;;  %237 = vrot.lane.b32.xlu0 %v236_v31, %s1228_s16 }
  0x11   :  { %50 = vst [vmem:[#allocation0 + $0xc8] ss:$24 sm:$0xf0] %v1107_v28   ;;  %60 = vst [vmem:[#allocation0 + $0x188] ss:$24 sm:$0xf] %v1109_v29  }
  0x12   :  { %62 = vst [vmem:[#allocation0 + $0x188] ss:$24 sm:$0xf0] %v1109_v29   ;;  %54 = vst [vmem:[#allocation0 + $0x180] ss:$24 sm:$0xf] %v1108_v30  }
  0x13   :  { %56 = vst [vmem:[#allocation0 + $0x180] ss:$24 sm:$0xf0] %v1108_v30   ;;  %66 = vst [vmem:[#allocation0 + $0x240] ss:$24 sm:$0xf] %v1110_v32  }
  0x14   :  { %68 = vst [vmem:[#allocation0 + $0x240] ss:$24 sm:$0xf0] %v1110_v32   ;;  %20 = vst.msk [vmem:[#allocation0 + $0x190] ss:$24 sm:$0xf] %vm4_vm0, %v1103_v33  }
  0x15   :  { %22 = vst.msk [vmem:[#allocation0 + $0x190] ss:$24 sm:$0xf0] %vm4_vm0, %v1103_v33   ;;  %v1129_v34 = vld.sshfl [vmem:[%s1731_s0 + $0x88] sm:$0xff pattern:$0x56741230]  }
  0x16   :  { %v1128_v35 = vld.sshfl [vmem:[%s1731_s0 + $0x70] sm:$0xff pattern:$0x74563012]   ;;  %298 = vrot.lane.b32.xlu1 %v1129_v34, %s1228_s16  ;;  %v1104_v36 = vld [vmem:[%s1731_s0 + $0x88] sm:$0xff]   ;;  %v1111_v37 = vld [vmem:[%s1731_s0 + $0x80] sm:$0xff]  }
  0x17   :  { %285 = vrot.lane.b32.xlu0 %v1128_v35, %s1228_s16  ;;  %v1131_v38 = vld.sshfl [vmem:[%s1731_s0 + $0x98] sm:$0xff pattern:$0x74563012]   ;;  %27 = vst.msk [vmem:[#allocation0 + $0x250] ss:$24 sm:$0xf] %vm4_vm0, %v1104_v36  }
  0x18   :  { %29 = vst.msk [vmem:[#allocation0 + $0x250] ss:$24 sm:$0xf0] %vm4_vm0, %v1104_v36   ;;  %72 = vst [vmem:[#allocation0 + $0x248] ss:$24 sm:$0xf] %v1111_v37  }
  0x19   :  { %74 = vst [vmem:[#allocation0 + $0x248] ss:$24 sm:$0xf0] %v1111_v37   ;;  %v1130_v39 = vld.sshfl [vmem:[%s1731_s0 + $0x90] sm:$0xff pattern:$0x67452301]  }
  0x1a   :  { %324 = vrot.lane.b32.xlu1 %v1131_v38, %s1228_s16 }
  0x1b   :  { %311 = vrot.lane.b32.xlu0 %v1130_v39, %s1228_s16 }
  0x76   :  { %v134_v40 = vpop.permute.xlu1 %133   ;;  %v82_v41 = vpop.permute.xlu0 %81  }
  0x77   :  { %137 = vst.msk [vmem:[#allocation0 + $0x41] ss:$-24 sm:$0x7] %vm4_vm0, %v134_v40   ;;  %139 = vst.msk [vmem:[#allocation0 - $0x7f] ss:$72 sm:$0x18] %vm4_vm0, %v134_v40  }
  0x78   :  { %141 = vst.msk [vmem:[#allocation0 + $0x101] ss:$-24 sm:$0x60] %vm4_vm0, %v134_v40   ;;  %143 = vst.msk [vmem:[#allocation0 + $0xb2] sm:$0x80] %vm4_vm0, %v134_v40  }
  0x79   :  { %146 = vst.msk [vmem:[#allocation0 + $0xc1] ss:$72 sm:$0x3] %vm92_vm1, %v134_v40   ;;  %148 = vst.msk [vmem:[#allocation0 + $0x121] ss:$-24 sm:$0xc] %vm92_vm1, %v134_v40  }
  0x7a   :  { %150 = vst.msk [vmem:[#allocation0 + $0x1] ss:$72 sm:$0x30] %vm92_vm1, %v134_v40   ;;  %152 = vst.msk [vmem:[#allocation0 + $0x1e1] ss:$-24 sm:$0xc0] %vm92_vm1, %v134_v40   ;;  %v160_v42 = vpop.permute.xlu1 %159   ;;  %v108_v43 = vpop.permute.xlu0 %107  }
  0x7b   :  { %85 = vst.msk [vmem:[#allocation0 + $0x1] ss:$72 sm:$0x3] %vm4_vm0, %v82_v41   ;;  %87 = vst.msk [vmem:[#allocation0 + $0x61] ss:$-24 sm:$0xc] %vm4_vm0, %v82_v41  }
  0x7c   :  { %89 = vst.msk [vmem:[#allocation0 - $0xbf] ss:$72 sm:$0x30] %vm4_vm0, %v82_v41   ;;  %91 = vst.msk [vmem:[#allocation0 + $0x121] ss:$-24 sm:$0xc0] %vm4_vm0, %v82_v41  }
  0x7d   :  { %94 = vst.msk [vmem:[#allocation0 + $0x1] ss:$72 sm:$0x3] %vm92_vm1, %v82_v41   ;;  %96 = vst.msk [vmem:[#allocation0 + $0x61] ss:$-24 sm:$0xc] %vm92_vm1, %v82_v41  }
  0x7e   :  { %98 = vst.msk [vmem:[#allocation0 - $0xbf] ss:$72 sm:$0x30] %vm92_vm1, %v82_v41   ;;  %100 = vst.msk [vmem:[#allocation0 + $0x121] ss:$-24 sm:$0xc0] %vm92_vm1, %v82_v41   ;;  %v212_v47 = vpop.permute.xlu1 %211   ;;  %v186_v51 = vpop.permute.xlu0 %185  }
  0x7f   :  { %163 = vst.msk [vmem:[#allocation0 + $0xc1] ss:$72 sm:$0x3] %vm4_vm0, %v160_v42   ;;  %165 = vst.msk [vmem:[#allocation0 + $0x121] ss:$-24 sm:$0xc] %vm4_vm0, %v160_v42  }
  0x80   :  { %167 = vst.msk [vmem:[#allocation0 + $0x1] ss:$72 sm:$0x30] %vm4_vm0, %v160_v42   ;;  %169 = vst.msk [vmem:[#allocation0 + $0x1e1] ss:$-24 sm:$0xc0] %vm4_vm0, %v160_v42  }
  0x81   :  { %172 = vst.msk [vmem:[#allocation0 + $0xe1] ss:$-24 sm:$0x3] %vm92_vm1, %v160_v42   ;;  %174 = vst.msk [vmem:[#allocation0 + $0x141] ss:$-24 sm:$0xc] %vm92_vm1, %v160_v42  }
  0x82   :  { %176 = vst.msk [vmem:[#allocation0 + $0x1a1] ss:$-24 sm:$0x30] %vm92_vm1, %v160_v42   ;;  %178 = vst.msk [vmem:[#allocation0 + $0x201] ss:$-24 sm:$0xc0] %vm92_vm1, %v160_v42   ;;  %v264_v61 = vpop.permute.xlu1 %263   ;;  %v238_v1 = vpop.permute.xlu0 %237  }
  0x83   :  { %111 = vst.msk [vmem:[#allocation0 + $0x21] ss:$-24 sm:$0x3] %vm4_vm0, %v108_v43   ;;  %113 = vst.msk [vmem:[#allocation0 + $0x81] ss:$-24 sm:$0xc] %vm4_vm0, %v108_v43  }
  0x84   :  { %115 = vst.msk [vmem:[#allocation0 + $0xe1] ss:$-24 sm:$0x30] %vm4_vm0, %v108_v43   ;;  %117 = vst.msk [vmem:[#allocation0 + $0x141] ss:$-24 sm:$0xc0] %vm4_vm0, %v108_v43  }
  0x85   :  { %120 = vst.msk [vmem:[#allocation0 + $0x21] ss:$-24 sm:$0x3] %vm92_vm1, %v108_v43   ;;  %122 = vst.msk [vmem:[#allocation0 + $0x81] ss:$-24 sm:$0xc] %vm92_vm1, %v108_v43  }
  0x86   :  { %124 = vst.msk [vmem:[#allocation0 + $0xe1] ss:$-24 sm:$0x30] %vm92_vm1, %v108_v43   ;;  %126 = vst.msk [vmem:[#allocation0 + $0x141] ss:$-24 sm:$0xc0] %vm92_vm1, %v108_v43  }
  0x87   :  { %v350_v44 = vld [vmem:[#allocation0 + $0x10] sm:$0x3]  ;;  %v371_v45 = vld [vmem:[#allocation0 + $0x28] sm:$0x3]  ;;  %v392_v46 = vld [vmem:[#allocation0 + $0x40] sm:$0x3] }
  0x88   :  { %1133 = vst [vmem:[%s1732_s1 + $0x4] sm:$0x3] %v350_v44  ;;  %1136 = vst [vmem:[%s1732_s1 + $0xa] sm:$0x3] %v371_v45  ;;  %v413_v48 = vld [vmem:[#allocation0 + $0x58] sm:$0x3]  ;;  %v299_v11 = vpop.permute.xlu1 %298  }
  0x89   :  { %1139 = vst [vmem:[%s1732_s1 + $0x10] sm:$0x3] %v392_v46  ;;  %v434_v49 = vld [vmem:[#allocation0 + $0x70] sm:$0x3]  ;;  %v455_v50 = vld [vmem:[#allocation0 + $0x88] sm:$0x3]  ;;  %v286_v15 = vpop.permute.xlu0 %285  }
  0x8a   :  { %215 = vst.msk [vmem:[#allocation0 + $0x101] ss:$-24 sm:$0x7] %vm4_vm0, %v212_v47   ;;  %217 = vst.msk [vmem:[#allocation0 + $0x41] ss:$72 sm:$0x18] %vm4_vm0, %v212_v47  }
  0x8b   :  { %219 = vst.msk [vmem:[#allocation0 + $0x1c1] ss:$-24 sm:$0x60] %vm4_vm0, %v212_v47   ;;  %221 = vst.msk [vmem:[#allocation0 + $0x172] sm:$0x80] %vm4_vm0, %v212_v47  }
  0x8c   :  { %224 = vst.msk [vmem:[#allocation0 + $0x1a1] ss:$-24 sm:$0x3] %vm92_vm1, %v212_v47   ;;  %226 = vst.msk [vmem:[#allocation0 + $0x201] ss:$-24 sm:$0xc] %vm92_vm1, %v212_v47   ;;  %v325_v25 = vpop.permute.xlu1 %324  }
  0x8d   :  { %228 = vst.msk [vmem:[#allocation0 + $0x261] ss:$-24 sm:$0x30] %vm92_vm1, %v212_v47   ;;  %230 = vst.msk [vmem:[#allocation0 + $0x2c1] ss:$-24 sm:$0xc0] %vm92_vm1, %v212_v47   ;;  %v312_v29 = vpop.permute.xlu0 %311  }
  0x8e   :  { %1142 = vst [vmem:[%s1732_s1 + $0x16] sm:$0x3] %v413_v48  ;;  %1145 = vst [vmem:[%s1732_s1 + $0x1c] sm:$0x3] %v434_v49  ;;  %v476_v52 = vld [vmem:[#allocation0 + $0xa0] sm:$0x3] }
  0x8f   :  { %1148 = vst [vmem:[%s1732_s1 + $0x22] sm:$0x3] %v455_v50  ;;  %v497_v53 = vld [vmem:[#allocation0 + $0xb8] sm:$0x3]  ;;  %v339_v54 = vld [vmem:[#allocation0] sm:$0x3] }
  0x90   :  { %189 = vst.msk [vmem:[#allocation0 + $0xe1] ss:$-24 sm:$0x3] %vm4_vm0, %v186_v51   ;;  %191 = vst.msk [vmem:[#allocation0 + $0x141] ss:$-24 sm:$0xc] %vm4_vm0, %v186_v51  }
  0x91   :  { %193 = vst.msk [vmem:[#allocation0 + $0x1a1] ss:$-24 sm:$0x30] %vm4_vm0, %v186_v51   ;;  %195 = vst.msk [vmem:[#allocation0 + $0x201] ss:$-24 sm:$0xc0] %vm4_vm0, %v186_v51  }
  0x92   :  { %198 = vst.msk [vmem:[#allocation0 + $0x181] ss:$72 sm:$0x3] %vm92_vm1, %v186_v51   ;;  %200 = vst.msk [vmem:[#allocation0 + $0x1e1] ss:$-24 sm:$0xc] %vm92_vm1, %v186_v51  }
  0x93   :  { %202 = vst.msk [vmem:[#allocation0 + $0xc1] ss:$72 sm:$0x30] %vm92_vm1, %v186_v51   ;;  %204 = vst.msk [vmem:[#allocation0 + $0x2a1] ss:$-24 sm:$0xc0] %vm92_vm1, %v186_v51  }
  0x94   :  { %1151 = vst [vmem:[%s1732_s1 + $0x28] sm:$0x3] %v476_v52  ;;  %1154 = vst [vmem:[%s1732_s1 + $0x2e] sm:$0x3] %v497_v53  ;;  %v357_v55 = vld [vmem:[#allocation0 + $0x18] sm:$0x3] }
  0x95   :  { %342 = vst [vmem:[%s1732_s1] sm:$0x3] %v339_v54  ;;  %v378_v56 = vld [vmem:[#allocation0 + $0x30] sm:$0x3]  ;;  %v399_v57 = vld [vmem:[#allocation0 + $0x48] sm:$0x3] }
  0x96   :  { %1134 = vst [vmem:[%s1732_s1 + $0x6] sm:$0x3] %v357_v55  ;;  %1137 = vst [vmem:[%s1732_s1 + $0xc] sm:$0x3] %v378_v56  ;;  %v420_v58 = vld [vmem:[#allocation0 + $0x60] sm:$0x3] }
  0x97   :  { %1140 = vst [vmem:[%s1732_s1 + $0x12] sm:$0x3] %v399_v57  ;;  %v441_v59 = vld [vmem:[#allocation0 + $0x78] sm:$0x3]  ;;  %v462_v60 = vld [vmem:[#allocation0 + $0x90] sm:$0x3] }
  0x98   :  { %1143 = vst [vmem:[%s1732_s1 + $0x18] sm:$0x3] %v420_v58  ;;  %1146 = vst [vmem:[%s1732_s1 + $0x1e] sm:$0x3] %v441_v59  ;;  %v483_v62 = vld [vmem:[#allocation0 + $0xa8] sm:$0x3] }
  0x99   :  { %1149 = vst [vmem:[%s1732_s1 + $0x24] sm:$0x3] %v462_v60  ;;  %v504_v63 = vld [vmem:[#allocation0 + $0xc0] sm:$0x3]  ;;  %v525_v0 = vld [vmem:[#allocation0 + $0xd8] sm:$0x3] }
  0x9a   :  { %267 = vst.msk [vmem:[#allocation0 + $0x1a1] ss:$-24 sm:$0x3] %vm4_vm0, %v264_v61   ;;  %269 = vst.msk [vmem:[#allocation0 + $0x201] ss:$-24 sm:$0xc] %vm4_vm0, %v264_v61  }
  0x9b   :  { %271 = vst.msk [vmem:[#allocation0 + $0x261] ss:$-24 sm:$0x30] %vm4_vm0, %v264_v61   ;;  %273 = vst.msk [vmem:[#allocation0 + $0x2c1] ss:$-24 sm:$0xc0] %vm4_vm0, %v264_v61  }
  0x9c   :  { %276 = vst.msk [vmem:[#allocation0 + $0x261] ss:$-24 sm:$0x3] %vm92_vm1, %v264_v61   ;;  %278 = vst.msk [vmem:[#allocation0 + $0x2c1] ss:$-24 sm:$0xc] %vm92_vm1, %v264_v61  }
  0x9d   :  { %280 = vst.msk [vmem:[#allocation0 + $0x321] ss:$-24 sm:$0x30] %vm92_vm1, %v264_v61   ;;  %282 = vst.msk [vmem:[#allocation0 + $0x381] ss:$-24 sm:$0xc0] %vm92_vm1, %v264_v61  }
  0x9e   :  { %1152 = vst [vmem:[%s1732_s1 + $0x2a] sm:$0x3] %v483_v62  ;;  %1155 = vst [vmem:[%s1732_s1 + $0x30] sm:$0x3] %v504_v63  ;;  %v546_v2 = vld [vmem:[#allocation0 + $0xf0] sm:$0x3] }
  0x9f   :  { %1158 = vst [vmem:[%s1732_s1 + $0x36] sm:$0x3] %v525_v0  ;;  %v567_v3 = vld [vmem:[#allocation0 + $0x108] sm:$0x3]  ;;  %v588_v4 = vld [vmem:[#allocation0 + $0x120] sm:$0x3] }
  0xa0   :  { %241 = vst.msk [vmem:[#allocation0 + $0x181] ss:$72 sm:$0x3] %vm4_vm0, %v238_v1   ;;  %243 = vst.msk [vmem:[#allocation0 + $0x1e1] ss:$-24 sm:$0xc] %vm4_vm0, %v238_v1  }
  0xa1   :  { %245 = vst.msk [vmem:[#allocation0 + $0xc1] ss:$72 sm:$0x30] %vm4_vm0, %v238_v1   ;;  %247 = vst.msk [vmem:[#allocation0 + $0x2a1] ss:$-24 sm:$0xc0] %vm4_vm0, %v238_v1  }
  0xa2   :  { %250 = vst.msk [vmem:[#allocation0 + $0x241] ss:$72 sm:$0x3] %vm92_vm1, %v238_v1   ;;  %252 = vst.msk [vmem:[#allocation0 + $0x2a1] ss:$-24 sm:$0xc] %vm92_vm1, %v238_v1  }
  0xa3   :  { %254 = vst.msk [vmem:[#allocation0 + $0x181] ss:$72 sm:$0x30] %vm92_vm1, %v238_v1   ;;  %256 = vst.msk [vmem:[#allocation0 + $0x361] ss:$-24 sm:$0xc0] %vm92_vm1, %v238_v1  }
  0xa4   :  { %1161 = vst [vmem:[%s1732_s1 + $0x3c] sm:$0x3] %v546_v2  ;;  %1164 = vst [vmem:[%s1732_s1 + $0x42] sm:$0x3] %v567_v3  ;;  %v609_v5 = vld [vmem:[#allocation0 + $0x138] sm:$0x3] }
  0xa5   :  { %1167 = vst [vmem:[%s1732_s1 + $0x48] sm:$0x3] %v588_v4  ;;  %v630_v6 = vld [vmem:[#allocation0 + $0x150] sm:$0x3]  ;;  %v651_v7 = vld [vmem:[#allocation0 + $0x168] sm:$0x3] }
  0xa6   :  { %1170 = vst [vmem:[%s1732_s1 + $0x4e] sm:$0x3] %v609_v5  ;;  %1173 = vst [vmem:[%s1732_s1 + $0x54] sm:$0x3] %v630_v6  ;;  %v344_v8 = vld [vmem:[#allocation0 + $0x8] sm:$0x3] }
  0xa7   :  { %1176 = vst [vmem:[%s1732_s1 + $0x5a] sm:$0x3] %v651_v7  ;;  %v364_v9 = vld [vmem:[#allocation0 + $0x20] sm:$0x3]  ;;  %v385_v10 = vld [vmem:[#allocation0 + $0x38] sm:$0x3] }
  0xa8   :  { %1132 = vst [vmem:[%s1732_s1 + $0x2] sm:$0x3] %v344_v8  ;;  %1135 = vst [vmem:[%s1732_s1 + $0x8] sm:$0x3] %v364_v9  ;;  %v406_v12 = vld [vmem:[#allocation0 + $0x50] sm:$0x3] }
  0xa9   :  { %1138 = vst [vmem:[%s1732_s1 + $0xe] sm:$0x3] %v385_v10  ;;  %v427_v13 = vld [vmem:[#allocation0 + $0x68] sm:$0x3]  ;;  %v448_v14 = vld [vmem:[#allocation0 + $0x80] sm:$0x3] }
  0xaa   :  { %302 = vst.msk [vmem:[#allocation0 + $0x241] ss:$72 sm:$0x3] %vm4_vm0, %v299_v11   ;;  %304 = vst.msk [vmem:[#allocation0 + $0x2a1] ss:$-24 sm:$0xc] %vm4_vm0, %v299_v11  }
  0xab   :  { %306 = vst.msk [vmem:[#allocation0 + $0x181] ss:$72 sm:$0x30] %vm4_vm0, %v299_v11   ;;  %308 = vst.msk [vmem:[#allocation0 + $0x361] ss:$-24 sm:$0xc0] %vm4_vm0, %v299_v11  }
  0xac   :  { %1141 = vst [vmem:[%s1732_s1 + $0x14] sm:$0x3] %v406_v12  ;;  %1144 = vst [vmem:[%s1732_s1 + $0x1a] sm:$0x3] %v427_v13  ;;  %v469_v16 = vld [vmem:[#allocation0 + $0x98] sm:$0x3] }
  0xad   :  { %1147 = vst [vmem:[%s1732_s1 + $0x20] sm:$0x3] %v448_v14  ;;  %v490_v17 = vld [vmem:[#allocation0 + $0xb0] sm:$0x3]  ;;  %295 = vst.msk [vmem:[#allocation0 + $0x232] sm:$0x80] %vm4_vm0, %v286_v15  }
  0xae   :  { %v518_v18 = vld [vmem:[#allocation0 + $0xd0] sm:$0x3]  ;;  %289 = vst.msk [vmem:[#allocation0 + $0x1c1] ss:$-24 sm:$0x7] %vm4_vm0, %v286_v15  }
  0xaf   :  { %291 = vst.msk [vmem:[#allocation0 + $0x101] ss:$72 sm:$0x18] %vm4_vm0, %v286_v15   ;;  %293 = vst.msk [vmem:[#allocation0 + $0x281] ss:$-24 sm:$0x60] %vm4_vm0, %v286_v15  }
  0xb0   :  { %1150 = vst [vmem:[%s1732_s1 + $0x26] sm:$0x3] %v469_v16  ;;  %1153 = vst [vmem:[%s1732_s1 + $0x2c] sm:$0x3] %v490_v17  ;;  %v539_v19 = vld [vmem:[#allocation0 + $0xe8] sm:$0x3] }
  0xb1   :  { %1157 = vst [vmem:[%s1732_s1 + $0x34] sm:$0x3] %v518_v18  ;;  %v560_v20 = vld [vmem:[#allocation0 + $0x100] sm:$0x3]  ;;  %v581_v21 = vld [vmem:[#allocation0 + $0x118] sm:$0x3] }
  0xb2   :  { %1160 = vst [vmem:[%s1732_s1 + $0x3a] sm:$0x3] %v539_v19  ;;  %1163 = vst [vmem:[%s1732_s1 + $0x40] sm:$0x3] %v560_v20  ;;  %v602_v22 = vld [vmem:[#allocation0 + $0x130] sm:$0x3] }
  0xb3   :  { %1166 = vst [vmem:[%s1732_s1 + $0x46] sm:$0x3] %v581_v21  ;;  %v623_v23 = vld [vmem:[#allocation0 + $0x148] sm:$0x3]  ;;  %v644_v24 = vld [vmem:[#allocation0 + $0x160] sm:$0x3] }
  0xb4   :  { %1169 = vst [vmem:[%s1732_s1 + $0x4c] sm:$0x3] %v602_v22  ;;  %1172 = vst [vmem:[%s1732_s1 + $0x52] sm:$0x3] %v623_v23  ;;  %v665_v26 = vld [vmem:[#allocation0 + $0x178] sm:$0x3] }
  0xb5   :  { %1175 = vst [vmem:[%s1732_s1 + $0x58] sm:$0x3] %v644_v24  ;;  %v511_v27 = vld [vmem:[#allocation0 + $0xc8] sm:$0x3]  ;;  %v532_v28 = vld [vmem:[#allocation0 + $0xe0] sm:$0x3] }
  0xb6   :  { %328 = vst.msk [vmem:[#allocation0 + $0x281] ss:$-24 sm:$0x7] %vm4_vm0, %v325_v25   ;;  %330 = vst.msk [vmem:[#allocation0 + $0x1c1] ss:$72 sm:$0x18] %vm4_vm0, %v325_v25  }
  0xb7   :  { %332 = vst.msk [vmem:[#allocation0 + $0x341] ss:$-24 sm:$0x60] %vm4_vm0, %v325_v25   ;;  %334 = vst.msk [vmem:[#allocation0 + $0x2f2] sm:$0x80] %vm4_vm0, %v325_v25  }
  0xb8   :  { %1178 = vst [vmem:[%s1732_s1 + $0x5e] sm:$0x3] %v665_v26  ;;  %1156 = vst [vmem:[%s1732_s1 + $0x32] sm:$0x3] %v511_v27  ;;  %v553_v30 = vld [vmem:[#allocation0 + $0xf8] sm:$0x3] }
  0xb9   :  { %1159 = vst [vmem:[%s1732_s1 + $0x38] sm:$0x3] %v532_v28  ;;  %v574_v31 = vld [vmem:[#allocation0 + $0x110] sm:$0x3]  ;;  %v595_v32 = vld [vmem:[#allocation0 + $0x128] sm:$0x3] }
  0xba   :  { %315 = vst.msk [vmem:[#allocation0 + $0x261] ss:$-24 sm:$0x3] %vm4_vm0, %v312_v29   ;;  %317 = vst.msk [vmem:[#allocation0 + $0x2c1] ss:$-24 sm:$0xc] %vm4_vm0, %v312_v29  }
  0xbb   :  { %319 = vst.msk [vmem:[#allocation0 + $0x321] ss:$-24 sm:$0x30] %vm4_vm0, %v312_v29   ;;  %321 = vst.msk [vmem:[#allocation0 + $0x381] ss:$-24 sm:$0xc0] %vm4_vm0, %v312_v29  }
  0xbc   :  { %1162 = vst [vmem:[%s1732_s1 + $0x3e] sm:$0x3] %v553_v30  ;;  %1165 = vst [vmem:[%s1732_s1 + $0x44] sm:$0x3] %v574_v31  ;;  %v616_v33 = vld [vmem:[#allocation0 + $0x140] sm:$0x3] }
  0xbd   :  { %1168 = vst [vmem:[%s1732_s1 + $0x4a] sm:$0x3] %v595_v32  ;;  %v637_v34 = vld [vmem:[#allocation0 + $0x158] sm:$0x3]  ;;  %v658_v35 = vld [vmem:[#allocation0 + $0x170] sm:$0x3] }
  0xbe   :  { %1171 = vst [vmem:[%s1732_s1 + $0x50] sm:$0x3] %v616_v33  ;;  %1174 = vst [vmem:[%s1732_s1 + $0x56] sm:$0x3] %v637_v34  ;;  %v679_v36 = vld [vmem:[#allocation0 + $0x188] sm:$0x3] }
  0xbf   :  { %1177 = vst [vmem:[%s1732_s1 + $0x5c] sm:$0x3] %v658_v35  ;;  %v700_v37 = vld [vmem:[#allocation0 + $0x1a0] sm:$0x3]  ;;  %v721_v38 = vld [vmem:[#allocation0 + $0x1b8] sm:$0x3] }
  0xc0   :  { %1180 = vst [vmem:[%s1732_s1 + $0x62] sm:$0x3] %v679_v36  ;;  %1183 = vst [vmem:[%s1732_s1 + $0x68] sm:$0x3] %v700_v37  ;;  %v742_v39 = vld [vmem:[#allocation0 + $0x1d0] sm:$0x3] }
  0xc1   :  { %1186 = vst [vmem:[%s1732_s1 + $0x6e] sm:$0x3] %v721_v38  ;;  %v763_v40 = vld [vmem:[#allocation0 + $0x1e8] sm:$0x3]  ;;  %v784_v41 = vld [vmem:[#allocation0 + $0x200] sm:$0x3] }
  0xc2   :  { %1189 = vst [vmem:[%s1732_s1 + $0x74] sm:$0x3] %v742_v39  ;;  %1192 = vst [vmem:[%s1732_s1 + $0x7a] sm:$0x3] %v763_v40  ;;  %v805_v42 = vld [vmem:[#allocation0 + $0x218] sm:$0x3] }
  0xc3   :  { %1195 = vst [vmem:[%s1732_s1 + $0x80] sm:$0x3] %v784_v41  ;;  %v826_v43 = vld [vmem:[#allocation0 + $0x230] sm:$0x3]  ;;  %v672_v44 = vld [vmem:[#allocation0 + $0x180] sm:$0x3] }
  0xc4   :  { %1198 = vst [vmem:[%s1732_s1 + $0x86] sm:$0x3] %v805_v42  ;;  %1201 = vst [vmem:[%s1732_s1 + $0x8c] sm:$0x3] %v826_v43  ;;  %v693_v45 = vld [vmem:[#allocation0 + $0x198] sm:$0x3] }
  0xc5   :  { %1179 = vst [vmem:[%s1732_s1 + $0x60] sm:$0x3] %v672_v44  ;;  %v714_v46 = vld [vmem:[#allocation0 + $0x1b0] sm:$0x3]  ;;  %v735_v47 = vld [vmem:[#allocation0 + $0x1c8] sm:$0x3] }
  0xc6   :  { %1182 = vst [vmem:[%s1732_s1 + $0x66] sm:$0x3] %v693_v45  ;;  %1185 = vst [vmem:[%s1732_s1 + $0x6c] sm:$0x3] %v714_v46  ;;  %v756_v48 = vld [vmem:[#allocation0 + $0x1e0] sm:$0x3] }
  0xc7   :  { %1188 = vst [vmem:[%s1732_s1 + $0x72] sm:$0x3] %v735_v47  ;;  %v777_v49 = vld [vmem:[#allocation0 + $0x1f8] sm:$0x3]  ;;  %v798_v50 = vld [vmem:[#allocation0 + $0x210] sm:$0x3] }
  0xc8   :  { %1191 = vst [vmem:[%s1732_s1 + $0x78] sm:$0x3] %v756_v48  ;;  %1194 = vst [vmem:[%s1732_s1 + $0x7e] sm:$0x3] %v777_v49  ;;  %v819_v51 = vld [vmem:[#allocation0 + $0x228] sm:$0x3] }
  0xc9   :  { %1197 = vst [vmem:[%s1732_s1 + $0x84] sm:$0x3] %v798_v50  ;;  %v840_v52 = vld [vmem:[#allocation0 + $0x240] sm:$0x3]  ;;  %v861_v53 = vld [vmem:[#allocation0 + $0x258] sm:$0x3] }
  0xca   :  { %1200 = vst [vmem:[%s1732_s1 + $0x8a] sm:$0x3] %v819_v51  ;;  %1203 = vst [vmem:[%s1732_s1 + $0x90] sm:$0x3] %v840_v52  ;;  %v882_v54 = vld [vmem:[#allocation0 + $0x270] sm:$0x3] }
  0xcb   :  { %1206 = vst [vmem:[%s1732_s1 + $0x96] sm:$0x3] %v861_v53  ;;  %v903_v55 = vld [vmem:[#allocation0 + $0x288] sm:$0x3]  ;;  %v924_v56 = vld [vmem:[#allocation0 + $0x2a0] sm:$0x3] }
  0xcc   :  { %1209 = vst [vmem:[%s1732_s1 + $0x9c] sm:$0x3] %v882_v54  ;;  %1212 = vst [vmem:[%s1732_s1 + $0xa2] sm:$0x3] %v903_v55  ;;  %v945_v57 = vld [vmem:[#allocation0 + $0x2b8] sm:$0x3] }
  0xcd   :  { %1215 = vst [vmem:[%s1732_s1 + $0xa8] sm:$0x3] %v924_v56  ;;  %v966_v58 = vld [vmem:[#allocation0 + $0x2d0] sm:$0x3]  ;;  %v987_v59 = vld [vmem:[#allocation0 + $0x2e8] sm:$0x3] }
  0xce   :  { %1218 = vst [vmem:[%s1732_s1 + $0xae] sm:$0x3] %v945_v57  ;;  %1221 = vst [vmem:[%s1732_s1 + $0xb4] sm:$0x3] %v966_v58  ;;  %v686_v60 = vld [vmem:[#allocation0 + $0x190] sm:$0x3] }
  0xcf   :  { %1224 = vst [vmem:[%s1732_s1 + $0xba] sm:$0x3] %v987_v59  ;;  %v707_v61 = vld [vmem:[#allocation0 + $0x1a8] sm:$0x3]  ;;  %v728_v62 = vld [vmem:[#allocation0 + $0x1c0] sm:$0x3] }
  0xd0   :  { %1181 = vst [vmem:[%s1732_s1 + $0x64] sm:$0x3] %v686_v60  ;;  %1184 = vst [vmem:[%s1732_s1 + $0x6a] sm:$0x3] %v707_v61  ;;  %v749_v63 = vld [vmem:[#allocation0 + $0x1d8] sm:$0x3] }
  0xd1   :  { %1187 = vst [vmem:[%s1732_s1 + $0x70] sm:$0x3] %v728_v62  ;;  %v770_v0 = vld [vmem:[#allocation0 + $0x1f0] sm:$0x3]  ;;  %v791_v1 = vld [vmem:[#allocation0 + $0x208] sm:$0x3] }
  0xd2   :  { %1190 = vst [vmem:[%s1732_s1 + $0x76] sm:$0x3] %v749_v63  ;;  %1193 = vst [vmem:[%s1732_s1 + $0x7c] sm:$0x3] %v770_v0  ;;  %v812_v2 = vld [vmem:[#allocation0 + $0x220] sm:$0x3] }
  0xd3   :  { %1196 = vst [vmem:[%s1732_s1 + $0x82] sm:$0x3] %v791_v1  ;;  %v833_v3 = vld [vmem:[#allocation0 + $0x238] sm:$0x3]  ;;  %v854_v4 = vld [vmem:[#allocation0 + $0x250] sm:$0x3] }
  0xd4   :  { %1199 = vst [vmem:[%s1732_s1 + $0x88] sm:$0x3] %v812_v2  ;;  %1202 = vst [vmem:[%s1732_s1 + $0x8e] sm:$0x3] %v833_v3  ;;  %v875_v5 = vld [vmem:[#allocation0 + $0x268] sm:$0x3] }
  0xd5   :  { %1205 = vst [vmem:[%s1732_s1 + $0x94] sm:$0x3] %v854_v4  ;;  %v896_v6 = vld [vmem:[#allocation0 + $0x280] sm:$0x3]  ;;  %v917_v7 = vld [vmem:[#allocation0 + $0x298] sm:$0x3] }
  0xd6   :  { %1208 = vst [vmem:[%s1732_s1 + $0x9a] sm:$0x3] %v875_v5  ;;  %1211 = vst [vmem:[%s1732_s1 + $0xa0] sm:$0x3] %v896_v6  ;;  %v938_v8 = vld [vmem:[#allocation0 + $0x2b0] sm:$0x3] }
  0xd7   :  { %1214 = vst [vmem:[%s1732_s1 + $0xa6] sm:$0x3] %v917_v7  ;;  %v959_v9 = vld [vmem:[#allocation0 + $0x2c8] sm:$0x3]  ;;  %v980_v10 = vld [vmem:[#allocation0 + $0x2e0] sm:$0x3] }
  0xd8   :  { %1217 = vst [vmem:[%s1732_s1 + $0xac] sm:$0x3] %v938_v8  ;;  %1220 = vst [vmem:[%s1732_s1 + $0xb2] sm:$0x3] %v959_v9  ;;  %v1001_v11 = vld [vmem:[#allocation0 + $0x2f8] sm:$0x3] }
  0xd9   :  { %1223 = vst [vmem:[%s1732_s1 + $0xb8] sm:$0x3] %v980_v10  ;;  %v847_v12 = vld [vmem:[#allocation0 + $0x248] sm:$0x3]  ;;  %v868_v13 = vld [vmem:[#allocation0 + $0x260] sm:$0x3] }
  0xda   :  { %1226 = vst [vmem:[%s1732_s1 + $0xbe] sm:$0x3] %v1001_v11  ;;  %1204 = vst [vmem:[%s1732_s1 + $0x92] sm:$0x3] %v847_v12  ;;  %v889_v14 = vld [vmem:[#allocation0 + $0x278] sm:$0x3] }
  0xdb   :  { %1207 = vst [vmem:[%s1732_s1 + $0x98] sm:$0x3] %v868_v13  ;;  %v910_v15 = vld [vmem:[#allocation0 + $0x290] sm:$0x3]  ;;  %v931_v16 = vld [vmem:[#allocation0 + $0x2a8] sm:$0x3] }
  0xdc   :  { %1210 = vst [vmem:[%s1732_s1 + $0x9e] sm:$0x3] %v889_v14  ;;  %1213 = vst [vmem:[%s1732_s1 + $0xa4] sm:$0x3] %v910_v15  ;;  %v952_v17 = vld [vmem:[#allocation0 + $0x2c0] sm:$0x3] }
  0xdd   :  { %1216 = vst [vmem:[%s1732_s1 + $0xaa] sm:$0x3] %v931_v16  ;;  %v973_v18 = vld [vmem:[#allocation0 + $0x2d8] sm:$0x3]  ;;  %v994_v19 = vld [vmem:[#allocation0 + $0x2f0] sm:$0x3] }
  0xde   :  { %1219 = vst [vmem:[%s1732_s1 + $0xb0] sm:$0x3] %v952_v17  ;;  %1222 = vst [vmem:[%s1732_s1 + $0xb6] sm:$0x3] %v973_v18 }
  0xdf   :  { %1225 = vst [vmem:[%s1732_s1 + $0xbc] sm:$0x3] %v994_v19 }

// kernel: _polygon_head_jit.5
= control target key start
LH: loop header
LB: loop body
LE: loop exit
PB: predicated region body
PF: predicated region fallthrough
CT: control target
= control target key end

     0   :  { %s1410_s12 = smov 0   ;;  %s1839_s0 = inlined_call_operand.vmem [shape: bf16[640,32], index: 0, kind: input, shape index: {}]   ;;  %s1840_s1 = inlined_call_operand.vmem [shape: bf16[2,32,32], index: 1, kind: input, shape index: {}]   ;;  %s1841_s2 = inlined_call_operand.vmem [shape: f32[2,1,32], index: 2, kind: input, shape index: {}]   ;;  %s1842_s3 = inlined_call_operand.vmem [shape: f32[2,640,32], index: 3, kind: output, shape index: {}]  }
   0x1 LB: > { %s1107_s13 = sadd.s32 4294967295, %s1388_s12   ;;  %p1111_p0 = scmp.ge.s32.totalorder %s1388_s12, 1  ;;  %s1388_s12 = sphi %s1410_s12, %s13_s12  }
   0x2   : > { %p145_p1 = scmp.lt.s32.totalorder %s1388_s12, 3 }
   0x4   : > { %p146_p2 = pnand %p1111_p0, %p145_p1 }
   0x5   : > { %p172_p3 = scmp.lt.s32.totalorder (!%p146_p2), %s1107_s13, 1 }
   0x6   : > { %149 = sbr.rel (%p146_p2) target bundleno = 297 (0x129), region = 32 }
   0xb   : > { %v1342_v0 = vld [vmem:[%s1839_s0] sm:$0xff]   ;;  %vm489_vm0 = vcmask 261120   ;;  %s1844_s13 = smov (!%p172_p3, %s1107_s13), 1  ;;  %v1344_v4 = vld [vmem:[%s1839_s0 + $0x8] sm:$0xff]   ;;  %v1346_v6 = vld [vmem:[%s1839_s0 + $0x10] sm:$0xff]  }
   0xc   : > { %v1343_v1 = vld [vmem:[%s1839_s0 + $0xa0] sm:$0xff]   ;;  %1247 = vmatprep.mubr.msk.bf16.mxu0 %vm489_vm0, %v1342_v0  ;;  %s1200_s18 = sshll.u32 %s1844_s13, 4  ;;  %v1345_v5 = vld [vmem:[%s1839_s0 + $0xa8] sm:$0xff]   ;;  %v1347_v7 = vld [vmem:[%s1839_s0 + $0xb0] sm:$0xff]   ;;  %s179_s25 = scalar_lea.vmem %s1841_s2, %s1844_s13 }
   0xd   : > { %1287 = vmatprep.mubr.msk.bf16.mxu1 %vm489_vm0, %v1343_v1  ;;  %s176_s21 = scalar_lea.vmem %s1840_s1, %s1200_s18  ;;  %v1348_v8 = vld [vmem:[%s1839_s0 + $0x18] sm:$0xff]   ;;  %v1350_v10 = vld [vmem:[%s1839_s0 + $0x20] sm:$0xff]   ;;  %v1352_v12 = vld [vmem:[%s1839_s0 + $0x28] sm:$0xff]   ;;  %s1331_s26 = smul.u32 640, %s1844_s13 }
   0xe   : > { %v1340_v2 = vld [vmem:[%s176_s21 + $0x8] sm:$0xff]   ;;  %v1341_v3 = vld [vmem:[%s176_s21] sm:$0xff]   ;;  %v1349_v9 = vld [vmem:[%s1839_s0 + $0xb8] sm:$0xff]  }
   0xf   : > { %1243 = vmatprep.subr.bf16.mxu0 %v1340_v2  ;;  %1327 = vmatprep.subr.bf16.mxu1 %v1340_v2  ;;  %v1351_v11 = vld [vmem:[%s1839_s0 + $0xc0] sm:$0xff]   ;;  %v1353_v13 = vld [vmem:[%s1839_s0 + $0xc8] sm:$0xff]   ;;  %v1354_v14 = vld [vmem:[%s1839_s0 + $0x30] sm:$0xff]   ;;  %s1594_s29 = scalar_lea.vmem %s1842_s3, %s1331_s26 }
  0x10   : > { %1244 = vmatpush3.bf16.msra.mxu0 %v1340_v2  ;;  %1329 = vmatpush3.bf16.msra.mxu1 %v1340_v2  ;;  %v1355_v15 = vld [vmem:[%s1839_s0 + $0xd0] sm:$0xff]   ;;  %v1356_v16 = vld [vmem:[%s1839_s0 + $0x38] sm:$0xff]   ;;  %v1358_v18 = vld [vmem:[%s1839_s0 + $0x40] sm:$0xff]  }
  0x11   : > { %1245 = vmatprep.subr.bf16.mxu0 %v1341_v3  ;;  %1328 = vmatprep.subr.bf16.mxu1 %v1341_v3  ;;  %v1357_v17 = vld [vmem:[%s1839_s0 + $0xd8] sm:$0xff]   ;;  %v1359_v19 = vld [vmem:[%s1839_s0 + $0xe0] sm:$0xff]   ;;  %v1360_v20 = vld [vmem:[%s1839_s0 + $0x48] sm:$0xff]  }
  0x12   : > { %v1361_v21 = vld [vmem:[%s1839_s0 + $0xe8] sm:$0xff]   ;;  %v1362_v22 = vld [vmem:[%s1839_s0 + $0x50] sm:$0xff]   ;;  %v1364_v24 = vld [vmem:[%s1839_s0 + $0x58] sm:$0xff]  }
  0x13   : > { %v1363_v23 = vld [vmem:[%s1839_s0 + $0xf0] sm:$0xff]   ;;  %v1365_v25 = vld [vmem:[%s1839_s0 + $0xf8] sm:$0xff]   ;;  %v1366_v26 = vld [vmem:[%s1839_s0 + $0x60] sm:$0xff]  }
  0x14   : > { %1246 = vmatpush3.bf16.msra.mxu0 %v1341_v3  ;;  %1330 = vmatpush3.bf16.msra.mxu1 %v1341_v3  ;;  %v1367_v27 = vld [vmem:[%s1839_s0 + $0x100] sm:$0xff]   ;;  %v1368_v28 = vld [vmem:[%s1839_s0 + $0x68] sm:$0xff]   ;;  %v1370_v30 = vld [vmem:[%s1839_s0 + $0x70] sm:$0xff]  }
  0x15   : > { %v1369_v29 = vld [vmem:[%s1839_s0 + $0x108] sm:$0xff]   ;;  %v1371_v31 = vld [vmem:[%s1839_s0 + $0x110] sm:$0xff]   ;;  %v1372_v32 = vld [vmem:[%s1839_s0 + $0x78] sm:$0xff]  }
  0x16   : > { %v1373_v33 = vld [vmem:[%s1839_s0 + $0x118] sm:$0xff]   ;;  %v1374_v34 = vld [vmem:[%s1839_s0 + $0x80] sm:$0xff]   ;;  %v1376_v36 = vld [vmem:[%s1839_s0 + $0x88] sm:$0xff]  }
  0x17   : > { %1248 = vmatmul.mubr.msk.bf16.vlgmr.msra.gmra.mxu0 %vm489_vm0, %v1344_v4  ;;  %1288 = vmatmul.mubr.msk.bf16.vlgmr.msra.gmra.mxu1 %vm489_vm0, %v1345_v5  ;;  %v1375_v35 = vld [vmem:[%s1839_s0 + $0x120] sm:$0xff]   ;;  %v1377_v37 = vld [vmem:[%s1839_s0 + $0x128] sm:$0xff]   ;;  %v1378_v38 = vld [vmem:[%s1839_s0 + $0x90] sm:$0xff]  }
  0x18   : > { %1251 = vmatprep.mubr.msk.bf16.mxu0 %vm489_vm0, %v1346_v6  ;;  %1291 = vmatprep.mubr.msk.bf16.mxu1 %vm489_vm0, %v1347_v7  ;;  %v1379_v39 = vld [vmem:[%s1839_s0 + $0x130] sm:$0xff]   ;;  %v1380_v40 = vld [vmem:[%s1839_s0 + $0x98] sm:$0xff]   ;;  %v1589_v42 = vld [vmem:[%s179_s25] ss:$0 sm:$0xff] }
  0x19   : > { %v1381_v41 = vld [vmem:[%s1839_s0 + $0x138] sm:$0xff]  }
  0x1f   : > { %1252 = vmatmul.mubr.msk.bf16.gmra.mxu0 %vm489_vm0, %v1348_v8  ;;  %1292 = vmatmul.mubr.msk.bf16.gmra.mxu1 %vm489_vm0, %v1349_v9 }
  0x20   : > { %1255 = vmatprep.mubr.msk.bf16.mxu0 %vm489_vm0, %v1350_v10  ;;  %1295 = vmatprep.mubr.msk.bf16.mxu1 %vm489_vm0, %v1351_v11 }
  0x27   : > { %1256 = vmatmul.mubr.msk.bf16.gmra.mxu0 %vm489_vm0, %v1352_v12  ;;  %1296 = vmatmul.mubr.msk.bf16.gmra.mxu1 %vm489_vm0, %v1353_v13 }
  0x28   : > { %1259 = vmatprep.mubr.msk.bf16.mxu0 %vm489_vm0, %v1354_v14  ;;  %1299 = vmatprep.mubr.msk.bf16.mxu1 %vm489_vm0, %v1355_v15 }
  0x2f   : > { %1260 = vmatmul.mubr.msk.bf16.gmra.mxu0 %vm489_vm0, %v1356_v16  ;;  %1300 = vmatmul.mubr.msk.bf16.gmra.mxu1 %vm489_vm0, %v1357_v17 }
  0x30   : > { %1263 = vmatprep.mubr.msk.bf16.mxu0 %vm489_vm0, %v1358_v18  ;;  %1303 = vmatprep.mubr.msk.bf16.mxu1 %vm489_vm0, %v1359_v19 }
  0x37   : > { %1264 = vmatmul.mubr.msk.bf16.gmra.mxu0 %vm489_vm0, %v1360_v20  ;;  %1304 = vmatmul.mubr.msk.bf16.gmra.mxu1 %vm489_vm0, %v1361_v21 }
  0x38   : > { %1267 = vmatprep.mubr.msk.bf16.mxu0 %vm489_vm0, %v1362_v22  ;;  %1307 = vmatprep.mubr.msk.bf16.mxu1 %vm489_vm0, %v1363_v23 }
  0x3f   : > { %1268 = vmatmul.mubr.msk.bf16.gmra.mxu0 %vm489_vm0, %v1364_v24  ;;  %1308 = vmatmul.mubr.msk.bf16.gmra.mxu1 %vm489_vm0, %v1365_v25 }
  0x40   : > { %1271 = vmatprep.mubr.msk.bf16.mxu0 %vm489_vm0, %v1366_v26  ;;  %1311 = vmatprep.mubr.msk.bf16.mxu1 %vm489_vm0, %v1367_v27 }
  0x47   : > { %1272 = vmatmul.mubr.msk.bf16.gmra.mxu0 %vm489_vm0, %v1368_v28  ;;  %1312 = vmatmul.mubr.msk.bf16.gmra.mxu1 %vm489_vm0, %v1369_v29 }
  0x48   : > { %1275 = vmatprep.mubr.msk.bf16.mxu0 %vm489_vm0, %v1370_v30  ;;  %1315 = vmatprep.mubr.msk.bf16.mxu1 %vm489_vm0, %v1371_v31 }
  0x4f   : > { %1276 = vmatmul.mubr.msk.bf16.gmra.mxu0 %vm489_vm0, %v1372_v32  ;;  %1316 = vmatmul.mubr.msk.bf16.gmra.mxu1 %vm489_vm0, %v1373_v33 }
  0x50   : > { %1279 = vmatprep.mubr.msk.bf16.mxu0 %vm489_vm0, %v1374_v34  ;;  %1319 = vmatprep.mubr.msk.bf16.mxu1 %vm489_vm0, %v1375_v35 }
  0x57   : > { %1280 = vmatmul.mubr.msk.bf16.gmra.mxu0 %vm489_vm0, %v1376_v36  ;;  %1320 = vmatmul.mubr.msk.bf16.gmra.mxu1 %vm489_vm0, %v1377_v37 }
  0x58   : > { %1283 = vmatprep.mubr.msk.bf16.mxu0 %vm489_vm0, %v1378_v38  ;;  %1323 = vmatprep.mubr.msk.bf16.mxu1 %vm489_vm0, %v1379_v39 }
  0x5f   : > { %1284 = vmatmul.mubr.msk.bf16.gmra.mxu0 %vm489_vm0, %v1380_v40  ;;  %1324 = vmatmul.mubr.msk.bf16.gmra.mxu1 %vm489_vm0, %v1381_v41 }
  0xd7   : > { %v1249_v43 = vpop.f32.mrf.mxu0  ;;  %v1289_v44 = vpop.f32.mrf.mxu1 }
  0xd8   : > { %v653_v45 = vadd.f32 %v1249_v43, %v1589_v42  ;;  %v813_v46 = vadd.f32 %v1289_v44, %v1589_v42 }
  0xd9   : > { %v644_v47 = vpop.f32.mrf.mxu0  ;;  %v804_v48 = vpop.f32.mrf.mxu1 }
  0xda   : > { %965 = vst.msk [vmem:[%s1594_s29 + $0x10] sm:$0xff] %vm489_vm0, %v653_v45  ;;  %1005 = vst.msk [vmem:[%s1594_s29 + $0x150] sm:$0xff] %vm489_vm0, %v813_v46  ;;  %v645_v49 = vadd.f32 %v1589_v42, %v644_v47  ;;  %v805_v50 = vadd.f32 %v1589_v42, %v804_v48 }
  0xdb   : > { %v1250_v51 = vpop.f32.mrf.mxu0  ;;  %v1290_v52 = vpop.f32.mrf.mxu1 }
  0xdc   : > { %963 = vst.msk [vmem:[%s1594_s29] sm:$0xff] %vm489_vm0, %v645_v49  ;;  %1003 = vst.msk [vmem:[%s1594_s29 + $0x140] sm:$0xff] %vm489_vm0, %v805_v50  ;;  %v656_v53 = vadd.f32 %v1250_v51, %v1589_v42  ;;  %v816_v54 = vadd.f32 %v1290_v52, %v1589_v42 }
  0xdd   : > { %v647_v55 = vpop.f32.mrf.mxu0  ;;  %v807_v56 = vpop.f32.mrf.mxu1 }
  0xde   : > { %966 = vst.msk [vmem:[%s1594_s29 + $0x18] sm:$0xff] %vm489_vm0, %v656_v53  ;;  %1006 = vst.msk [vmem:[%s1594_s29 + $0x158] sm:$0xff] %vm489_vm0, %v816_v54  ;;  %v648_v57 = vadd.f32 %v1589_v42, %v647_v55  ;;  %v808_v58 = vadd.f32 %v1589_v42, %v807_v56 }
  0xdf   : > { %v1253_v59 = vpop.f32.mrf.mxu0  ;;  %v1293_v60 = vpop.f32.mrf.mxu1 }
  0xe0   : > { %964 = vst.msk [vmem:[%s1594_s29 + $0x8] sm:$0xff] %vm489_vm0, %v648_v57  ;;  %1004 = vst.msk [vmem:[%s1594_s29 + $0x148] sm:$0xff] %vm489_vm0, %v808_v58  ;;  %v669_v61 = vadd.f32 %v1253_v59, %v1589_v42  ;;  %v829_v62 = vadd.f32 %v1293_v60, %v1589_v42 }
  0xe1   : > { %v660_v63 = vpop.f32.mrf.mxu0  ;;  %v820_v0 = vpop.f32.mrf.mxu1 }
  0xe2   : > { %969 = vst.msk [vmem:[%s1594_s29 + $0x30] sm:$0xff] %vm489_vm0, %v669_v61  ;;  %1009 = vst.msk [vmem:[%s1594_s29 + $0x170] sm:$0xff] %vm489_vm0, %v829_v62  ;;  %v661_v1 = vadd.f32 %v1589_v42, %v660_v63  ;;  %v821_v2 = vadd.f32 %v1589_v42, %v820_v0 }
  0xe3   : > { %v1254_v3 = vpop.f32.mrf.mxu0  ;;  %v1294_v4 = vpop.f32.mrf.mxu1 }
  0xe4   : > { %967 = vst.msk [vmem:[%s1594_s29 + $0x20] sm:$0xff] %vm489_vm0, %v661_v1  ;;  %1007 = vst.msk [vmem:[%s1594_s29 + $0x160] sm:$0xff] %vm489_vm0, %v821_v2  ;;  %v672_v5 = vadd.f32 %v1254_v3, %v1589_v42  ;;  %v832_v6 = vadd.f32 %v1294_v4, %v1589_v42 }
  0xe5   : > { %v663_v7 = vpop.f32.mrf.mxu0  ;;  %v823_v8 = vpop.f32.mrf.mxu1 }
  0xe6   : > { %970 = vst.msk [vmem:[%s1594_s29 + $0x38] sm:$0xff] %vm489_vm0, %v672_v5  ;;  %1010 = vst.msk [vmem:[%s1594_s29 + $0x178] sm:$0xff] %vm489_vm0, %v832_v6  ;;  %v664_v9 = vadd.f32 %v1589_v42, %v663_v7  ;;  %v824_v10 = vadd.f32 %v1589_v42, %v823_v8 }
  0xe7   : > { %v1257_v11 = vpop.f32.mrf.mxu0  ;;  %v1297_v12 = vpop.f32.mrf.mxu1 }
  0xe8   : > { %968 = vst.msk [vmem:[%s1594_s29 + $0x28] sm:$0xff] %vm489_vm0, %v664_v9  ;;  %1008 = vst.msk [vmem:[%s1594_s29 + $0x168] sm:$0xff] %vm489_vm0, %v824_v10  ;;  %v685_v13 = vadd.f32 %v1257_v11, %v1589_v42  ;;  %v845_v14 = vadd.f32 %v1297_v12, %v1589_v42 }
  0xe9   : > { %v676_v15 = vpop.f32.mrf.mxu0  ;;  %v836_v16 = vpop.f32.mrf.mxu1 }
  0xea   : > { %973 = vst.msk [vmem:[%s1594_s29 + $0x50] sm:$0xff] %vm489_vm0, %v685_v13  ;;  %1013 = vst.msk [vmem:[%s1594_s29 + $0x190] sm:$0xff] %vm489_vm0, %v845_v14  ;;  %v677_v17 = vadd.f32 %v1589_v42, %v676_v15  ;;  %v837_v18 = vadd.f32 %v1589_v42, %v836_v16 }
  0xeb   : > { %v1258_v19 = vpop.f32.mrf.mxu0  ;;  %v1298_v20 = vpop.f32.mrf.mxu1 }
  0xec   : > { %971 = vst.msk [vmem:[%s1594_s29 + $0x40] sm:$0xff] %vm489_vm0, %v677_v17  ;;  %1011 = vst.msk [vmem:[%s1594_s29 + $0x180] sm:$0xff] %vm489_vm0, %v837_v18  ;;  %v688_v21 = vadd.f32 %v1258_v19, %v1589_v42  ;;  %v848_v22 = vadd.f32 %v1298_v20, %v1589_v42 }
  0xed   : > { %v679_v23 = vpop.f32.mrf.mxu0  ;;  %v839_v24 = vpop.f32.mrf.mxu1 }
  0xee   : > { %974 = vst.msk [vmem:[%s1594_s29 + $0x58] sm:$0xff] %vm489_vm0, %v688_v21  ;;  %1014 = vst.msk [vmem:[%s1594_s29 + $0x198] sm:$0xff] %vm489_vm0, %v848_v22  ;;  %v680_v25 = vadd.f32 %v1589_v42, %v679_v23  ;;  %v840_v26 = vadd.f32 %v1589_v42, %v839_v24 }
  0xef   : > { %v1261_v27 = vpop.f32.mrf.mxu0  ;;  %v1301_v28 = vpop.f32.mrf.mxu1 }
  0xf0   : > { %972 = vst.msk [vmem:[%s1594_s29 + $0x48] sm:$0xff] %vm489_vm0, %v680_v25  ;;  %1012 = vst.msk [vmem:[%s1594_s29 + $0x188] sm:$0xff] %vm489_vm0, %v840_v26  ;;  %v701_v29 = vadd.f32 %v1261_v27, %v1589_v42  ;;  %v861_v30 = vadd.f32 %v1301_v28, %v1589_v42 }
  0xf1   : > { %v692_v31 = vpop.f32.mrf.mxu0  ;;  %v852_v32 = vpop.f32.mrf.mxu1 }
  0xf2   : > { %977 = vst.msk [vmem:[%s1594_s29 + $0x70] sm:$0xff] %vm489_vm0, %v701_v29  ;;  %1017 = vst.msk [vmem:[%s1594_s29 + $0x1b0] sm:$0xff] %vm489_vm0, %v861_v30  ;;  %v693_v33 = vadd.f32 %v1589_v42, %v692_v31  ;;  %v853_v34 = vadd.f32 %v1589_v42, %v852_v32 }
  0xf3   : > { %v1262_v35 = vpop.f32.mrf.mxu0  ;;  %v1302_v36 = vpop.f32.mrf.mxu1 }
  0xf4   : > { %975 = vst.msk [vmem:[%s1594_s29 + $0x60] sm:$0xff] %vm489_vm0, %v693_v33  ;;  %1015 = vst.msk [vmem:[%s1594_s29 + $0x1a0] sm:$0xff] %vm489_vm0, %v853_v34  ;;  %v704_v37 = vadd.f32 %v1262_v35, %v1589_v42  ;;  %v864_v38 = vadd.f32 %v1302_v36, %v1589_v42 }
  0xf5   : > { %v695_v39 = vpop.f32.mrf.mxu0  ;;  %v855_v40 = vpop.f32.mrf.mxu1 }
  0xf6   : > { %978 = vst.msk [vmem:[%s1594_s29 + $0x78] sm:$0xff] %vm489_vm0, %v704_v37  ;;  %1018 = vst.msk [vmem:[%s1594_s29 + $0x1b8] sm:$0xff] %vm489_vm0, %v864_v38  ;;  %v696_v41 = vadd.f32 %v1589_v42, %v695_v39  ;;  %v856_v43 = vadd.f32 %v1589_v42, %v855_v40 }
  0xf7   : > { %v1265_v44 = vpop.f32.mrf.mxu0  ;;  %v1305_v45 = vpop.f32.mrf.mxu1 }
  0xf8   : > { %976 = vst.msk [vmem:[%s1594_s29 + $0x68] sm:$0xff] %vm489_vm0, %v696_v41  ;;  %1016 = vst.msk [vmem:[%s1594_s29 + $0x1a8] sm:$0xff] %vm489_vm0, %v856_v43  ;;  %v717_v46 = vadd.f32 %v1265_v44, %v1589_v42  ;;  %v877_v47 = vadd.f32 %v1305_v45, %v1589_v42 }
  0xf9   : > { %v708_v48 = vpop.f32.mrf.mxu0  ;;  %v868_v49 = vpop.f32.mrf.mxu1 }
  0xfa   : > { %981 = vst.msk [vmem:[%s1594_s29 + $0x90] sm:$0xff] %vm489_vm0, %v717_v46  ;;  %1021 = vst.msk [vmem:[%s1594_s29 + $0x1d0] sm:$0xff] %vm489_vm0, %v877_v47  ;;  %v709_v50 = vadd.f32 %v1589_v42, %v708_v48  ;;  %v869_v51 = vadd.f32 %v1589_v42, %v868_v49 }
  0xfb   : > { %v1266_v52 = vpop.f32.mrf.mxu0  ;;  %v1306_v53 = vpop.f32.mrf.mxu1 }
  0xfc   : > { %979 = vst.msk [vmem:[%s1594_s29 + $0x80] sm:$0xff] %vm489_vm0, %v709_v50  ;;  %1019 = vst.msk [vmem:[%s1594_s29 + $0x1c0] sm:$0xff] %vm489_vm0, %v869_v51  ;;  %v720_v54 = vadd.f32 %v1266_v52, %v1589_v42  ;;  %v880_v55 = vadd.f32 %v1306_v53, %v1589_v42 }
  0xfd   : > { %v711_v56 = vpop.f32.mrf.mxu0  ;;  %v871_v57 = vpop.f32.mrf.mxu1 }
  0xfe   : > { %982 = vst.msk [vmem:[%s1594_s29 + $0x98] sm:$0xff] %vm489_vm0, %v720_v54  ;;  %1022 = vst.msk [vmem:[%s1594_s29 + $0x1d8] sm:$0xff] %vm489_vm0, %v880_v55  ;;  %v712_v58 = vadd.f32 %v1589_v42, %v711_v56  ;;  %v872_v59 = vadd.f32 %v1589_v42, %v871_v57 }
  0xff   : > { %v1269_v60 = vpop.f32.mrf.mxu0  ;;  %v1309_v61 = vpop.f32.mrf.mxu1 }
 0x100   : > { %980 = vst.msk [vmem:[%s1594_s29 + $0x88] sm:$0xff] %vm489_vm0, %v712_v58  ;;  %1020 = vst.msk [vmem:[%s1594_s29 + $0x1c8] sm:$0xff] %vm489_vm0, %v872_v59  ;;  %v733_v62 = vadd.f32 %v1269_v60, %v1589_v42  ;;  %v893_v63 = vadd.f32 %v1309_v61, %v1589_v42 }
 0x101   : > { %v724_v0 = vpop.f32.mrf.mxu0  ;;  %v884_v1 = vpop.f32.mrf.mxu1 }
 0x102   : > { %985 = vst.msk [vmem:[%s1594_s29 + $0xb0] sm:$0xff] %vm489_vm0, %v733_v62  ;;  %1025 = vst.msk [vmem:[%s1594_s29 + $0x1f0] sm:$0xff] %vm489_vm0, %v893_v63  ;;  %v725_v2 = vadd.f32 %v1589_v42, %v724_v0  ;;  %v885_v3 = vadd.f32 %v1589_v42, %v884_v1 }
 0x103   : > { %v1270_v4 = vpop.f32.mrf.mxu0  ;;  %v1310_v5 = vpop.f32.mrf.mxu1 }
 0x104   : > { %983 = vst.msk [vmem:[%s1594_s29 + $0xa0] sm:$0xff] %vm489_vm0, %v725_v2  ;;  %1023 = vst.msk [vmem:[%s1594_s29 + $0x1e0] sm:$0xff] %vm489_vm0, %v885_v3  ;;  %v736_v6 = vadd.f32 %v1270_v4, %v1589_v42  ;;  %v896_v7 = vadd.f32 %v1310_v5, %v1589_v42 }
 0x105   : > { %v727_v8 = vpop.f32.mrf.mxu0  ;;  %v887_v9 = vpop.f32.mrf.mxu1 }
 0x106   : > { %986 = vst.msk [vmem:[%s1594_s29 + $0xb8] sm:$0xff] %vm489_vm0, %v736_v6  ;;  %1026 = vst.msk [vmem:[%s1594_s29 + $0x1f8] sm:$0xff] %vm489_vm0, %v896_v7  ;;  %v728_v10 = vadd.f32 %v1589_v42, %v727_v8  ;;  %v888_v11 = vadd.f32 %v1589_v42, %v887_v9 }
 0x107   : > { %v1273_v12 = vpop.f32.mrf.mxu0  ;;  %v1313_v13 = vpop.f32.mrf.mxu1 }
 0x108   : > { %984 = vst.msk [vmem:[%s1594_s29 + $0xa8] sm:$0xff] %vm489_vm0, %v728_v10  ;;  %1024 = vst.msk [vmem:[%s1594_s29 + $0x1e8] sm:$0xff] %vm489_vm0, %v888_v11  ;;  %v749_v14 = vadd.f32 %v1273_v12, %v1589_v42  ;;  %v909_v15 = vadd.f32 %v1313_v13, %v1589_v42 }
 0x109   : > { %v740_v16 = vpop.f32.mrf.mxu0  ;;  %v900_v17 = vpop.f32.mrf.mxu1 }
 0x10a   : > { %989 = vst.msk [vmem:[%s1594_s29 + $0xd0] sm:$0xff] %vm489_vm0, %v749_v14  ;;  %1029 = vst.msk [vmem:[%s1594_s29 + $0x210] sm:$0xff] %vm489_vm0, %v909_v15  ;;  %v741_v18 = vadd.f32 %v1589_v42, %v740_v16  ;;  %v901_v19 = vadd.f32 %v1589_v42, %v900_v17 }
 0x10b   : > { %v1274_v20 = vpop.f32.mrf.mxu0  ;;  %v1314_v21 = vpop.f32.mrf.mxu1 }
 0x10c   : > { %987 = vst.msk [vmem:[%s1594_s29 + $0xc0] sm:$0xff] %vm489_vm0, %v741_v18  ;;  %1027 = vst.msk [vmem:[%s1594_s29 + $0x200] sm:$0xff] %vm489_vm0, %v901_v19  ;;  %v752_v22 = vadd.f32 %v1274_v20, %v1589_v42  ;;  %v912_v23 = vadd.f32 %v1314_v21, %v1589_v42 }
 0x10d   : > { %v743_v24 = vpop.f32.mrf.mxu0  ;;  %v903_v25 = vpop.f32.mrf.mxu1 }
 0x10e   : > { %990 = vst.msk [vmem:[%s1594_s29 + $0xd8] sm:$0xff] %vm489_vm0, %v752_v22  ;;  %1030 = vst.msk [vmem:[%s1594_s29 + $0x218] sm:$0xff] %vm489_vm0, %v912_v23  ;;  %v744_v26 = vadd.f32 %v1589_v42, %v743_v24  ;;  %v904_v27 = vadd.f32 %v1589_v42, %v903_v25 }
 0x10f   : > { %v1277_v28 = vpop.f32.mrf.mxu0  ;;  %v1317_v29 = vpop.f32.mrf.mxu1 }
 0x110   : > { %988 = vst.msk [vmem:[%s1594_s29 + $0xc8] sm:$0xff] %vm489_vm0, %v744_v26  ;;  %1028 = vst.msk [vmem:[%s1594_s29 + $0x208] sm:$0xff] %vm489_vm0, %v904_v27  ;;  %v765_v30 = vadd.f32 %v1277_v28, %v1589_v42  ;;  %v925_v31 = vadd.f32 %v1317_v29, %v1589_v42 }
 0x111   : > { %v756_v32 = vpop.f32.mrf.mxu0  ;;  %v916_v33 = vpop.f32.mrf.mxu1 }
 0x112   : > { %993 = vst.msk [vmem:[%s1594_s29 + $0xf0] sm:$0xff] %vm489_vm0, %v765_v30  ;;  %1033 = vst.msk [vmem:[%s1594_s29 + $0x230] sm:$0xff] %vm489_vm0, %v925_v31  ;;  %v757_v34 = vadd.f32 %v1589_v42, %v756_v32  ;;  %v917_v35 = vadd.f32 %v1589_v42, %v916_v33 }
 0x113   : > { %v1278_v36 = vpop.f32.mrf.mxu0  ;;  %v1318_v37 = vpop.f32.mrf.mxu1 }
 0x114   : > { %991 = vst.msk [vmem:[%s1594_s29 + $0xe0] sm:$0xff] %vm489_vm0, %v757_v34  ;;  %1031 = vst.msk [vmem:[%s1594_s29 + $0x220] sm:$0xff] %vm489_vm0, %v917_v35  ;;  %v768_v38 = vadd.f32 %v1278_v36, %v1589_v42  ;;  %v928_v39 = vadd.f32 %v1318_v37, %v1589_v42 }
 0x115   : > { %v759_v40 = vpop.f32.mrf.mxu0  ;;  %v919_v41 = vpop.f32.mrf.mxu1 }
 0x116   : > { %994 = vst.msk [vmem:[%s1594_s29 + $0xf8] sm:$0xff] %vm489_vm0, %v768_v38  ;;  %1034 = vst.msk [vmem:[%s1594_s29 + $0x238] sm:$0xff] %vm489_vm0, %v928_v39  ;;  %v760_v43 = vadd.f32 %v1589_v42, %v759_v40  ;;  %v920_v44 = vadd.f32 %v1589_v42, %v919_v41 }
 0x117   : > { %v1281_v45 = vpop.f32.mrf.mxu0  ;;  %v1321_v46 = vpop.f32.mrf.mxu1 }
 0x118   : > { %992 = vst.msk [vmem:[%s1594_s29 + $0xe8] sm:$0xff] %vm489_vm0, %v760_v43  ;;  %1032 = vst.msk [vmem:[%s1594_s29 + $0x228] sm:$0xff] %vm489_vm0, %v920_v44  ;;  %v781_v47 = vadd.f32 %v1281_v45, %v1589_v42  ;;  %v941_v48 = vadd.f32 %v1321_v46, %v1589_v42 }
 0x119   : > { %v772_v49 = vpop.f32.mrf.mxu0  ;;  %v932_v50 = vpop.f32.mrf.mxu1 }
 0x11a   : > { %997 = vst.msk [vmem:[%s1594_s29 + $0x110] sm:$0xff] %vm489_vm0, %v781_v47  ;;  %1037 = vst.msk [vmem:[%s1594_s29 + $0x250] sm:$0xff] %vm489_vm0, %v941_v48  ;;  %v773_v51 = vadd.f32 %v1589_v42, %v772_v49  ;;  %v933_v52 = vadd.f32 %v1589_v42, %v932_v50 }
 0x11b   : > { %v1282_v53 = vpop.f32.mrf.mxu0  ;;  %v1322_v54 = vpop.f32.mrf.mxu1 }
 0x11c   : > { %995 = vst.msk [vmem:[%s1594_s29 + $0x100] sm:$0xff] %vm489_vm0, %v773_v51  ;;  %1035 = vst.msk [vmem:[%s1594_s29 + $0x240] sm:$0xff] %vm489_vm0, %v933_v52  ;;  %v784_v55 = vadd.f32 %v1282_v53, %v1589_v42  ;;  %v944_v56 = vadd.f32 %v1322_v54, %v1589_v42 }
 0x11d   : > { %v775_v57 = vpop.f32.mrf.mxu0  ;;  %v935_v58 = vpop.f32.mrf.mxu1 }
 0x11e   : > { %998 = vst.msk [vmem:[%s1594_s29 + $0x118] sm:$0xff] %vm489_vm0, %v784_v55  ;;  %1038 = vst.msk [vmem:[%s1594_s29 + $0x258] sm:$0xff] %vm489_vm0, %v944_v56  ;;  %v776_v59 = vadd.f32 %v1589_v42, %v775_v57  ;;  %v936_v60 = vadd.f32 %v1589_v42, %v935_v58 }
 0x11f   : > { %v1285_v61 = vpop.f32.mrf.mxu0  ;;  %v1325_v62 = vpop.f32.mrf.mxu1 }
 0x120   : > { %996 = vst.msk [vmem:[%s1594_s29 + $0x108] sm:$0xff] %vm489_vm0, %v776_v59  ;;  %1036 = vst.msk [vmem:[%s1594_s29 + $0x248] sm:$0xff] %vm489_vm0, %v936_v60  ;;  %v797_v63 = vadd.f32 %v1285_v61, %v1589_v42  ;;  %v957_v0 = vadd.f32 %v1325_v62, %v1589_v42 }
 0x121   : > { %v788_v1 = vpop.f32.mrf.mxu0  ;;  %v948_v2 = vpop.f32.mrf.mxu1 }
 0x122   : > { %1001 = vst.msk [vmem:[%s1594_s29 + $0x130] sm:$0xff] %vm489_vm0, %v797_v63  ;;  %1041 = vst.msk [vmem:[%s1594_s29 + $0x270] sm:$0xff] %vm489_vm0, %v957_v0  ;;  %v789_v3 = vadd.f32 %v1589_v42, %v788_v1  ;;  %v949_v4 = vadd.f32 %v1589_v42, %v948_v2 }
 0x123   : > { %v1286_v5 = vpop.f32.mrf.mxu0  ;;  %v1326_v6 = vpop.f32.mrf.mxu1 }
 0x124   : > { %999 = vst.msk [vmem:[%s1594_s29 + $0x120] sm:$0xff] %vm489_vm0, %v789_v3  ;;  %1039 = vst.msk [vmem:[%s1594_s29 + $0x260] sm:$0xff] %vm489_vm0, %v949_v4  ;;  %v800_v7 = vadd.f32 %v1286_v5, %v1589_v42  ;;  %v960_v8 = vadd.f32 %v1326_v6, %v1589_v42 }
 0x125   : > { %v791_v9 = vpop.f32.mrf.mxu0  ;;  %v951_v10 = vpop.f32.mrf.mxu1 }
 0x126   : > { %1002 = vst.msk [vmem:[%s1594_s29 + $0x138] sm:$0xff] %vm489_vm0, %v800_v7  ;;  %1042 = vst.msk [vmem:[%s1594_s29 + $0x278] sm:$0xff] %vm489_vm0, %v960_v8  ;;  %v792_v11 = vadd.f32 %v1589_v42, %v791_v9  ;;  %v952_v12 = vadd.f32 %v1589_v42, %v951_v10 }
 0x128   : > { %1000 = vst.msk [vmem:[%s1594_s29 + $0x128] sm:$0xff] %vm489_vm0, %v792_v11  ;;  %1040 = vst.msk [vmem:[%s1594_s29 + $0x268] sm:$0xff] %vm489_vm0, %v952_v12 }
 0x129 PF: > { %s13_s12 = sadd.s32 1, %s1388_s12  }
 0x12a   : > { %p10_p4 = scmp.ge.s32.totalorder %s13_s12, 4  }
 0x12c   :  { %12 = sbr.rel (!%p10_p4) target bundleno = 1 (0x1), region = 65 }

// kernel: custom-call.8
= control target key start
LH: loop header
LB: loop body
LE: loop exit
PB: predicated region body
PF: predicated region fallthrough
CT: control target
= control target key end

     0   :  { %s6_s0 = inlined_call_operand.vmem [shape: f32[16,32], index: 0, kind: output, shape index: {}]  }

// kernel: _polygon_head_jit.7
= control target key start
LH: loop header
LB: loop body
LE: loop exit
PB: predicated region body
PF: predicated region fallthrough
CT: control target
= control target key end

     0   :  { %s1743_s0 = inlined_call_operand.vmem [shape: f32[32,32], index: 0, kind: input, shape index: {}]   ;;  %s1744_s1 = inlined_call_operand.vmem [shape: f32[32,32], index: 1, kind: input, shape index: {}]   ;;  %s1745_s2 = inlined_call_operand.vmem [shape: f32[32,2], index: 2, kind: input, shape index: {}]   ;;  %s1746_s3 = inlined_call_operand.vmem [shape: bf16[32,32], index: 3, kind: input, shape index: {}]   ;;  %s1747_s4 = inlined_call_operand.vmem [shape: f32[1,32], index: 4, kind: input, shape index: {}]   ;;  %s1748_s5 = inlined_call_operand.vmem [shape: f32[1,32], index: 5, kind: input, shape index: {}]   ;;  %s1749_s6 = inlined_call_operand.vmem [shape: f32[1,32], index: 6, kind: input, shape index: {}]   ;;  %s1750_s7 = inlined_call_operand.vmem [shape: bf16[32,64], index: 7, kind: input, shape index: {}]   ;;  %s1751_s8 = inlined_call_operand.vmem [shape: f32[1,64], index: 8, kind: input, shape index: {}]   ;;  %s1752_s9 = inlined_call_operand.vmem [shape: bf16[64,32], index: 9, kind: input, shape index: {}]   ;;  %s1753_s10 = inlined_call_operand.vmem [shape: f32[1,32], index: 10, kind: input, shape index: {}]   ;;  %s1754_s11 = inlined_call_operand.vmem [shape: f32[1,32], index: 11, kind: input, shape index: {}]   ;;  %s1755_s12 = inlined_call_operand.vmem [shape: f32[1,32], index: 12, kind: input, shape index: {}]   ;;  %s1756_s13 = inlined_call_operand.vmem [shape: bf16[32,32], index: 13, kind: input, shape index: {}]   ;;  %s1757_s14 = inlined_call_operand.vmem [shape: f32[1,32], index: 14, kind: input, shape index: {}]   ;;  %s1758_s15 = inlined_call_operand.vmem [shape: bf16[32,32], index: 15, kind: input, shape index: {}]   ;;  %s1759_s16 = inlined_call_operand.vmem [shape: f32[1,32], index: 16, kind: input, shape index: {}]   ;;  %s1760_s17 = inlined_call_operand.vmem [shape: bf16[32,2], index: 17, kind: input, shape index: {}]   ;;  %s1761_s18 = inlined_call_operand.vmem [shape: f32[1,2], index: 18, kind: input, shape index: {}]   ;;  %s1762_s19 = inlined_call_operand.vmem [shape: f32[32,128], index: 19, kind: output, shape index: {}]  }
   0x1   :  { %1764 = sst [smem:[#allocation2_spill]] %s1743_s0  ;;  %s1591_s0 = smov 0  }
   0x2   :  { %1765 = sst [smem:[#allocation3_spill]] %s1744_s1 }
   0x3   :  { %1766 = sst [smem:[#allocation4_spill]] %s1745_s2 }
   0x4   :  { %1767 = sst [smem:[#allocation5_spill]] %s1746_s3 }
   0x5 LB: > { %s1314_s30 = sadd.s32 4294967295, %s1486_s0   ;;  %p1318_p0 = scmp.ge.s32.totalorder %s1486_s0, 1  ;;  %s1486_s0 = sphi %s1591_s0, %s29_s0  }
   0x6   : > { %p560_p1 = scmp.lt.s32.totalorder %s1486_s0, 3 }
   0x8   : > { %p561_p2 = pnand %p1318_p0, %p560_p1 }
   0x9   : > { %s1768_s1 = sld [smem:[#allocation5_spill]] (!%p561_p2)  ;;  %s1319_s23 = sshll.u32 (!%p561_p2), %s1314_s30, 1 }
   0xa   : > { %564 = sbr.rel (%p561_p2) target bundleno = 2007 (0x7d7), region = 96  ;;  %p627_p3 = scmp.lt.s32.totalorder (!%p561_p2), %s1319_s23, 3 }
   0xb   : > { %s1769_s26 = sld [smem:[#allocation3_spill]] (!%p561_p2) }
   0xc   : > { %s1770_s30 = sld [smem:[#allocation2_spill]] (!%p561_p2) }
   0xd   : > { %s1771_s21 = sld [smem:[#allocation4_spill]] (!%p561_p2) }
   0xf   : > { %v1442_v0 = vld [vmem:[%s1768_s1 + $0x8] sm:$0xff]   ;;  %v1488_v1 = vmov 0.0   ;;  %v1443_v2 = vld [vmem:[%s1768_s1] sm:$0xff]   ;;  %vm1489_vm0 = vmmov 0   ;;  %s1773_s23 = smov (!%p627_p3, %s1319_s23), 3  ;;  %vm679_vm1 = vcmask 261120  }
  0x10   : > { %1379 = vmatprep.subr.bf16.mxu0 %v1488_v1  ;;  %1387 = vmatprep.subr.bf16.mxu1 %v1488_v1  ;;  %s1612_s24 = sshll.u32 %s1773_s23, 3  ;;  %v1327_v6 = vld [vmem:[%s1747_s4] ss:$0 sm:$0xff]  ;;  %v1444_v29 = vld [vmem:[%s1750_s7 + $0x8] sm:$0xff]   ;;  %v1446_v31 = vld [vmem:[%s1752_s9 + $0x18] sm:$0xff]   ;;  %vm874_vm2 = vcmask 523264  }
  0x11   : > { %1380 = vmatpush3.bf16.msra.mxu0 %v1442_v0  ;;  %1383 = vmatprep.mubr.msk.bf16.mxu0 %vm1489_vm0, %v1488_v1  ;;  %s636_s27 = scalar_lea.vmem %s1769_s26, %s1612_s24  ;;  %v1445_v30 = vld [vmem:[%s1750_s7] sm:$0xff]   ;;  %v1447_v49 = vld [vmem:[%s1752_s9 + $0x10] sm:$0xff]   ;;  %v1448_v50 = vld [vmem:[%s1752_s9 + $0x8] sm:$0xff]   ;;  %s1696_s28 = scalar_lea.vmem %s1762_s19, %s1612_s24  ;;  %vm1228_vm3 = vcmask 277760   ;;  %vm1231_vm4 = vcmask 1047824  }
  0x12   : > { %1381 = vmatprep.subr.bf16.mxu0 %v1488_v1  ;;  %1391 = vmatprep.mubr.msk.bf16.mxu1 %vm1489_vm0, %v1488_v1  ;;  %v653_v3 = vld [vmem:[%s636_s27] sm:$0xff]  ;;  %v654_v4 = vld [vmem:[%s636_s27 + $0x8] sm:$0xff]  ;;  %s630_s20 = scalar_lea.vmem %s1770_s30, %s1612_s24  ;;  %s1490_s23 = smov 32  }
  0x13   : > { %v655_v5 = vpack.c.bf16 %v654_v4, %v653_v3  ;;  %v651_v8 = vld [vmem:[%s630_s20] sm:$0xff]  ;;  %v652_v13 = vld [vmem:[%s630_s20 + $0x8] sm:$0xff]  ;;  %1388 = vmatpush3.bf16.msra.mxu1 %v1444_v29  ;;  %s642_s22 = scalar_lea.vmem %s1771_s21, %s1612_s24 }
  0x14   : > { %1389 = vmatprep.subr.bf16.mxu1 %v1488_v1  ;;  %v1331_v40 = vld [vmem:[%s1748_s5] ss:$0 sm:$0xff] }
  0x15   : > { %1382 = vmatpush3.bf16.msra.mxu0 %v1443_v2  ;;  %v1332_v44 = vld [vmem:[%s1749_s6] ss:$0 sm:$0xff] }
  0x16   : > { %1395 = vmatprep.subr.bf16.mxu0 %v1488_v1  ;;  %v1449_v51 = vld [vmem:[%s1752_s9] sm:$0xff]  }
  0x17   : > { %1390 = vmatpush3.bf16.msra.mxu1 %v1445_v30  ;;  %v1333_v52 = vld [vmem:[%s1751_s8] ss:$0 sm:$0xff] }
  0x18   : > { %1384 = vmatmul.mubr.msk.bf16.vlgmr.msra.gmra.mxu0 %vm679_vm1, %v655_v5  ;;  %1407 = vmatprep.subr.bf16.mxu1 %v1488_v1  ;;  %v1342_v63 = vld [vmem:[%s1753_s10] ss:$0 sm:$0xff] }
  0x19   : > { %1403 = vmatprep.mubr.msk.bf16.mxu0 %vm1489_vm0, %v1488_v1  ;;  %1396 = vmatpush3.bf16.msra.mxu0 %v1446_v31  ;;  %v1343_v29 = vld [vmem:[%s1754_s11] ss:$0 sm:$0xff] }
  0x1a   : > { %1397 = vmatprep.subr.bf16.mxu0 %v1488_v1  ;;  %v1344_v31 = vld [vmem:[%s1755_s12] ss:$0 sm:$0xff] }
  0x1d   : > { %1398 = vmatpush3.bf16.msra.mxu0 %v1447_v49 }
  0x1e   : > { %1399 = vmatprep.subr.bf16.mxu0 %v1488_v1 }
  0x21   : > { %1400 = vmatpush3.bf16.msra.mxu0 %v1448_v50 }
  0x22   : > { %1401 = vmatprep.subr.bf16.mxu0 %v1488_v1 }
  0x25   : > { %1402 = vmatpush3.bf16.msra.mxu0 %v1449_v51  ;;  %v1454_v51 = vld [vmem:[%s1760_s17 + $0x8] sm:$0xff]  }
  0x26   : > { %1423 = vmatprep.subr.bf16.mxu0 %v1488_v1 }
  0xd8   : > { %v717_v7 = vpop.f32.mrf.mxu0 }
  0xd9   : > { %v718_v9 = vadd.f32 %v1327_v6, %v717_v7 }
  0xda   : > { %v1385_v10 = vpop.f32.mrf.mxu0 }
  0xdb   : > { %v724_v11 = vadd.f32 %v718_v9, %v651_v8 }
  0xdc   : > { %v720_v12 = vpop.f32.mrf.mxu0 }
  0xdd   : > { %v721_v14 = vadd.f32 %v1327_v6, %v720_v12  ;;  %v728_v15 = vsel %vm679_vm1, %v724_v11, 0.0 }
  0xde   : > { %v1386_v16 = vpop.f32.mrf.mxu0  ;;  %729 = vadd.xlane.f32.xlu0 %v728_v15 }
  0xdf   : > { %v725_v17 = vadd.f32 %v721_v14, %v652_v13 }
  0xe1   : > { %v731_v18 = vsel %vm679_vm1, %v725_v17, 0.0 }
  0xe2   : > { %732 = vadd.xlane.f32.xlu0 %v731_v18 }
 0x167   : > { %v730_v19 = vpop.xlane.xlu0 %729 }
 0x168   : > { %v735_v20 = vmul.f32 0.03125, %v730_v19 }
 0x16a   : > { %v737_v21 = vsub.f32 %v724_v11, %v735_v20  ;;  %v1450_v20 = vld [vmem:[%s1756_s13 + $0x8] sm:$0xff]  }
 0x16b   : > { %v733_v22 = vpop.xlane.xlu0 %732 }
 0x16c   : > { %v736_v23 = vmul.f32 0.03125, %v733_v22  ;;  %v739_v24 = vmul.f32 %v737_v21, %v737_v21 }
 0x16e   : > { %v738_v25 = vsub.f32 %v725_v17, %v736_v23  ;;  %v741_v26 = vsel %vm679_vm1, %v739_v24, 0.0 }
 0x16f   : > { %742 = vadd.xlane.f32.xlu1 %v741_v26 }
 0x170   : > { %v740_v27 = vmul.f32 %v738_v25, %v738_v25 }
 0x172   : > { %v744_v28 = vsel %vm679_vm1, %v740_v27, 0.0 }
 0x173   : > { %745 = vadd.xlane.f32.xlu1 %v744_v28 }
 0x1f8   : > { %v743_v32 = vpop.xlane.xlu1 %742 }
 0x1f9   : > { %v747_v33 = vmul.f32 0.03125, %v743_v32 }
 0x1fb   : > { %v749_v34 = vadd.f32 1e-05, %v747_v33 }
 0x1fc   : > { %v746_v35 = vpop.xlane.xlu1 %745 }
 0x1fd   : > { %1456 = vrsqrt.f32 %v749_v34  ;;  %v748_v36 = vmul.f32 0.03125, %v746_v35 }
 0x1ff   : > { %v750_v37 = vadd.f32 1e-05, %v748_v36 }
 0x201   : > { %1458 = vrsqrt.f32 %v750_v37 }
 0x20a   : > { %v1457_v38 = vpop.eup %1456 }
 0x20b   : > { %v753_v39 = vmul.f32 %v1457_v38, %v737_v21  ;;  %v1451_v21 = vld [vmem:[%s1756_s13] sm:$0xff]  }
 0x20d   : > { %v761_v43 = vmul.f32 %v1331_v40, %v753_v39  ;;  %v1452_v39 = vld [vmem:[%s1758_s15 + $0x8] sm:$0xff]  }
 0x20e   : > { %v1459_v41 = vpop.eup %1458 }
 0x20f   : > { %v754_v42 = vmul.f32 %v1459_v41, %v738_v25  ;;  %v769_v46 = vadd.f32 %v1332_v44, %v761_v43  ;;  %v1345_v41 = vld [vmem:[%s1757_s14] ss:$0 sm:$0xff] }
 0x211   : > { %v762_v45 = vmul.f32 %v1331_v40, %v754_v42  ;;  %v1453_v40 = vld [vmem:[%s1758_s15] sm:$0xff]  }
 0x213   : > { %v770_v47 = vadd.f32 %v1332_v44, %v762_v45 }
 0x215   : > { %v771_v48 = vpack.c.bf16 %v770_v47, %v769_v46 }
 0x217   : > { %1392 = vmatmul.mubr.msk.bf16.vlgmr.msra.gmra.mxu1 %vm679_vm1, %v771_v48 }
 0x218   : > { %1411 = vmatprep.mubr.msk.bf16.mxu1 %vm1489_vm0, %v1488_v1  ;;  %1408 = vmatpush3.bf16.msra.mxu1 %v1450_v20 }
 0x219   : > { %1409 = vmatprep.subr.bf16.mxu1 %v1488_v1 }
 0x21c   : > { %1410 = vmatpush3.bf16.msra.mxu1 %v1451_v21 }
 0x21d   : > { %1415 = vmatprep.subr.bf16.mxu1 %v1488_v1 }
 0x2d7   : > { %v832_v53 = vpop.f32.mrf.mxu1 }
 0x2d8   : > { %v833_v55 = vadd.f32 %v1333_v52, %v832_v53  ;;  %v1349_v53 = vld [vmem:[%s1759_s16] ss:$0 sm:$0xff] }
 0x2d9   : > { %v1393_v54 = vpop.f32.mrf.mxu1 }
 0x2da   : > { %v839_v59 = vmax.f32 %v833_v55, 0.0 }
 0x2db   : > { %v835_v56 = vpop.f32.mrf.mxu1 }
 0x2dc   : > { %v836_v57 = vadd.f32 %v1333_v52, %v835_v56  ;;  %v1455_v52 = vld [vmem:[%s1760_s17] sm:$0xff]  }
 0x2dd   : > { %v1394_v58 = vpop.f32.mrf.mxu1 }
 0x2de   : > { %v840_v60 = vmax.f32 %v836_v57, 0.0 }
 0x2e0   : > { %v841_v61 = vpack.c.bf16 %v840_v60, %v839_v59 }
 0x2e2   : > { %1404 = vmatmul.mubr.msk.bf16.vlgmr.msra.gmra.mxu0 %vm874_vm2, %v841_v61 }
 0x2e3   : > { %1427 = vmatprep.mubr.msk.bf16.mxu0 %vm1489_vm0, %v1488_v1  ;;  %1424 = vmatpush3.bf16.msra.mxu0 %v1454_v51 }
 0x2e4   : > { %1425 = vmatprep.subr.bf16.mxu0 %v1488_v1 }
 0x2e7   : > { %1426 = vmatpush3.bf16.msra.mxu0 %v1455_v52 }
 0x3a2   : > { %v912_v62 = vpop.f32.mrf.mxu0 }
 0x3a3   : > { %v919_v0 = vadd.f32 %v912_v62, %v769_v46 }
 0x3a4   : > { %v1405_v2 = vpop.f32.mrf.mxu0 }
 0x3a5   : > { %v928_v3 = vadd.f32 %v1342_v63, %v919_v0  ;;  %v1183_v2 = vld [vmem:[%s642_s22 + $0x8] sm:$0xff] }
 0x3a6   : > { %v915_v4 = vpop.f32.mrf.mxu0 }
 0x3a7   : > { %v920_v5 = vadd.f32 %v915_v4, %v770_v47  ;;  %v932_v6 = vsel %vm679_vm1, %v928_v3, 0.0  ;;  %v1185_v4 = vmax.f32 %v1183_v2, 0.0 }
 0x3a8   : > { %933 = vadd.xlane.f32.xlu0 %v932_v6  ;;  %v1406_v7 = vpop.f32.mrf.mxu0 }
 0x3a9   : > { %v929_v8 = vadd.f32 %v1342_v63, %v920_v5  ;;  %v1182_v63 = vld [vmem:[%s642_s22] sm:$0xff]  ;;  %v1187_v6 = vmin.f32 %v1185_v4, 1.0 }
 0x3aa   : > { %v1184_v0 = vmax.f32 %v1182_v63, 0.0 }
 0x3ab   : > { %v935_v9 = vsel %vm679_vm1, %v929_v8, 0.0 }
 0x3ac   : > { %936 = vadd.xlane.f32.xlu1 %v935_v9  ;;  %v1195_v9 = vsub.f32 1.0, %v1187_v6 }
 0x431   : > { %v934_v10 = vpop.xlane.xlu0 %933 }
 0x432   : > { %v938_v11 = vmul.f32 0.03125, %v934_v10  ;;  %v1189_v10 = vmax.f32 %v1187_v6, 1e-05 }
 0x434   : > { %v940_v12 = vsub.f32 %v928_v3, %v938_v11  ;;  %v1186_v3 = vmin.f32 %v1184_v0, 1.0  ;;  %v1197_v11 = vmax.f32 %v1195_v9, 1e-05 }
 0x435   : > { %v937_v13 = vpop.xlane.xlu1 %936 }
 0x436   : > { %v939_v14 = vmul.f32 0.03125, %v937_v13  ;;  %v942_v15 = vmul.f32 %v940_v12, %v940_v12  ;;  %v1194_v5 = vsub.f32 1.0, %v1186_v3  ;;  %v1188_v7 = vmax.f32 %v1186_v3, 1e-05 }
 0x438   : > { %v941_v16 = vsub.f32 %v929_v8, %v939_v14  ;;  %v944_v17 = vsel %vm679_vm1, %v942_v15, 0.0  ;;  %v1196_v8 = vmax.f32 %v1194_v5, 1e-05 }
 0x439   : > { %945 = vadd.xlane.f32.xlu0 %v944_v17 }
 0x43a   : > { %v943_v18 = vmul.f32 %v941_v16, %v941_v16 }
 0x43c   : > { %v947_v19 = vsel %vm679_vm1, %v943_v18, 0.0  ;;  %v1353_v18 = vld [vmem:[%s1761_s18] ss:$0 sm:$0xff] }
 0x43d   : > { %948 = vadd.xlane.f32.xlu1 %v947_v19 }
 0x4c2   : > { %v946_v22 = vpop.xlane.xlu0 %945 }
 0x4c3   : > { %v950_v23 = vmul.f32 0.03125, %v946_v22 }
 0x4c5   : > { %v952_v24 = vadd.f32 1e-05, %v950_v23 }
 0x4c6   : > { %v949_v25 = vpop.xlane.xlu1 %948 }
 0x4c7   : > { %1460 = vrsqrt.f32 %v952_v24  ;;  %v951_v26 = vmul.f32 0.03125, %v949_v25 }
 0x4c9   : > { %v953_v27 = vadd.f32 1e-05, %v951_v26 }
 0x4cb   : > { %1462 = vrsqrt.f32 %v953_v27 }
 0x4cc   : > { %1464 = vlog2.f32 %v1188_v7 }
 0x4cd   : > { %1466 = vlog2.f32 %v1196_v8 }
 0x4ce   : > { %1468 = vlog2.f32 %v1189_v10 }
 0x4cf   : > { %1470 = vlog2.f32 %v1197_v11 }
 0x4d4   : > { %v1461_v28 = vpop.eup %1460 }
 0x4d5   : > { %v956_v30 = vmul.f32 %v1461_v28, %v940_v12 }
 0x4d7   : > { %v964_v32 = vmul.f32 %v1343_v29, %v956_v30 }
 0x4d8   : > { %v1463_v33 = vpop.eup %1462 }
 0x4d9   : > { %v957_v34 = vmul.f32 %v1463_v33, %v941_v16  ;;  %v972_v35 = vadd.f32 %v1344_v31, %v964_v32  ;;  %v1465_v12 = vpop.eup %1464 }
 0x4da   : > { %v1467_v13 = vpop.eup %1466  ;;  %v1191_v15 = vmul.f32 0.6931472, %v1465_v12 }
 0x4db   : > { %v965_v36 = vmul.f32 %v1343_v29, %v957_v34  ;;  %1218 = vst.msk [vmem:[%s1696_s28] sm:$0xff] %vm679_vm1, %v972_v35  ;;  %v1469_v14 = vpop.eup %1468  ;;  %v1199_v16 = vmul.f32 0.6931472, %v1467_v13 }
 0x4dc   : > { %v1471_v17 = vpop.eup %1470  ;;  %v1193_v20 = vmul.f32 0.6931472, %v1469_v14 }
 0x4dd   : > { %v973_v37 = vadd.f32 %v1344_v31, %v965_v36  ;;  %v1202_v19 = vsub.f32 %v1191_v15, %v1199_v16  ;;  %v1201_v21 = vmul.f32 0.6931472, %v1471_v17 }
 0x4df   : > { %v974_v38 = vpack.c.bf16 %v973_v37, %v972_v35  ;;  %1219 = vst.msk [vmem:[%s1696_s28 + $0x8] sm:$0xff] %vm679_vm1, %v973_v37  ;;  %v1203_v26 = vsub.f32 %v1193_v20, %v1201_v21 }
 0x4e1   : > { %1412 = vmatmul.mubr.msk.bf16.vlgmr.msra.gmra.mxu1 %vm679_vm1, %v974_v38 }
 0x4e2   : > { %1419 = vmatprep.mubr.msk.bf16.mxu1 %vm1489_vm0, %v1488_v1  ;;  %1416 = vmatpush3.bf16.msra.mxu1 %v1452_v39 }
 0x4e3   : > { %1417 = vmatprep.subr.bf16.mxu1 %v1488_v1 }
 0x4e6   : > { %1418 = vmatpush3.bf16.msra.mxu1 %v1453_v40 }
 0x5a1   : > { %v1035_v42 = vpop.f32.mrf.mxu1 }
 0x5a2   : > { %v1036_v44 = vadd.f32 %v1345_v41, %v1035_v42 }
 0x5a3   : > { %v1413_v43 = vpop.f32.mrf.mxu1 }
 0x5a4   : > { %v1042_v48 = vmax.f32 %v1036_v44, 0.0 }
 0x5a5   : > { %v1038_v45 = vpop.f32.mrf.mxu1 }
 0x5a6   : > { %v1039_v46 = vadd.f32 %v1345_v41, %v1038_v45 }
 0x5a7   : > { %v1414_v47 = vpop.f32.mrf.mxu1 }
 0x5a8   : > { %v1043_v49 = vmax.f32 %v1039_v46, 0.0 }
 0x5aa   : > { %v1044_v50 = vpack.c.bf16 %v1043_v49, %v1042_v48 }
 0x5ac   : > { %1420 = vmatmul.mubr.msk.bf16.vlgmr.msra.gmra.mxu1 %vm679_vm1, %v1044_v50 }
 0x66c   : > { %v1105_v54 = vpop.f32.mrf.mxu1 }
 0x66d   : > { %v1106_v56 = vadd.f32 %v1349_v53, %v1105_v54 }
 0x66e   : > { %v1421_v55 = vpop.f32.mrf.mxu1 }
 0x66f   : > { %v1112_v60 = vmax.f32 %v1106_v56, 0.0 }
 0x670   : > { %v1108_v57 = vpop.f32.mrf.mxu1 }
 0x671   : > { %v1109_v58 = vadd.f32 %v1349_v53, %v1108_v57 }
 0x672   : > { %v1422_v59 = vpop.f32.mrf.mxu1 }
 0x673   : > { %v1113_v61 = vmax.f32 %v1109_v58, 0.0 }
 0x675   : > { %v1114_v62 = vpack.c.bf16 %v1113_v61, %v1112_v60 }
 0x677   : > { %1428 = vmatmul.mubr.msk.bf16.vlgmr.msra.gmra.mxu0 %vm679_vm1, %v1114_v62 }
 0x737   : > { %v1175_v22 = vpop.f32.mrf.mxu0 }
 0x738   : > { %v1176_v23 = vadd.f32 %v1353_v18, %v1175_v22 }
 0x739   : > { %v1429_v24 = vpop.f32.mrf.mxu0 }
 0x73a   : > { %v1204_v25 = vadd.f32 %v1202_v19, %v1176_v23 }
 0x73b   : > { %v1178_v27 = vpop.f32.mrf.mxu0 }
 0x73c   : > { %v1206_v28 = vsub.f32 0.0, %v1204_v25  ;;  %v1179_v29 = vadd.f32 %v1353_v18, %v1178_v27 }
 0x73d   : > { %v1430_v30 = vpop.f32.mrf.mxu0 }
 0x73e   : > { %v1208_v31 = vmul.f32 1.442695, %v1206_v28  ;;  %v1205_v32 = vadd.f32 %v1203_v26, %v1179_v29 }
 0x740   : > { %1472 = vpow2.f32 %v1208_v31  ;;  %v1207_v33 = vsub.f32 0.0, %v1205_v32 }
 0x742   : > { %v1210_v34 = vmul.f32 1.442695, %v1207_v33 }
 0x744   : > { %1474 = vpow2.f32 %v1210_v34 }
 0x74d   : > { %v1473_v35 = vpop.eup %1472 }
 0x74e   : > { %v1212_v36 = vadd.f32 1.0, %v1473_v35 }
 0x750   : > { %1476 = vrcp.f32 %v1212_v36 }
 0x751   : > { %v1475_v37 = vpop.eup %1474 }
 0x752   : > { %v1213_v38 = vadd.f32 1.0, %v1475_v37 }
 0x754   : > { %1478 = vrcp.f32 %v1213_v38 }
 0x75d   : > { %v1477_v39 = vpop.eup %1476 }
 0x75e   : > { %1222 = vrot.lane.b32.xlu0 %v1477_v39, %s1490_s23 }
 0x761   : > { %v1479_v40 = vpop.eup %1478 }
 0x762   : > { %1224 = vrot.lane.b32.xlu1 %v1479_v40, %s1490_s23 }
 0x7d0   : > { %v1223_v41 = vpop.permute.xlu0 %1222 }
 0x7d1   : > { %1229 = vst.msk [vmem:[%s1696_s28] sm:$0xff] %vm1228_vm3, %v1223_v41 }
 0x7d2   : > { %1232 = vst.msk [vmem:[%s1696_s28] sm:$0xff] %vm1231_vm4, %v1488_v1 }
 0x7d4   : > { %v1225_v42 = vpop.permute.xlu1 %1224 }
 0x7d5   : > { %1230 = vst.msk [vmem:[%s1696_s28 + $0x8] sm:$0xff] %vm1228_vm3, %v1225_v42 }
 0x7d6   : > { %1233 = vst.msk [vmem:[%s1696_s28 + $0x8] sm:$0xff] %vm1231_vm4, %v1488_v1 }
 0x7d7 PF: > { %s29_s0 = sadd.s32 1, %s1486_s0  }
 0x7d8   : > { %p26_p4 = scmp.ge.s32.totalorder %s29_s0, 4  }
 0x7da   :  { %28 = sbr.rel (!%p26_p4) target bundleno = 5 (0x5), region = 132 }

// kernel: _polygon_head_jit.8
= control target key start
LH: loop header
LB: loop body
LE: loop exit
PB: predicated region body
PF: predicated region fallthrough
CT: control target
= control target key end

     0   :  { %s3751_s21 = smov 0   ;;  %s4388_s0 = inlined_call_operand.vmem [shape: f32[64,32], index: 0, kind: input, shape index: {}]   ;;  %s4389_s1 = inlined_call_operand.vmem [shape: f32[64,32], index: 1, kind: input, shape index: {}]   ;;  %s4390_s2 = inlined_call_operand.vmem [shape: bf16[32,64], index: 2, kind: input, shape index: {}]   ;;  %s4391_s3 = inlined_call_operand.vmem [shape: f32[1,64], index: 3, kind: input, shape index: {}]   ;;  %s4392_s4 = inlined_call_operand.vmem [shape: bf16[8,32,32], index: 4, kind: input, shape index: {}]   ;;  %s4393_s5 = inlined_call_operand.vmem [shape: f32[1,32], index: 5, kind: input, shape index: {}]   ;;  %s4394_s6 = inlined_call_operand.vmem [shape: f32[1,32], index: 6, kind: input, shape index: {}]   ;;  %s4395_s7 = inlined_call_operand.vmem [shape: f32[1,32], index: 7, kind: input, shape index: {}]   ;;  %s4396_s8 = inlined_call_operand.vmem [shape: bf16[32,192], index: 8, kind: input, shape index: {}]   ;;  %s4397_s9 = inlined_call_operand.vmem [shape: f32[1,192], index: 9, kind: input, shape index: {}]   ;;  %s4398_s10 = inlined_call_operand.vmem [shape: f32[32,32], index: 10, kind: input, shape index: {}]   ;;  %s4399_s11 = inlined_call_operand.vmem [shape: bf16[64,64], index: 11, kind: input, shape index: {}]   ;;  %s4400_s12 = inlined_call_operand.vmem [shape: f32[64,256], index: 12, kind: output, shape index: {}]  }
   0x1 LB: > { %s2981_s22 = sadd.s32 4294967295, %s3666_s21   ;;  %p2985_p0 = scmp.ge.s32.totalorder %s3666_s21, 1  ;;  %s3666_s21 = sphi %s3751_s21, %s22_s21  }
   0x2   : > { %p374_p1 = scmp.lt.s32.totalorder %s3666_s21, 3 }
   0x4   : > { %p375_p2 = pnand %p2985_p0, %p374_p1 }
   0x5   : > { %s2986_s25 = sshll.u32 (!%p375_p2), %s2981_s22, 2  ;;  %s3668_s29 = smov (!%p375_p2), 92  }
   0x6   : > { %378 = sbr.rel (%p375_p2) target bundleno = 3902 (0xf3e), region = 68  ;;  %p423_p3 = scmp.lt.s32.totalorder (!%p375_p2), %s2986_s25, 7 }
   0x7   : > { %s3669_s30 = smov (!%p375_p2), 96   ;;  %s3670_s14 = smov (!%p375_p2), 124  }
   0x8   : > { %s3671_s26 = smov (!%p375_p2), 88   ;;  %s3672_s27 = smov (!%p375_p2), 120  }
   0x9   : > { %s3675_s18 = smov (!%p375_p2), 80   ;;  %s3676_s19 = smov (!%p375_p2), 112  }
   0xa   : > { %s3679_s15 = smov (!%p375_p2), 72   ;;  %s3680_s17 = smov (!%p375_p2), 104  }
   0xb   : > { %v3468_v0 = vld [vmem:[%s4390_s2 + $0x8] sm:$0xff]   ;;  %v3469_v1 = vld [vmem:[%s4390_s2] sm:$0xff]   ;;  %s4402_s25 = smov (!%p423_p3, %s2986_s25), 7  ;;  %vm479_vm0 = vcmask 261120   ;;  %v3472_v19 = vld [vmem:[%s4392_s4 + $0x18] sm:$0xff]   ;;  %vm620_vm1 = vcmask 31744  }
   0xc   : > { %3214 = vmatprep.subr.bf16.mxu0 %v3468_v0  ;;  %s2987_s28 = sshll.u32 %s4402_s25, 3  ;;  %v3470_v17 = vld [vmem:[%s4392_s4 + $0x8] sm:$0xff]   ;;  %v3471_v18 = vld [vmem:[%s4392_s4] sm:$0xff]   ;;  %v3473_v21 = vld [vmem:[%s4392_s4 + $0x10] sm:$0xff]   ;;  %s3681_s23 = smov 68   ;;  %vm2730_vm2 = vcmask 523264  }
   0xd   : > { %3215 = vmatpush3.bf16.msra.mxu0 %v3468_v0  ;;  %s3771_s13 = scalar_lea.vmem %s4388_s0, %s2987_s28  ;;  %s3776_s16 = scalar_lea.vmem %s4389_s1, %s2987_s28  ;;  %3222 = vmatprep.subr.bf16.mxu1 %v3470_v17  ;;  %v2993_v23 = vld [vmem:[%s4391_s3] ss:$0 sm:$0xff]  ;;  %v3854_v60 = vld [vmem:[%s4398_s10 + $0x10] sm:$0xff]  ;;  %vm2876_vm3 = vcmask 1047808   ;;  %vm2901_vm4 = vcmask 785664   ;;  %vm2906_vm5 = vcmask 1048320  }
   0xe   : > { %3216 = vmatprep.subr.bf16.mxu0 %v3469_v1  ;;  %v442_v2 = vld [vmem:[%s3771_s13] sm:$0xff]  ;;  %v443_v3 = vld [vmem:[%s3771_s13 + $0x8] sm:$0xff]  ;;  %v444_v8 = vld [vmem:[%s3771_s13 + $0x10] sm:$0xff]  ;;  %3223 = vmatpush3.bf16.msra.mxu1 %v3470_v17  ;;  %s3673_s28 = smov 84   ;;  %s3682_s24 = smov 100  }
   0xf   : > { %v446_v4 = vld [vmem:[%s3776_s16] sm:$0xff]  ;;  %v447_v5 = vld [vmem:[%s3776_s16 + $0x8] sm:$0xff]  ;;  %v3782_v7 = vpack.c.bf16 %v443_v3, %v442_v2  ;;  %v445_v9 = vld [vmem:[%s3771_s13 + $0x18] sm:$0xff]  ;;  %3224 = vmatprep.subr.bf16.mxu1 %v3471_v18 }
  0x10   : > { %v450_v6 = vadd.f32 %v446_v4, %v442_v2  ;;  %v451_v10 = vadd.f32 %v447_v5, %v443_v3  ;;  %v448_v11 = vld [vmem:[%s3776_s16 + $0x10] sm:$0xff]  ;;  %v449_v12 = vld [vmem:[%s3776_s16 + $0x18] sm:$0xff]  ;;  %v3801_v20 = vpack.c.bf16 %v445_v9, %v444_v8  ;;  %v3849_v58 = vld [vmem:[%s4398_s10] sm:$0xff] }
  0x11   : > { %3217 = vmatpush3.bf16.msra.mxu0 %v3469_v1  ;;  %v452_v13 = vadd.f32 %v448_v11, %v444_v8  ;;  %v453_v14 = vadd.f32 %v449_v12, %v445_v9  ;;  %3226 = vmatprep.mubr.msk.bf16.mxu1 %vm479_vm0, %v3782_v7  ;;  %v3861_v3 = vld [vmem:[%s4398_s10 + $0x8] sm:$0xff] }
  0x12   : > { %v454_v15 = vpack.c.bf16 %v451_v10, %v450_v6  ;;  %3225 = vmatpush3.bf16.msra.mxu1 %v3471_v18  ;;  %v3867_v10 = vld [vmem:[%s4398_s10 + $0x18] sm:$0xff] }
  0x13   : > { %v455_v16 = vpack.c.bf16 %v453_v14, %v452_v13  ;;  %3238 = vmatprep.subr.bf16.mxu1 %v3472_v19 }
  0x14   : > { %3218 = vmatprep.mubr.msk.bf16.mxu0 %vm479_vm0, %v454_v15 }
  0x15   : > { %3219 = vmatmul.mubr.msk.bf16.vlgmr.msra.gmra.mxu0 %vm479_vm0, %v455_v16  ;;  %3227 = vmatmul.mubr.msk.bf16.vlgmr.msra.gmra.mxu1 %vm479_vm0, %v3801_v20 }
  0x16   : > { %3239 = vmatpush3.bf16.msra.mxu1 %v3472_v19  ;;  %3242 = vmatprep.mubr.msk.bf16.mxu1 %vm479_vm0, %v3782_v7 }
  0x17   : > { %3240 = vmatprep.subr.bf16.mxu1 %v3473_v21 }
  0x1a   : > { %3241 = vmatpush3.bf16.msra.mxu1 %v3473_v21 }
  0x1d   : > { %3243 = vmatmul.mubr.msk.bf16.vlgmr.msra.gmra.mxu1 %vm479_vm0, %v3801_v20 }
  0xd5   : > { %v3220_v22 = vpop.f32.mrf.mxu0  ;;  %v3228_v33 = vpop.f32.mrf.mxu1 }
  0xd6   : > { %v529_v26 = vadd.f32 %v3220_v22, %v2993_v23 }
  0xd7   : > { %v520_v24 = vpop.f32.mrf.mxu0  ;;  %v599_v34 = vpop.f32.mrf.mxu1 }
  0xd8   : > { %v521_v29 = vadd.f32 %v2993_v23, %v520_v24 }
  0xd9   : > { %v3221_v25 = vpop.f32.mrf.mxu0  ;;  %v3229_v35 = vpop.f32.mrf.mxu1 }
  0xda   : > { %v532_v27 = vadd.f32 %v3221_v25, %v2993_v23  ;;  %v3843_v54 = vpack.c.bf16 %v3229_v35, %v3228_v33 }
  0xdb   : > { %v523_v28 = vpop.f32.mrf.mxu0  ;;  %v602_v36 = vpop.f32.mrf.mxu1 }
  0xdc   : > { %v3815_v30 = vpack.c.bf16 %v532_v27, %v529_v26  ;;  %v524_v31 = vadd.f32 %v2993_v23, %v523_v28  ;;  %v3827_v37 = vpack.c.bf16 %v602_v36, %v599_v34 }
  0xdd   : > { %v3244_v39 = vpop.f32.mrf.mxu1 }
  0xde   : > { %v3817_v32 = vpack.c.bf16 %v524_v31, %v521_v29  ;;  %810 = vrot.lane.b32.xlu0 %v3815_v30, %s3668_s29 }
  0xdf   : > { %v789_v43 = vpop.f32.mrf.mxu1 }
  0xe0   : > { %808 = vrot.lane.b32.xlu1 %v3817_v32, %s3668_s29  ;;  %3234 = vmatprep.mubr.msk.bf16.mxu0 %vm620_vm1, %v3817_v32  ;;  %s3674_s29 = smov 116  }
  0xe1   : > { %v3245_v47 = vpop.f32.mrf.mxu1 }
  0xe2   : > { %618 = vrot.lane.b32.xlu0 %v3815_v30, %s3669_s30  ;;  %v928_v49 = vpack.c.bf16 %v3245_v47, %v3244_v39 }
  0xe3   : > { %v792_v52 = vpop.f32.mrf.mxu1 }
  0xe4   : > { %804 = vrot.lane.b32.xlu1 %v3817_v32, %s3670_s14  ;;  %v927_v53 = vpack.c.bf16 %v792_v52, %v789_v43 }
  0xe6   : > { %616 = vrot.lane.b32.xlu0 %v3817_v32, %s3669_s30 }
  0xe8   : > { %806 = vrot.lane.b32.xlu1 %v3815_v30, %s3670_s14 }
 0x150   : > { %v811_v38 = vpop.permute.xlu0 %810 }
 0x151   : > { %3428 = vmatprep.subr.msk.bf16.mxu1 %vm620_vm1, %v811_v38  ;;  %v822_v40 = vsel %vm620_vm1, %v811_v38, 0 }
 0x152   : > { %3247 = vmatpush3.bf16.xpose.msra.mxu1 %v822_v40  ;;  %v809_v41 = vpop.permute.xlu1 %808 }
 0x153   : > { %3429 = vmatprep.subr.msk.bf16.mxu1 %vm620_vm1, %v809_v41  ;;  %v819_v48 = vsel %vm620_vm1, %v809_v41, 0 }
 0x154   : > { %v619_v42 = vpop.permute.xlu0 %618 }
 0x155   : > { %3426 = vmatprep.subr.msk.bf16.mxu0 %vm620_vm1, %v619_v42  ;;  %v631_v44 = vsel %vm620_vm1, %v619_v42, 0 }
 0x156   : > { %3231 = vmatpush3.bf16.xpose.msra.mxu0 %v631_v44  ;;  %v805_v45 = vpop.permute.xlu1 %804 }
 0x157   : > { %3250 = vmatprep.mubr.msk.bf16.mxu1 %vm620_vm1, %v805_v45 }
 0x158   : > { %v617_v46 = vpop.permute.xlu0 %616 }
 0x159   : > { %3427 = vmatprep.subr.msk.bf16.mxu0 %vm620_vm1, %v617_v46  ;;  %v628_v50 = vsel %vm620_vm1, %v617_v46, 0 }
 0x15a   : > { %3249 = vmatpush3.bf16.xpose.msra.mxu1 %v819_v48  ;;  %v807_v51 = vpop.permute.xlu1 %806 }
 0x15e   : > { %3233 = vmatpush3.bf16.xpose.msra.mxu0 %v628_v50 }
 0x15f   : > { %3254 = vmatprep.subr.bf16.mxu0 %v928_v49 }
 0x161   : > { %3251 = vmatmul.mubr.msk.bf16.vlgmr.msra.gmra.mxu1 %vm620_vm1, %v807_v51 }
 0x162   : > { %3274 = vmatprep.mubr.msk.bf16.mxu1 %vm479_vm0, %v3782_v7 }
 0x165   : > { %3235 = vmatmul.mubr.msk.bf16.vlgmr.msra.gmra.mxu0 %vm620_vm1, %v3815_v30 }
 0x166   : > { %3255 = vmatpush3.bf16.msra.mxu0 %v928_v49 }
 0x167   : > { %3256 = vmatprep.subr.bf16.mxu0 %v927_v53 }
 0x16a   : > { %3257 = vmatpush3.bf16.msra.mxu0 %v927_v53 }
 0x16b   : > { %3262 = vmatprep.subr.bf16.mxu0 %v3843_v54 }
 0x221   : > { %v3252_v55 = vpop.f32.mrf.mxu1 }
 0x222   : > { %v875_v56 = vmul.f32 0.5, %v3252_v55 }
 0x223   : > { %v858_v57 = vpop.f32.mrf.mxu1 }
 0x224   : > { %v873_v59 = vmul.f32 0.5, %v858_v57  ;;  %v879_v2 = vadd.f32 %v875_v56, %v3854_v60 }
 0x225   : > { %v3236_v61 = vpop.f32.mrf.mxu0  ;;  %v3253_v62 = vpop.f32.mrf.mxu1 }
 0x226   : > { %v877_v63 = vadd.f32 %v873_v59, %v3849_v58  ;;  %v876_v4 = vmul.f32 0.5, %v3253_v62  ;;  %v684_v12 = vmul.f32 0.5, %v3236_v61  ;;  %v887_v14 = vsel %vm479_vm0, %v879_v2, -inf }
 0x227   : > { %v667_v0 = vpop.f32.mrf.mxu0  ;;  %v861_v1 = vpop.f32.mrf.mxu1 }
 0x228   : > { %v682_v5 = vmul.f32 0.5, %v667_v0  ;;  %v874_v6 = vmul.f32 0.5, %v861_v1  ;;  %v881_v8 = vsel %vm479_vm0, %v877_v63, -inf  ;;  %v880_v17 = vadd.f32 %v876_v4, %v3867_v10 }
 0x229   : > { %882 = vmax.xlane.f32.xlu0 %v881_v8  ;;  %v3237_v9 = vpop.f32.mrf.mxu0  ;;  %v688_v19 = vadd.f32 %v684_v12, %v3854_v60 }
 0x22a   : > { %v878_v11 = vadd.f32 %v874_v6, %v3861_v3  ;;  %v686_v18 = vadd.f32 %v682_v5, %v3849_v58  ;;  %v685_v21 = vmul.f32 0.5, %v3237_v9  ;;  %v890_v22 = vsel %vm479_vm0, %v880_v17, -inf }
 0x22b   : > { %v670_v13 = vpop.f32.mrf.mxu0  ;;  %v696_v25 = vsel %vm479_vm0, %v688_v19, -inf }
 0x22c   : > { %v683_v15 = vmul.f32 0.5, %v670_v13  ;;  %v884_v16 = vsel %vm479_vm0, %v878_v11, -inf  ;;  %v690_v23 = vsel %vm479_vm0, %v686_v18, -inf  ;;  %v689_v27 = vadd.f32 %v685_v21, %v3867_v10 }
 0x22d   : > { %888 = vmax.xlane.f32.xlu0 %v887_v14  ;;  %885 = vmax.xlane.f32.xlu1 %v884_v16 }
 0x22e   : > { %v687_v24 = vadd.f32 %v683_v15, %v3861_v3  ;;  %v699_v28 = vsel %vm479_vm0, %v689_v27, -inf }
 0x230   : > { %v693_v26 = vsel %vm479_vm0, %v687_v24, -inf }
 0x231   : > { %891 = vmax.xlane.f32.xlu0 %v890_v22  ;;  %691 = vmax.xlane.f32.xlu1 %v690_v23 }
 0x235   : > { %697 = vmax.xlane.f32.xlu1 %v696_v25  ;;  %694 = vmax.xlane.f32.xlu0 %v693_v26 }
 0x239   : > { %700 = vmax.xlane.f32.xlu0 %v699_v28 }
 0x2b2   : > { %v883_v29 = vpop.xlane.xlu0 %882 }
 0x2b3   : > { %v893_v31 = vsub.f32 %v877_v63, %v883_v29 }
 0x2b5   : > { %v897_v38 = vmul.f32 1.442695, %v893_v31 }
 0x2b6   : > { %v889_v33 = vpop.xlane.xlu0 %888  ;;  %v886_v34 = vpop.xlane.xlu1 %885 }
 0x2b7   : > { %v895_v35 = vsub.f32 %v879_v2, %v889_v33  ;;  %v894_v36 = vsub.f32 %v878_v11, %v886_v34 }
 0x2b9   : > { %v901_v39 = vmul.f32 1.442695, %v895_v35  ;;  %v899_v40 = vmul.f32 1.442695, %v894_v36 }
 0x2ba   : > { %v892_v41 = vpop.xlane.xlu0 %891  ;;  %v692_v42 = vpop.xlane.xlu1 %691 }
 0x2bb   : > { %3496 = vpow2.f32 %v901_v39  ;;  %v896_v43 = vsub.f32 %v880_v17, %v892_v41  ;;  %v702_v44 = vsub.f32 %v686_v18, %v692_v42 }
 0x2bc   : > { %3498 = vpow2.f32 %v899_v40 }
 0x2bd   : > { %3500 = vpow2.f32 %v897_v38  ;;  %v903_v45 = vmul.f32 1.442695, %v896_v43  ;;  %v706_v46 = vmul.f32 1.442695, %v702_v44 }
 0x2be   : > { %v698_v47 = vpop.xlane.xlu1 %697  ;;  %v695_v48 = vpop.xlane.xlu0 %694 }
 0x2bf   : > { %3502 = vpow2.f32 %v903_v45  ;;  %v704_v49 = vsub.f32 %v688_v19, %v698_v47  ;;  %v703_v50 = vsub.f32 %v687_v24, %v695_v48 }
 0x2c0   : > { %3504 = vpow2.f32 %v706_v46 }
 0x2c1   : > { %v710_v51 = vmul.f32 1.442695, %v704_v49  ;;  %v708_v52 = vmul.f32 1.442695, %v703_v50 }
 0x2c2   : > { %v701_v53 = vpop.xlane.xlu0 %700 }
 0x2c3   : > { %v705_v55 = vsub.f32 %v689_v27, %v701_v53  ;;  %3506 = vpow2.f32 %v708_v52 }
 0x2c4   : > { %3508 = vpow2.f32 %v710_v51 }
 0x2c5   : > { %v712_v56 = vmul.f32 1.442695, %v705_v55 }
 0x2c7   : > { %3510 = vpow2.f32 %v712_v56 }
 0x2c8   : > { %v3497_v57 = vpop.eup %3496 }
 0x2c9   : > { %v3499_v59 = vpop.eup %3498  ;;  %v911_v61 = vsel %vm479_vm0, %v3497_v57, 0.0 }
 0x2ca   : > { %v3501_v62 = vpop.eup %3500  ;;  %912 = vadd.xlane.f32.xlu1 %v911_v61  ;;  %v908_v63 = vsel %vm479_vm0, %v3499_v59, 0.0 }
 0x2cb   : > { %909 = vadd.xlane.f32.xlu0 %v908_v63  ;;  %v905_v1 = vsel %vm479_vm0, %v3501_v62, 0.0 }
 0x2cc   : > { %v3503_v0 = vpop.eup %3502 }
 0x2cd   : > { %v914_v2 = vsel %vm479_vm0, %v3503_v0, 0.0  ;;  %v3505_v4 = vpop.eup %3504 }
 0x2ce   : > { %906 = vadd.xlane.f32.xlu1 %v905_v1  ;;  %v714_v6 = vsel %vm479_vm0, %v3505_v4, 0.0 }
 0x2cf   : > { %915 = vadd.xlane.f32.xlu0 %v914_v2 }
 0x2d0   : > { %v3507_v5 = vpop.eup %3506 }
 0x2d1   : > { %v3509_v8 = vpop.eup %3508  ;;  %v717_v9 = vsel %vm479_vm0, %v3507_v5, 0.0 }
 0x2d2   : > { %715 = vadd.xlane.f32.xlu1 %v714_v6  ;;  %v720_v12 = vsel %vm479_vm0, %v3509_v8, 0.0 }
 0x2d3   : > { %718 = vadd.xlane.f32.xlu0 %v717_v9 }
 0x2d4   : > { %v3511_v11 = vpop.eup %3510 }
 0x2d5   : > { %v723_v13 = vsel %vm479_vm0, %v3511_v11, 0.0 }
 0x2d6   : > { %721 = vadd.xlane.f32.xlu1 %v720_v12 }
 0x2d7   : > { %724 = vadd.xlane.f32.xlu0 %v723_v13 }
 0x2e7   : > { %1111 = vrot.lane.b32.xlu1 %v3815_v30, %s3671_s26 }
 0x2eb   : > { %1105 = vrot.lane.b32.xlu1 %v3817_v32, %s3672_s27 }
 0x2ed   : > { %1109 = vrot.lane.b32.xlu0 %v3817_v32, %s3671_s26  ;;  %s3677_s26 = smov 76  }
 0x2ef   : > { %1107 = vrot.lane.b32.xlu1 %v3815_v30, %s3672_s27  ;;  %s3678_s27 = smov 108  }
 0x2f1   : > { %1361 = vrot.lane.b32.xlu0 %v3815_v30, %s3673_s28 }
 0x2f3   : > { %1359 = vrot.lane.b32.xlu1 %v3817_v32, %s3673_s28 }
 0x2f5   : > { %1355 = vrot.lane.b32.xlu0 %v3817_v32, %s3674_s29 }
 0x2f7   : > { %1357 = vrot.lane.b32.xlu1 %v3815_v30, %s3674_s29 }
 0x353   : > { %v913_v14 = vpop.xlane.xlu1 %912 }
 0x354   : > { %v910_v15 = vpop.xlane.xlu0 %909 }
 0x355   : > { %3512 = vrcp.f32 %v910_v15 }
 0x356   : > { %3514 = vrcp.f32 %v913_v14 }
 0x357   : > { %v907_v16 = vpop.xlane.xlu1 %906 }
 0x358   : > { %3516 = vrcp.f32 %v907_v16  ;;  %v916_v17 = vpop.xlane.xlu0 %915 }
 0x359   : > { %3518 = vrcp.f32 %v916_v17 }
 0x35b   : > { %v716_v18 = vpop.xlane.xlu1 %715 }
 0x35c   : > { %3520 = vrcp.f32 %v716_v18  ;;  %v719_v19 = vpop.xlane.xlu0 %718 }
 0x35d   : > { %3522 = vrcp.f32 %v719_v19 }
 0x35f   : > { %v722_v21 = vpop.xlane.xlu1 %721 }
 0x360   : > { %3524 = vrcp.f32 %v722_v21  ;;  %v725_v22 = vpop.xlane.xlu0 %724 }
 0x361   : > { %3526 = vrcp.f32 %v725_v22 }
 0x362   : > { %v3513_v23 = vpop.eup %3512 }
 0x363   : > { %v3515_v24 = vpop.eup %3514  ;;  %v922_v28 = vmul.f32 %v3513_v23, %v3499_v59  ;;  %v1112_v41 = vpop.permute.xlu1 %1111  ;;  %v3475_v59 = vld [vmem:[%s4392_s4 + $0x20] sm:$0xff]  }
 0x364   : > { %v923_v29 = vmul.f32 %v3515_v24, %v3497_v57  ;;  %v1123_v47 = vsel %vm620_vm1, %v1112_v41, 0  ;;  %v3474_v57 = vld [vmem:[%s4392_s4 + $0x28] sm:$0xff]  }
 0x365   : > { %v3517_v25 = vpop.eup %3516  ;;  %3270 = vmatprep.subr.bf16.mxu1 %v3474_v57 }
 0x366   : > { %v3519_v26 = vpop.eup %3518  ;;  %v921_v27 = vmul.f32 %v3517_v25, %v3501_v62  ;;  %3271 = vmatpush3.bf16.msra.mxu1 %v3474_v57  ;;  %v3476_v57 = vld [vmem:[%s4392_s4 + $0x38] sm:$0xff]  }
 0x367   : > { %v924_v31 = vmul.f32 %v3519_v26, %v3503_v0  ;;  %v1106_v48 = vpop.permute.xlu1 %1105  ;;  %3272 = vmatprep.subr.bf16.mxu1 %v3475_v59 }
 0x368   : > { %v925_v33 = vpack.c.bf16 %v922_v28, %v921_v27 }
 0x369   : > { %v3521_v34 = vpop.eup %3520  ;;  %v926_v35 = vpack.c.bf16 %v924_v31, %v923_v29 }
 0x36a   : > { %v3523_v36 = vpop.eup %3522  ;;  %3258 = vmatprep.mubr.msk.bf16.mxu0 %vm479_vm0, %v925_v33  ;;  %v730_v38 = vmul.f32 %v3521_v34, %v3505_v4  ;;  %3273 = vmatpush3.bf16.msra.mxu1 %v3475_v59 }
 0x36b   : > { %3259 = vmatmul.mubr.msk.bf16.vlgmr.msra.gmra.mxu0 %vm479_vm0, %v926_v35  ;;  %v731_v39 = vmul.f32 %v3523_v36, %v3507_v5 }
 0x36c   : > { %3263 = vmatpush3.bf16.msra.mxu0 %v3843_v54  ;;  %v1110_v54 = vpop.permute.xlu0 %1109 }
 0x36d   : > { %v3525_v40 = vpop.eup %3524  ;;  %3264 = vmatprep.subr.bf16.mxu0 %v3827_v37  ;;  %v734_v42 = vpack.c.bf16 %v731_v39, %v730_v38  ;;  %v1120_v49 = vsel %vm620_vm1, %v1110_v54, 0  ;;  %3275 = vmatmul.mubr.msk.bf16.vlgmr.msra.gmra.mxu1 %vm479_vm0, %v3801_v20 }
 0x36e   : > { %v3527_v43 = vpop.eup %3526  ;;  %v732_v44 = vmul.f32 %v3525_v40, %v3509_v8 }
 0x36f   : > { %3266 = vmatprep.mubr.msk.bf16.mxu0 %vm479_vm0, %v734_v42  ;;  %v733_v45 = vmul.f32 %v3527_v43, %v3511_v11 }
 0x370   : > { %3265 = vmatpush3.bf16.msra.mxu0 %v3827_v37  ;;  %v1362_v50 = vpop.permute.xlu0 %1361  ;;  %v1108_v37 = vpop.permute.xlu1 %1107 }
 0x371   : > { %3430 = vmatprep.subr.msk.bf16.mxu0 %vm620_vm1, %v1112_v41  ;;  %v735_v46 = vpack.c.bf16 %v733_v45, %v732_v44  ;;  %v1373_v51 = vsel %vm620_vm1, %v1362_v50, 0 }
 0x373   : > { %3267 = vmatmul.mubr.msk.bf16.vlgmr.msra.gmra.mxu0 %vm479_vm0, %v735_v46 }
 0x374   : > { %3279 = vmatpush3.bf16.xpose.msra.mxu0 %v1123_v47  ;;  %3282 = vmatprep.mubr.msk.bf16.mxu0 %vm620_vm1, %v1106_v48  ;;  %v1356_v52 = vpop.permute.xlu0 %1355  ;;  %v1360_v53 = vpop.permute.xlu1 %1359 }
 0x375   : > { %3431 = vmatprep.subr.msk.bf16.mxu0 %vm620_vm1, %v1110_v54  ;;  %v1370_v55 = vsel %vm620_vm1, %v1360_v53, 0 }
 0x378   : > { %v1358_v56 = vpop.permute.xlu1 %1357 }
 0x37c   : > { %3281 = vmatpush3.bf16.xpose.msra.mxu0 %v1120_v49 }
 0x37d   : > { %3432 = vmatprep.subr.msk.bf16.mxu0 %vm620_vm1, %v1362_v50 }
 0x383   : > { %3283 = vmatmul.mubr.msk.bf16.vlgmr.msra.gmra.mxu0 %vm620_vm1, %v1108_v37 }
 0x384   : > { %3303 = vmatpush3.bf16.xpose.msra.mxu0 %v1373_v51  ;;  %3306 = vmatprep.mubr.msk.bf16.mxu0 %vm620_vm1, %v1356_v52 }
 0x385   : > { %3433 = vmatprep.subr.msk.bf16.mxu0 %vm620_vm1, %v1360_v53 }
 0x38c   : > { %3305 = vmatpush3.bf16.xpose.msra.mxu0 %v1370_v55 }
 0x393   : > { %3307 = vmatmul.mubr.msk.bf16.vlgmr.msra.gmra.mxu0 %vm620_vm1, %v1358_v56 }
 0x42b   : > { %v3260_v61 = vpop.f32.mrf.mxu0 }
 0x42d   : > { %v969_v62 = vpop.f32.mrf.mxu0  ;;  %v3276_v37 = vpop.f32.mrf.mxu1 }
 0x42f   : > { %v3261_v63 = vpop.f32.mrf.mxu0  ;;  %v1090_v51 = vpop.f32.mrf.mxu1 }
 0x431   : > { %v972_v0 = vpop.f32.mrf.mxu0  ;;  %v3277_v52 = vpop.f32.mrf.mxu1 }
 0x432   : > { %v1229_v53 = vpack.c.bf16 %v3277_v52, %v3276_v37 }
 0x433   : > { %v3268_v1 = vpop.f32.mrf.mxu0  ;;  %v1093_v55 = vpop.f32.mrf.mxu1 }
 0x434   : > { %v3925_v2 = vadd.f32 %v3268_v1, %v3260_v61  ;;  %3286 = vmatprep.subr.bf16.mxu1 %v1229_v53  ;;  %v1228_v56 = vpack.c.bf16 %v1093_v55, %v1090_v51 }
 0x435   : > { %v1024_v4 = vpop.f32.mrf.mxu0  ;;  %3287 = vmatpush3.bf16.msra.mxu1 %v1229_v53 }
 0x436   : > { %v3927_v5 = vadd.f32 %v1024_v4, %v969_v62  ;;  %3288 = vmatprep.subr.bf16.mxu1 %v1228_v56 }
 0x437   : > { %v3269_v6 = vpop.f32.mrf.mxu0 }
 0x438   : > { %v3929_v8 = vadd.f32 %v3269_v6, %v3261_v63 }
 0x439   : > { %v1027_v9 = vpop.f32.mrf.mxu0  ;;  %3289 = vmatpush3.bf16.msra.mxu1 %v1228_v56 }
 0x43a   : > { %v3931_v11 = vadd.f32 %v1027_v9, %v972_v0  ;;  %3294 = vmatprep.subr.bf16.mxu1 %v3476_v57 }
 0x443   : > { %v3284_v12 = vpop.f32.mrf.mxu0 }
 0x444   : > { %v1176_v14 = vmul.f32 0.5, %v3284_v12 }
 0x445   : > { %v1159_v13 = vpop.f32.mrf.mxu0 }
 0x446   : > { %v1174_v15 = vmul.f32 0.5, %v1159_v13  ;;  %v1180_v23 = vadd.f32 %v1176_v14, %v3854_v60 }
 0x447   : > { %v3285_v16 = vpop.f32.mrf.mxu0 }
 0x448   : > { %v1178_v17 = vadd.f32 %v1174_v15, %v3849_v58  ;;  %v1177_v19 = vmul.f32 0.5, %v3285_v16  ;;  %v1188_v25 = vsel %vm479_vm0, %v1180_v23, -inf }
 0x449   : > { %v1162_v18 = vpop.f32.mrf.mxu0 }
 0x44a   : > { %v1175_v21 = vmul.f32 0.5, %v1162_v18  ;;  %v1182_v22 = vsel %vm479_vm0, %v1178_v17, -inf  ;;  %v1181_v27 = vadd.f32 %v1177_v19, %v3867_v10 }
 0x44b   : > { %1183 = vmax.xlane.f32.xlu0 %v1182_v22 }
 0x44c   : > { %v1179_v24 = vadd.f32 %v1175_v21, %v3861_v3  ;;  %v1191_v28 = vsel %vm479_vm0, %v1181_v27, -inf }
 0x44e   : > { %v1185_v26 = vsel %vm479_vm0, %v1179_v24, -inf }
 0x44f   : > { %1189 = vmax.xlane.f32.xlu0 %v1188_v25  ;;  %1186 = vmax.xlane.f32.xlu1 %v1185_v26 }
 0x453   : > { %1192 = vmax.xlane.f32.xlu0 %v1191_v28  ;;  %v3308_v59 = vpop.f32.mrf.mxu0 }
 0x454   : > { %v1426_v1 = vmul.f32 0.5, %v3308_v59 }
 0x455   : > { %v1409_v61 = vpop.f32.mrf.mxu0 }
 0x456   : > { %v1424_v63 = vmul.f32 0.5, %v1409_v61  ;;  %v1430_v13 = vadd.f32 %v1426_v1, %v3854_v60 }
 0x457   : > { %v3309_v62 = vpop.f32.mrf.mxu0 }
 0x458   : > { %v1428_v4 = vadd.f32 %v1424_v63, %v3849_v58  ;;  %v1427_v9 = vmul.f32 0.5, %v3309_v62  ;;  %v1438_v15 = vsel %vm479_vm0, %v1430_v13, -inf }
 0x459   : > { %v1412_v0 = vpop.f32.mrf.mxu0 }
 0x45a   : > { %v1425_v6 = vmul.f32 0.5, %v1412_v0  ;;  %v1432_v12 = vsel %vm479_vm0, %v1428_v4, -inf  ;;  %v1431_v16 = vadd.f32 %v1427_v9, %v3867_v10 }
 0x45c   : > { %v1429_v14 = vadd.f32 %v1425_v6, %v3861_v3  ;;  %v1441_v18 = vsel %vm479_vm0, %v1431_v16, -inf }
 0x4d4   : > { %v1184_v29 = vpop.xlane.xlu0 %1183 }
 0x4d5   : > { %v1194_v31 = vsub.f32 %v1178_v17, %v1184_v29  ;;  %v1435_v17 = vsel %vm479_vm0, %v1429_v14, -inf }
 0x4d7   : > { %v1198_v33 = vmul.f32 1.442695, %v1194_v31 }
 0x4d8   : > { %v1187_v34 = vpop.xlane.xlu1 %1186  ;;  %v1190_v35 = vpop.xlane.xlu0 %1189 }
 0x4d9   : > { %3528 = vpow2.f32 %v1198_v33  ;;  %v1195_v36 = vsub.f32 %v1179_v24, %v1187_v34  ;;  %v1196_v38 = vsub.f32 %v1180_v23, %v1190_v35 }
 0x4db   : > { %v1200_v39 = vmul.f32 1.442695, %v1195_v36  ;;  %v1202_v40 = vmul.f32 1.442695, %v1196_v38 }
 0x4dc   : > { %v1193_v41 = vpop.xlane.xlu0 %1192 }
 0x4dd   : > { %3530 = vpow2.f32 %v1200_v39  ;;  %v1197_v42 = vsub.f32 %v1181_v27, %v1193_v41 }
 0x4de   : > { %3532 = vpow2.f32 %v1202_v40 }
 0x4df   : > { %v1204_v43 = vmul.f32 1.442695, %v1197_v42 }
 0x4e1   : > { %3534 = vpow2.f32 %v1204_v43  ;;  %v3477_v43 = vld [vmem:[%s4392_s4 + $0x30] sm:$0xff]  }
 0x4e6   : > { %v3941_v44 = vpop.eup %3528 }
 0x4e7   : > { %v1206_v45 = vsel %vm479_vm0, %v3941_v44, 0.0 }
 0x4e8   : > { %1207 = vadd.xlane.f32.xlu1 %v1206_v45 }
 0x4ea   : > { %v3945_v46 = vpop.eup %3530 }
 0x4eb   : > { %v3947_v47 = vpop.eup %3532  ;;  %v1209_v48 = vsel %vm479_vm0, %v3945_v46, 0.0 }
 0x4ec   : > { %1210 = vadd.xlane.f32.xlu0 %v1209_v48  ;;  %v1212_v54 = vsel %vm479_vm0, %v3947_v47, 0.0 }
 0x4ed   : > { %1213 = vadd.xlane.f32.xlu1 %v1212_v54 }
 0x4ee   : > { %v3953_v49 = vpop.eup %3534 }
 0x4ef   : > { %v1215_v50 = vsel %vm479_vm0, %v3953_v49, 0.0 }
 0x4f0   : > { %1216 = vadd.xlane.f32.xlu0 %v1215_v50 }
 0x4fe   : > { %1611 = vrot.lane.b32.xlu1 %v3815_v30, %s3675_s18 }
 0x502   : > { %1605 = vrot.lane.b32.xlu1 %v3817_v32, %s3676_s19 }
 0x506   : > { %1607 = vrot.lane.b32.xlu1 %v3815_v30, %s3676_s19  ;;  %1609 = vrot.lane.b32.xlu0 %v3817_v32, %s3675_s18 }
 0x525   : > { %1433 = vmax.xlane.f32.xlu0 %v1432_v12 }
 0x529   : > { %1439 = vmax.xlane.f32.xlu0 %v1438_v15 }
 0x52a   : > { %1436 = vmax.xlane.f32.xlu1 %v1435_v17 }
 0x52d   : > { %1442 = vmax.xlane.f32.xlu0 %v1441_v18 }
 0x571   : > { %v1208_v19 = vpop.xlane.xlu1 %1207 }
 0x572   : > { %3536 = vrcp.f32 %v1208_v19 }
 0x575   : > { %v1211_v21 = vpop.xlane.xlu0 %1210 }
 0x576   : > { %v1214_v22 = vpop.xlane.xlu1 %1213  ;;  %3538 = vrcp.f32 %v1211_v21 }
 0x577   : > { %3540 = vrcp.f32 %v1214_v22 }
 0x579   : > { %v1217_v23 = vpop.xlane.xlu0 %1216 }
 0x57a   : > { %v1612_v24 = vpop.permute.xlu1 %1611  ;;  %3542 = vrcp.f32 %v1217_v23 }
 0x57b   : > { %v1623_v25 = vsel %vm620_vm1, %v1612_v24, 0  ;;  %3434 = vmatprep.subr.msk.bf16.mxu0 %vm620_vm1, %v1612_v24 }
 0x57c   : > { %3327 = vmatpush3.bf16.xpose.msra.mxu0 %v1623_v25 }
 0x57d   : > { %v1610_v26 = vpop.permute.xlu0 %1609 }
 0x57e   : > { %v1606_v27 = vpop.permute.xlu1 %1605  ;;  %3435 = vmatprep.subr.msk.bf16.mxu0 %vm620_vm1, %v1610_v26  ;;  %v1620_v31 = vsel %vm620_vm1, %v1610_v26, 0 }
 0x57f   : > { %3330 = vmatprep.mubr.msk.bf16.mxu0 %vm620_vm1, %v1606_v27  ;;  %v3537_v28 = vpop.eup %3536 }
 0x580   : > { %v1222_v33 = vmul.f32 %v3537_v28, %v3941_v44 }
 0x582   : > { %v1608_v41 = vpop.permute.xlu1 %1607 }
 0x583   : > { %v3539_v29 = vpop.eup %3538 }
 0x584   : > { %3329 = vmatpush3.bf16.xpose.msra.mxu0 %v1620_v31  ;;  %v1223_v34 = vmul.f32 %v3539_v29, %v3945_v46  ;;  %v3541_v35 = vpop.eup %3540 }
 0x585   : > { %v1224_v39 = vmul.f32 %v3541_v35, %v3947_v47 }
 0x586   : > { %v1226_v36 = vpack.c.bf16 %v1223_v34, %v1222_v33 }
 0x587   : > { %v3543_v38 = vpop.eup %3542 }
 0x588   : > { %3290 = vmatprep.mubr.msk.bf16.mxu1 %vm479_vm0, %v1226_v36  ;;  %v1225_v40 = vmul.f32 %v3543_v38, %v3953_v49 }
 0x58a   : > { %v1227_v42 = vpack.c.bf16 %v1225_v40, %v1224_v39 }
 0x58b   : > { %3331 = vmatmul.mubr.msk.bf16.vlgmr.msra.gmra.mxu0 %vm620_vm1, %v1608_v41 }
 0x58c   : > { %3291 = vmatmul.mubr.msk.bf16.vlgmr.msra.gmra.mxu1 %vm479_vm0, %v1227_v42 }
 0x58d   : > { %3295 = vmatpush3.bf16.msra.mxu1 %v3476_v57  ;;  %3298 = vmatprep.mubr.msk.bf16.mxu1 %vm479_vm0, %v3782_v7 }
 0x58e   : > { %3296 = vmatprep.subr.bf16.mxu1 %v3477_v43 }
 0x591   : > { %3297 = vmatpush3.bf16.msra.mxu1 %v3477_v43 }
 0x594   : > { %3299 = vmatmul.mubr.msk.bf16.vlgmr.msra.gmra.mxu1 %vm479_vm0, %v3801_v20 }
 0x5ae   : > { %v1434_v44 = vpop.xlane.xlu0 %1433 }
 0x5af   : > { %v1444_v45 = vsub.f32 %v1428_v4, %v1434_v44 }
 0x5b1   : > { %v1448_v46 = vmul.f32 1.442695, %v1444_v45 }
 0x5b2   : > { %v1440_v47 = vpop.xlane.xlu0 %1439 }
 0x5b3   : > { %3544 = vpow2.f32 %v1448_v46  ;;  %v1437_v48 = vpop.xlane.xlu1 %1436  ;;  %v1446_v54 = vsub.f32 %v1430_v13, %v1440_v47 }
 0x5b4   : > { %v1445_v49 = vsub.f32 %v1429_v14, %v1437_v48  ;;  %v3478_v48 = vld [vmem:[%s4392_s4 + $0x48] sm:$0xff]  }
 0x5b5   : > { %v1452_v50 = vmul.f32 1.442695, %v1446_v54 }
 0x5b6   : > { %v1450_v37 = vmul.f32 1.442695, %v1445_v49  ;;  %v1443_v51 = vpop.xlane.xlu0 %1442 }
 0x5b7   : > { %3546 = vpow2.f32 %v1452_v50  ;;  %v1447_v52 = vsub.f32 %v1431_v16, %v1443_v51 }
 0x5b8   : > { %3548 = vpow2.f32 %v1450_v37 }
 0x5b9   : > { %v1454_v53 = vmul.f32 1.442695, %v1447_v52 }
 0x5bb   : > { %3550 = vpow2.f32 %v1454_v53 }
 0x5c0   : > { %v3991_v55 = vpop.eup %3544 }
 0x5c1   : > { %v1456_v56 = vsel %vm479_vm0, %v3991_v55, 0.0 }
 0x5c2   : > { %1457 = vadd.xlane.f32.xlu1 %v1456_v56 }
 0x5c4   : > { %v3995_v57 = vpop.eup %3546 }
 0x5c5   : > { %v3997_v59 = vpop.eup %3548  ;;  %v1462_v61 = vsel %vm479_vm0, %v3995_v57, 0.0 }
 0x5c6   : > { %v1459_v62 = vsel %vm479_vm0, %v3997_v59, 0.0  ;;  %1463 = vadd.xlane.f32.xlu1 %v1462_v61 }
 0x5c7   : > { %1460 = vadd.xlane.f32.xlu0 %v1459_v62 }
 0x5c8   : > { %v4003_v63 = vpop.eup %3550 }
 0x5c9   : > { %v1465_v0 = vsel %vm479_vm0, %v4003_v63, 0.0 }
 0x5cb   : > { %1466 = vadd.xlane.f32.xlu0 %v1465_v0 }
 0x5d7   : > { %1861 = vrot.lane.b32.xlu1 %v3815_v30, %s3677_s26 }
 0x5db   : > { %1855 = vrot.lane.b32.xlu1 %v3817_v32, %s3678_s27 }
 0x5df   : > { %1857 = vrot.lane.b32.xlu1 %v3815_v30, %s3678_s27 }
 0x5e1   : > { %1859 = vrot.lane.b32.xlu0 %v3817_v32, %s3677_s26 }
 0x64b   : > { %v3332_v1 = vpop.f32.mrf.mxu0  ;;  %v1458_v4 = vpop.xlane.xlu1 %1457 }
 0x64c   : > { %v3292_v6 = vpop.f32.mrf.mxu1  ;;  %v1676_v13 = vmul.f32 0.5, %v3332_v1  ;;  %3552 = vrcp.f32 %v1458_v4 }
 0x64d   : > { %v4012_v9 = vadd.f32 %v3292_v6, %v3925_v2  ;;  %v1659_v12 = vpop.f32.mrf.mxu0 }
 0x64e   : > { %v1674_v14 = vmul.f32 0.5, %v1659_v12  ;;  %v1270_v15 = vpop.f32.mrf.mxu1 }
 0x64f   : > { %v4015_v16 = vadd.f32 %v1270_v15, %v3927_v5  ;;  %v3333_v17 = vpop.f32.mrf.mxu0  ;;  %v1464_v18 = vpop.xlane.xlu1 %1463  ;;  %v4026_v5 = vadd.f32 %v1676_v13, %v3854_v60 }
 0x650   : > { %v1461_v19 = vpop.xlane.xlu0 %1460  ;;  %v3293_v21 = vpop.f32.mrf.mxu1  ;;  %v4018_v22 = vadd.f32 %v1674_v14, %v3849_v58  ;;  %v1677_v24 = vmul.f32 0.5, %v3333_v17 }
 0x651   : > { %3554 = vrcp.f32 %v1461_v19  ;;  %v4021_v23 = vadd.f32 %v3293_v21, %v3929_v8  ;;  %v1662_v2 = vpop.f32.mrf.mxu0  ;;  %v1688_v36 = vsel %vm479_vm0, %v4026_v5, -inf }
 0x652   : > { %v1675_v25 = vmul.f32 0.5, %v1662_v2  ;;  %v1273_v26 = vpop.f32.mrf.mxu1  ;;  %v1682_v27 = vsel %vm479_vm0, %v4018_v22, -inf  ;;  %3556 = vrcp.f32 %v1464_v18 }
 0x653   : > { %v4029_v28 = vadd.f32 %v1273_v26, %v3931_v11  ;;  %1683 = vmax.xlane.f32.xlu0 %v1682_v27  ;;  %v1862_v29 = vpop.permute.xlu1 %1861  ;;  %v1681_v11 = vadd.f32 %v1677_v24, %v3867_v10 }
 0x654   : > { %v1873_v31 = vsel %vm620_vm1, %v1862_v29, 0  ;;  %v1467_v8 = vpop.xlane.xlu0 %1466  ;;  %3436 = vmatprep.subr.msk.bf16.mxu0 %vm620_vm1, %v1862_v29  ;;  %v1679_v33 = vadd.f32 %v1675_v25, %v3861_v3  ;;  %v3300_v34 = vpop.f32.mrf.mxu1 }
 0x655   : > { %3558 = vrcp.f32 %v1467_v8  ;;  %3351 = vmatpush3.bf16.xpose.msra.mxu0 %v1873_v31  ;;  %v1691_v43 = vsel %vm479_vm0, %v1681_v11, -inf }
 0x656   : > { %v1685_v35 = vsel %vm479_vm0, %v1679_v33, -inf  ;;  %v1340_v38 = vpop.f32.mrf.mxu1 }
 0x657   : > { %1686 = vmax.xlane.f32.xlu1 %v1685_v35  ;;  %1689 = vmax.xlane.f32.xlu0 %v1688_v36  ;;  %v1856_v39 = vpop.permute.xlu1 %1855 }
 0x658   : > { %v1860_v40 = vpop.permute.xlu0 %1859  ;;  %3354 = vmatprep.mubr.msk.bf16.mxu0 %vm620_vm1, %v1856_v39  ;;  %v3301_v41 = vpop.f32.mrf.mxu1 }
 0x659   : > { %3437 = vmatprep.subr.msk.bf16.mxu0 %vm620_vm1, %v1860_v40  ;;  %v1479_v42 = vpack.c.bf16 %v3301_v41, %v3300_v34  ;;  %v3553_v46 = vpop.eup %3552  ;;  %v1870_v47 = vsel %vm620_vm1, %v1860_v40, 0 }
 0x65a   : > { %v1343_v44 = vpop.f32.mrf.mxu1  ;;  %v1472_v49 = vmul.f32 %v3553_v46, %v3991_v55  ;;  %v3479_v55 = vld [vmem:[%s4392_s4 + $0x40] sm:$0xff]  }
 0x65b   : > { %1692 = vmax.xlane.f32.xlu0 %v1691_v43  ;;  %3310 = vmatprep.subr.bf16.mxu1 %v1479_v42  ;;  %v1478_v45 = vpack.c.bf16 %v1343_v44, %v1340_v38  ;;  %v1858_v53 = vpop.permute.xlu1 %1857 }
 0x65c   : > { %3311 = vmatpush3.bf16.msra.mxu1 %v1479_v42 }
 0x65d   : > { %3353 = vmatpush3.bf16.xpose.msra.mxu0 %v1870_v47  ;;  %3312 = vmatprep.subr.bf16.mxu1 %v1478_v45 }
 0x65e   : > { %v3555_v54 = vpop.eup %3554 }
 0x65f   : > { %v1473_v50 = vmul.f32 %v3555_v54, %v3997_v59  ;;  %v3557_v37 = vpop.eup %3556 }
 0x660   : > { %3313 = vmatpush3.bf16.msra.mxu1 %v1478_v45  ;;  %v1474_v56 = vmul.f32 %v3557_v37, %v3995_v57 }
 0x661   : > { %v1476_v51 = vpack.c.bf16 %v1473_v50, %v1472_v49  ;;  %3318 = vmatprep.subr.bf16.mxu1 %v3478_v48  ;;  %v3480_v50 = vld [vmem:[%s4392_s4 + $0x58] sm:$0xff]  }
 0x662   : > { %v3559_v52 = vpop.eup %3558 }
 0x663   : > { %3314 = vmatprep.mubr.msk.bf16.mxu1 %vm479_vm0, %v1476_v51  ;;  %v1475_v61 = vmul.f32 %v3559_v52, %v4003_v63 }
 0x664   : > { %3355 = vmatmul.mubr.msk.bf16.vlgmr.msra.gmra.mxu0 %vm620_vm1, %v1858_v53 }
 0x665   : > { %v1477_v62 = vpack.c.bf16 %v1475_v61, %v1474_v56 }
 0x667   : > { %3315 = vmatmul.mubr.msk.bf16.vlgmr.msra.gmra.mxu1 %vm479_vm0, %v1477_v62 }
 0x668   : > { %3319 = vmatpush3.bf16.msra.mxu1 %v3478_v48  ;;  %3322 = vmatprep.mubr.msk.bf16.mxu1 %vm479_vm0, %v3782_v7 }
 0x669   : > { %3320 = vmatprep.subr.bf16.mxu1 %v3479_v55 }
 0x66c   : > { %3321 = vmatpush3.bf16.msra.mxu1 %v3479_v55 }
 0x66f   : > { %3323 = vmatmul.mubr.msk.bf16.vlgmr.msra.gmra.mxu1 %vm479_vm0, %v3801_v20 }
 0x6dc   : > { %v1684_v57 = vpop.xlane.xlu0 %1683 }
 0x6dd   : > { %v1694_v59 = vsub.f32 %v4018_v22, %v1684_v57 }
 0x6df   : > { %v1698_v63 = vmul.f32 1.442695, %v1694_v59 }
 0x6e0   : > { %v1687_v0 = vpop.xlane.xlu1 %1686  ;;  %v1690_v1 = vpop.xlane.xlu0 %1689 }
 0x6e1   : > { %3560 = vpow2.f32 %v1698_v63  ;;  %v1695_v4 = vsub.f32 %v1679_v33, %v1687_v0  ;;  %v1696_v6 = vsub.f32 %v4026_v5, %v1690_v1 }
 0x6e3   : > { %v1700_v12 = vmul.f32 1.442695, %v1695_v4  ;;  %v1702_v13 = vmul.f32 1.442695, %v1696_v6 }
 0x6e4   : > { %v1693_v14 = vpop.xlane.xlu0 %1692 }
 0x6e5   : > { %3562 = vpow2.f32 %v1700_v12  ;;  %v1697_v15 = vsub.f32 %v1681_v11, %v1693_v14 }
 0x6e6   : > { %3564 = vpow2.f32 %v1702_v13 }
 0x6e7   : > { %v1704_v17 = vmul.f32 1.442695, %v1697_v15 }
 0x6e9   : > { %3566 = vpow2.f32 %v1704_v17  ;;  %v3481_v17 = vld [vmem:[%s4392_s4 + $0x50] sm:$0xff]  }
 0x6ee   : > { %v4061_v18 = vpop.eup %3560 }
 0x6ef   : > { %v1706_v19 = vsel %vm479_vm0, %v4061_v18, 0.0 }
 0x6f0   : > { %1707 = vadd.xlane.f32.xlu1 %v1706_v19 }
 0x6f2   : > { %v4065_v21 = vpop.eup %3562 }
 0x6f3   : > { %v4067_v22 = vpop.eup %3564  ;;  %v1709_v2 = vsel %vm479_vm0, %v4065_v21, 0.0 }
 0x6f4   : > { %1710 = vadd.xlane.f32.xlu0 %v1709_v2  ;;  %v1712_v24 = vsel %vm479_vm0, %v4067_v22, 0.0 }
 0x6f5   : > { %1713 = vadd.xlane.f32.xlu1 %v1712_v24 }
 0x6f6   : > { %v4073_v25 = vpop.eup %3566 }
 0x6f7   : > { %v1715_v26 = vsel %vm479_vm0, %v4073_v25, 0.0 }
 0x6f8   : > { %1716 = vadd.xlane.f32.xlu0 %v1715_v26 }
 0x706   : > { %2111 = vrot.lane.b32.xlu1 %v3815_v30, %s3679_s15 }
 0x70a   : > { %2105 = vrot.lane.b32.xlu1 %v3817_v32, %s3680_s17 }
 0x70e   : > { %2107 = vrot.lane.b32.xlu1 %v3815_v30, %s3680_s17  ;;  %2109 = vrot.lane.b32.xlu0 %v3817_v32, %s3679_s15  ;;  %s3684_s15 = smov 32  }
 0x724   : > { %v3356_v27 = vpop.f32.mrf.mxu0 }
 0x725   : > { %v1926_v8 = vmul.f32 0.5, %v3356_v27 }
 0x726   : > { %v1909_v5 = vpop.f32.mrf.mxu0 }
 0x727   : > { %v3316_v29 = vpop.f32.mrf.mxu1  ;;  %v1924_v31 = vmul.f32 0.5, %v1909_v5 }
 0x728   : > { %v4082_v33 = vadd.f32 %v3316_v29, %v4012_v9  ;;  %v3357_v34 = vpop.f32.mrf.mxu0  ;;  %v4096_v9 = vadd.f32 %v1926_v8, %v3854_v60 }
 0x729   : > { %v1520_v35 = vpop.f32.mrf.mxu1  ;;  %v4085_v36 = vadd.f32 %v1924_v31, %v3849_v58  ;;  %v1927_v42 = vmul.f32 0.5, %v3357_v34 }
 0x72a   : > { %v4088_v38 = vadd.f32 %v1520_v35, %v4015_v16  ;;  %v1912_v11 = vpop.f32.mrf.mxu0  ;;  %v1938_v47 = vsel %vm479_vm0, %v4096_v9, -inf }
 0x72b   : > { %v3317_v39 = vpop.f32.mrf.mxu1  ;;  %v1925_v40 = vmul.f32 0.5, %v1912_v11  ;;  %v1932_v41 = vsel %vm479_vm0, %v4085_v36, -inf }
 0x72c   : > { %v4093_v43 = vadd.f32 %v3317_v39, %v4021_v23  ;;  %v4109_v23 = vadd.f32 %v1927_v42, %v3867_v10 }
 0x72d   : > { %v1523_v44 = vpop.f32.mrf.mxu1  ;;  %1933 = vmax.xlane.f32.xlu0 %v1932_v41  ;;  %v4099_v58 = vadd.f32 %v1925_v40, %v3861_v3 }
 0x72e   : > { %v4102_v16 = vadd.f32 %v1523_v44, %v4029_v28  ;;  %v1941_v3 = vsel %vm479_vm0, %v4109_v23, -inf }
 0x72f   : > { %v1935_v45 = vsel %vm479_vm0, %v4099_v58, -inf  ;;  %v3324_v46 = vpop.f32.mrf.mxu1 }
 0x731   : > { %1939 = vmax.xlane.f32.xlu0 %v1938_v47  ;;  %v1590_v60 = vpop.f32.mrf.mxu1 }
 0x732   : > { %1936 = vmax.xlane.f32.xlu1 %v1935_v45 }
 0x733   : > { %v3325_v48 = vpop.f32.mrf.mxu1 }
 0x734   : > { %v1729_v54 = vpack.c.bf16 %v3325_v48, %v3324_v46 }
 0x735   : > { %1942 = vmax.xlane.f32.xlu0 %v1941_v3  ;;  %v1593_v28 = vpop.f32.mrf.mxu1 }
 0x736   : > { %3334 = vmatprep.subr.bf16.mxu1 %v1729_v54  ;;  %v1728_v49 = vpack.c.bf16 %v1593_v28, %v1590_v60 }
 0x737   : > { %3335 = vmatpush3.bf16.msra.mxu1 %v1729_v54 }
 0x738   : > { %3336 = vmatprep.subr.bf16.mxu1 %v1728_v49 }
 0x73b   : > { %3337 = vmatpush3.bf16.msra.mxu1 %v1728_v49 }
 0x73c   : > { %3342 = vmatprep.subr.bf16.mxu1 %v3480_v50 }
 0x779   : > { %v1708_v10 = vpop.xlane.xlu1 %1707 }
 0x77a   : > { %3568 = vrcp.f32 %v1708_v10 }
 0x77d   : > { %v1711_v37 = vpop.xlane.xlu0 %1710 }
 0x77e   : > { %v1714_v51 = vpop.xlane.xlu1 %1713  ;;  %3570 = vrcp.f32 %v1711_v37 }
 0x77f   : > { %3572 = vrcp.f32 %v1714_v51  ;;  %v4181_v51 = vld [vmem:[%s4398_s10 + $0x10] sm:$0xff] }
 0x781   : > { %v1717_v52 = vpop.xlane.xlu0 %1716 }
 0x782   : > { %v2112_v53 = vpop.permute.xlu1 %2111  ;;  %3574 = vrcp.f32 %v1717_v52 }
 0x783   : > { %v2123_v56 = vsel %vm620_vm1, %v2112_v53, 0  ;;  %3438 = vmatprep.subr.msk.bf16.mxu0 %vm620_vm1, %v2112_v53 }
 0x784   : > { %3375 = vmatpush3.bf16.xpose.msra.mxu0 %v2123_v56 }
 0x785   : > { %v2110_v61 = vpop.permute.xlu0 %2109 }
 0x786   : > { %v2106_v62 = vpop.permute.xlu1 %2105  ;;  %3439 = vmatprep.subr.msk.bf16.mxu0 %vm620_vm1, %v2110_v61  ;;  %v2120_v59 = vsel %vm620_vm1, %v2110_v61, 0 }
 0x787   : > { %3378 = vmatprep.mubr.msk.bf16.mxu0 %vm620_vm1, %v2106_v62  ;;  %v3569_v55 = vpop.eup %3568  ;;  %v4194_v62 = vld [vmem:[%s4398_s10 + $0x8] sm:$0xff] }
 0x788   : > { %v1722_v63 = vmul.f32 %v3569_v55, %v4061_v18 }
 0x78a   : > { %v2108_v14 = vpop.permute.xlu1 %2107 }
 0x78b   : > { %v3571_v57 = vpop.eup %3570 }
 0x78c   : > { %3377 = vmatpush3.bf16.xpose.msra.mxu0 %v2120_v59  ;;  %v1723_v0 = vmul.f32 %v3571_v57, %v4065_v21  ;;  %v3573_v1 = vpop.eup %3572 }
 0x78d   : > { %v1724_v12 = vmul.f32 %v3573_v1, %v4067_v22 }
 0x78e   : > { %v1726_v4 = vpack.c.bf16 %v1723_v0, %v1722_v63  ;;  %v4203_v0 = vld [vmem:[%s4398_s10 + $0x18] sm:$0xff] }
 0x78f   : > { %v3575_v6 = vpop.eup %3574 }
 0x790   : > { %3338 = vmatprep.mubr.msk.bf16.mxu1 %vm479_vm0, %v1726_v4  ;;  %v1725_v13 = vmul.f32 %v3575_v6, %v4073_v25 }
 0x792   : > { %v1727_v15 = vpack.c.bf16 %v1725_v13, %v1724_v12 }
 0x793   : > { %3379 = vmatmul.mubr.msk.bf16.vlgmr.msra.gmra.mxu0 %vm620_vm1, %v2108_v14 }
 0x794   : > { %3339 = vmatmul.mubr.msk.bf16.vlgmr.msra.gmra.mxu1 %vm479_vm0, %v1727_v15 }
 0x795   : > { %3343 = vmatpush3.bf16.msra.mxu1 %v3480_v50  ;;  %3346 = vmatprep.mubr.msk.bf16.mxu1 %vm479_vm0, %v3782_v7 }
 0x796   : > { %3344 = vmatprep.subr.bf16.mxu1 %v3481_v17 }
 0x799   : > { %3345 = vmatpush3.bf16.msra.mxu1 %v3481_v17 }
 0x79c   : > { %3347 = vmatmul.mubr.msk.bf16.vlgmr.msra.gmra.mxu1 %vm479_vm0, %v3801_v20 }
 0x7b6   : > { %v1934_v18 = vpop.xlane.xlu0 %1933 }
 0x7b7   : > { %v1944_v19 = vsub.f32 %v4085_v36, %v1934_v18 }
 0x7b9   : > { %v1948_v21 = vmul.f32 1.442695, %v1944_v19 }
 0x7ba   : > { %v1940_v22 = vpop.xlane.xlu0 %1939 }
 0x7bb   : > { %3576 = vpow2.f32 %v1948_v21  ;;  %v1937_v2 = vpop.xlane.xlu1 %1936  ;;  %v1946_v24 = vsub.f32 %v4096_v9, %v1940_v22  ;;  %v3482_v21 = vld [vmem:[%s4392_s4 + $0x68] sm:$0xff]  }
 0x7bc   : > { %v1945_v25 = vsub.f32 %v4099_v58, %v1937_v2 }
 0x7bd   : > { %v1952_v26 = vmul.f32 1.442695, %v1946_v24 }
 0x7be   : > { %v1950_v27 = vmul.f32 1.442695, %v1945_v25  ;;  %v1943_v5 = vpop.xlane.xlu0 %1942 }
 0x7bf   : > { %3578 = vpow2.f32 %v1952_v26  ;;  %v1947_v29 = vsub.f32 %v4109_v23, %v1943_v5 }
 0x7c0   : > { %3580 = vpow2.f32 %v1950_v27 }
 0x7c1   : > { %v1954_v31 = vmul.f32 1.442695, %v1947_v29 }
 0x7c3   : > { %3582 = vpow2.f32 %v1954_v31 }
 0x7c8   : > { %v4139_v8 = vpop.eup %3576 }
 0x7c9   : > { %v1956_v34 = vsel %vm479_vm0, %v4139_v8, 0.0 }
 0x7ca   : > { %1957 = vadd.xlane.f32.xlu1 %v1956_v34 }
 0x7cc   : > { %v4143_v35 = vpop.eup %3578 }
 0x7cd   : > { %v4145_v36 = vpop.eup %3580  ;;  %v1962_v11 = vsel %vm479_vm0, %v4143_v35, 0.0 }
 0x7ce   : > { %v1959_v39 = vsel %vm479_vm0, %v4145_v36, 0.0  ;;  %1963 = vadd.xlane.f32.xlu1 %v1962_v11 }
 0x7cf   : > { %1960 = vadd.xlane.f32.xlu0 %v1959_v39 }
 0x7d0   : > { %v4151_v40 = vpop.eup %3582 }
 0x7d1   : > { %v1965_v41 = vsel %vm479_vm0, %v4151_v40, 0.0 }
 0x7d3   : > { %1966 = vadd.xlane.f32.xlu0 %v1965_v41 }
 0x7df   : > { %2361 = vrot.lane.b32.xlu1 %v3815_v30, %s3681_s23 }
 0x7e3   : > { %2355 = vrot.lane.b32.xlu1 %v3817_v32, %s3682_s24 }
 0x7e7   : > { %2357 = vrot.lane.b32.xlu1 %v3815_v30, %s3682_s24  ;;  %s3107_s24 = sshll.u32 %s4402_s25, 4 }
 0x7e9   : > { %2359 = vrot.lane.b32.xlu0 %v3817_v32, %s3681_s23  ;;  %v4168_v32 = vld [vmem:[%s4398_s10] sm:$0xff] }
 0x853   : > { %v3380_v42 = vpop.f32.mrf.mxu0  ;;  %v1958_v9 = vpop.xlane.xlu1 %1957 }
 0x854   : > { %v3340_v44 = vpop.f32.mrf.mxu1  ;;  %v2176_v46 = vmul.f32 0.5, %v3380_v42  ;;  %3584 = vrcp.f32 %v1958_v9 }
 0x855   : > { %v4160_v58 = vadd.f32 %v3340_v44, %v4082_v33  ;;  %v2159_v45 = vpop.f32.mrf.mxu0 }
 0x856   : > { %v2174_v47 = vmul.f32 0.5, %v2159_v45  ;;  %v1770_v23 = vpop.f32.mrf.mxu1  ;;  %v4184_v52 = vadd.f32 %v4181_v51, %v2176_v46 }
 0x857   : > { %v4163_v60 = vadd.f32 %v1770_v23, %v4088_v38  ;;  %v3381_v48 = vpop.f32.mrf.mxu0  ;;  %v1964_v3 = vpop.xlane.xlu1 %1963 }
 0x858   : > { %v1961_v54 = vpop.xlane.xlu0 %1960  ;;  %v3341_v30 = vpop.f32.mrf.mxu1  ;;  %v4171_v33 = vadd.f32 %v4168_v32, %v2174_v47  ;;  %v2177_v50 = vmul.f32 0.5, %v3381_v48  ;;  %v2188_v59 = vsel %vm479_vm0, %v4184_v52, -inf }
 0x859   : > { %3586 = vrcp.f32 %v1961_v54  ;;  %v4174_v28 = vadd.f32 %v3341_v30, %v4093_v43  ;;  %v2162_v49 = vpop.f32.mrf.mxu0 }
 0x85a   : > { %v2175_v38 = vmul.f32 0.5, %v2162_v49  ;;  %v1773_v10 = vpop.f32.mrf.mxu1  ;;  %v2182_v37 = vsel %vm479_vm0, %v4171_v33, -inf  ;;  %3588 = vrcp.f32 %v1964_v3  ;;  %v2181_v1 = vadd.f32 %v4203_v0, %v2177_v50 }
 0x85b   : > { %v4187_v53 = vadd.f32 %v1773_v10, %v4102_v16  ;;  %2183 = vmax.xlane.f32.xlu0 %v2182_v37  ;;  %v2362_v43 = vpop.permute.xlu1 %2361 }
 0x85c   : > { %v2373_v56 = vsel %vm620_vm1, %v2362_v43, 0  ;;  %v1967_v61 = vpop.xlane.xlu0 %1966  ;;  %3440 = vmatprep.subr.msk.bf16.mxu0 %vm620_vm1, %v2362_v43  ;;  %v2179_v55 = vadd.f32 %v4194_v62, %v2175_v38  ;;  %v3348_v57 = vpop.f32.mrf.mxu1  ;;  %v2191_v14 = vsel %vm479_vm0, %v2181_v1, -inf }
 0x85d   : > { %3590 = vrcp.f32 %v1967_v61  ;;  %3399 = vmatpush3.bf16.xpose.msra.mxu0 %v2373_v56 }
 0x85e   : > { %v2185_v16 = vsel %vm479_vm0, %v2179_v55, -inf  ;;  %v1840_v63 = vpop.f32.mrf.mxu1 }
 0x85f   : > { %2186 = vmax.xlane.f32.xlu1 %v2185_v16  ;;  %2189 = vmax.xlane.f32.xlu0 %v2188_v59  ;;  %v2356_v4 = vpop.permute.xlu1 %2355 }
 0x860   : > { %v2360_v6 = vpop.permute.xlu0 %2359  ;;  %3402 = vmatprep.mubr.msk.bf16.mxu0 %vm620_vm1, %v2356_v4  ;;  %v3349_v12 = vpop.f32.mrf.mxu1 }
 0x861   : > { %3441 = vmatprep.subr.msk.bf16.mxu0 %vm620_vm1, %v2360_v6  ;;  %v1979_v13 = vpack.c.bf16 %v3349_v12, %v3348_v57  ;;  %v3585_v18 = vpop.eup %3584  ;;  %v2370_v19 = vsel %vm620_vm1, %v2360_v6, 0 }
 0x862   : > { %v1843_v15 = vpop.f32.mrf.mxu1  ;;  %v1972_v2 = vmul.f32 %v3585_v18, %v4139_v8  ;;  %v3483_v8 = vld [vmem:[%s4392_s4 + $0x60] sm:$0xff]  }
 0x863   : > { %2192 = vmax.xlane.f32.xlu0 %v2191_v14  ;;  %3358 = vmatprep.subr.bf16.mxu1 %v1979_v13  ;;  %v1978_v17 = vpack.c.bf16 %v1843_v15, %v1840_v63  ;;  %v2358_v5 = vpop.permute.xlu1 %2357 }
 0x864   : > { %3359 = vmatpush3.bf16.msra.mxu1 %v1979_v13 }
 0x865   : > { %3401 = vmatpush3.bf16.xpose.msra.mxu0 %v2370_v19  ;;  %3360 = vmatprep.subr.bf16.mxu1 %v1978_v17 }
 0x866   : > { %v3587_v22 = vpop.eup %3586 }
 0x867   : > { %v1973_v24 = vmul.f32 %v3587_v22, %v4145_v36  ;;  %v3589_v25 = vpop.eup %3588 }
 0x868   : > { %3361 = vmatpush3.bf16.msra.mxu1 %v1978_v17  ;;  %v1974_v29 = vmul.f32 %v3589_v25, %v4143_v35 }
 0x869   : > { %v1976_v26 = vpack.c.bf16 %v1973_v24, %v1972_v2  ;;  %3366 = vmatprep.subr.bf16.mxu1 %v3482_v21 }
 0x86a   : > { %v3591_v27 = vpop.eup %3590 }
 0x86b   : > { %3362 = vmatprep.mubr.msk.bf16.mxu1 %vm479_vm0, %v1976_v26  ;;  %v1975_v31 = vmul.f32 %v3591_v27, %v4151_v40 }
 0x86c   : > { %3403 = vmatmul.mubr.msk.bf16.vlgmr.msra.gmra.mxu0 %vm620_vm1, %v2358_v5 }
 0x86d   : > { %v1977_v34 = vpack.c.bf16 %v1975_v31, %v1974_v29 }
 0x86f   : > { %3363 = vmatmul.mubr.msk.bf16.vlgmr.msra.gmra.mxu1 %vm479_vm0, %v1977_v34 }
 0x870   : > { %3367 = vmatpush3.bf16.msra.mxu1 %v3482_v21  ;;  %3370 = vmatprep.mubr.msk.bf16.mxu1 %vm479_vm0, %v3782_v7 }
 0x871   : > { %3368 = vmatprep.subr.bf16.mxu1 %v3483_v8 }
 0x874   : > { %3369 = vmatpush3.bf16.msra.mxu1 %v3483_v8 }
 0x877   : > { %3371 = vmatmul.mubr.msk.bf16.vlgmr.msra.gmra.mxu1 %vm479_vm0, %v3801_v20 }
 0x8e4   : > { %v2184_v35 = vpop.xlane.xlu0 %2183 }
 0x8e5   : > { %v2194_v36 = vsub.f32 %v4171_v33, %v2184_v35 }
 0x8e7   : > { %v2198_v11 = vmul.f32 1.442695, %v2194_v36 }
 0x8e8   : > { %v2187_v39 = vpop.xlane.xlu1 %2186  ;;  %v2190_v40 = vpop.xlane.xlu0 %2189 }
 0x8e9   : > { %3592 = vpow2.f32 %v2198_v11  ;;  %v2195_v41 = vsub.f32 %v2179_v55, %v2187_v39  ;;  %v2196_v42 = vsub.f32 %v4184_v52, %v2190_v40  ;;  %v3485_v39 = vld [vmem:[%s4392_s4 + $0x70] sm:$0xff]  }
 0x8eb   : > { %v2200_v9 = vmul.f32 1.442695, %v2195_v41  ;;  %v2202_v44 = vmul.f32 1.442695, %v2196_v42 }
 0x8ec   : > { %v2193_v45 = vpop.xlane.xlu0 %2192 }
 0x8ed   : > { %3594 = vpow2.f32 %v2200_v9  ;;  %v2197_v46 = vsub.f32 %v2181_v1, %v2193_v45 }
 0x8ee   : > { %3596 = vpow2.f32 %v2202_v44 }
 0x8ef   : > { %v2204_v47 = vmul.f32 1.442695, %v2197_v46 }
 0x8f1   : > { %3598 = vpow2.f32 %v2204_v47 }
 0x8f6   : > { %v3593_v23 = vpop.eup %3592 }
 0x8f7   : > { %v2206_v48 = vsel %vm479_vm0, %v3593_v23, 0.0 }
 0x8f8   : > { %2207 = vadd.xlane.f32.xlu1 %v2206_v48 }
 0x8fa   : > { %v3595_v3 = vpop.eup %3594 }
 0x8fb   : > { %v4230_v54 = vpop.eup %3596  ;;  %v2209_v30 = vsel %vm479_vm0, %v3595_v3, 0.0 }
 0x8fc   : > { %2210 = vadd.xlane.f32.xlu0 %v2209_v30  ;;  %v2212_v33 = vsel %vm479_vm0, %v4230_v54, 0.0 }
 0x8fd   : > { %2213 = vadd.xlane.f32.xlu1 %v2212_v33 }
 0x8fe   : > { %v3599_v49 = vpop.eup %3598 }
 0x8ff   : > { %v2215_v50 = vsel %vm479_vm0, %v3599_v49, 0.0 }
 0x900   : > { %2216 = vadd.xlane.f32.xlu0 %v2215_v50 }
 0x92c   : > { %v3404_v38 = vpop.f32.mrf.mxu0 }
 0x92d   : > { %v2426_v37 = vmul.f32 0.5, %v3404_v38 }
 0x92e   : > { %v2409_v10 = vpop.f32.mrf.mxu0 }
 0x92f   : > { %v3364_v52 = vpop.f32.mrf.mxu1  ;;  %v2424_v43 = vmul.f32 0.5, %v2409_v10  ;;  %v2430_v12 = vadd.f32 %v4181_v51, %v2426_v37 }
 0x930   : > { %v4237_v56 = vadd.f32 %v3364_v52, %v4160_v58  ;;  %v3405_v61 = vpop.f32.mrf.mxu0 }
 0x931   : > { %v2020_v55 = vpop.f32.mrf.mxu1  ;;  %v2428_v57 = vadd.f32 %v4168_v32, %v2424_v43  ;;  %v2427_v63 = vmul.f32 0.5, %v3405_v61 }
 0x932   : > { %v4241_v16 = vadd.f32 %v2020_v55, %v4163_v60  ;;  %v2412_v59 = vpop.f32.mrf.mxu0  ;;  %v2438_v60 = vsel %vm479_vm0, %v2430_v12, -inf }
 0x933   : > { %v3365_v1 = vpop.f32.mrf.mxu1  ;;  %v2425_v4 = vmul.f32 0.5, %v2412_v59  ;;  %v2432_v6 = vsel %vm479_vm0, %v2428_v57, -inf  ;;  %v2431_v17 = vadd.f32 %v4203_v0, %v2427_v63 }
 0x934   : > { %v4246_v13 = vadd.f32 %v3365_v1, %v4174_v28  ;;  %2433 = vmax.xlane.f32.xlu1 %v2432_v6 }
 0x935   : > { %v2023_v58 = vpop.f32.mrf.mxu1  ;;  %v2429_v14 = vadd.f32 %v4194_v62, %v2425_v4  ;;  %v2441_v28 = vsel %vm479_vm0, %v2431_v17, -inf }
 0x936   : > { %v4250_v32 = vadd.f32 %v2023_v58, %v4187_v53  ;;  %v3484_v53 = vld [vmem:[%s4392_s4 + $0x78] sm:$0xff]  }
 0x937   : > { %v2435_v15 = vsel %vm479_vm0, %v2429_v14, -inf  ;;  %v3372_v18 = vpop.f32.mrf.mxu1 }
 0x938   : > { %2439 = vmax.xlane.f32.xlu1 %v2438_v60  ;;  %2436 = vmax.xlane.f32.xlu0 %v2435_v15 }
 0x939   : > { %v2090_v51 = vpop.f32.mrf.mxu1 }
 0x93b   : > { %v3373_v19 = vpop.f32.mrf.mxu1 }
 0x93c   : > { %2442 = vmax.xlane.f32.xlu0 %v2441_v28  ;;  %v2229_v21 = vpack.c.bf16 %v3373_v19, %v3372_v18 }
 0x93d   : > { %v2093_v22 = vpop.f32.mrf.mxu1 }
 0x93e   : > { %3382 = vmatprep.subr.bf16.mxu1 %v2229_v21  ;;  %v2228_v62 = vpack.c.bf16 %v2093_v22, %v2090_v51 }
 0x93f   : > { %3383 = vmatpush3.bf16.msra.mxu1 %v2229_v21 }
 0x940   : > { %3384 = vmatprep.subr.bf16.mxu1 %v2228_v62 }
 0x943   : > { %3385 = vmatpush3.bf16.msra.mxu1 %v2228_v62 }
 0x944   : > { %3390 = vmatprep.subr.bf16.mxu1 %v3484_v53 }
 0x981   : > { %v2208_v0 = vpop.xlane.xlu1 %2207 }
 0x982   : > { %3600 = vrcp.f32 %v2208_v0 }
 0x985   : > { %v2211_v2 = vpop.xlane.xlu0 %2210 }
 0x986   : > { %v2214_v24 = vpop.xlane.xlu1 %2213  ;;  %3602 = vrcp.f32 %v2211_v2  ;;  %v3090_v2 = vld [vmem:[%s4393_s5] ss:$0 sm:$0xff] }
 0x987   : > { %3604 = vrcp.f32 %v2214_v24 }
 0x989   : > { %v2217_v25 = vpop.xlane.xlu0 %2216 }
 0x98a   : > { %3606 = vrcp.f32 %v2217_v25 }
 0x98f   : > { %v3601_v26 = vpop.eup %3600 }
 0x990   : > { %v2222_v5 = vmul.f32 %v3601_v26, %v3593_v23 }
 0x993   : > { %v3603_v27 = vpop.eup %3602 }
 0x994   : > { %v2223_v29 = vmul.f32 %v3603_v27, %v3595_v3  ;;  %v3605_v31 = vpop.eup %3604 }
 0x995   : > { %v2224_v35 = vmul.f32 %v3605_v31, %v4230_v54 }
 0x996   : > { %v2226_v34 = vpack.c.bf16 %v2223_v29, %v2222_v5 }
 0x997   : > { %v3607_v8 = vpop.eup %3606 }
 0x998   : > { %3386 = vmatprep.mubr.msk.bf16.mxu1 %vm479_vm0, %v2226_v34  ;;  %v2225_v36 = vmul.f32 %v3607_v8, %v3599_v49  ;;  %v3652_v8 = vld [vmem:[%s3771_s13] sm:$0xff] }
 0x99a   : > { %v2227_v11 = vpack.c.bf16 %v2225_v36, %v2224_v35 }
 0x99c   : > { %3387 = vmatmul.mubr.msk.bf16.vlgmr.msra.gmra.mxu1 %vm479_vm0, %v2227_v11 }
 0x99d   : > { %3391 = vmatpush3.bf16.msra.mxu1 %v3484_v53  ;;  %3394 = vmatprep.mubr.msk.bf16.mxu1 %vm479_vm0, %v3782_v7 }
 0x99e   : > { %3392 = vmatprep.subr.bf16.mxu1 %v3485_v39 }
 0x9a1   : > { %3393 = vmatpush3.bf16.msra.mxu1 %v3485_v39 }
 0x9a4   : > { %3395 = vmatmul.mubr.msk.bf16.vlgmr.msra.gmra.mxu1 %vm479_vm0, %v3801_v20 }
 0x9bd   : > { %v2434_v40 = vpop.xlane.xlu1 %2433 }
 0x9be   : > { %v2444_v41 = vsub.f32 %v2428_v57, %v2434_v40  ;;  %v3653_v40 = vld [vmem:[%s3771_s13 + $0x10] sm:$0xff] }
 0x9c0   : > { %v2448_v42 = vmul.f32 1.442695, %v2444_v41 }
 0x9c1   : > { %v2440_v9 = vpop.xlane.xlu1 %2439  ;;  %v2437_v44 = vpop.xlane.xlu0 %2436 }
 0x9c2   : > { %3608 = vpow2.f32 %v2448_v42  ;;  %v2446_v45 = vsub.f32 %v2430_v12, %v2440_v9  ;;  %v2445_v46 = vsub.f32 %v2429_v14, %v2437_v44  ;;  %v3654_v42 = vld [vmem:[%s3771_s13 + $0x8] sm:$0xff] }
 0x9c4   : > { %v2452_v47 = vmul.f32 1.442695, %v2446_v45  ;;  %v2450_v23 = vmul.f32 1.442695, %v2445_v46  ;;  %v3655_v46 = vld [vmem:[%s3771_s13 + $0x18] sm:$0xff]  ;;  %s4316_s13 = scalar_lea.vmem %s4400_s12, %s3107_s24 }
 0x9c5   : > { %v2443_v48 = vpop.xlane.xlu0 %2442 }
 0x9c6   : > { %3610 = vpow2.f32 %v2452_v47  ;;  %v2447_v3 = vsub.f32 %v2431_v17, %v2443_v48 }
 0x9c7   : > { %3612 = vpow2.f32 %v2450_v23 }
 0x9c8   : > { %v2454_v7 = vmul.f32 1.442695, %v2447_v3 }
 0x9ca   : > { %3614 = vpow2.f32 %v2454_v7 }
 0x9cf   : > { %v3609_v54 = vpop.eup %3608 }
 0x9d0   : > { %v2456_v30 = vsel %vm479_vm0, %v3609_v54, 0.0 }
 0x9d1   : > { %2457 = vadd.xlane.f32.xlu1 %v2456_v30 }
 0x9d3   : > { %v3611_v20 = vpop.eup %3610 }
 0x9d4   : > { %v3613_v33 = vpop.eup %3612  ;;  %v2462_v49 = vsel %vm479_vm0, %v3611_v20, 0.0 }
 0x9d5   : > { %2463 = vadd.xlane.f32.xlu1 %v2462_v49  ;;  %v2459_v50 = vsel %vm479_vm0, %v3613_v33, 0.0 }
 0x9d6   : > { %2460 = vadd.xlane.f32.xlu0 %v2459_v50 }
 0x9d7   : > { %v3615_v38 = vpop.eup %3614 }
 0x9d8   : > { %v2465_v10 = vsel %vm479_vm0, %v3615_v38, 0.0 }
 0x9da   : > { %2466 = vadd.xlane.f32.xlu0 %v2465_v10 }
 0xa5a   : > { %v2458_v37 = vpop.xlane.xlu1 %2457 }
 0xa5b   : > { %3616 = vrcp.f32 %v2458_v37 }
 0xa5c   : > { %v3388_v52 = vpop.f32.mrf.mxu1 }
 0xa5d   : > { %v2287_v43 = vadd.f32 %v3388_v52, %v4237_v56 }
 0xa5e   : > { %v2270_v61 = vpop.f32.mrf.mxu1  ;;  %v2464_v57 = vpop.xlane.xlu1 %2463 }
 0xa5f   : > { %v2285_v55 = vadd.f32 %v2270_v61, %v4241_v16  ;;  %v2461_v59 = vpop.xlane.xlu0 %2460 }
 0xa60   : > { %3618 = vrcp.f32 %v2461_v59  ;;  %v3389_v63 = vpop.f32.mrf.mxu1 }
 0xa61   : > { %v2288_v1 = vadd.f32 %v3389_v63, %v4246_v13  ;;  %3620 = vrcp.f32 %v2464_v57 }
 0xa62   : > { %v2273_v4 = vpop.f32.mrf.mxu1 }
 0xa63   : > { %v2286_v6 = vadd.f32 %v2273_v4, %v4250_v32  ;;  %v2467_v12 = vpop.xlane.xlu0 %2466  ;;  %v3488_v4 = vld [vmem:[%s4396_s8 + $0x14] ss:$8 sps:$4 sm:$0xff]  }
 0xa64   : > { %3622 = vrcp.f32 %v2467_v12  ;;  %v3396_v58 = vpop.f32.mrf.mxu1  ;;  %v3491_v12 = vld [vmem:[%s4396_s8 + $0x4] ss:$8 sps:$4 sm:$0xff]  }
 0xa66   : > { %v2340_v14 = vpop.f32.mrf.mxu1 }
 0xa68   : > { %v3397_v60 = vpop.f32.mrf.mxu1  ;;  %v3617_v17 = vpop.eup %3616 }
 0xa69   : > { %v2479_v56 = vpack.c.bf16 %v3397_v60, %v3396_v58  ;;  %v2472_v51 = vmul.f32 %v3617_v17, %v3609_v54  ;;  %v3489_v58 = vld [vmem:[%s4396_s8] ss:$8 sps:$4 sm:$0xff]  }
 0xa6a   : > { %v2343_v15 = vpop.f32.mrf.mxu1 }
 0xa6b   : > { %v2478_v18 = vpack.c.bf16 %v2343_v15, %v2340_v14  ;;  %3406 = vmatprep.subr.bf16.mxu1 %v2479_v56  ;;  %v3683_v14 = vmov 0  }
 0xa6c   : > { %3407 = vmatpush3.bf16.msra.mxu1 %v2479_v56 }
 0xa6d   : > { %v3619_v16 = vpop.eup %3618  ;;  %3408 = vmatprep.subr.bf16.mxu1 %v2478_v18 }
 0xa6e   : > { %v2473_v28 = vmul.f32 %v3619_v16, %v3613_v33  ;;  %v3621_v13 = vpop.eup %3620 }
 0xa6f   : > { %v2474_v32 = vmul.f32 %v3621_v13, %v3611_v20 }
 0xa70   : > { %3409 = vmatpush3.bf16.msra.mxu1 %v2478_v18  ;;  %v2476_v19 = vpack.c.bf16 %v2473_v28, %v2472_v51 }
 0xa71   : > { %v3623_v21 = vpop.eup %3622  ;;  %2689 = vmatprep.subr.bf16.mxu1 %v3488_v4 }
 0xa72   : > { %3410 = vmatprep.mubr.msk.bf16.mxu1 %vm479_vm0, %v2476_v19  ;;  %v2475_v22 = vmul.f32 %v3623_v21, %v3615_v38 }
 0xa74   : > { %v2477_v62 = vpack.c.bf16 %v2475_v22, %v2474_v32 }
 0xa76   : > { %3411 = vmatmul.mubr.msk.bf16.vlgmr.msra.gmra.mxu1 %vm479_vm0, %v2477_v62  ;;  %v3091_v62 = vld [vmem:[%s4394_s6] ss:$0 sm:$0xff] }
 0xa77   : > { %2709 = vmatprep.mubr.bf16.mxu1 %v3683_v14 }
 0xb36   : > { %v3412_v53 = vpop.f32.mrf.mxu1 }
 0xb37   : > { %v2537_v0 = vadd.f32 %v3412_v53, %v2287_v43 }
 0xb38   : > { %v2520_v24 = vpop.f32.mrf.mxu1 }
 0xb39   : > { %v2535_v25 = vadd.f32 %v2520_v24, %v2285_v55  ;;  %v2548_v27 = vadd.f32 %v3090_v2, %v2537_v0  ;;  %v3092_v0 = vld [vmem:[%s4395_s7] ss:$0 sm:$0xff] }
 0xb3a   : > { %v3413_v26 = vpop.f32.mrf.mxu1 }
 0xb3b   : > { %v2546_v5 = vadd.f32 %v3090_v2, %v2535_v25  ;;  %v2538_v29 = vadd.f32 %v3413_v26, %v2288_v1  ;;  %v2552_v41 = vadd.f32 %v3653_v40, %v2548_v27 }
 0xb3c   : > { %v2523_v31 = vpop.f32.mrf.mxu1 }
 0xb3d   : > { %v2536_v34 = vadd.f32 %v2523_v31, %v2286_v6  ;;  %v2550_v35 = vadd.f32 %v3652_v8, %v2546_v5  ;;  %v2549_v36 = vadd.f32 %v3090_v2, %v2538_v29  ;;  %v2562_v44 = vsel %vm479_vm0, %v2552_v41, 0.0  ;;  %v3486_v6 = vld [vmem:[%s4396_s8 + $0x10] ss:$8 sps:$4 sm:$0xff]  }
 0xb3e   : > { %2690 = vmatpush1.bf16.msra.mxu1 %v3486_v6 }
 0xb3f   : > { %v2547_v11 = vadd.f32 %v3090_v2, %v2536_v34  ;;  %v2556_v39 = vsel %vm479_vm0, %v2550_v35, 0.0  ;;  %v2553_v47 = vadd.f32 %v3655_v46, %v2549_v36  ;;  %2691 = vmatprep.subr.bf16.mxu1 %v3491_v12 }
 0xb40   : > { %2557 = vadd.xlane.f32.xlu1 %v2556_v39  ;;  %v3656_v39 = vld [vmem:[%s3776_s16] sm:$0xff] }
 0xb41   : > { %v2551_v9 = vadd.f32 %v3654_v42, %v2547_v11  ;;  %v2565_v23 = vsel %vm479_vm0, %v2553_v47, 0.0 }
 0xb42   : > { %2692 = vmatpush1.bf16.msra.mxu1 %v3489_v58 }
 0xb43   : > { %v2559_v45 = vsel %vm479_vm0, %v2551_v9, 0.0 }
 0xb44   : > { %2563 = vadd.xlane.f32.xlu1 %v2562_v44  ;;  %2560 = vadd.xlane.f32.xlu0 %v2559_v45  ;;  %v3658_v45 = vld [vmem:[%s3776_s16 + $0x18] sm:$0xff] }
 0xb48   : > { %2566 = vadd.xlane.f32.xlu0 %v2565_v23 }
 0xbc9   : > { %v2558_v48 = vpop.xlane.xlu1 %2557 }
 0xbca   : > { %v2569_v3 = vmul.f32 0.03125, %v2558_v48 }
 0xbcc   : > { %v2573_v7 = vsub.f32 %v2550_v35, %v2569_v3  ;;  %v2641_v3 = vlaneseq }
 0xbcd   : > { %v2564_v54 = vpop.xlane.xlu1 %2563  ;;  %v2561_v30 = vpop.xlane.xlu0 %2560 }
 0xbce   : > { %v2571_v20 = vmul.f32 0.03125, %v2564_v54  ;;  %v2570_v33 = vmul.f32 0.03125, %v2561_v30  ;;  %v2577_v49 = vmul.f32 %v2573_v7, %v2573_v7  ;;  %v2639_v30 = vld [vmem:[%s4397_s9] sm:$0x3] }
 0xbd0   : > { %v2575_v50 = vsub.f32 %v2552_v41, %v2571_v20  ;;  %v2574_v38 = vsub.f32 %v2551_v9, %v2570_v33  ;;  %v2581_v10 = vsel %vm479_vm0, %v2577_v49, 0.0  ;;  %v3657_v41 = vld [vmem:[%s3776_s16 + $0x8] sm:$0xff] }
 0xbd1   : > { %2582 = vadd.xlane.f32.xlu1 %v2581_v10  ;;  %v2567_v37 = vpop.xlane.xlu0 %2566 }
 0xbd2   : > { %v2572_v52 = vmul.f32 0.03125, %v2567_v37  ;;  %v2579_v43 = vmul.f32 %v2575_v50, %v2575_v50  ;;  %v2578_v61 = vmul.f32 %v2574_v38, %v2574_v38 }
 0xbd4   : > { %v2576_v55 = vsub.f32 %v2553_v47, %v2572_v52  ;;  %v2587_v57 = vsel %vm479_vm0, %v2579_v43, 0.0  ;;  %v2584_v59 = vsel %vm479_vm0, %v2578_v61, 0.0  ;;  %v3659_v47 = vld [vmem:[%s3776_s16 + $0x10] sm:$0xff] }
 0xbd5   : > { %2588 = vadd.xlane.f32.xlu1 %v2587_v57  ;;  %2585 = vadd.xlane.f32.xlu0 %v2584_v59 }
 0xbd6   : > { %v2580_v63 = vmul.f32 %v2576_v55, %v2576_v55 }
 0xbd8   : > { %v2590_v1 = vsel %vm479_vm0, %v2580_v63, 0.0 }
 0xbd9   : > { %2591 = vadd.xlane.f32.xlu0 %v2590_v1 }
 0xc5a   : > { %v2583_v60 = vpop.xlane.xlu1 %2582 }
 0xc5b   : > { %v2593_v56 = vmul.f32 0.03125, %v2583_v60  ;;  %v3492_v60 = vld [vmem:[%s4399_s11 + $0x18] sm:$0xff]  }
 0xc5c   : > { %3414 = vmatprep.subr.bf16.mxu0 %v3492_v60 }
 0xc5d   : > { %v2597_v15 = vadd.f32 1e-05, %v2593_v56  ;;  %3415 = vmatpush3.bf16.msra.mxu0 %v3492_v60 }
 0xc5e   : > { %v2589_v17 = vpop.xlane.xlu1 %2588  ;;  %v2586_v18 = vpop.xlane.xlu0 %2585 }
 0xc5f   : > { %3624 = vrsqrt.f32 %v2597_v15  ;;  %v2595_v16 = vmul.f32 0.03125, %v2589_v17  ;;  %v2594_v51 = vmul.f32 0.03125, %v2586_v18  ;;  %v3493_v15 = vld [vmem:[%s4399_s11 + $0x10] sm:$0xff]   ;;  %v3494_v17 = vld [vmem:[%s4399_s11 + $0x8] sm:$0xff]  }
 0xc60   : > { %3416 = vmatprep.subr.bf16.mxu0 %v3493_v15 }
 0xc61   : > { %v2599_v28 = vadd.f32 1e-05, %v2595_v16  ;;  %v2598_v13 = vadd.f32 1e-05, %v2594_v51  ;;  %3417 = vmatpush3.bf16.msra.mxu0 %v3493_v15  ;;  %v3495_v51 = vld [vmem:[%s4399_s11] sm:$0xff]  }
 0xc62   : > { %v2592_v19 = vpop.xlane.xlu0 %2591  ;;  %3418 = vmatprep.subr.bf16.mxu0 %v3494_v17 }
 0xc63   : > { %3626 = vrsqrt.f32 %v2599_v28  ;;  %v2596_v21 = vmul.f32 0.03125, %v2592_v19 }
 0xc64   : > { %3628 = vrsqrt.f32 %v2598_v13 }
 0xc65   : > { %v2600_v32 = vadd.f32 1e-05, %v2596_v21  ;;  %3419 = vmatpush3.bf16.msra.mxu0 %v3494_v17 }
 0xc66   : > { %3420 = vmatprep.subr.bf16.mxu0 %v3495_v51 }
 0xc67   : > { %3630 = vrsqrt.f32 %v2600_v32 }
 0xc69   : > { %3421 = vmatpush3.bf16.msra.mxu0 %v3495_v51 }
 0xc6c   : > { %v3625_v22 = vpop.eup %3624 }
 0xc6d   : > { %v2605_v53 = vmul.f32 %v3625_v22, %v2573_v7  ;;  %v2642_v7 = vshrl.u32 %v2641_v3, 7 }
 0xc6f   : > { %v2615_v2 = vmul.f32 %v3091_v62, %v2605_v53  ;;  %v2647_v54 = vsub.s32 1, %v2642_v7  ;;  %v2643_v12 = vsub.s32 0, %v2642_v7 }
 0xc70   : > { %v3627_v24 = vpop.eup %3626 }
 0xc71   : > { %v3629_v25 = vpop.eup %3628  ;;  %v2625_v26 = vadd.f32 %v3092_v0, %v2615_v2  ;;  %v2607_v27 = vmul.f32 %v3627_v24, %v2575_v50  ;;  %v2648_v20 = vrot.slane %v2639_v30, %v2647_v54  ;;  %v2644_v58 = vrot.slane %v2639_v30, %v2643_v12 }
 0xc72   : > { %v2606_v5 = vmul.f32 %v3629_v25, %v2574_v38 }
 0xc73   : > { %2856 = vst.msk [vmem:[%s4316_s13] sm:$0xff] %vm479_vm0, %v2625_v26  ;;  %v2617_v29 = vmul.f32 %v3091_v62, %v2607_v27  ;;  %v2629_v40 = vadd.f32 %v3656_v39, %v2625_v26 }
 0xc74   : > { %v3631_v31 = vpop.eup %3630  ;;  %v2616_v34 = vmul.f32 %v3091_v62, %v2606_v5 }
 0xc75   : > { %v2608_v8 = vmul.f32 %v3631_v31, %v2576_v55  ;;  %v2627_v35 = vadd.f32 %v3092_v0, %v2617_v29 }
 0xc76   : > { %v2626_v36 = vadd.f32 %v3092_v0, %v2616_v34 }
 0xc77   : > { %v2618_v11 = vmul.f32 %v3091_v62, %v2608_v8  ;;  %2858 = vst.msk [vmem:[%s4316_s13 + $0x20] sm:$0xff] %vm479_vm0, %v2627_v35  ;;  %v2631_v23 = vadd.f32 %v3659_v47, %v2627_v35 }
 0xc78   : > { %v2630_v42 = vadd.f32 %v3657_v41, %v2626_v36  ;;  %2857 = vst.msk [vmem:[%s4316_s13 + $0x10] sm:$0xff] %vm479_vm0, %v2626_v36 }
 0xc79   : > { %v2628_v9 = vadd.f32 %v3092_v0, %v2618_v11 }
 0xc7a   : > { %v2633_v44 = vpack.c.bf16 %v2630_v42, %v2629_v40 }
 0xc7b   : > { %2859 = vst.msk [vmem:[%s4316_s13 + $0x30] sm:$0xff] %vm479_vm0, %v2628_v9  ;;  %v2632_v46 = vadd.f32 %v3658_v45, %v2628_v9 }
 0xc7c   : > { %3097 = vmatmul.mubr.msk.bf16.vlgmr.msra.gmra.mxu1 %vm479_vm0, %v2633_v44 }
 0xc7d   : > { %2719 = vmatprep.mubr.bf16.mxu1 %v3683_v14  ;;  %v2634_v48 = vpack.c.bf16 %v2632_v46, %v2631_v23 }
 0xc84   : > { %3098 = vmatmul.mubr.msk.bf16.gmra.mxu1 %vm479_vm0, %v2634_v48 }
 0xd3c   : > { %v2711_v33 = vpop.f32.mrf.mxu1 }
 0xd3d   : > { %v2712_v14 = vadd.f32 %v2711_v33, %v2644_v58 }
 0xd3e   : > { %v2713_v49 = vpop.f32.mrf.mxu1 }
 0xd3f   : > { %v2714_v50 = vadd.f32 %v2713_v49, %v2648_v20 }
 0xd40   : > { %v2715_v38 = vpop.f32.mrf.mxu1 }
 0xd41   : > { %v2731_v10 = vsel %vm2730_vm2, %v2714_v50, -inf  ;;  %v2716_v16 = vadd.f32 %v2715_v38, %v2644_v58 }
 0xd42   : > { %v2717_v37 = vpop.f32.mrf.mxu1  ;;  %2732 = vmax.xlane.f32.xlu1 %v2731_v10  ;;  %v3685_v10 = vmov 0.0  }
 0xd43   : > { %v2718_v52 = vadd.f32 %v2717_v37, %v2648_v20 }
 0xd44   : > { %v2721_v43 = vpop.f32.mrf.mxu1 }
 0xd45   : > { %v2734_v61 = vsel %vm2730_vm2, %v2718_v52, -inf  ;;  %v2722_v56 = vadd.f32 %v2721_v43, %v2644_v58 }
 0xd46   : > { %2735 = vmax.xlane.f32.xlu0 %v2734_v61  ;;  %v2723_v55 = vpop.f32.mrf.mxu1 }
 0xd47   : > { %v2724_v57 = vadd.f32 %v2723_v55, %v2648_v20 }
 0xd48   : > { %v2725_v59 = vpop.f32.mrf.mxu1 }
 0xd49   : > { %v2737_v63 = vsel %vm2730_vm2, %v2724_v57, -inf  ;;  %v2726_v18 = vadd.f32 %v2725_v59, %v2644_v58 }
 0xd4a   : > { %v2727_v1 = vpop.f32.mrf.mxu1  ;;  %2738 = vmax.xlane.f32.xlu1 %v2737_v63 }
 0xd4b   : > { %v2728_v4 = vadd.f32 %v2727_v1, %v2648_v20 }
 0xd4d   : > { %v2740_v6 = vsel %vm2730_vm2, %v2728_v4, -inf }
 0xd4e   : > { %2741 = vmax.xlane.f32.xlu0 %v2740_v6 }
 0xd5b   : > { %2864 = vrot.lane.b32.xlu1 %v2712_v14, %s3684_s15 }
 0xd5f   : > { %2868 = vrot.lane.b32.xlu1 %v2722_v56, %s3684_s15 }
 0xd63   : > { %2870 = vrot.lane.b32.xlu1 %v2726_v18, %s3684_s15 }
 0xd64   : > { %2866 = vrot.lane.b32.xlu0 %v2716_v16, %s3684_s15 }
 0xdcb   : > { %v2733_v28 = vpop.xlane.xlu1 %2732 }
 0xdcc   : > { %v2743_v13 = vsub.f32 %v2714_v50, %v2733_v28 }
 0xdce   : > { %v2747_v19 = vmul.f32 1.442695, %v2743_v13 }
 0xdcf   : > { %v2736_v21 = vpop.xlane.xlu0 %2735 }
 0xdd0   : > { %v2744_v32 = vsub.f32 %v2718_v52, %v2736_v21  ;;  %3632 = vpow2.f32 %v2747_v19 }
 0xdd2   : > { %v2749_v22 = vmul.f32 1.442695, %v2744_v32 }
 0xdd3   : > { %v2739_v62 = vpop.xlane.xlu1 %2738 }
 0xdd4   : > { %3634 = vpow2.f32 %v2749_v22  ;;  %v2745_v53 = vsub.f32 %v2724_v57, %v2739_v62 }
 0xdd6   : > { %v2751_v0 = vmul.f32 1.442695, %v2745_v53 }
 0xdd7   : > { %v2865_v2 = vpop.permute.xlu1 %2864  ;;  %v2742_v24 = vpop.xlane.xlu0 %2741 }
 0xdd8   : > { %2877 = vst.msk [vmem:[%s4316_s13] sm:$0xff] %vm2876_vm3, %v2865_v2  ;;  %v2746_v25 = vsub.f32 %v2728_v4, %v2742_v24  ;;  %3636 = vpow2.f32 %v2751_v0 }
 0xdd9   : > { %2878 = vst.msk [vmem:[%s4316_s13 + $0x8] sm:$0xff] %vm479_vm0, %v2865_v2 }
 0xdda   : > { %v2753_v26 = vmul.f32 1.442695, %v2746_v25 }
 0xddb   : > { %v2869_v27 = vpop.permute.xlu1 %2868  ;;  %v2867_v5 = vpop.permute.xlu0 %2866 }
 0xddc   : > { %3638 = vpow2.f32 %v2753_v26  ;;  %2879 = vst.msk [vmem:[%s4316_s13 + $0x10] sm:$0xff] %vm2876_vm3, %v2867_v5  ;;  %2881 = vst.msk [vmem:[%s4316_s13 + $0x20] sm:$0xff] %vm2876_vm3, %v2869_v27 }
 0xddd   : > { %2880 = vst.msk [vmem:[%s4316_s13 + $0x18] sm:$0xff] %vm479_vm0, %v2867_v5  ;;  %2882 = vst.msk [vmem:[%s4316_s13 + $0x28] sm:$0xff] %vm479_vm0, %v2869_v27  ;;  %v3633_v31 = vpop.eup %3632 }
 0xddf   : > { %v2871_v29 = vpop.permute.xlu1 %2870 }
 0xde0   : > { %2883 = vst.msk [vmem:[%s4316_s13 + $0x30] sm:$0xff] %vm2876_vm3, %v2871_v29 }
 0xde1   : > { %2884 = vst.msk [vmem:[%s4316_s13 + $0x38] sm:$0xff] %vm479_vm0, %v2871_v29  ;;  %v3635_v34 = vpop.eup %3634 }
 0xde2   : > { %v2755_v8 = vpack.c.bf16 %v3635_v34, %v3633_v31 }
 0xde4   : > { %3422 = vmatprep.mubr.msk.bf16.mxu0 %vm2730_vm2, %v2755_v8 }
 0xde5   : > { %v3637_v35 = vpop.eup %3636 }
 0xde9   : > { %v3639_v36 = vpop.eup %3638 }
 0xdea   : > { %v2756_v11 = vpack.c.bf16 %v3639_v36, %v3637_v35 }
 0xdec   : > { %3423 = vmatmul.mubr.msk.bf16.vlgmr.msra.gmra.mxu0 %vm2730_vm2, %v2756_v11 }
 0xeac   : > { %v3424_v39 = vpop.f32.mrf.mxu0 }
 0xead   : > { %v2846_v41 = vmax.f32 %v3424_v39, 1e-20 }
 0xeae   : > { %v2829_v40 = vpop.f32.mrf.mxu0 }
 0xeaf   : > { %v2844_v42 = vmax.f32 %v2829_v40, 1e-20 }
 0xeb0   : > { %v3425_v9 = vpop.f32.mrf.mxu0 }
 0xeb1   : > { %3640 = vrcp.f32 %v2844_v42  ;;  %v2847_v45 = vmax.f32 %v3425_v9, 1e-20 }
 0xeb2   : > { %v2832_v44 = vpop.f32.mrf.mxu0  ;;  %3642 = vrcp.f32 %v2846_v41 }
 0xeb3   : > { %v2845_v46 = vmax.f32 %v2832_v44, 1e-20 }
 0xeb5   : > { %3644 = vrcp.f32 %v2845_v46 }
 0xeb6   : > { %3646 = vrcp.f32 %v2847_v45 }
 0xebe   : > { %v3641_v47 = vpop.eup %3640 }
 0xebf   : > { %v2852_v23 = vmul.f32 %v3641_v47, %v3633_v31  ;;  %v3643_v48 = vpop.eup %3642 }
 0xec0   : > { %v2854_v7 = vmul.f32 %v3643_v48, %v3637_v35 }
 0xec1   : > { %2889 = vrot.lane.b32.xlu0 %v2852_v23, %s3684_s15 }
 0xec2   : > { %v3645_v3 = vpop.eup %3644 }
 0xec3   : > { %v2853_v54 = vmul.f32 %v3645_v3, %v3635_v34  ;;  %v3647_v30 = vpop.eup %3646 }
 0xec4   : > { %v2855_v20 = vmul.f32 %v3647_v30, %v3639_v36 }
 0xec5   : > { %2893 = vrot.lane.b32.xlu0 %v2854_v7, %s3684_s15  ;;  %2891 = vrot.lane.b32.xlu1 %v2853_v54, %s3684_s15 }
 0xec9   : > { %2895 = vrot.lane.b32.xlu1 %v2855_v20, %s3684_s15 }
 0xf33   : > { %v2890_v33 = vpop.permute.xlu0 %2889 }
 0xf34   : > { %2902 = vst.msk [vmem:[%s4316_s13 + $0x8] sm:$0xff] %vm2901_vm4, %v2890_v33 }
 0xf35   : > { %2907 = vst.msk [vmem:[%s4316_s13 + $0x8] sm:$0xff] %vm2906_vm5, %v3685_v10 }
 0xf37   : > { %v2892_v49 = vpop.permute.xlu1 %2891  ;;  %v2894_v50 = vpop.permute.xlu0 %2893 }
 0xf38   : > { %2903 = vst.msk [vmem:[%s4316_s13 + $0x18] sm:$0xff] %vm2901_vm4, %v2892_v49  ;;  %2904 = vst.msk [vmem:[%s4316_s13 + $0x28] sm:$0xff] %vm2901_vm4, %v2894_v50 }
 0xf39   : > { %2908 = vst.msk [vmem:[%s4316_s13 + $0x18] sm:$0xff] %vm2906_vm5, %v3685_v10  ;;  %2909 = vst.msk [vmem:[%s4316_s13 + $0x28] sm:$0xff] %vm2906_vm5, %v3685_v10 }
 0xf3b   : > { %v2896_v38 = vpop.permute.xlu1 %2895 }
 0xf3c   : > { %2905 = vst.msk [vmem:[%s4316_s13 + $0x38] sm:$0xff] %vm2901_vm4, %v2896_v38 }
 0xf3d   : > { %2910 = vst.msk [vmem:[%s4316_s13 + $0x38] sm:$0xff] %vm2906_vm5, %v3685_v10 }
 0xf3e PF: > { %s22_s21 = sadd.s32 1, %s3666_s21  }
 0xf3f   : > { %p19_p4 = scmp.ge.s32.totalorder %s22_s21, 4  }
 0xf41   :  { %21 = sbr.rel (!%p19_p4) target bundleno = 1 (0x1), region = 108 }

// kernel: _polygon_head_jit.9
= control target key start
LH: loop header
LB: loop body
LE: loop exit
PB: predicated region body
PF: predicated region fallthrough
CT: control target
= control target key end

     0   :  { %s1968_s0 = inlined_call_operand.vmem [shape: f32[64,32], index: 0, kind: input, shape index: {}]   ;;  %s1969_s1 = inlined_call_operand.vmem [shape: f32[64,32], index: 1, kind: input, shape index: {}]   ;;  %s1970_s2 = inlined_call_operand.vmem [shape: f32[64,2], index: 2, kind: input, shape index: {}]   ;;  %s1971_s3 = inlined_call_operand.vmem [shape: bf16[32,32], index: 3, kind: input, shape index: {}]   ;;  %s1972_s4 = inlined_call_operand.vmem [shape: f32[1,32], index: 4, kind: input, shape index: {}]   ;;  %s1973_s5 = inlined_call_operand.vmem [shape: f32[1,32], index: 5, kind: input, shape index: {}]   ;;  %s1974_s6 = inlined_call_operand.vmem [shape: f32[1,32], index: 6, kind: input, shape index: {}]   ;;  %s1975_s7 = inlined_call_operand.vmem [shape: bf16[32,64], index: 7, kind: input, shape index: {}]   ;;  %s1976_s8 = inlined_call_operand.vmem [shape: f32[1,64], index: 8, kind: input, shape index: {}]   ;;  %s1977_s9 = inlined_call_operand.vmem [shape: bf16[64,32], index: 9, kind: input, shape index: {}]   ;;  %s1978_s10 = inlined_call_operand.vmem [shape: f32[1,32], index: 10, kind: input, shape index: {}]   ;;  %s1979_s11 = inlined_call_operand.vmem [shape: f32[1,32], index: 11, kind: input, shape index: {}]   ;;  %s1980_s12 = inlined_call_operand.vmem [shape: f32[1,32], index: 12, kind: input, shape index: {}]   ;;  %s1981_s13 = inlined_call_operand.vmem [shape: bf16[32,32], index: 13, kind: input, shape index: {}]   ;;  %s1982_s14 = inlined_call_operand.vmem [shape: f32[1,32], index: 14, kind: input, shape index: {}]   ;;  %s1983_s15 = inlined_call_operand.vmem [shape: bf16[32,32], index: 15, kind: input, shape index: {}]   ;;  %s1984_s16 = inlined_call_operand.vmem [shape: f32[1,32], index: 16, kind: input, shape index: {}]   ;;  %s1985_s17 = inlined_call_operand.vmem [shape: bf16[32,2], index: 17, kind: input, shape index: {}]   ;;  %s1986_s18 = inlined_call_operand.vmem [shape: f32[1,2], index: 18, kind: input, shape index: {}]   ;;  %s1987_s19 = inlined_call_operand.vmem [shape: f32[64,128], index: 19, kind: output, shape index: {}]  }
   0x1   :  { %1989 = sst [smem:[#allocation2_spill]] %s1968_s0  ;;  %s1823_s0 = smov 0  }
   0x2   :  { %1990 = sst [smem:[#allocation3_spill]] %s1969_s1 }
   0x3   :  { %1991 = sst [smem:[#allocation4_spill]] %s1970_s2 }
   0x4   :  { %1992 = sst [smem:[#allocation5_spill]] %s1971_s3 }
   0x5 LB: > { %s1512_s30 = sadd.s32 4294967295, %s1719_s0   ;;  %p1516_p0 = scmp.ge.s32.totalorder %s1719_s0, 1  ;;  %s1719_s0 = sphi %s1823_s0, %s29_s0  }
   0x6   : > { %p560_p1 = scmp.lt.s32.totalorder %s1719_s0, 3 }
   0x8   : > { %p561_p2 = pnand %p1516_p0, %p560_p1 }
   0x9   : > { %s1993_s1 = sld [smem:[#allocation5_spill]] (!%p561_p2)  ;;  %s1517_s22 = sshll.u32 (!%p561_p2), %s1512_s30, 2 }
   0xa   : > { %564 = sbr.rel (%p561_p2) target bundleno = 2034 (0x7f2), region = 96  ;;  %p627_p3 = scmp.lt.s32.totalorder (!%p561_p2), %s1517_s22, 7 }
   0xb   : > { %s1994_s26 = sld [smem:[#allocation3_spill]] (!%p561_p2)  ;;  %s1721_s23 = smov (!%p561_p2), 32  }
   0xc   : > { %s1995_s30 = sld [smem:[#allocation2_spill]] (!%p561_p2) }
   0xd   : > { %s1996_s21 = sld [smem:[#allocation4_spill]] (!%p561_p2) }
   0xf   : > { %v1651_v0 = vld [vmem:[%s1993_s1 + $0x8] sm:$0xff]   ;;  %v1652_v1 = vld [vmem:[%s1993_s1] sm:$0xff]   ;;  %s1998_s22 = smov (!%p627_p3, %s1517_s22), 7  ;;  %vm684_vm0 = vcmask 261120   ;;  %v1655_v51 = vld [vmem:[%s1977_s9 + $0x18] sm:$0xff]   ;;  %vm937_vm1 = vcmask 523264  }
  0x10   : > { %1589 = vmatprep.subr.bf16.mxu0 %v1651_v0  ;;  %s1837_s24 = sshll.u32 %s1998_s22, 3  ;;  %v1525_v8 = vld [vmem:[%s1972_s4] ss:$0 sm:$0xff]  ;;  %v1653_v49 = vld [vmem:[%s1975_s7 + $0x8] sm:$0xff]   ;;  %vm1422_vm2 = vcmask 277760   ;;  %vm1427_vm3 = vcmask 1047824  }
  0x11   : > { %1590 = vmatpush3.bf16.msra.mxu0 %v1651_v0  ;;  %s636_s27 = scalar_lea.vmem %s1994_s26, %s1837_s24  ;;  %v1654_v50 = vld [vmem:[%s1975_s7] sm:$0xff]   ;;  %1597 = vmatprep.subr.bf16.mxu1 %v1653_v49  ;;  %s1916_s28 = scalar_lea.vmem %s1987_s19, %s1837_s24 }
  0x12   : > { %1591 = vmatprep.subr.bf16.mxu0 %v1652_v1  ;;  %v655_v2 = vld [vmem:[%s636_s27] sm:$0xff]  ;;  %v656_v3 = vld [vmem:[%s636_s27 + $0x8] sm:$0xff]  ;;  %v657_v4 = vld [vmem:[%s636_s27 + $0x10] sm:$0xff]  ;;  %s630_s20 = scalar_lea.vmem %s1995_s30, %s1837_s24  ;;  %1598 = vmatpush3.bf16.msra.mxu1 %v1653_v49 }
  0x13   : > { %v659_v5 = vpack.c.bf16 %v656_v3, %v655_v2  ;;  %v658_v6 = vld [vmem:[%s636_s27 + $0x18] sm:$0xff]  ;;  %v653_v10 = vld [vmem:[%s630_s20 + $0x10] sm:$0xff]  ;;  %v651_v13 = vld [vmem:[%s630_s20] sm:$0xff]  ;;  %1599 = vmatprep.subr.bf16.mxu1 %v1654_v50  ;;  %s642_s22 = scalar_lea.vmem %s1996_s21, %s1837_s24 }
  0x14   : > { %v660_v7 = vpack.c.bf16 %v658_v6, %v657_v4  ;;  %v654_v17 = vld [vmem:[%s630_s20 + $0x18] sm:$0xff]  ;;  %v652_v22 = vld [vmem:[%s630_s20 + $0x8] sm:$0xff]  ;;  %v1530_v2 = vld [vmem:[%s1973_s5] ss:$0 sm:$0xff] }
  0x15   : > { %1592 = vmatpush3.bf16.msra.mxu0 %v1652_v1  ;;  %1593 = vmatprep.mubr.msk.bf16.mxu0 %vm684_vm0, %v659_v5 }
  0x16   : > { %1600 = vmatpush3.bf16.msra.mxu1 %v1654_v50  ;;  %1605 = vmatprep.subr.bf16.mxu0 %v1655_v51 }
  0x18   : > { %1594 = vmatmul.mubr.msk.bf16.vlgmr.msra.gmra.mxu0 %vm684_vm0, %v660_v7  ;;  %v1531_v7 = vld [vmem:[%s1974_s6] ss:$0 sm:$0xff] }
  0x19   : > { %1606 = vmatpush3.bf16.msra.mxu0 %v1655_v51 }
  0xd8   : > { %v1595_v9 = vpop.f32.mrf.mxu0 }
  0xd9   : > { %v734_v11 = vadd.f32 %v1595_v9, %v1525_v8 }
  0xda   : > { %v725_v12 = vpop.f32.mrf.mxu0 }
  0xdb   : > { %v726_v14 = vadd.f32 %v1525_v8, %v725_v12  ;;  %v742_v15 = vadd.f32 %v734_v11, %v653_v10 }
  0xdc   : > { %v1596_v16 = vpop.f32.mrf.mxu0 }
  0xdd   : > { %v737_v18 = vadd.f32 %v1596_v16, %v1525_v8  ;;  %v752_v19 = vsel %vm684_vm0, %v742_v15, 0.0  ;;  %v740_v20 = vadd.f32 %v726_v14, %v651_v13 }
  0xde   : > { %v728_v21 = vpop.f32.mrf.mxu0  ;;  %753 = vadd.xlane.f32.xlu1 %v752_v19 }
  0xdf   : > { %v729_v23 = vadd.f32 %v1525_v8, %v728_v21  ;;  %v746_v24 = vsel %vm684_vm0, %v740_v20, 0.0  ;;  %v743_v25 = vadd.f32 %v737_v18, %v654_v17  ;;  %v1657_v21 = vld [vmem:[%s1977_s9 + $0x8] sm:$0xff]  }
  0xe0   : > { %747 = vadd.xlane.f32.xlu0 %v746_v24 }
  0xe1   : > { %v755_v26 = vsel %vm684_vm0, %v743_v25, 0.0  ;;  %v741_v27 = vadd.f32 %v729_v23, %v652_v22  ;;  %v1658_v22 = vld [vmem:[%s1977_s9] sm:$0xff]  }
  0xe2   : > { %756 = vadd.xlane.f32.xlu1 %v755_v26 }
  0xe3   : > { %v749_v28 = vsel %vm684_vm0, %v741_v27, 0.0 }
  0xe4   : > { %750 = vadd.xlane.f32.xlu0 %v749_v28 }
 0x167   : > { %v754_v29 = vpop.xlane.xlu1 %753 }
 0x168   : > { %v761_v30 = vmul.f32 0.03125, %v754_v29 }
 0x169   : > { %v748_v31 = vpop.xlane.xlu0 %747 }
 0x16a   : > { %v759_v32 = vmul.f32 0.03125, %v748_v31  ;;  %v765_v34 = vsub.f32 %v742_v15, %v761_v30 }
 0x16b   : > { %v757_v33 = vpop.xlane.xlu1 %756 }
 0x16c   : > { %v763_v35 = vsub.f32 %v740_v20, %v759_v32  ;;  %v762_v36 = vmul.f32 0.03125, %v757_v33  ;;  %v769_v43 = vmul.f32 %v765_v34, %v765_v34  ;;  %v1656_v20 = vld [vmem:[%s1977_s9 + $0x10] sm:$0xff]  }
 0x16d   : > { %v751_v37 = vpop.xlane.xlu0 %750  ;;  %1607 = vmatprep.subr.bf16.mxu0 %v1656_v20 }
 0x16e   : > { %v760_v38 = vmul.f32 0.03125, %v751_v37  ;;  %v767_v39 = vmul.f32 %v763_v35, %v763_v35  ;;  %v766_v40 = vsub.f32 %v743_v25, %v762_v36  ;;  %v777_v45 = vsel %vm684_vm0, %v769_v43, 0.0  ;;  %1608 = vmatpush3.bf16.msra.mxu0 %v1656_v20  ;;  %v1532_v25 = vld [vmem:[%s1976_s8] ss:$0 sm:$0xff] }
 0x16f   : > { %1609 = vmatprep.subr.bf16.mxu0 %v1657_v21  ;;  %v1543_v43 = vld [vmem:[%s1978_s10] ss:$0 sm:$0xff] }
 0x170   : > { %v764_v41 = vsub.f32 %v741_v27, %v760_v38  ;;  %v771_v42 = vsel %vm684_vm0, %v767_v39, 0.0  ;;  %v770_v47 = vmul.f32 %v766_v40, %v766_v40 }
 0x171   : > { %772 = vadd.xlane.f32.xlu0 %v771_v42 }
 0x172   : > { %v768_v44 = vmul.f32 %v764_v41, %v764_v41  ;;  %v780_v48 = vsel %vm684_vm0, %v770_v47, 0.0  ;;  %1610 = vmatpush3.bf16.msra.mxu0 %v1657_v21 }
 0x173   : > { %1611 = vmatprep.subr.bf16.mxu0 %v1658_v22 }
 0x174   : > { %v774_v46 = vsel %vm684_vm0, %v768_v44, 0.0 }
 0x175   : > { %778 = vadd.xlane.f32.xlu0 %v777_v45  ;;  %775 = vadd.xlane.f32.xlu1 %v774_v46 }
 0x176   : > { %1612 = vmatpush3.bf16.msra.mxu0 %v1658_v22 }
 0x179   : > { %781 = vadd.xlane.f32.xlu1 %v780_v48 }
 0x1fa   : > { %v773_v52 = vpop.xlane.xlu0 %772 }
 0x1fb   : > { %v783_v53 = vmul.f32 0.03125, %v773_v52 }
 0x1fd   : > { %v787_v54 = vadd.f32 1e-05, %v783_v53 }
 0x1fe   : > { %v776_v55 = vpop.xlane.xlu1 %775  ;;  %v779_v56 = vpop.xlane.xlu0 %778 }
 0x1ff   : > { %1665 = vrsqrt.f32 %v787_v54  ;;  %v784_v57 = vmul.f32 0.03125, %v776_v55  ;;  %v785_v58 = vmul.f32 0.03125, %v779_v56 }
 0x201   : > { %v788_v59 = vadd.f32 1e-05, %v784_v57  ;;  %v789_v60 = vadd.f32 1e-05, %v785_v58 }
 0x202   : > { %v782_v61 = vpop.xlane.xlu1 %781 }
 0x203   : > { %1667 = vrsqrt.f32 %v788_v59  ;;  %v786_v62 = vmul.f32 0.03125, %v782_v61 }
 0x204   : > { %1669 = vrsqrt.f32 %v789_v60 }
 0x205   : > { %v790_v63 = vadd.f32 1e-05, %v786_v62 }
 0x207   : > { %1671 = vrsqrt.f32 %v790_v63 }
 0x20c   : > { %v1666_v0 = vpop.eup %1665 }
 0x20d   : > { %v795_v1 = vmul.f32 %v1666_v0, %v763_v35 }
 0x20f   : > { %v805_v6 = vmul.f32 %v1530_v2, %v795_v1 }
 0x210   : > { %v1668_v3 = vpop.eup %1667 }
 0x211   : > { %v1670_v4 = vpop.eup %1669  ;;  %v796_v5 = vmul.f32 %v1668_v3, %v764_v41  ;;  %v815_v11 = vadd.f32 %v1531_v7, %v805_v6 }
 0x212   : > { %v797_v8 = vmul.f32 %v1670_v4, %v765_v34 }
 0x213   : > { %v806_v9 = vmul.f32 %v1530_v2, %v796_v5 }
 0x214   : > { %v1672_v10 = vpop.eup %1671  ;;  %v807_v14 = vmul.f32 %v1530_v2, %v797_v8 }
 0x215   : > { %v816_v12 = vadd.f32 %v1531_v7, %v806_v9  ;;  %v798_v13 = vmul.f32 %v1672_v10, %v766_v40 }
 0x216   : > { %v817_v17 = vadd.f32 %v1531_v7, %v807_v14 }
 0x217   : > { %v819_v15 = vpack.c.bf16 %v816_v12, %v815_v11  ;;  %v808_v16 = vmul.f32 %v1530_v2, %v798_v13 }
 0x219   : > { %1601 = vmatprep.mubr.msk.bf16.mxu1 %vm684_vm0, %v819_v15  ;;  %v818_v18 = vadd.f32 %v1531_v7, %v808_v16 }
 0x21b   : > { %v820_v19 = vpack.c.bf16 %v818_v18, %v817_v17 }
 0x21d   : > { %1602 = vmatmul.mubr.msk.bf16.vlgmr.msra.gmra.mxu1 %vm684_vm0, %v820_v19 }
 0x2dd   : > { %v1603_v23 = vpop.f32.mrf.mxu1 }
 0x2de   : > { %v893_v29 = vadd.f32 %v1603_v23, %v1532_v25 }
 0x2df   : > { %v884_v24 = vpop.f32.mrf.mxu1 }
 0x2e0   : > { %v885_v27 = vadd.f32 %v1532_v25, %v884_v24  ;;  %v901_v35 = vmax.f32 %v893_v29, 0.0 }
 0x2e1   : > { %v1604_v26 = vpop.f32.mrf.mxu1 }
 0x2e2   : > { %v896_v28 = vadd.f32 %v1604_v26, %v1532_v25  ;;  %v899_v33 = vmax.f32 %v885_v27, 0.0  ;;  %v1544_v26 = vld [vmem:[%s1979_s11] ss:$0 sm:$0xff] }
 0x2e3   : > { %v887_v30 = vpop.f32.mrf.mxu1 }
 0x2e4   : > { %v888_v31 = vadd.f32 %v1532_v25, %v887_v30  ;;  %v902_v32 = vmax.f32 %v896_v28, 0.0  ;;  %v1545_v28 = vld [vmem:[%s1980_s12] ss:$0 sm:$0xff] }
 0x2e6   : > { %v900_v34 = vmax.f32 %v888_v31, 0.0  ;;  %v904_v37 = vpack.c.bf16 %v902_v32, %v901_v35 }
 0x2e8   : > { %v903_v36 = vpack.c.bf16 %v900_v34, %v899_v33 }
 0x2ea   : > { %1613 = vmatprep.mubr.msk.bf16.mxu0 %vm937_vm1, %v903_v36 }
 0x2eb   : > { %1614 = vmatmul.mubr.msk.bf16.vlgmr.msra.gmra.mxu0 %vm937_vm1, %v904_v37 }
 0x3ab   : > { %v1615_v38 = vpop.f32.mrf.mxu0 }
 0x3ac   : > { %v995_v40 = vadd.f32 %v1615_v38, %v817_v17 }
 0x3ad   : > { %v978_v39 = vpop.f32.mrf.mxu0 }
 0x3ae   : > { %v993_v41 = vadd.f32 %v978_v39, %v815_v11  ;;  %v1006_v49 = vadd.f32 %v1543_v43, %v995_v40  ;;  %v1659_v11 = vld [vmem:[%s1981_s13 + $0x8] sm:$0xff]  }
 0x3af   : > { %v1616_v42 = vpop.f32.mrf.mxu0  ;;  %1617 = vmatprep.subr.bf16.mxu1 %v1659_v11 }
 0x3b0   : > { %v1004_v44 = vadd.f32 %v1543_v43, %v993_v41  ;;  %v996_v46 = vadd.f32 %v1616_v42, %v818_v18  ;;  %v1016_v51 = vsel %vm684_vm0, %v1006_v49, 0.0  ;;  %1618 = vmatpush3.bf16.msra.mxu1 %v1659_v11 }
 0x3b1   : > { %v981_v45 = vpop.f32.mrf.mxu0 }
 0x3b2   : > { %v994_v47 = vadd.f32 %v981_v45, %v816_v12  ;;  %v1010_v48 = vsel %vm684_vm0, %v1004_v44, 0.0  ;;  %v1007_v53 = vadd.f32 %v1543_v43, %v996_v46  ;;  %v1660_v12 = vld [vmem:[%s1981_s13] sm:$0xff]   ;;  %v1661_v45 = vld [vmem:[%s1983_s15 + $0x8] sm:$0xff]  }
 0x3b3   : > { %1011 = vadd.xlane.f32.xlu0 %v1010_v48  ;;  %1619 = vmatprep.subr.bf16.mxu1 %v1660_v12  ;;  %v1662_v46 = vld [vmem:[%s1983_s15] sm:$0xff]  }
 0x3b4   : > { %v1005_v50 = vadd.f32 %v1543_v43, %v994_v47  ;;  %v1019_v54 = vsel %vm684_vm0, %v1007_v53, 0.0  ;;  %1620 = vmatpush3.bf16.msra.mxu1 %v1660_v12 }
 0x3b5   : > { %1625 = vmatprep.subr.bf16.mxu1 %v1661_v45 }
 0x3b6   : > { %v1013_v52 = vsel %vm684_vm0, %v1005_v50, 0.0 }
 0x3b7   : > { %1017 = vadd.xlane.f32.xlu0 %v1016_v51  ;;  %1014 = vadd.xlane.f32.xlu1 %v1013_v52 }
 0x3bb   : > { %1020 = vadd.xlane.f32.xlu1 %v1019_v54 }
 0x43c   : > { %v1012_v55 = vpop.xlane.xlu0 %1011 }
 0x43d   : > { %v1022_v56 = vmul.f32 0.03125, %v1012_v55 }
 0x43f   : > { %v1026_v57 = vsub.f32 %v1004_v44, %v1022_v56 }
 0x440   : > { %v1018_v58 = vpop.xlane.xlu0 %1017  ;;  %v1015_v59 = vpop.xlane.xlu1 %1014 }
 0x441   : > { %v1024_v60 = vmul.f32 0.03125, %v1018_v58  ;;  %v1023_v61 = vmul.f32 0.03125, %v1015_v59  ;;  %v1030_v62 = vmul.f32 %v1026_v57, %v1026_v57 }
 0x443   : > { %v1028_v63 = vsub.f32 %v1006_v49, %v1024_v60  ;;  %v1027_v0 = vsub.f32 %v1005_v50, %v1023_v61  ;;  %v1034_v1 = vsel %vm684_vm0, %v1030_v62, 0.0  ;;  %v1546_v49 = vld [vmem:[%s1982_s14] ss:$0 sm:$0xff]  ;;  %v1663_v62 = vld [vmem:[%s1985_s17 + $0x8] sm:$0xff]  }
 0x444   : > { %1035 = vadd.xlane.f32.xlu0 %v1034_v1  ;;  %v1021_v2 = vpop.xlane.xlu1 %1020  ;;  %1633 = vmatprep.subr.bf16.mxu0 %v1663_v62 }
 0x445   : > { %v1025_v3 = vmul.f32 0.03125, %v1021_v2  ;;  %v1032_v4 = vmul.f32 %v1028_v63, %v1028_v63  ;;  %v1031_v5 = vmul.f32 %v1027_v0, %v1027_v0  ;;  %1634 = vmatpush3.bf16.msra.mxu0 %v1663_v62  ;;  %v1551_v2 = vld [vmem:[%s1984_s16] ss:$0 sm:$0xff] }
 0x447   : > { %v1029_v6 = vsub.f32 %v1007_v53, %v1025_v3  ;;  %v1040_v7 = vsel %vm684_vm0, %v1032_v4, 0.0  ;;  %v1037_v8 = vsel %vm684_vm0, %v1031_v5, 0.0 }
 0x448   : > { %1041 = vadd.xlane.f32.xlu0 %v1040_v7  ;;  %1038 = vadd.xlane.f32.xlu1 %v1037_v8 }
 0x449   : > { %v1033_v9 = vmul.f32 %v1029_v6, %v1029_v6 }
 0x44b   : > { %v1043_v10 = vsel %vm684_vm0, %v1033_v9, 0.0 }
 0x44c   : > { %1044 = vadd.xlane.f32.xlu1 %v1043_v10 }
 0x4cd   : > { %v1036_v13 = vpop.xlane.xlu0 %1035 }
 0x4ce   : > { %v1046_v14 = vmul.f32 0.03125, %v1036_v13 }
 0x4d0   : > { %v1050_v15 = vadd.f32 1e-05, %v1046_v14 }
 0x4d1   : > { %v1042_v16 = vpop.xlane.xlu0 %1041  ;;  %v1039_v17 = vpop.xlane.xlu1 %1038 }
 0x4d2   : > { %1673 = vrsqrt.f32 %v1050_v15  ;;  %v1048_v18 = vmul.f32 0.03125, %v1042_v16  ;;  %v1047_v19 = vmul.f32 0.03125, %v1039_v17  ;;  %v1332_v15 = vld [vmem:[%s642_s22 + $0x10] sm:$0xff]  ;;  %v1330_v16 = vld [vmem:[%s642_s22] sm:$0xff] }
 0x4d3   : > { %v1336_v17 = vmax.f32 %v1332_v15, 0.0 }
 0x4d4   : > { %v1052_v20 = vadd.f32 1e-05, %v1048_v18  ;;  %v1051_v21 = vadd.f32 1e-05, %v1047_v19  ;;  %v1333_v18 = vld [vmem:[%s642_s22 + $0x18] sm:$0xff]  ;;  %v1334_v19 = vmax.f32 %v1330_v16, 0.0 }
 0x4d5   : > { %v1045_v22 = vpop.xlane.xlu1 %1044 }
 0x4d6   : > { %1675 = vrsqrt.f32 %v1052_v20  ;;  %v1049_v23 = vmul.f32 0.03125, %v1045_v22  ;;  %v1331_v20 = vld [vmem:[%s642_s22 + $0x8] sm:$0xff]  ;;  %v1337_v22 = vmax.f32 %v1333_v18, 0.0 }
 0x4d7   : > { %1677 = vrsqrt.f32 %v1051_v21  ;;  %v1340_v21 = vmin.f32 %v1336_v17, 1.0 }
 0x4d8   : > { %v1053_v24 = vadd.f32 1e-05, %v1049_v23  ;;  %v1338_v23 = vmin.f32 %v1334_v19, 1.0 }
 0x4da   : > { %1679 = vrsqrt.f32 %v1053_v24  ;;  %v1335_v24 = vmax.f32 %v1331_v20, 0.0 }
 0x4df   : > { %v1674_v25 = vpop.eup %1673 }
 0x4e0   : > { %v1058_v27 = vmul.f32 %v1674_v25, %v1026_v57  ;;  %v1356_v25 = vsub.f32 1.0, %v1340_v21 }
 0x4e2   : > { %v1068_v29 = vmul.f32 %v1544_v26, %v1058_v27  ;;  %v1354_v27 = vsub.f32 1.0, %v1338_v23 }
 0x4e3   : > { %v1676_v30 = vpop.eup %1675 }
 0x4e4   : > { %v1678_v31 = vpop.eup %1677  ;;  %v1060_v32 = vmul.f32 %v1676_v30, %v1028_v63  ;;  %v1078_v33 = vadd.f32 %v1545_v28, %v1068_v29  ;;  %v1664_v63 = vld [vmem:[%s1985_s17] sm:$0xff]   ;;  %v1344_v29 = vmax.f32 %v1340_v21, 1e-05  ;;  %v1360_v30 = vmax.f32 %v1356_v25, 1e-05 }
 0x4e5   : > { %v1059_v34 = vmul.f32 %v1678_v31, %v1027_v0  ;;  %1635 = vmatprep.subr.bf16.mxu0 %v1664_v63 }
 0x4e6   : > { %1402 = vst.msk [vmem:[%s1916_s28] sm:$0xff] %vm684_vm0, %v1078_v33  ;;  %v1070_v35 = vmul.f32 %v1544_v26, %v1060_v32  ;;  %1636 = vmatpush3.bf16.msra.mxu0 %v1664_v63  ;;  %v1342_v32 = vmax.f32 %v1338_v23, 1e-05  ;;  %1681 = vlog2.f32 %v1344_v29 }
 0x4e7   : > { %v1680_v36 = vpop.eup %1679  ;;  %v1069_v37 = vmul.f32 %v1544_v26, %v1059_v34  ;;  %1683 = vlog2.f32 %v1360_v30 }
 0x4e8   : > { %v1061_v38 = vmul.f32 %v1680_v36, %v1029_v6  ;;  %v1080_v39 = vadd.f32 %v1545_v28, %v1070_v35  ;;  %1685 = vlog2.f32 %v1342_v32  ;;  %v1722_v32 = vmov 0.0  }
 0x4e9   : > { %v1079_v40 = vadd.f32 %v1545_v28, %v1069_v37 }
 0x4ea   : > { %v1071_v41 = vmul.f32 %v1544_v26, %v1061_v38  ;;  %1404 = vst.msk [vmem:[%s1916_s28 + $0x10] sm:$0xff] %vm684_vm0, %v1080_v39  ;;  %v1341_v26 = vmin.f32 %v1337_v22, 1.0 }
 0x4eb   : > { %v1082_v42 = vpack.c.bf16 %v1079_v40, %v1078_v33  ;;  %1403 = vst.msk [vmem:[%s1916_s28 + $0x8] sm:$0xff] %vm684_vm0, %v1079_v40  ;;  %v1358_v33 = vmax.f32 %v1354_v27, 1e-05 }
 0x4ec   : > { %v1081_v43 = vadd.f32 %v1545_v28, %v1071_v41  ;;  %v1339_v28 = vmin.f32 %v1335_v24, 1.0  ;;  %v1357_v31 = vsub.f32 1.0, %v1341_v26  ;;  %v1345_v35 = vmax.f32 %v1341_v26, 1e-05 }
 0x4ed   : > { %1621 = vmatprep.mubr.msk.bf16.mxu1 %vm684_vm0, %v1082_v42  ;;  %1687 = vlog2.f32 %v1358_v33 }
 0x4ee   : > { %v1083_v44 = vpack.c.bf16 %v1081_v43, %v1080_v39  ;;  %1405 = vst.msk [vmem:[%s1916_s28 + $0x18] sm:$0xff] %vm684_vm0, %v1081_v43  ;;  %v1355_v34 = vsub.f32 1.0, %v1339_v28  ;;  %v1361_v36 = vmax.f32 %v1357_v31, 1e-05  ;;  %v1343_v37 = vmax.f32 %v1339_v28, 1e-05 }
 0x4ef   : > { %1689 = vlog2.f32 %v1345_v35 }
 0x4f0   : > { %1622 = vmatmul.mubr.msk.bf16.vlgmr.msra.gmra.mxu1 %vm684_vm0, %v1083_v44  ;;  %v1359_v38 = vmax.f32 %v1355_v34, 1e-05  ;;  %1691 = vlog2.f32 %v1361_v36 }
 0x4f1   : > { %1626 = vmatpush3.bf16.msra.mxu1 %v1661_v45  ;;  %1693 = vlog2.f32 %v1343_v37 }
 0x4f2   : > { %1627 = vmatprep.subr.bf16.mxu1 %v1662_v46  ;;  %1695 = vlog2.f32 %v1359_v38 }
 0x4f3   : > { %v1682_v39 = vpop.eup %1681 }
 0x4f4   : > { %v1684_v40 = vpop.eup %1683  ;;  %v1351_v44 = vmul.f32 0.6931472, %v1682_v39 }
 0x4f5   : > { %1628 = vmatpush3.bf16.msra.mxu1 %v1662_v46  ;;  %v1686_v41 = vpop.eup %1685  ;;  %v1367_v45 = vmul.f32 0.6931472, %v1684_v40 }
 0x4fa   : > { %v1688_v42 = vpop.eup %1687 }
 0x4fc   : > { %v1690_v43 = vpop.eup %1689 }
 0x4fd   : > { %v1692_v46 = vpop.eup %1691 }
 0x5b0   : > { %v1623_v47 = vpop.f32.mrf.mxu1 }
 0x5b1   : > { %v1156_v53 = vadd.f32 %v1623_v47, %v1546_v49  ;;  %v1694_v47 = vpop.eup %1693 }
 0x5b2   : > { %v1147_v48 = vpop.f32.mrf.mxu1 }
 0x5b3   : > { %v1148_v51 = vadd.f32 %v1546_v49, %v1147_v48  ;;  %v1164_v59 = vmax.f32 %v1156_v53, 0.0  ;;  %v1347_v48 = vmul.f32 0.6931472, %v1686_v41  ;;  %v1353_v53 = vmul.f32 0.6931472, %v1690_v43 }
 0x5b4   : > { %v1624_v50 = vpop.f32.mrf.mxu1 }
 0x5b5   : > { %v1159_v52 = vadd.f32 %v1624_v50, %v1546_v49  ;;  %v1162_v57 = vmax.f32 %v1148_v51, 0.0  ;;  %v1696_v50 = vpop.eup %1695  ;;  %v1556_v51 = vld [vmem:[%s1986_s18] ss:$0 sm:$0xff] }
 0x5b6   : > { %v1150_v54 = vpop.f32.mrf.mxu1 }
 0x5b7   : > { %v1151_v55 = vadd.f32 %v1546_v49, %v1150_v54  ;;  %v1165_v56 = vmax.f32 %v1159_v52, 0.0  ;;  %v1363_v49 = vmul.f32 0.6931472, %v1688_v42  ;;  %v1372_v52 = vsub.f32 %v1351_v44, %v1367_v45 }
 0x5b8   : > { %v1369_v54 = vmul.f32 0.6931472, %v1692_v46 }
 0x5b9   : > { %v1163_v58 = vmax.f32 %v1151_v55, 0.0  ;;  %v1167_v61 = vpack.c.bf16 %v1165_v56, %v1164_v59  ;;  %v1365_v59 = vmul.f32 0.6931472, %v1696_v50 }
 0x5ba   : > { %v1373_v63 = vsub.f32 %v1353_v53, %v1369_v54 }
 0x5bb   : > { %v1166_v60 = vpack.c.bf16 %v1163_v58, %v1162_v57  ;;  %v1370_v57 = vsub.f32 %v1347_v48, %v1363_v49  ;;  %v1349_v58 = vmul.f32 0.6931472, %v1694_v47 }
 0x5bd   : > { %1629 = vmatprep.mubr.msk.bf16.mxu1 %vm684_vm0, %v1166_v60 }
 0x5be   : > { %1630 = vmatmul.mubr.msk.bf16.vlgmr.msra.gmra.mxu1 %vm684_vm0, %v1167_v61 }
 0x67e   : > { %v1631_v0 = vpop.f32.mrf.mxu1 }
 0x67f   : > { %v1240_v6 = vadd.f32 %v1631_v0, %v1551_v2 }
 0x680   : > { %v1231_v1 = vpop.f32.mrf.mxu1 }
 0x681   : > { %v1232_v4 = vadd.f32 %v1551_v2, %v1231_v1  ;;  %v1248_v12 = vmax.f32 %v1240_v6, 0.0 }
 0x682   : > { %v1632_v3 = vpop.f32.mrf.mxu1 }
 0x683   : > { %v1243_v5 = vadd.f32 %v1632_v3, %v1551_v2  ;;  %v1246_v10 = vmax.f32 %v1232_v4, 0.0  ;;  %v1371_v4 = vsub.f32 %v1349_v58, %v1365_v59 }
 0x684   : > { %v1234_v7 = vpop.f32.mrf.mxu1 }
 0x685   : > { %v1235_v8 = vadd.f32 %v1551_v2, %v1234_v7  ;;  %v1249_v9 = vmax.f32 %v1243_v5, 0.0 }
 0x687   : > { %v1247_v11 = vmax.f32 %v1235_v8, 0.0  ;;  %v1251_v14 = vpack.c.bf16 %v1249_v9, %v1248_v12 }
 0x689   : > { %v1250_v13 = vpack.c.bf16 %v1247_v11, %v1246_v10 }
 0x68b   : > { %1637 = vmatprep.mubr.msk.bf16.mxu0 %vm684_vm0, %v1250_v13 }
 0x68c   : > { %1638 = vmatmul.mubr.msk.bf16.vlgmr.msra.gmra.mxu0 %vm684_vm0, %v1251_v14 }
 0x74c   : > { %v1639_v55 = vpop.f32.mrf.mxu0 }
 0x74d   : > { %v1324_v56 = vadd.f32 %v1639_v55, %v1556_v51 }
 0x74e   : > { %v1315_v60 = vpop.f32.mrf.mxu0 }
 0x74f   : > { %v1376_v61 = vadd.f32 %v1372_v52, %v1324_v56  ;;  %v1316_v62 = vadd.f32 %v1556_v51, %v1315_v60 }
 0x750   : > { %v1640_v0 = vpop.f32.mrf.mxu0 }
 0x751   : > { %v1380_v1 = vsub.f32 0.0, %v1376_v61  ;;  %v1374_v2 = vadd.f32 %v1370_v57, %v1316_v62  ;;  %v1327_v3 = vadd.f32 %v1640_v0, %v1556_v51 }
 0x752   : > { %v1318_v5 = vpop.f32.mrf.mxu0 }
 0x753   : > { %v1386_v6 = vmul.f32 1.442695, %v1380_v1  ;;  %v1378_v7 = vsub.f32 0.0, %v1374_v2  ;;  %v1377_v8 = vadd.f32 %v1373_v63, %v1327_v3  ;;  %v1319_v9 = vadd.f32 %v1556_v51, %v1318_v5 }
 0x755   : > { %1697 = vpow2.f32 %v1386_v6  ;;  %v1382_v10 = vmul.f32 1.442695, %v1378_v7  ;;  %v1381_v11 = vsub.f32 0.0, %v1377_v8  ;;  %v1375_v12 = vadd.f32 %v1371_v4, %v1319_v9 }
 0x757   : > { %1699 = vpow2.f32 %v1382_v10  ;;  %v1388_v13 = vmul.f32 1.442695, %v1381_v11  ;;  %v1379_v14 = vsub.f32 0.0, %v1375_v12 }
 0x759   : > { %v1384_v15 = vmul.f32 1.442695, %v1379_v14  ;;  %1701 = vpow2.f32 %v1388_v13 }
 0x75b   : > { %1703 = vpow2.f32 %v1384_v15 }
 0x762   : > { %v1698_v16 = vpop.eup %1697 }
 0x763   : > { %v1392_v17 = vadd.f32 1.0, %v1698_v16 }
 0x764   : > { %v1700_v18 = vpop.eup %1699 }
 0x765   : > { %1705 = vrcp.f32 %v1392_v17  ;;  %v1390_v19 = vadd.f32 1.0, %v1700_v18 }
 0x766   : > { %v1702_v20 = vpop.eup %1701 }
 0x767   : > { %1707 = vrcp.f32 %v1390_v19  ;;  %v1393_v23 = vadd.f32 1.0, %v1702_v20 }
 0x768   : > { %v1704_v21 = vpop.eup %1703 }
 0x769   : > { %v1391_v22 = vadd.f32 1.0, %v1704_v21 }
 0x76b   : > { %1709 = vrcp.f32 %v1391_v22 }
 0x76c   : > { %1711 = vrcp.f32 %v1393_v23 }
 0x772   : > { %v1706_v24 = vpop.eup %1705 }
 0x773   : > { %1414 = vrot.lane.b32.xlu1 %v1706_v24, %s1721_s23 }
 0x774   : > { %v1708_v25 = vpop.eup %1707 }
 0x775   : > { %1410 = vrot.lane.b32.xlu0 %v1708_v25, %s1721_s23 }
 0x778   : > { %v1710_v26 = vpop.eup %1709 }
 0x779   : > { %1412 = vrot.lane.b32.xlu1 %v1710_v26, %s1721_s23  ;;  %v1712_v27 = vpop.eup %1711 }
 0x77d   : > { %1416 = vrot.lane.b32.xlu1 %v1712_v27, %s1721_s23 }
 0x7e5   : > { %v1415_v28 = vpop.permute.xlu1 %1414 }
 0x7e6   : > { %1425 = vst.msk [vmem:[%s1916_s28 + $0x10] sm:$0xff] %vm1422_vm2, %v1415_v28 }
 0x7e7   : > { %v1411_v29 = vpop.permute.xlu0 %1410  ;;  %1430 = vst.msk [vmem:[%s1916_s28 + $0x10] sm:$0xff] %vm1427_vm3, %v1722_v32 }
 0x7e8   : > { %1423 = vst.msk [vmem:[%s1916_s28] sm:$0xff] %vm1422_vm2, %v1411_v29 }
 0x7e9   : > { %1428 = vst.msk [vmem:[%s1916_s28] sm:$0xff] %vm1427_vm3, %v1722_v32 }
 0x7eb   : > { %v1413_v30 = vpop.permute.xlu1 %1412 }
 0x7ec   : > { %1424 = vst.msk [vmem:[%s1916_s28 + $0x8] sm:$0xff] %vm1422_vm2, %v1413_v30 }
 0x7ed   : > { %1429 = vst.msk [vmem:[%s1916_s28 + $0x8] sm:$0xff] %vm1427_vm3, %v1722_v32 }
 0x7ef   : > { %v1417_v31 = vpop.permute.xlu1 %1416 }
 0x7f0   : > { %1426 = vst.msk [vmem:[%s1916_s28 + $0x18] sm:$0xff] %vm1422_vm2, %v1417_v31 }
 0x7f1   : > { %1431 = vst.msk [vmem:[%s1916_s28 + $0x18] sm:$0xff] %vm1427_vm3, %v1722_v32 }
 0x7f2 PF: > { %s29_s0 = sadd.s32 1, %s1719_s0  }
 0x7f3   : > { %p26_p4 = scmp.ge.s32.totalorder %s29_s0, 4  }
 0x7f5   :  { %28 = sbr.rel (!%p26_p4) target bundleno = 5 (0x5), region = 132 }

</bundles_post_ra>
